<compile_context>
chip_gen: v7x
topology: tpu7x:2x2x1
jax: 0.10.0
libtpu: 0.0.40
codegen_flags: <defaults>
</compile_context>

<pallas_src>
import functools

import jax
import jax.numpy as jnp
from jax import lax
from jax.experimental import pallas as pl
from jax.experimental.pallas import tpu as pltpu

# Full-f32 matmuls everywhere so the Pallas kernel and the XLA reference agree
# to ~1e-5 (lets us use a tight correctness tolerance).
jax.config.update("jax_default_matmul_precision", "highest")


def _round_up(x, m):
    return (x + m - 1) // m * m


# ----------------------------------------------------------------------------
# Fully fused forward kernel
# ----------------------------------------------------------------------------
def _fused_forward_kernel(ids_ref, table_ref, *refs, seq_len, batch, k_bag,
                          vocab, hidden, num_layers):
    # refs layout:
    #   [w_ih_cat_0, b_cat_0, w_hh_bd_0, ..., w_ih_cat_{L-1}, b_cat_{L-1},
    #    w_hh_bd_{L-1}, lin_w, lin_b, out_ref, xp_scr]
    n_layer_refs = 3 * num_layers
    layer_refs = refs[:n_layer_refs]
    lin_w_ref = refs[n_layer_refs]
    lin_b_ref = refs[n_layer_refs + 1]
    out_ref = refs[n_layer_refs + 2]
    xp_scr = refs[n_layer_refs + 3]          # (T*B, 2H) swizzled x-projection

    n_rows = seq_len * batch
    two_h = 2 * hidden

    # ---- EmbeddingBag(sum): one-hot counts (VPU) + a single MXU matmul -----
    ids = ids_ref[...]                                            # (T*B, K) int32
    vocab_iota = lax.broadcasted_iota(jnp.int32, (n_rows, vocab), 1)
    counts = jnp.zeros((n_rows, vocab), jnp.float32)
    for k in range(k_bag):                                        # K small & static
        counts = counts + (ids[:, k:k + 1] == vocab_iota).astype(jnp.float32)
    act = jnp.dot(counts, table_ref[...],
                  preferred_element_type=jnp.float32)             # (T*B, E)

    # Lane mask: lanes [:H] -> forward direction, lanes [H:] -> backward.
    lane = lax.broadcasted_iota(jnp.int32, (batch, two_h), 1)
    is_fwd_lane = lane < hidden

    # ---- Bidirectional RNN(tanh) layers -------------------------------------
    for layer in range(num_layers):
        w_ih_ref, b_ref, w_hh_ref = layer_refs[3 * layer: 3 * layer + 3]

        # Hoisted input projection for BOTH directions, one lane-dense matmul;
        # combined bias (b_ih + b_hh, fwd|bwd) added exactly once.
        xp = (jnp.dot(act, w_ih_ref[...], preferred_element_type=jnp.float32)
              + b_ref[...])                                       # (T*B, 2H)

        # Swizzle (off the critical path): xp_scr[s] = [xp_f(t=s) | xp_b(t=T-1-s)]
        # so each recurrence step reads ONE full (B, 2H) row block.
        for s in range(seq_len):
            rf = s * batch
            rb = (seq_len - 1 - s) * batch
            xp_scr[rf:rf + batch, :] = jnp.where(
                is_fwd_lane, xp[rf:rf + batch, :], xp[rb:rb + batch, :])

        # Fused recurrence: combined state [h_f(s) | h_b(T-1-s)] updated with a
        # single (B,2H)@(2H,2H) block-diagonal matmul + tanh per step.
        w_hh = w_hh_ref[...]
        h = jnp.zeros((batch, two_h), jnp.float32)                # h0 == zeros
        hs = []
        for s in range(seq_len):
            r = s * batch
            h = jnp.tanh(xp_scr[r:r + batch, :]
                         + jnp.dot(h, w_hh, preferred_element_type=jnp.float32))
            hs.append(h)
        # TODO(synk): for long sequences switch to lax.fori_loop(unroll=True)
        #             with h / outputs carried through VMEM scratch.

        # De-swizzle back to time order: act(t) = [ h_f(t) | h_b(t) ]   (lane select)
        rows = [jnp.where(is_fwd_lane, hs[t], hs[seq_len - 1 - t])
                for t in range(seq_len)]
        act = jnp.concatenate(rows, axis=0)                       # (T*B, 2H)
        # TODO(synk): nn.RNN inter-layer dropout is identity here (eval mode).

    # ---- Final Linear into a lane-dense (128-padded) output slab ------------
    out_ref[...] = (jnp.dot(act, lin_w_ref[...],
                            preferred_element_type=jnp.float32)
                    + lin_b_ref[...])


def _fused_forward(ids, fused, *, seq_len, batch, k_bag, hidden, num_layers):
    vocab, _ = fused["embedding"].shape
    n_rows = seq_len * batch
    out_pad = fused["linear_w"].shape[1]

    kernel = functools.partial(
        _fused_forward_kernel, seq_len=seq_len, batch=batch, k_bag=k_bag,
        vocab=vocab, hidden=hidden, num_layers=num_layers)

    flat_inputs = [ids, fused["embedding"]]
    for lp in fused["layers"]:
        flat_inputs += [lp["w_ih"], lp["b"], lp["w_hh"]]
    flat_inputs += [fused["linear_w"], fused["linear_b"]]

    return pl.pallas_call(
        kernel,
        out_shape=jax.ShapeDtypeStruct((n_rows, out_pad), jnp.float32),
        in_specs=[pl.BlockSpec(memory_space=pltpu.MemorySpace.VMEM)
                  for _ in flat_inputs],
        out_specs=pl.BlockSpec(memory_space=pltpu.MemorySpace.VMEM),
        scratch_shapes=[pltpu.VMEM((n_rows, 2 * hidden), jnp.float32)],
    )(*flat_inputs)


# ----------------------------------------------------------------------------
# Parameters
# ----------------------------------------------------------------------------
def init_params(key, vocab_size, embedding_size, hidden_dim, output_size, num_layers):
    n_keys = 1 + num_layers * 2 * 4 + 2
    keys = iter(jax.random.split(key, n_keys))
    k = 1.0 / jnp.sqrt(jnp.float32(hidden_dim))

    params = {
        "embedding": jax.random.normal(
            next(keys), (vocab_size, embedding_size), jnp.float32),
    }
    rnn_layers = []
    for layer in range(num_layers):
        in_dim = embedding_size if layer == 0 else 2 * hidden_dim
        layer_p = {}
        for direction in ("fwd", "bwd"):
            w_ih = jax.random.uniform(next(keys), (in_dim, hidden_dim), jnp.float32, -k, k)
            w_hh = jax.random.uniform(next(keys), (hidden_dim, hidden_dim), jnp.float32, -k, k)
            b_ih = jax.random.uniform(next(keys), (1, hidden_dim), jnp.float32, -k, k)
            b_hh = jax.random.uniform(next(keys), (1, hidden_dim), jnp.float32, -k, k)
            layer_p[direction] = {"w_ih": w_ih, "w_hh": w_hh, "b": b_ih + b_hh}
        rnn_layers.append(layer_p)
    params["rnn"] = rnn_layers

    kl = 1.0 / jnp.sqrt(jnp.float32(2 * hidden_dim))
    params["linear_w"] = jax.random.uniform(
        next(keys), (2 * hidden_dim, output_size), jnp.float32, -kl, kl)
    params["linear_b"] = jax.random.uniform(
        next(keys), (1, output_size), jnp.float32, -kl, kl)
    return params


def fuse_params(params, hidden_dim):
    """One-time (outside jit) repack for the fused kernel:
    concat W_ih fwd|bwd, block-diagonal W_hh, 128-lane-pad the final Linear."""
    two_h = 2 * hidden_dim
    layers = []
    for lp in params["rnn"]:
        f, b = lp["fwd"], lp["bwd"]
        w_ih = jnp.concatenate([f["w_ih"], b["w_ih"]], axis=1)        # (in, 2H)
        bias = jnp.concatenate([f["b"], b["b"]], axis=1)              # (1, 2H)
        w_hh = jnp.zeros((two_h, two_h), jnp.float32)
        w_hh = w_hh.at[:hidden_dim, :hidden_dim].set(f["w_hh"])
        w_hh = w_hh.at[hidden_dim:, hidden_dim:].set(b["w_hh"])
        layers.append({"w_ih": w_ih, "b": bias, "w_hh": w_hh})

    out_size = params["linear_w"].shape[1]
    out_pad = _round_up(out_size, 128)
    return {
        "embedding": params["embedding"],
        "layers": layers,
        "linear_w": jnp.pad(params["linear_w"], ((0, 0), (0, out_pad - out_size))),
        "linear_b": jnp.pad(params["linear_b"], ((0, 0), (0, out_pad - out_size))),
    }


# ----------------------------------------------------------------------------
# Forward wrapper
# ----------------------------------------------------------------------------
@functools.partial(jax.jit,
                   static_argnames=("num_layers", "hidden_dim", "output_size"))
def my_classifier3a_forward(x, fused_params, *, num_layers, hidden_dim, output_size):
    # x: (B, T, K) int token ids
    bsz, seq_len, k_bag = x.shape
    # Only the tiny int32 id tensor is relaid out; float activations stay
    # time-major (T*B, F) inside the single fused kernel.
    ids = x.astype(jnp.int32).transpose(1, 0, 2).reshape(seq_len * bsz, k_bag)

    out = _fused_forward(ids, fused_params, seq_len=seq_len, batch=bsz,
                         k_bag=k_bag, hidden=hidden_dim, num_layers=num_layers)
    out = out.reshape(seq_len, bsz, -1)[:, :, :output_size]      # (T, B, O)
    return out.transpose(1, 0, 2)                                # (B, T, O)


# ----------------------------------------------------------------------------
# Pure-JAX reference (eval mode) for the correctness check
# ----------------------------------------------------------------------------
def _reference_forward(x, params, num_layers, hidden_dim):
    emb = jnp.sum(params["embedding"][x], axis=2)        # (B, T, E)
    seq = emb.transpose(1, 0, 2)                         # (T, B, E)
    for layer in range(num_layers):
        outs = []
        for direction, rev in (("fwd", False), ("bwd", True)):
            p = params["rnn"][layer][direction]
            xs = seq[::-1] if rev else seq

            def step(h, xt, p=p):
                h = jnp.tanh(xt @ p["w_ih"] + h @ p["w_hh"] + p["b"][0])
                return h, h

            h0 = jnp.zeros((seq.shape[1], hidden_dim), jnp.float32)
            _, ys = lax.scan(step, h0, xs)
            outs.append(ys[::-1] if rev else ys)
        seq = jnp.concatenate(outs, axis=-1)
    out = seq @ params["linear_w"] + params["linear_b"][0]
    return out.transpose(1, 0, 2)


# ----------------------------------------------------------------------------
if __name__ == "__main__":
    # Small but TPU-layout-friendly shapes (B = 8 sublanes, E = 2H = 128 lanes).
    B, T, K = 8, 8, 4          # batch, sequence length, bag size per position
    VOCAB = 32                 # input_size
    EMB = 128                  # embedding_size
    HID = 64                   # hidden_dim (2H = 128 -> lane-dense everywhere)
    OUT = 5                    # output_size
    NUM_LAYERS = 2

    key = jax.random.PRNGKey(0)
    k_x, k_p = jax.random.split(key)
    x = jax.random.randint(k_x, (B, T, K), 0, VOCAB, dtype=jnp.int32)
    params = init_params(k_p, VOCAB, EMB, HID, OUT, NUM_LAYERS)
    fused = fuse_params(params, HID)           # one-time repack, outside jit

    y = my_classifier3a_forward(x, fused, num_layers=NUM_LAYERS,
                                hidden_dim=HID, output_size=OUT)
    y = jax.block_until_ready(y)

    assert y.shape == (B, T, OUT), y.shape
    assert y.dtype == jnp.float32
    assert bool(jnp.all(jnp.isfinite(y)))

    y_ref = _reference_forward(x, params, NUM_LAYERS, HID)
    max_err = float(jnp.max(jnp.abs(y - y_ref)))
    # All-f32 pipeline (matmul precision pinned to highest): typical error ~1e-5.
    assert max_err < 2e-4, f"max abs error vs reference: {max_err}"

    print("KERNEL_OK")
</pallas_src>

<mosaic_0001>
module attributes {stable_mosaic.version = 11 : i64} {
  func.func @_fused_forward_kernel(%arg0: memref<64x4xi32, #tpu.memory_space<vmem>>, %arg1: memref<32x128xf32, #tpu.memory_space<vmem>>, %arg2: memref<128x128xf32, #tpu.memory_space<vmem>>, %arg3: memref<1x128xf32, #tpu.memory_space<vmem>>, %arg4: memref<128x128xf32, #tpu.memory_space<vmem>>, %arg5: memref<128x128xf32, #tpu.memory_space<vmem>>, %arg6: memref<1x128xf32, #tpu.memory_space<vmem>>, %arg7: memref<128x128xf32, #tpu.memory_space<vmem>>, %arg8: memref<128x128xf32, #tpu.memory_space<vmem>>, %arg9: memref<1x128xf32, #tpu.memory_space<vmem>>, %arg10: memref<64x128xf32, #tpu.memory_space<vmem>>, %arg11: memref<64x128xf32, #tpu.memory_space<vmem>>) attributes {dimension_semantics = [], scalar_prefetch = 0 : i64, scratch_operands = 1 : i64, tpu.core_type = #tpu.core_type<tc>} {
    %c0 = arith.constant 0 : index
    %c0_0 = arith.constant 0 : index
    %0 = vector.load %arg0[%c0, %c0_0] : memref<64x4xi32, #tpu.memory_space<vmem>>, vector<64x4xi32>
    %1 = tpu.iota {dimensions = array<i32: 1>} : vector<64x32xi32>
    %cst = arith.constant 0.000000e+00 : f32
    %2 = vector.broadcast %cst : f32 to vector<64x32xf32>
    %3 = vector.extract_strided_slice %0 {offsets = [0, 0], sizes = [64, 1], strides = [1, 1]} : vector<64x4xi32> to vector<64x1xi32>
    %4 = vector.broadcast %3 : vector<64x1xi32> to vector<64x32xi32>
    %5 = arith.cmpi eq, %4, %1 : vector<64x32xi32>
    %6 = arith.extui %5 : vector<64x32xi1> to vector<64x32xi32>
    %7 = arith.sitofp %6 : vector<64x32xi32> to vector<64x32xf32>
    %8 = arith.addf %2, %7 : vector<64x32xf32>
    %9 = vector.extract_strided_slice %0 {offsets = [0, 1], sizes = [64, 1], strides = [1, 1]} : vector<64x4xi32> to vector<64x1xi32>
    %10 = vector.broadcast %9 : vector<64x1xi32> to vector<64x32xi32>
    %11 = arith.cmpi eq, %10, %1 : vector<64x32xi32>
    %12 = arith.extui %11 : vector<64x32xi1> to vector<64x32xi32>
    %13 = arith.sitofp %12 : vector<64x32xi32> to vector<64x32xf32>
    %14 = arith.addf %8, %13 : vector<64x32xf32>
    %15 = vector.extract_strided_slice %0 {offsets = [0, 2], sizes = [64, 1], strides = [1, 1]} : vector<64x4xi32> to vector<64x1xi32>
    %16 = vector.broadcast %15 : vector<64x1xi32> to vector<64x32xi32>
    %17 = arith.cmpi eq, %16, %1 : vector<64x32xi32>
    %18 = arith.extui %17 : vector<64x32xi1> to vector<64x32xi32>
    %19 = arith.sitofp %18 : vector<64x32xi32> to vector<64x32xf32>
    %20 = arith.addf %14, %19 : vector<64x32xf32>
    %21 = vector.extract_strided_slice %0 {offsets = [0, 3], sizes = [64, 1], strides = [1, 1]} : vector<64x4xi32> to vector<64x1xi32>
    %22 = vector.broadcast %21 : vector<64x1xi32> to vector<64x32xi32>
    %23 = arith.cmpi eq, %22, %1 : vector<64x32xi32>
    %24 = arith.extui %23 : vector<64x32xi1> to vector<64x32xi32>
    %25 = arith.sitofp %24 : vector<64x32xi32> to vector<64x32xf32>
    %26 = arith.addf %20, %25 : vector<64x32xf32>
    %c0_1 = arith.constant 0 : index
    %c0_2 = arith.constant 0 : index
    %27 = vector.load %arg1[%c0_1, %c0_2] : memref<32x128xf32, #tpu.memory_space<vmem>>, vector<32x128xf32>
    %cst_3 = arith.constant dense<0.000000e+00> : vector<64x128xf32>
    %28 = tpu.matmul %26, %27, %cst_3 {dimension_numbers = #tpu.dot_dimension_numbers<[1], [0], [0], [1], [0, 0, 1, 1], [], []>, precision = #tpu.contract_precision<fp32>} : vector<64x32xf32>, vector<32x128xf32>, vector<64x128xf32> -> vector<64x128xf32>
    %29 = tpu.iota {dimensions = array<i32: 1>} : vector<8x128xi32>
    %c64_i32 = arith.constant 64 : i32
    %30 = vector.broadcast %c64_i32 : i32 to vector<8x128xi32>
    %31 = arith.cmpi slt, %29, %30 : vector<8x128xi32>
    %c0_4 = arith.constant 0 : index
    %c0_5 = arith.constant 0 : index
    %32 = vector.load %arg2[%c0_4, %c0_5] : memref<128x128xf32, #tpu.memory_space<vmem>>, vector<128x128xf32>
    %cst_6 = arith.constant dense<0.000000e+00> : vector<64x128xf32>
    %33 = tpu.matmul %28, %32, %cst_6 {dimension_numbers = #tpu.dot_dimension_numbers<[1], [0], [0], [1], [0, 0, 1, 1], [], []>, precision = #tpu.contract_precision<fp32>} : vector<64x128xf32>, vector<128x128xf32>, vector<64x128xf32> -> vector<64x128xf32>
    %c0_7 = arith.constant 0 : index
    %c0_8 = arith.constant 0 : index
    %34 = vector.load %arg3[%c0_7, %c0_8] : memref<1x128xf32, #tpu.memory_space<vmem>>, vector<1x128xf32>
    %35 = vector.broadcast %34 : vector<1x128xf32> to vector<64x128xf32>
    %36 = arith.addf %33, %35 : vector<64x128xf32>
    %37 = vector.extract_strided_slice %36 {offsets = [0, 0], sizes = [8, 128], strides = [1, 1]} : vector<64x128xf32> to vector<8x128xf32>
    %38 = vector.extract_strided_slice %36 {offsets = [56, 0], sizes = [8, 128], strides = [1, 1]} : vector<64x128xf32> to vector<8x128xf32>
    %39 = arith.select %31, %37, %38 : vector<8x128xi1>, vector<8x128xf32>
    %c0_9 = arith.constant 0 : index
    %c0_10 = arith.constant 0 : index
    %40 = vector.load %arg11[%c0_9, %c0_10] : memref<64x128xf32, #tpu.memory_space<vmem>>, vector<8x128xf32>
    tpu.vector_store %arg11[%c0_9, %c0_10], %39 {strides = array<i32>} : memref<64x128xf32, #tpu.memory_space<vmem>>, vector<8x128xf32>,
    %41 = vector.extract_strided_slice %36 {offsets = [8, 0], sizes = [8, 128], strides = [1, 1]} : vector<64x128xf32> to vector<8x128xf32>
    %42 = vector.extract_strided_slice %36 {offsets = [48, 0], sizes = [8, 128], strides = [1, 1]} : vector<64x128xf32> to vector<8x128xf32>
    %43 = arith.select %31, %41, %42 : vector<8x128xi1>, vector<8x128xf32>
    %c8 = arith.constant 8 : index
    %c0_11 = arith.constant 0 : index
    %44 = vector.load %arg11[%c8, %c0_11] : memref<64x128xf32, #tpu.memory_space<vmem>>, vector<8x128xf32>
    tpu.vector_store %arg11[%c8, %c0_11], %43 {strides = array<i32>} : memref<64x128xf32, #tpu.memory_space<vmem>>, vector<8x128xf32>,
    %45 = vector.extract_strided_slice %36 {offsets = [16, 0], sizes = [8, 128], strides = [1, 1]} : vector<64x128xf32> to vector<8x128xf32>
    %46 = vector.extract_strided_slice %36 {offsets = [40, 0], sizes = [8, 128], strides = [1, 1]} : vector<64x128xf32> to vector<8x128xf32>
    %47 = arith.select %31, %45, %46 : vector<8x128xi1>, vector<8x128xf32>
    %c16 = arith.constant 16 : index
    %c0_12 = arith.constant 0 : index
    %48 = vector.load %arg11[%c16, %c0_12] : memref<64x128xf32, #tpu.memory_space<vmem>>, vector<8x128xf32>
    tpu.vector_store %arg11[%c16, %c0_12], %47 {strides = array<i32>} : memref<64x128xf32, #tpu.memory_space<vmem>>, vector<8x128xf32>,
    %49 = vector.extract_strided_slice %36 {offsets = [24, 0], sizes = [8, 128], strides = [1, 1]} : vector<64x128xf32> to vector<8x128xf32>
    %50 = vector.extract_strided_slice %36 {offsets = [32, 0], sizes = [8, 128], strides = [1, 1]} : vector<64x128xf32> to vector<8x128xf32>
    %51 = arith.select %31, %49, %50 : vector<8x128xi1>, vector<8x128xf32>
    %c24 = arith.constant 24 : index
    %c0_13 = arith.constant 0 : index
    %52 = vector.load %arg11[%c24, %c0_13] : memref<64x128xf32, #tpu.memory_space<vmem>>, vector<8x128xf32>
    tpu.vector_store %arg11[%c24, %c0_13], %51 {strides = array<i32>} : memref<64x128xf32, #tpu.memory_space<vmem>>, vector<8x128xf32>,
    %53 = vector.extract_strided_slice %36 {offsets = [32, 0], sizes = [8, 128], strides = [1, 1]} : vector<64x128xf32> to vector<8x128xf32>
    %54 = vector.extract_strided_slice %36 {offsets = [24, 0], sizes = [8, 128], strides = [1, 1]} : vector<64x128xf32> to vector<8x128xf32>
    %55 = arith.select %31, %53, %54 : vector<8x128xi1>, vector<8x128xf32>
    %c32 = arith.constant 32 : index
    %c0_14 = arith.constant 0 : index
    %56 = vector.load %arg11[%c32, %c0_14] : memref<64x128xf32, #tpu.memory_space<vmem>>, vector<8x128xf32>
    tpu.vector_store %arg11[%c32, %c0_14], %55 {strides = array<i32>} : memref<64x128xf32, #tpu.memory_space<vmem>>, vector<8x128xf32>,
    %57 = vector.extract_strided_slice %36 {offsets = [40, 0], sizes = [8, 128], strides = [1, 1]} : vector<64x128xf32> to vector<8x128xf32>
    %58 = vector.extract_strided_slice %36 {offsets = [16, 0], sizes = [8, 128], strides = [1, 1]} : vector<64x128xf32> to vector<8x128xf32>
    %59 = arith.select %31, %57, %58 : vector<8x128xi1>, vector<8x128xf32>
    %c40 = arith.constant 40 : index
    %c0_15 = arith.constant 0 : index
    %60 = vector.load %arg11[%c40, %c0_15] : memref<64x128xf32, #tpu.memory_space<vmem>>, vector<8x128xf32>
    tpu.vector_store %arg11[%c40, %c0_15], %59 {strides = array<i32>} : memref<64x128xf32, #tpu.memory_space<vmem>>, vector<8x128xf32>,
    %61 = vector.extract_strided_slice %36 {offsets = [48, 0], sizes = [8, 128], strides = [1, 1]} : vector<64x128xf32> to vector<8x128xf32>
    %62 = vector.extract_strided_slice %36 {offsets = [8, 0], sizes = [8, 128], strides = [1, 1]} : vector<64x128xf32> to vector<8x128xf32>
    %63 = arith.select %31, %61, %62 : vector<8x128xi1>, vector<8x128xf32>
    %c48 = arith.constant 48 : index
    %c0_16 = arith.constant 0 : index
    %64 = vector.load %arg11[%c48, %c0_16] : memref<64x128xf32, #tpu.memory_space<vmem>>, vector<8x128xf32>
    tpu.vector_store %arg11[%c48, %c0_16], %63 {strides = array<i32>} : memref<64x128xf32, #tpu.memory_space<vmem>>, vector<8x128xf32>,
    %65 = vector.extract_strided_slice %36 {offsets = [56, 0], sizes = [8, 128], strides = [1, 1]} : vector<64x128xf32> to vector<8x128xf32>
    %66 = vector.extract_strided_slice %36 {offsets = [0, 0], sizes = [8, 128], strides = [1, 1]} : vector<64x128xf32> to vector<8x128xf32>
    %67 = arith.select %31, %65, %66 : vector<8x128xi1>, vector<8x128xf32>
    %c56 = arith.constant 56 : index
    %c0_17 = arith.constant 0 : index
    %68 = vector.load %arg11[%c56, %c0_17] : memref<64x128xf32, #tpu.memory_space<vmem>>, vector<8x128xf32>
    tpu.vector_store %arg11[%c56, %c0_17], %67 {strides = array<i32>} : memref<64x128xf32, #tpu.memory_space<vmem>>, vector<8x128xf32>,
    %c0_18 = arith.constant 0 : index
    %c0_19 = arith.constant 0 : index
    %69 = vector.load %arg4[%c0_18, %c0_19] : memref<128x128xf32, #tpu.memory_space<vmem>>, vector<128x128xf32>
    %cst_20 = arith.constant 0.000000e+00 : f32
    %70 = vector.broadcast %cst_20 : f32 to vector<8x128xf32>
    %c0_21 = arith.constant 0 : index
    %c0_22 = arith.constant 0 : index
    %71 = vector.load %arg11[%c0_21, %c0_22] : memref<64x128xf32, #tpu.memory_space<vmem>>, vector<8x128xf32>
    %cst_23 = arith.constant dense<0.000000e+00> : vector<8x128xf32>
    %72 = tpu.matmul %70, %69, %cst_23 {dimension_numbers = #tpu.dot_dimension_numbers<[1], [0], [0], [1], [0, 0, 1, 1], [], []>, precision = #tpu.contract_precision<fp32>} : vector<8x128xf32>, vector<128x128xf32>, vector<8x128xf32> -> vector<8x128xf32>
    %73 = arith.addf %71, %72 : vector<8x128xf32>
    %74 = math.tanh %73 : vector<8x128xf32>
    %c8_24 = arith.constant 8 : index
    %c0_25 = arith.constant 0 : index
    %75 = vector.load %arg11[%c8_24, %c0_25] : memref<64x128xf32, #tpu.memory_space<vmem>>, vector<8x128xf32>
    %cst_26 = arith.constant dense<0.000000e+00> : vector<8x128xf32>
    %76 = tpu.matmul %74, %69, %cst_26 {dimension_numbers = #tpu.dot_dimension_numbers<[1], [0], [0], [1], [0, 0, 1, 1], [], []>, precision = #tpu.contract_precision<fp32>} : vector<8x128xf32>, vector<128x128xf32>, vector<8x128xf32> -> vector<8x128xf32>
    %77 = arith.addf %75, %76 : vector<8x128xf32>
    %78 = math.tanh %77 : vector<8x128xf32>
    %c16_27 = arith.constant 16 : index
    %c0_28 = arith.constant 0 : index
    %79 = vector.load %arg11[%c16_27, %c0_28] : memref<64x128xf32, #tpu.memory_space<vmem>>, vector<8x128xf32>
    %cst_29 = arith.constant dense<0.000000e+00> : vector<8x128xf32>
    %80 = tpu.matmul %78, %69, %cst_29 {dimension_numbers = #tpu.dot_dimension_numbers<[1], [0], [0], [1], [0, 0, 1, 1], [], []>, precision = #tpu.contract_precision<fp32>} : vector<8x128xf32>, vector<128x128xf32>, vector<8x128xf32> -> vector<8x128xf32>
    %81 = arith.addf %79, %80 : vector<8x128xf32>
    %82 = math.tanh %81 : vector<8x128xf32>
    %c24_30 = arith.constant 24 : index
    %c0_31 = arith.constant 0 : index
    %83 = vector.load %arg11[%c24_30, %c0_31] : memref<64x128xf32, #tpu.memory_space<vmem>>, vector<8x128xf32>
    %cst_32 = arith.constant dense<0.000000e+00> : vector<8x128xf32>
    %84 = tpu.matmul %82, %69, %cst_32 {dimension_numbers = #tpu.dot_dimension_numbers<[1], [0], [0], [1], [0, 0, 1, 1], [], []>, precision = #tpu.contract_precision<fp32>} : vector<8x128xf32>, vector<128x128xf32>, vector<8x128xf32> -> vector<8x128xf32>
    %85 = arith.addf %83, %84 : vector<8x128xf32>
    %86 = math.tanh %85 : vector<8x128xf32>
    %c32_33 = arith.constant 32 : index
    %c0_34 = arith.constant 0 : index
    %87 = vector.load %arg11[%c32_33, %c0_34] : memref<64x128xf32, #tpu.memory_space<vmem>>, vector<8x128xf32>
    %cst_35 = arith.constant dense<0.000000e+00> : vector<8x128xf32>
    %88 = tpu.matmul %86, %69, %cst_35 {dimension_numbers = #tpu.dot_dimension_numbers<[1], [0], [0], [1], [0, 0, 1, 1], [], []>, precision = #tpu.contract_precision<fp32>} : vector<8x128xf32>, vector<128x128xf32>, vector<8x128xf32> -> vector<8x128xf32>
    %89 = arith.addf %87, %88 : vector<8x128xf32>
    %90 = math.tanh %89 : vector<8x128xf32>
    %c40_36 = arith.constant 40 : index
    %c0_37 = arith.constant 0 : index
    %91 = vector.load %arg11[%c40_36, %c0_37] : memref<64x128xf32, #tpu.memory_space<vmem>>, vector<8x128xf32>
    %cst_38 = arith.constant dense<0.000000e+00> : vector<8x128xf32>
    %92 = tpu.matmul %90, %69, %cst_38 {dimension_numbers = #tpu.dot_dimension_numbers<[1], [0], [0], [1], [0, 0, 1, 1], [], []>, precision = #tpu.contract_precision<fp32>} : vector<8x128xf32>, vector<128x128xf32>, vector<8x128xf32> -> vector<8x128xf32>
    %93 = arith.addf %91, %92 : vector<8x128xf32>
    %94 = math.tanh %93 : vector<8x128xf32>
    %c48_39 = arith.constant 48 : index
    %c0_40 = arith.constant 0 : index
    %95 = vector.load %arg11[%c48_39, %c0_40] : memref<64x128xf32, #tpu.memory_space<vmem>>, vector<8x128xf32>
    %cst_41 = arith.constant dense<0.000000e+00> : vector<8x128xf32>
    %96 = tpu.matmul %94, %69, %cst_41 {dimension_numbers = #tpu.dot_dimension_numbers<[1], [0], [0], [1], [0, 0, 1, 1], [], []>, precision = #tpu.contract_precision<fp32>} : vector<8x128xf32>, vector<128x128xf32>, vector<8x128xf32> -> vector<8x128xf32>
    %97 = arith.addf %95, %96 : vector<8x128xf32>
    %98 = math.tanh %97 : vector<8x128xf32>
    %c56_42 = arith.constant 56 : index
    %c0_43 = arith.constant 0 : index
    %99 = vector.load %arg11[%c56_42, %c0_43] : memref<64x128xf32, #tpu.memory_space<vmem>>, vector<8x128xf32>
    %cst_44 = arith.constant dense<0.000000e+00> : vector<8x128xf32>
    %100 = tpu.matmul %98, %69, %cst_44 {dimension_numbers = #tpu.dot_dimension_numbers<[1], [0], [0], [1], [0, 0, 1, 1], [], []>, precision = #tpu.contract_precision<fp32>} : vector<8x128xf32>, vector<128x128xf32>, vector<8x128xf32> -> vector<8x128xf32>
    %101 = arith.addf %99, %100 : vector<8x128xf32>
    %102 = math.tanh %101 : vector<8x128xf32>
    %103 = arith.select %31, %74, %102 : vector<8x128xi1>, vector<8x128xf32>
    %104 = arith.select %31, %78, %98 : vector<8x128xi1>, vector<8x128xf32>
    %105 = arith.select %31, %82, %94 : vector<8x128xi1>, vector<8x128xf32>
    %106 = arith.select %31, %86, %90 : vector<8x128xi1>, vector<8x128xf32>
    %107 = arith.select %31, %90, %86 : vector<8x128xi1>, vector<8x128xf32>
    %108 = arith.select %31, %94, %82 : vector<8x128xi1>, vector<8x128xf32>
    %109 = arith.select %31, %98, %78 : vector<8x128xi1>, vector<8x128xf32>
    %110 = arith.select %31, %102, %74 : vector<8x128xi1>, vector<8x128xf32>
    %111 = tpu.concatenate %103, %104, %105, %106, %107, %108, %109, %110 in 0 : vector<8x128xf32>, vector<8x128xf32>, vector<8x128xf32>, vector<8x128xf32>, vector<8x128xf32>, vector<8x128xf32>, vector<8x128xf32>, vector<8x128xf32> -> vector<64x128xf32>
    %c0_45 = arith.constant 0 : index
    %c0_46 = arith.constant 0 : index
    %112 = vector.load %arg5[%c0_45, %c0_46] : memref<128x128xf32, #tpu.memory_space<vmem>>, vector<128x128xf32>
    %cst_47 = arith.constant dense<0.000000e+00> : vector<64x128xf32>
    %113 = tpu.matmul %111, %112, %cst_47 {dimension_numbers = #tpu.dot_dimension_numbers<[1], [0], [0], [1], [0, 0, 1, 1], [], []>, precision = #tpu.contract_precision<fp32>} : vector<64x128xf32>, vector<128x128xf32>, vector<64x128xf32> -> vector<64x128xf32>
    %c0_48 = arith.constant 0 : index
    %c0_49 = arith.constant 0 : index
    %114 = vector.load %arg6[%c0_48, %c0_49] : memref<1x128xf32, #tpu.memory_space<vmem>>, vector<1x128xf32>
    %115 = vector.broadcast %114 : vector<1x128xf32> to vector<64x128xf32>
    %116 = arith.addf %113, %115 : vector<64x128xf32>
    %117 = vector.extract_strided_slice %116 {offsets = [0, 0], sizes = [8, 128], strides = [1, 1]} : vector<64x128xf32> to vector<8x128xf32>
    %118 = vector.extract_strided_slice %116 {offsets = [56, 0], sizes = [8, 128], strides = [1, 1]} : vector<64x128xf32> to vector<8x128xf32>
    %119 = arith.select %31, %117, %118 : vector<8x128xi1>, vector<8x128xf32>
    %c0_50 = arith.constant 0 : index
    %c0_51 = arith.constant 0 : index
    %120 = vector.load %arg11[%c0_50, %c0_51] : memref<64x128xf32, #tpu.memory_space<vmem>>, vector<8x128xf32>
    tpu.vector_store %arg11[%c0_50, %c0_51], %119 {strides = array<i32>} : memref<64x128xf32, #tpu.memory_space<vmem>>, vector<8x128xf32>,
    %121 = vector.extract_strided_slice %116 {offsets = [8, 0], sizes = [8, 128], strides = [1, 1]} : vector<64x128xf32> to vector<8x128xf32>
    %122 = vector.extract_strided_slice %116 {offsets = [48, 0], sizes = [8, 128], strides = [1, 1]} : vector<64x128xf32> to vector<8x128xf32>
    %123 = arith.select %31, %121, %122 : vector<8x128xi1>, vector<8x128xf32>
    %c8_52 = arith.constant 8 : index
    %c0_53 = arith.constant 0 : index
    %124 = vector.load %arg11[%c8_52, %c0_53] : memref<64x128xf32, #tpu.memory_space<vmem>>, vector<8x128xf32>
    tpu.vector_store %arg11[%c8_52, %c0_53], %123 {strides = array<i32>} : memref<64x128xf32, #tpu.memory_space<vmem>>, vector<8x128xf32>,
    %125 = vector.extract_strided_slice %116 {offsets = [16, 0], sizes = [8, 128], strides = [1, 1]} : vector<64x128xf32> to vector<8x128xf32>
    %126 = vector.extract_strided_slice %116 {offsets = [40, 0], sizes = [8, 128], strides = [1, 1]} : vector<64x128xf32> to vector<8x128xf32>
    %127 = arith.select %31, %125, %126 : vector<8x128xi1>, vector<8x128xf32>
    %c16_54 = arith.constant 16 : index
    %c0_55 = arith.constant 0 : index
    %128 = vector.load %arg11[%c16_54, %c0_55] : memref<64x128xf32, #tpu.memory_space<vmem>>, vector<8x128xf32>
    tpu.vector_store %arg11[%c16_54, %c0_55], %127 {strides = array<i32>} : memref<64x128xf32, #tpu.memory_space<vmem>>, vector<8x128xf32>,
    %129 = vector.extract_strided_slice %116 {offsets = [24, 0], sizes = [8, 128], strides = [1, 1]} : vector<64x128xf32> to vector<8x128xf32>
    %130 = vector.extract_strided_slice %116 {offsets = [32, 0], sizes = [8, 128], strides = [1, 1]} : vector<64x128xf32> to vector<8x128xf32>
    %131 = arith.select %31, %129, %130 : vector<8x128xi1>, vector<8x128xf32>
    %c24_56 = arith.constant 24 : index
    %c0_57 = arith.constant 0 : index
    %132 = vector.load %arg11[%c24_56, %c0_57] : memref<64x128xf32, #tpu.memory_space<vmem>>, vector<8x128xf32>
    tpu.vector_store %arg11[%c24_56, %c0_57], %131 {strides = array<i32>} : memref<64x128xf32, #tpu.memory_space<vmem>>, vector<8x128xf32>,
    %133 = vector.extract_strided_slice %116 {offsets = [32, 0], sizes = [8, 128], strides = [1, 1]} : vector<64x128xf32> to vector<8x128xf32>
    %134 = vector.extract_strided_slice %116 {offsets = [24, 0], sizes = [8, 128], strides = [1, 1]} : vector<64x128xf32> to vector<8x128xf32>
    %135 = arith.select %31, %133, %134 : vector<8x128xi1>, vector<8x128xf32>
    %c32_58 = arith.constant 32 : index
    %c0_59 = arith.constant 0 : index
    %136 = vector.load %arg11[%c32_58, %c0_59] : memref<64x128xf32, #tpu.memory_space<vmem>>, vector<8x128xf32>
    tpu.vector_store %arg11[%c32_58, %c0_59], %135 {strides = array<i32>} : memref<64x128xf32, #tpu.memory_space<vmem>>, vector<8x128xf32>,
    %137 = vector.extract_strided_slice %116 {offsets = [40, 0], sizes = [8, 128], strides = [1, 1]} : vector<64x128xf32> to vector<8x128xf32>
    %138 = vector.extract_strided_slice %116 {offsets = [16, 0], sizes = [8, 128], strides = [1, 1]} : vector<64x128xf32> to vector<8x128xf32>
    %139 = arith.select %31, %137, %138 : vector<8x128xi1>, vector<8x128xf32>
    %c40_60 = arith.constant 40 : index
    %c0_61 = arith.constant 0 : index
    %140 = vector.load %arg11[%c40_60, %c0_61] : memref<64x128xf32, #tpu.memory_space<vmem>>, vector<8x128xf32>
    tpu.vector_store %arg11[%c40_60, %c0_61], %139 {strides = array<i32>} : memref<64x128xf32, #tpu.memory_space<vmem>>, vector<8x128xf32>,
    %141 = vector.extract_strided_slice %116 {offsets = [48, 0], sizes = [8, 128], strides = [1, 1]} : vector<64x128xf32> to vector<8x128xf32>
    %142 = vector.extract_strided_slice %116 {offsets = [8, 0], sizes = [8, 128], strides = [1, 1]} : vector<64x128xf32> to vector<8x128xf32>
    %143 = arith.select %31, %141, %142 : vector<8x128xi1>, vector<8x128xf32>
    %c48_62 = arith.constant 48 : index
    %c0_63 = arith.constant 0 : index
    %144 = vector.load %arg11[%c48_62, %c0_63] : memref<64x128xf32, #tpu.memory_space<vmem>>, vector<8x128xf32>
    tpu.vector_store %arg11[%c48_62, %c0_63], %143 {strides = array<i32>} : memref<64x128xf32, #tpu.memory_space<vmem>>, vector<8x128xf32>,
    %145 = vector.extract_strided_slice %116 {offsets = [56, 0], sizes = [8, 128], strides = [1, 1]} : vector<64x128xf32> to vector<8x128xf32>
    %146 = vector.extract_strided_slice %116 {offsets = [0, 0], sizes = [8, 128], strides = [1, 1]} : vector<64x128xf32> to vector<8x128xf32>
    %147 = arith.select %31, %145, %146 : vector<8x128xi1>, vector<8x128xf32>
    %c56_64 = arith.constant 56 : index
    %c0_65 = arith.constant 0 : index
    %148 = vector.load %arg11[%c56_64, %c0_65] : memref<64x128xf32, #tpu.memory_space<vmem>>, vector<8x128xf32>
    tpu.vector_store %arg11[%c56_64, %c0_65], %147 {strides = array<i32>} : memref<64x128xf32, #tpu.memory_space<vmem>>, vector<8x128xf32>,
    %c0_66 = arith.constant 0 : index
    %c0_67 = arith.constant 0 : index
    %149 = vector.load %arg7[%c0_66, %c0_67] : memref<128x128xf32, #tpu.memory_space<vmem>>, vector<128x128xf32>
    %cst_68 = arith.constant 0.000000e+00 : f32
    %150 = vector.broadcast %cst_68 : f32 to vector<8x128xf32>
    %c0_69 = arith.constant 0 : index
    %c0_70 = arith.constant 0 : index
    %151 = vector.load %arg11[%c0_69, %c0_70] : memref<64x128xf32, #tpu.memory_space<vmem>>, vector<8x128xf32>
    %cst_71 = arith.constant dense<0.000000e+00> : vector<8x128xf32>
    %152 = tpu.matmul %150, %149, %cst_71 {dimension_numbers = #tpu.dot_dimension_numbers<[1], [0], [0], [1], [0, 0, 1, 1], [], []>, precision = #tpu.contract_precision<fp32>} : vector<8x128xf32>, vector<128x128xf32>, vector<8x128xf32> -> vector<8x128xf32>
    %153 = arith.addf %151, %152 : vector<8x128xf32>
    %154 = math.tanh %153 : vector<8x128xf32>
    %c8_72 = arith.constant 8 : index
    %c0_73 = arith.constant 0 : index
    %155 = vector.load %arg11[%c8_72, %c0_73] : memref<64x128xf32, #tpu.memory_space<vmem>>, vector<8x128xf32>
    %cst_74 = arith.constant dense<0.000000e+00> : vector<8x128xf32>
    %156 = tpu.matmul %154, %149, %cst_74 {dimension_numbers = #tpu.dot_dimension_numbers<[1], [0], [0], [1], [0, 0, 1, 1], [], []>, precision = #tpu.contract_precision<fp32>} : vector<8x128xf32>, vector<128x128xf32>, vector<8x128xf32> -> vector<8x128xf32>
    %157 = arith.addf %155, %156 : vector<8x128xf32>
    %158 = math.tanh %157 : vector<8x128xf32>
    %c16_75 = arith.constant 16 : index
    %c0_76 = arith.constant 0 : index
    %159 = vector.load %arg11[%c16_75, %c0_76] : memref<64x128xf32, #tpu.memory_space<vmem>>, vector<8x128xf32>
    %cst_77 = arith.constant dense<0.000000e+00> : vector<8x128xf32>
    %160 = tpu.matmul %158, %149, %cst_77 {dimension_numbers = #tpu.dot_dimension_numbers<[1], [0], [0], [1], [0, 0, 1, 1], [], []>, precision = #tpu.contract_precision<fp32>} : vector<8x128xf32>, vector<128x128xf32>, vector<8x128xf32> -> vector<8x128xf32>
    %161 = arith.addf %159, %160 : vector<8x128xf32>
    %162 = math.tanh %161 : vector<8x128xf32>
    %c24_78 = arith.constant 24 : index
    %c0_79 = arith.constant 0 : index
    %163 = vector.load %arg11[%c24_78, %c0_79] : memref<64x128xf32, #tpu.memory_space<vmem>>, vector<8x128xf32>
    %cst_80 = arith.constant dense<0.000000e+00> : vector<8x128xf32>
    %164 = tpu.matmul %162, %149, %cst_80 {dimension_numbers = #tpu.dot_dimension_numbers<[1], [0], [0], [1], [0, 0, 1, 1], [], []>, precision = #tpu.contract_precision<fp32>} : vector<8x128xf32>, vector<128x128xf32>, vector<8x128xf32> -> vector<8x128xf32>
    %165 = arith.addf %163, %164 : vector<8x128xf32>
    %166 = math.tanh %165 : vector<8x128xf32>
    %c32_81 = arith.constant 32 : index
    %c0_82 = arith.constant 0 : index
    %167 = vector.load %arg11[%c32_81, %c0_82] : memref<64x128xf32, #tpu.memory_space<vmem>>, vector<8x128xf32>
    %cst_83 = arith.constant dense<0.000000e+00> : vector<8x128xf32>
    %168 = tpu.matmul %166, %149, %cst_83 {dimension_numbers = #tpu.dot_dimension_numbers<[1], [0], [0], [1], [0, 0, 1, 1], [], []>, precision = #tpu.contract_precision<fp32>} : vector<8x128xf32>, vector<128x128xf32>, vector<8x128xf32> -> vector<8x128xf32>
    %169 = arith.addf %167, %168 : vector<8x128xf32>
    %170 = math.tanh %169 : vector<8x128xf32>
    %c40_84 = arith.constant 40 : index
    %c0_85 = arith.constant 0 : index
    %171 = vector.load %arg11[%c40_84, %c0_85] : memref<64x128xf32, #tpu.memory_space<vmem>>, vector<8x128xf32>
    %cst_86 = arith.constant dense<0.000000e+00> : vector<8x128xf32>
    %172 = tpu.matmul %170, %149, %cst_86 {dimension_numbers = #tpu.dot_dimension_numbers<[1], [0], [0], [1], [0, 0, 1, 1], [], []>, precision = #tpu.contract_precision<fp32>} : vector<8x128xf32>, vector<128x128xf32>, vector<8x128xf32> -> vector<8x128xf32>
    %173 = arith.addf %171, %172 : vector<8x128xf32>
    %174 = math.tanh %173 : vector<8x128xf32>
    %c48_87 = arith.constant 48 : index
    %c0_88 = arith.constant 0 : index
    %175 = vector.load %arg11[%c48_87, %c0_88] : memref<64x128xf32, #tpu.memory_space<vmem>>, vector<8x128xf32>
    %cst_89 = arith.constant dense<0.000000e+00> : vector<8x128xf32>
    %176 = tpu.matmul %174, %149, %cst_89 {dimension_numbers = #tpu.dot_dimension_numbers<[1], [0], [0], [1], [0, 0, 1, 1], [], []>, precision = #tpu.contract_precision<fp32>} : vector<8x128xf32>, vector<128x128xf32>, vector<8x128xf32> -> vector<8x128xf32>
    %177 = arith.addf %175, %176 : vector<8x128xf32>
    %178 = math.tanh %177 : vector<8x128xf32>
    %c56_90 = arith.constant 56 : index
    %c0_91 = arith.constant 0 : index
    %179 = vector.load %arg11[%c56_90, %c0_91] : memref<64x128xf32, #tpu.memory_space<vmem>>, vector<8x128xf32>
    %cst_92 = arith.constant dense<0.000000e+00> : vector<8x128xf32>
    %180 = tpu.matmul %178, %149, %cst_92 {dimension_numbers = #tpu.dot_dimension_numbers<[1], [0], [0], [1], [0, 0, 1, 1], [], []>, precision = #tpu.contract_precision<fp32>} : vector<8x128xf32>, vector<128x128xf32>, vector<8x128xf32> -> vector<8x128xf32>
    %181 = arith.addf %179, %180 : vector<8x128xf32>
    %182 = math.tanh %181 : vector<8x128xf32>
    %183 = arith.select %31, %154, %182 : vector<8x128xi1>, vector<8x128xf32>
    %184 = arith.select %31, %158, %178 : vector<8x128xi1>, vector<8x128xf32>
    %185 = arith.select %31, %162, %174 : vector<8x128xi1>, vector<8x128xf32>
    %186 = arith.select %31, %166, %170 : vector<8x128xi1>, vector<8x128xf32>
    %187 = arith.select %31, %170, %166 : vector<8x128xi1>, vector<8x128xf32>
    %188 = arith.select %31, %174, %162 : vector<8x128xi1>, vector<8x128xf32>
    %189 = arith.select %31, %178, %158 : vector<8x128xi1>, vector<8x128xf32>
    %190 = arith.select %31, %182, %154 : vector<8x128xi1>, vector<8x128xf32>
    %191 = tpu.concatenate %183, %184, %185, %186, %187, %188, %189, %190 in 0 : vector<8x128xf32>, vector<8x128xf32>, vector<8x128xf32>, vector<8x128xf32>, vector<8x128xf32>, vector<8x128xf32>, vector<8x128xf32>, vector<8x128xf32> -> vector<64x128xf32>
    %c0_93 = arith.constant 0 : index
    %c0_94 = arith.constant 0 : index
    %192 = vector.load %arg8[%c0_93, %c0_94] : memref<128x128xf32, #tpu.memory_space<vmem>>, vector<128x128xf32>
    %cst_95 = arith.constant dense<0.000000e+00> : vector<64x128xf32>
    %193 = tpu.matmul %191, %192, %cst_95 {dimension_numbers = #tpu.dot_dimension_numbers<[1], [0], [0], [1], [0, 0, 1, 1], [], []>, precision = #tpu.contract_precision<fp32>} : vector<64x128xf32>, vector<128x128xf32>, vector<64x128xf32> -> vector<64x128xf32>
    %c0_96 = arith.constant 0 : index
    %c0_97 = arith.constant 0 : index
    %194 = vector.load %arg9[%c0_96, %c0_97] : memref<1x128xf32, #tpu.memory_space<vmem>>, vector<1x128xf32>
    %195 = vector.broadcast %194 : vector<1x128xf32> to vector<64x128xf32>
    %196 = arith.addf %193, %195 : vector<64x128xf32>
    %c0_98 = arith.constant 0 : index
    %c0_99 = arith.constant 0 : index
    %197 = vector.load %arg10[%c0_98, %c0_99] : memref<64x128xf32, #tpu.memory_space<vmem>>, vector<64x128xf32>
    tpu.vector_store %arg10[%c0_98, %c0_99], %196 {strides = array<i32>} : memref<64x128xf32, #tpu.memory_space<vmem>>, vector<64x128xf32>,
    return
  }
}

</mosaic_0001>

<bundles_post_ra>
// kernel: my_classifier3a_forward.1
= control target key start
LH: loop header
LB: loop body
LE: loop exit
PB: predicated region body
PF: predicated region fallthrough
CT: control target
= control target key end

     0   :  { %15 = vsyncpa [#allocation4], 0  ;;  %s28650_s0 = inlined_call_operand.vmem [shape: s32[64,4], index: 0, kind: input, shape index: {}]   ;;  %s28651_s1 = inlined_call_operand.hbm [shape: f32[32,128], index: 1, kind: input, shape index: {}]   ;;  %s28652_s2 = inlined_call_operand.hbm [shape: f32[128,128], index: 2, kind: input, shape index: {}]   ;;  %s28653_s3 = inlined_call_operand.vmem [shape: f32[1,128], index: 3, kind: input, shape index: {}]   ;;  %s28654_s4 = inlined_call_operand.hbm [shape: f32[128,128], index: 4, kind: input, shape index: {}]   ;;  %s28655_s5 = inlined_call_operand.vmem [shape: f32[128,128], index: 5, kind: input, shape index: {}]   ;;  %s28656_s6 = inlined_call_operand.vmem [shape: f32[1,128], index: 6, kind: input, shape index: {}]   ;;  %s28657_s7 = inlined_call_operand.hbm [shape: f32[128,128], index: 7, kind: input, shape index: {}]   ;;  %s28658_s8 = inlined_call_operand.hbm [shape: f32[128,128], index: 8, kind: input, shape index: {}]   ;;  %s28659_s9 = inlined_call_operand.vmem [shape: f32[1,128], index: 9, kind: input, shape index: {}]   ;;  %s28660_s10 = inlined_call_operand.vmem [shape: f32[64,128], index: 10, kind: output, shape index: {}]  }
   0x1   :  { %16 = vsyncpa [#allocation6], 0 }
   0x2   :  { %17 = vsyncpa [#allocation9], 0  ;;  %s24162_s13 = smov [#allocation5]   ;;  %s24163_s15 = smov [#allocation8]  }
   0x3   :  { %s37_s14 = sshll.u32 %s24162_s13, 4  ;;  %s67_s16 = sshll.u32 %s24163_s15, 4  ;;  %s38_s14 = int_to_ptr.vmem [resolvable:$true] %s37_s14  ;;  %s24231_s16 = int_to_ptr.vmem [resolvable:$true] %s67_s16 }
   0x4   :  { %s24046_s19 = scalar_lea.hbm %s28652_s2, 2048 }
   0x5   :  { %p24047_p0 = scmp.ne.s32.totalorder %s28652_s2, %s24046_s19  ;;  %p24050_p1 = scmp.lt.u32.totalorder %s24046_s19, %s28652_s2 }
   0x7   :  { %p24052_p2 = pnand %p24050_p1, %p24047_p0 }
   0x9   :  { %24055 = shalt.err (!%p24052_p2)
}
   0xa   :  { %s24056_s24 = scalar_lea.vmem %s38_s14, 2048  ;;  %p24061_p4 = scmp.lt.s32.totalorder %s38_s14, %s38_s14 }
   0xb   :  { %p24057_p3 = scmp.ne.s32.totalorder %s38_s14, %s24056_s24  ;;  %p24062_p5 = scmp.lt.s32.totalorder %s24056_s24, %s24056_s24 }
   0xd   :  { %p24063_p6 = por %p24062_p5, %p24061_p4 }
   0xf   :  { %p24064_p7 = pnand %p24063_p6, %p24057_p3 }
  0x11   :  { %24067 = shalt.err (!%p24064_p7)
}
  0x12   :  { %s24164_s25 = smov 128   ;;  %s24165_s26 = smov 8  }
  0x13   :  { %43 = dma.hbm_to_vmem [thread:$0]  %s28652_s2, 2048, %s38_s14, [#allocation6], %s24164_s25, %s24164_s25, %s24165_s26  }
  0x14   :  { %s24068_s11 = scalar_lea.hbm %s28657_s7, 2048 }
  0x15   :  { %p24069_p8 = scmp.ne.s32.totalorder %s28657_s7, %s24068_s11  ;;  %p24072_p9 = scmp.lt.u32.totalorder %s24068_s11, %s28657_s7 }
  0x17   :  { %p24074_p10 = pnand %p24072_p9, %p24069_p8 }
  0x19   :  { %24077 = shalt.err (!%p24074_p10)
}
  0x1a   :  { %s24078_s18 = scalar_lea.vmem %s24231_s16, 2048  ;;  %p24083_p12 = scmp.lt.s32.totalorder %s24231_s16, %s24231_s16 }
  0x1b   :  { %p24079_p11 = scmp.ne.s32.totalorder %s24231_s16, %s24078_s18  ;;  %p24084_p13 = scmp.lt.s32.totalorder %s24078_s18, %s24078_s18 }
  0x1d   :  { %p24085_p0 = por %p24084_p13, %p24083_p12 }
  0x1f   :  { %p24086_p1 = pnand %p24085_p0, %p24079_p11 }
  0x21   :  { %24089 = shalt.err (!%p24086_p1)
}
  0x22   :  { %73 = dma.hbm_to_vmem [thread:$0]  %s28657_s7, 2048, %s24231_s16, [#allocation9], %s24164_s25, %s24164_s25, %s24165_s26  }
  0x23   :  { %s24166_s19 = smov [#allocation3]   ;;  %s24167_s21 = smov [#allocation7]  }
  0x24   :  { %s25_s20 = sshll.u32 %s24166_s19, 4  ;;  %s51_s22 = sshll.u32 %s24167_s21, 4  ;;  %s26_s20 = int_to_ptr.vmem [resolvable:$true] %s25_s20  ;;  %s24268_s22 = int_to_ptr.vmem [resolvable:$true] %s51_s22 }
  0x25   :  { %s24090_s27 = scalar_lea.hbm %s28651_s1, 512 }
  0x26   :  { %p24091_p2 = scmp.ne.s32.totalorder %s28651_s1, %s24090_s27  ;;  %p24094_p3 = scmp.lt.u32.totalorder %s24090_s27, %s28651_s1 }
  0x28   :  { %p24096_p4 = pnand %p24094_p3, %p24091_p2 }
  0x2a   :  { %24099 = shalt.err (!%p24096_p4)
}
  0x2b   :  { %s24100_s7 = scalar_lea.vmem %s26_s20, 512  ;;  %p24105_p6 = scmp.lt.s32.totalorder %s26_s20, %s26_s20 }
  0x2c   :  { %p24101_p5 = scmp.ne.s32.totalorder %s26_s20, %s24100_s7  ;;  %p24106_p7 = scmp.lt.s32.totalorder %s24100_s7, %s24100_s7 }
  0x2e   :  { %p24107_p8 = por %p24106_p7, %p24105_p6 }
  0x30   :  { %p24108_p9 = pnand %p24107_p8, %p24101_p5 }
  0x32   :  { %24111 = shalt.err (!%p24108_p9)
}
  0x33   :  { %31 = dma.hbm_to_vmem [thread:$0]  %s28651_s1, 512, %s26_s20, [#allocation4], %s24164_s25, %s24164_s25, %s24165_s26  }
  0x34   :  { %s24112_s17 = scalar_lea.hbm %s28654_s4, 2048 }
  0x35   :  { %p24113_p10 = scmp.ne.s32.totalorder %s28654_s4, %s24112_s17  ;;  %p24116_p11 = scmp.lt.u32.totalorder %s24112_s17, %s28654_s4 }
  0x37   :  { %p24118_p12 = pnand %p24116_p11, %p24113_p10 }
  0x39   :  { %24121 = shalt.err (!%p24118_p12)
}
  0x3a   :  { %s24122_s21 = scalar_lea.vmem %s24268_s22, 2048  ;;  %p24127_p0 = scmp.lt.s32.totalorder %s24268_s22, %s24268_s22 }
  0x3b   :  { %p24123_p13 = scmp.ne.s32.totalorder %s24268_s22, %s24122_s21  ;;  %p24128_p1 = scmp.lt.s32.totalorder %s24122_s21, %s24122_s21 }
  0x3d   :  { %p24129_p2 = por %p24128_p1, %p24127_p0 }
  0x3f   :  { %p24130_p3 = pnand %p24129_p2, %p24123_p13 }
  0x41   :  { %24133 = shalt.err (!%p24130_p3)
}
  0x42   :  { %57 = dma.hbm_to_vmem [thread:$0]  %s28654_s4, 2048, %s24268_s22, [#allocation6], %s24164_s25, %s24164_s25, %s24165_s26  }
  0x43   :  { %s24168_s23 = smov [#allocation10]   ;;  %s24134_s29 = scalar_lea.hbm %s28658_s8, 2048 }
  0x44   :  { %s79_s24 = sshll.u32 %s24168_s23, 4  ;;  %p24135_p4 = scmp.ne.s32.totalorder %s28658_s8, %s24134_s29  ;;  %s80_s24 = int_to_ptr.vmem [resolvable:$true] %s79_s24 }
  0x45   :  { %p24138_p5 = scmp.lt.u32.totalorder %s24134_s29, %s28658_s8 }
  0x47   :  { %p24140_p6 = pnand %p24138_p5, %p24135_p4 }
  0x49   :  { %24143 = shalt.err (!%p24140_p6)
}
  0x4a   :  { %s24144_s12 = scalar_lea.vmem %s80_s24, 2048  ;;  %p24149_p8 = scmp.lt.s32.totalorder %s80_s24, %s80_s24 }
  0x4b   :  { %p24145_p7 = scmp.ne.s32.totalorder %s80_s24, %s24144_s12  ;;  %p24150_p9 = scmp.lt.s32.totalorder %s24144_s12, %s24144_s12 }
  0x4d   :  { %p24151_p10 = por %p24150_p9, %p24149_p8 }
  0x4f   :  { %p24152_p11 = pnand %p24151_p10, %p24145_p7 }
  0x51   :  { %24155 = shalt.err (!%p24152_p11)
}
  0x52   :  { %85 = dma.hbm_to_vmem [thread:$0]  %s28658_s8, 2048, %s80_s24, [#allocation9], %s24164_s25, %s24164_s25, %s24165_s26  }
  0x53   :  { %24156 = dma.done.wait [#allocation4], 512  }
  0x54   :  { %24157 = vsyncadd [#allocation4], 4294966784 }
  0x55   :  { %24158 = dma.done.wait [#allocation6], 4096  }
  0x56   :  { %24159 = vsyncadd [#allocation6], 4294963200 }
  0x57   :  { %24160 = dma.done.wait [#allocation9], 4096  }
  0x58   :  { %24161 = vsyncadd [#allocation9], 4294963200  ;;  %v24169_v0 = vmov 0   ;;  %v104_v1 = vld [vmem:[%s28650_s0 + $0x8] sm:$0xff]  ;;  %v103_v2 = vld [vmem:[%s28650_s0] sm:$0xff]  ;;  %v24170_v3 = vmov 1   ;;  %v111_v41 = vlaneseq }
  0x59   :  { %23992 = vset.pattern.permute.xlu1 %v24169_v0  ;;  %23990 = vset.pattern.permute.xlu0 %v24169_v0  ;;  %v24171_v4 = vmov 2   ;;  %v24172_v5 = vmov 3   ;;  %v105_v6 = vld [vmem:[%s28650_s0 + $0x10] sm:$0xff]  ;;  %v106_v7 = vld [vmem:[%s28650_s0 + $0x18] sm:$0xff]  ;;  %v107_v8 = vld [vmem:[%s28650_s0 + $0x20] sm:$0xff]  ;;  %v28661_v47 = vmov 0.0  }
  0x5a   :  { %117 = vperm.xlu1 %23992, %v104_v1   ;;  %114 = vperm.xlu0 %23990, %v103_v2   ;;  %v337_v9 = vld [vmem:[#allocation3] sm:$0xff]  ;;  %v338_v10 = vld [vmem:[#allocation3 + $0x8] sm:$0xff]  ;;  %v339_v16 = vld [vmem:[#allocation3 + $0x10] sm:$0xff]  ;;  %v24405_v44 = vand.u32 127, %v111_v41  ;;  %vm341_vm4 = vcmask 261120  }
  0x5b   :  { %v367_v11 = vand.u32 4294901760, %v337_v9  ;;  %v370_v12 = vand.u32 4294901760, %v338_v10  ;;  %v108_v15 = vld [vmem:[%s28650_s0 + $0x28] sm:$0xff]  ;;  %v340_v17 = vld [vmem:[#allocation3 + $0x18] sm:$0xff]  ;;  %v373_v20 = vand.u32 4294901760, %v339_v16  ;;  %v109_v39 = vld [vmem:[%s28650_s0 + $0x30] sm:$0xff] }
  0x5c   :  { %v376_v21 = vand.u32 4294901760, %v340_v17  ;;  %v110_v37 = vld [vmem:[%s28650_s0 + $0x38] sm:$0xff]  ;;  %28851 = vst [vmem:[#allocation14_spill] sm:$0xff] %v24405_v44 }
  0x5d   :  { %v24344_v13 = vsub.f32 %v337_v9, %v367_v11  ;;  %v24346_v14 = vsub.f32 %v338_v10, %v370_v12  ;;  %v24360_v24 = vsub.f32 %v339_v16, %v373_v20  ;;  %v24375_v36 = vpack.c.bf16 %v370_v12, %v367_v11 }
  0x5e   :  { %23993 = vset.pattern.permute.xlu1 %v24170_v3  ;;  %23991 = vset.pattern.permute.xlu0 %v24170_v3  ;;  %v24362_v25 = vsub.f32 %v340_v17, %v376_v21  ;;  %v24383_v38 = vpack.c.bf16 %v376_v21, %v373_v20 }
  0x5f   :  { %173 = vperm.xlu1 %23993, %v104_v1   ;;  %170 = vperm.xlu0 %23991, %v103_v2   ;;  %v518_v18 = vand.u32 4294901760, %v24344_v13  ;;  %v525_v19 = vand.u32 4294901760, %v24346_v14  ;;  %v532_v28 = vand.u32 4294901760, %v24360_v24  ;;  %v24401_v40 = vpack.c.bf16 %v24346_v14, %v24344_v13 }
  0x60   :  { %v539_v29 = vand.u32 4294901760, %v24362_v25  ;;  %20865 = vmatprep.subr.bf16.mxu1 %v24375_v36 }
  0x61   :  { %v519_v22 = vsub.f32 %v24344_v13, %v518_v18  ;;  %v526_v23 = vsub.f32 %v24346_v14, %v525_v19  ;;  %v533_v31 = vsub.f32 %v24360_v24, %v532_v28  ;;  %20867 = vmatpush3.bf16.msra.mxu1 %v24375_v36  ;;  %v24594_v14 = vld [vmem:[#allocation5] sm:$0xff] }
  0x62   :  { %v540_v32 = vsub.f32 %v24362_v25, %v539_v29  ;;  %20869 = vmatprep.subr.bf16.mxu1 %v24383_v38  ;;  %v20900_v13 = vpack.c.bf16 %v539_v29, %v532_v28  ;;  %v24602_v28 = vld [vmem:[#allocation5 + $0x18] sm:$0xff] }
  0x63   :  { %23994 = vset.pattern.permute.xlu1 %v24171_v4  ;;  %23997 = vset.pattern.permute.xlu0 %v24172_v5  ;;  %v520_v26 = vand.u32 4294901760, %v519_v22  ;;  %v527_v27 = vand.u32 4294901760, %v526_v23  ;;  %v534_v33 = vand.u32 4294901760, %v533_v31 }
  0x64   :  { %226 = vperm.xlu1 %23994, %v103_v2   ;;  %282 = vperm.xlu0 %23997, %v103_v2   ;;  %v541_v34 = vand.u32 4294901760, %v540_v32 }
  0x65   :  { %v20872_v30 = vpack.c.bf16 %v527_v27, %v520_v26  ;;  %20871 = vmatpush3.bf16.msra.mxu1 %v24383_v38 }
  0x66   :  { %v20876_v35 = vpack.c.bf16 %v541_v34, %v534_v33 }
  0x67   :  { %20873 = vmatprep.subr.bf16.mxu0 %v20872_v30 }
  0x68   :  { %23995 = vset.pattern.permute.xlu1 %v24169_v0  ;;  %285 = vperm.xlu0 %23997, %v104_v1  }
  0x69   :  { %120 = vperm.xlu1 %23995, %v105_v6   ;;  %20875 = vmatpush3.bf16.msra.mxu0 %v20872_v30 }
  0x6a   :  { %20877 = vmatprep.subr.bf16.mxu0 %v20876_v35 }
  0x6c   :  { %288 = vperm.xlu0 %23997, %v105_v6  }
  0x6d   :  { %23996 = vset.pattern.permute.xlu1 %v24170_v3  ;;  %20879 = vmatpush3.bf16.msra.mxu0 %v20876_v35 }
  0x6e   :  { %176 = vperm.xlu1 %23996, %v105_v6   ;;  %20881 = vmatprep.subr.bf16.mxu0 %v24401_v40 }
  0x70   :  { %291 = vperm.xlu0 %23997, %v106_v7  }
  0x72   :  { %23998 = vset.pattern.permute.xlu1 %v24169_v0 }
  0x73   :  { %123 = vperm.xlu1 %23998, %v106_v7  }
  0x74   :  { %294 = vperm.xlu0 %23997, %v107_v8  }
  0x77   :  { %23999 = vset.pattern.permute.xlu1 %v24170_v3 }
  0x78   :  { %179 = vperm.xlu1 %23999, %v106_v7   ;;  %297 = vperm.xlu0 %23997, %v108_v15  }
  0x7c   :  { %24000 = vset.pattern.permute.xlu1 %v24171_v4  ;;  %24010 = vset.pattern.permute.xlu0 %v24171_v4 }
  0x7d   :  { %232 = vperm.xlu1 %24000, %v105_v6   ;;  %229 = vperm.xlu0 %24010, %v104_v1  }
  0x81   :  { %24001 = vset.pattern.permute.xlu1 %v24169_v0  ;;  %235 = vperm.xlu0 %24010, %v106_v7  }
  0x82   :  { %126 = vperm.xlu1 %24001, %v107_v8  }
  0x85   :  { %241 = vperm.xlu0 %24010, %v108_v15  }
  0x86   :  { %24002 = vset.pattern.permute.xlu1 %v24170_v3 }
  0x87   :  { %182 = vperm.xlu1 %24002, %v107_v8  }
  0x89   :  { %247 = vperm.xlu0 %24010, %v110_v37  }
  0x8b   :  { %24003 = vset.pattern.permute.xlu1 %v24169_v0 }
  0x8c   :  { %129 = vperm.xlu1 %24003, %v108_v15  }
  0x8d   :  { %24013 = vset.pattern.permute.xlu0 %v24172_v5 }
  0x90   :  { %24004 = vset.pattern.permute.xlu1 %v24170_v3 }
  0x91   :  { %185 = vperm.xlu1 %24004, %v108_v15  }
  0x95   :  { %24005 = vset.pattern.permute.xlu1 %v24171_v4 }
  0x96   :  { %238 = vperm.xlu1 %24005, %v107_v8  }
  0x9a   :  { %24006 = vset.pattern.permute.xlu1 %v24169_v0 }
  0x9b   :  { %132 = vperm.xlu1 %24006, %v109_v39  }
  0x9f   :  { %24007 = vset.pattern.permute.xlu1 %v24170_v3 }
  0xa0   :  { %188 = vperm.xlu1 %24007, %v109_v39  }
  0xa4   :  { %24008 = vset.pattern.permute.xlu1 %v24169_v0 }
  0xa5   :  { %135 = vperm.xlu1 %24008, %v110_v37  }
  0xa9   :  { %24009 = vset.pattern.permute.xlu1 %v24170_v3 }
  0xaa   :  { %191 = vperm.xlu1 %24009, %v110_v37  }
  0xae   :  { %24011 = vset.pattern.permute.xlu1 %v24171_v4 }
  0xaf   :  { %244 = vperm.xlu1 %24011, %v109_v39  }
  0xb3   :  { %24012 = vset.pattern.permute.xlu1 %v24172_v5 }
  0xb4   :  { %300 = vperm.xlu1 %24012, %v109_v39  }
  0xb8   :  { %303 = vperm.xlu1 %24012, %v110_v37  }
  0xd9   :  { %v118_v42 = vpop.permute.xlu1 %117  ;;  %v115_v43 = vpop.permute.xlu0 %114 }
  0xda   :  { %vm137_vm0 = vcmp.eq.s32.totalorder %v115_v43, %v24405_v44  ;;  %vm138_vm7 = vcmp.eq.s32.totalorder %v118_v42, %v24405_v44 }
  0xdb   :  { %v14421_v48 = vsel %vm137_vm0, 1.0, %v28661_v47  ;;  %v14422_v10 = vsel %vm138_vm7, 1.0, %v28661_v47 }
  0xde   :  { %v174_v45 = vpop.permute.xlu1 %173  ;;  %v171_v46 = vpop.permute.xlu0 %170 }
  0xdf   :  { %vm193_vm1 = vcmp.eq.s32.totalorder %v171_v46, %v24405_v44  ;;  %vm194_vm5 = vcmp.eq.s32.totalorder %v174_v45, %v24405_v44 }
  0xe0   :  { %v14429_v49 = vsel %vm193_vm1, 1.0, %v28661_v47  ;;  %v14430_v8 = vsel %vm194_vm5, 1.0, %v28661_v47 }
  0xe1   :  { %v217_v50 = vadd.f32 %v14429_v49, %v14421_v48  ;;  %v218_v11 = vadd.f32 %v14430_v8, %v14422_v10  ;;  %v20884_v49 = vpack.c.bf16 %v24362_v25, %v24360_v24  ;;  %v1177_v24 = vand.u32 4294901760, %v24594_v14 }
  0xe3   :  { %v227_v51 = vpop.permute.xlu1 %226  ;;  %v283_v52 = vpop.permute.xlu0 %282 }
  0xe4   :  { %vm249_vm2 = vcmp.eq.s32.totalorder %v227_v51, %v24405_v44  ;;  %vm305_vm3 = vcmp.eq.s32.totalorder %v283_v52, %v24405_v44 }
  0xe5   :  { %v14437_v53 = vsel %vm249_vm2, 1.0, %v28661_v47  ;;  %v14445_v54 = vsel %vm305_vm3, 1.0, %v28661_v47 }
  0xe6   :  { %v273_v55 = vadd.f32 %v14437_v53, %v217_v50 }
  0xe7   :  { %v286_v56 = vpop.permute.xlu0 %285 }
  0xe8   :  { %v329_v57 = vadd.f32 %v14445_v54, %v273_v55  ;;  %v121_v58 = vpop.permute.xlu1 %120  ;;  %vm306_vm9 = vcmp.eq.s32.totalorder %v286_v56, %v24405_v44 }
  0xe9   :  { %vm139_vm8 = vcmp.eq.s32.totalorder %v121_v58, %v24405_v44  ;;  %v14446_v15 = vsel %vm306_vm9, 1.0, %v28661_v47 }
  0xea   :  { %v343_v59 = vsel %vm341_vm4, %v329_v57, 0  ;;  %v14423_v12 = vsel %vm139_vm8, 1.0, %v28661_v47 }
  0xeb   :  { %v24416_v60 = vand.u32 4294901760, %v343_v59  ;;  %v289_v61 = vpop.permute.xlu0 %288 }
  0xec   :  { %vm307_vm10 = vcmp.eq.s32.totalorder %v289_v61, %v24405_v44 }
  0xed   :  { %v177_v62 = vpop.permute.xlu1 %176  ;;  %16620 = vmatprep.mubr.f32.mxu0 %v24416_v60  ;;  %v24420_v63 = vsub.f32 %v343_v59, %v24416_v60  ;;  %v14447_v21 = vsel %vm307_vm10, 1.0, %v28661_v47 }
  0xee   :  { %vm195_vm6 = vcmp.eq.s32.totalorder %v177_v62, %v24405_v44 }
  0xef   :  { %v292_v0 = vpop.permute.xlu0 %291  ;;  %v437_v1 = vand.u32 4294901760, %v24420_v63  ;;  %v14431_v9 = vsel %vm195_vm6, 1.0, %v28661_v47 }
  0xf0   :  { %v219_v20 = vadd.f32 %v14431_v9, %v14423_v12  ;;  %vm308_vm15 = vcmp.eq.s32.totalorder %v292_v0, %v24405_v44 }
  0xf1   :  { %v438_v2 = vsub.f32 %v24420_v63, %v437_v1  ;;  %v14448_v39 = vsel %vm308_vm15, 1.0, %v28661_v47 }
  0xf2   :  { %v124_v3 = vpop.permute.xlu1 %123 }
  0xf3   :  { %v24426_v4 = vpop.permute.xlu0 %294  ;;  %v439_v5 = vand.u32 4294901760, %v438_v2  ;;  %vm140_vm12 = vcmp.eq.s32.totalorder %v124_v3, %v24405_v44 }
  0xf4   :  { %v14424_v31 = vsel %vm140_vm12, 1.0, %v28661_v47  ;;  %vm309_vm8 = vcmp.eq.s32.totalorder %v24426_v4, %v24405_v44 }
  0xf5   :  { %16600 = vmatprep.mubr.f32.mxu1 %v439_v5 }
  0xf7   :  { %v180_v6 = vpop.permute.xlu1 %179  ;;  %v24430_v7 = vpop.permute.xlu0 %297 }
  0xf8   :  { %vm196_vm11 = vcmp.eq.s32.totalorder %v180_v6, %v24405_v44  ;;  %vm310_vm7 = vcmp.eq.s32.totalorder %v24430_v7, %v24405_v44  ;;  %v14449_v7 = vsel %vm309_vm8, 1.0, %v28661_v47 }
  0xf9   :  { %v14432_v22 = vsel %vm196_vm11, 1.0, %v28661_v47 }
  0xfa   :  { %v220_v33 = vadd.f32 %v14432_v22, %v14424_v31 }
  0xfc   :  { %v233_v16 = vpop.permute.xlu1 %232  ;;  %v230_v17 = vpop.permute.xlu0 %229 }
  0xfd   :  { %vm251_vm13 = vcmp.eq.s32.totalorder %v233_v16, %v24405_v44  ;;  %vm250_vm14 = vcmp.eq.s32.totalorder %v230_v17, %v24405_v44 }
  0xfe   :  { %v14439_v23 = vsel %vm251_vm13, 1.0, %v28661_v47  ;;  %v14438_v26 = vsel %vm250_vm14, 1.0, %v28661_v47 }
  0xff   :  { %v275_v27 = vadd.f32 %v14439_v23, %v219_v20  ;;  %v274_v30 = vadd.f32 %v14438_v26, %v218_v11 }
 0x100   :  { %v236_v32 = vpop.permute.xlu0 %235 }
 0x101   :  { %v331_v34 = vadd.f32 %v14447_v21, %v275_v27  ;;  %v330_v35 = vadd.f32 %v14446_v15, %v274_v30  ;;  %vm252_vm0 = vcmp.eq.s32.totalorder %v236_v32, %v24405_v44  ;;  %v127_v37 = vpop.permute.xlu1 %126  ;;  %v14450_v21 = vsel %vm310_vm7, 1.0, %v28661_v47 }
 0x102   :  { %v14440_v41 = vsel %vm252_vm0, 1.0, %v28661_v47  ;;  %vm141_vm6 = vcmp.eq.s32.totalorder %v127_v37, %v24405_v44 }
 0x103   :  { %v349_v42 = vsel %vm341_vm4, %v331_v34, 0  ;;  %v346_v43 = vsel %vm341_vm4, %v330_v35, 0  ;;  %v276_v45 = vadd.f32 %v14440_v41, %v220_v33  ;;  %v14425_v16 = vsel %vm141_vm6, 1.0, %v28661_v47 }
 0x104   :  { %v24456_v46 = vand.u32 4294901760, %v349_v42  ;;  %v24458_v48 = vand.u32 4294901760, %v346_v43  ;;  %v242_v3 = vpop.permute.xlu0 %241 }
 0x105   :  { %v332_v50 = vadd.f32 %v14448_v39, %v276_v45  ;;  %vm254_vm2 = vcmp.eq.s32.totalorder %v242_v3, %v24405_v44 }
 0x106   :  { %v24463_v51 = vsub.f32 %v349_v42, %v24456_v46  ;;  %v24466_v52 = vsub.f32 %v346_v43, %v24458_v48  ;;  %v183_v53 = vpop.permute.xlu1 %182  ;;  %16621 = vmatmul.mubr.f32.vlgmr.msra.gmra.mrb[0].mxu0 %v24458_v48  ;;  %v14442_v11 = vsel %vm254_vm2, 1.0, %v28661_v47 }
 0x107   :  { %v352_v54 = vsel %vm341_vm4, %v332_v50, 0  ;;  %16623 = vmatprep.mubr.f32.mxu0 %v24456_v46  ;;  %20883 = vmatpush3.bf16.msra.mxu0 %v24401_v40  ;;  %vm197_vm3 = vcmp.eq.s32.totalorder %v183_v53, %v24405_v44 }
 0x108   :  { %v24472_v55 = vand.u32 4294901760, %v352_v54  ;;  %v447_v56 = vand.u32 4294901760, %v24466_v52  ;;  %v457_v57 = vand.u32 4294901760, %v24463_v51  ;;  %20885 = vmatprep.subr.bf16.mxu0 %v20884_v49  ;;  %v14433_v12 = vsel %vm197_vm3, 1.0, %v28661_v47 }
 0x109   :  { %v221_v22 = vadd.f32 %v14433_v12, %v14425_v16 }
 0x10a   :  { %v24477_v58 = vsub.f32 %v352_v54, %v24472_v55  ;;  %16624 = vmatmul.mubr.f32.gmra.mrb[2].mxu0 %v24472_v55  ;;  %v448_v59 = vsub.f32 %v24466_v52, %v447_v56  ;;  %v458_v40 = vsub.f32 %v24463_v51, %v457_v57 }
 0x10b   :  { %v130_v61 = vpop.permute.xlu1 %129  ;;  %20887 = vmatpush3.bf16.msra.mxu0 %v20884_v49 }
 0x10c   :  { %v449_v62 = vand.u32 4294901760, %v448_v59  ;;  %v459_v0 = vand.u32 4294901760, %v458_v40  ;;  %v467_v2 = vand.u32 4294901760, %v24477_v58  ;;  %20889 = vmatprep.subr.bf16.mxu0 %v24375_v36  ;;  %vm142_vm1 = vcmp.eq.s32.totalorder %v130_v61, %v24405_v44 }
 0x10d   :  { %v14426_v9 = vsel %vm142_vm1, 1.0, %v28661_v47 }
 0x10e   :  { %16601 = vmatmul.mubr.f32.vlgmr.msra.gmra.mrb[0].mxu1 %v449_v62  ;;  %v468_v5 = vsub.f32 %v24477_v58, %v467_v2 }
 0x10f   :  { %16603 = vmatprep.mubr.f32.mxu1 %v459_v0  ;;  %v248_v0 = vpop.permute.xlu0 %247 }
 0x110   :  { %v186_v6 = vpop.permute.xlu1 %185  ;;  %v469_v8 = vand.u32 4294901760, %v468_v5  ;;  %vm256_vm15 = vcmp.eq.s32.totalorder %v248_v0, %v24405_v44 }
 0x111   :  { %vm198_vm5 = vcmp.eq.s32.totalorder %v186_v6, %v24405_v44 }
 0x112   :  { %v14434_v10 = vsel %vm198_vm5, 1.0, %v28661_v47  ;;  %16604 = vmatmul.mubr.f32.gmra.mrb[2].mxu1 %v469_v8 }
 0x113   :  { %v222_v15 = vadd.f32 %v14434_v10, %v14426_v9 }
 0x115   :  { %v278_v17 = vadd.f32 %v14442_v11, %v222_v15  ;;  %v239_v20 = vpop.permute.xlu1 %238  ;;  %v14444_v15 = vsel %vm256_vm15, 1.0, %v28661_v47 }
 0x116   :  { %vm253_vm9 = vcmp.eq.s32.totalorder %v239_v20, %v24405_v44 }
 0x117   :  { %v334_v23 = vadd.f32 %v14450_v21, %v278_v17  ;;  %v14441_v26 = vsel %vm253_vm9, 1.0, %v28661_v47 }
 0x118   :  { %v277_v27 = vadd.f32 %v14441_v26, %v221_v22 }
 0x119   :  { %v358_v30 = vsel %vm341_vm4, %v334_v23, 0 }
 0x11a   :  { %v24510_v31 = vand.u32 4294901760, %v358_v30  ;;  %v333_v32 = vadd.f32 %v14449_v7, %v277_v27  ;;  %v133_v33 = vpop.permute.xlu1 %132 }
 0x11b   :  { %vm143_vm11 = vcmp.eq.s32.totalorder %v133_v33, %v24405_v44 }
 0x11c   :  { %v24513_v34 = vsub.f32 %v358_v30, %v24510_v31  ;;  %v355_v4 = vsel %vm341_vm4, %v333_v32, 0  ;;  %v14427_v61 = vsel %vm143_vm11, 1.0, %v28661_v47 }
 0x11d   :  { %v24516_v35 = vand.u32 4294901760, %v355_v4 }
 0x11e   :  { %v487_v37 = vand.u32 4294901760, %v24513_v34 }
 0x11f   :  { %v24520_v39 = vsub.f32 %v355_v4, %v24516_v35  ;;  %v189_v41 = vpop.permute.xlu1 %188  ;;  %16626 = vmatprep.mubr.f32.mxu0 %v24516_v35 }
 0x120   :  { %16627 = vmatmul.mubr.f32.gmra.mrb[4].mxu0 %v24510_v31  ;;  %v488_v43 = vsub.f32 %v24513_v34, %v487_v37  ;;  %vm199_vm10 = vcmp.eq.s32.totalorder %v189_v41, %v24405_v44 }
 0x121   :  { %v477_v42 = vand.u32 4294901760, %v24520_v39  ;;  %v14435_v40 = vsel %vm199_vm10, 1.0, %v28661_v47 }
 0x122   :  { %v489_v53 = vand.u32 4294901760, %v488_v43  ;;  %v223_v5 = vadd.f32 %v14435_v40, %v14427_v61  ;;  %v24692_v40 = vld [vmem:[#allocation5 + $0x68] sm:$0xff] }
 0x123   :  { %v478_v45 = vsub.f32 %v24520_v39, %v477_v42 }
 0x124   :  { %v136_v49 = vpop.permute.xlu1 %135 }
 0x125   :  { %v479_v50 = vand.u32 4294901760, %v478_v45  ;;  %vm144_vm14 = vcmp.eq.s32.totalorder %v136_v49, %v24405_v44  ;;  %v20896_v49 = vpack.c.bf16 %v525_v19, %v518_v18  ;;  %v24596_v18 = vld [vmem:[#allocation5 + $0x8] sm:$0xff]  ;;  %v24598_v19 = vld [vmem:[#allocation5 + $0x10] sm:$0xff] }
 0x126   :  { %v14428_v6 = vsel %vm144_vm14, 1.0, %v28661_v47  ;;  %v1180_v25 = vand.u32 4294901760, %v24596_v18  ;;  %v1183_v29 = vand.u32 4294901760, %v24598_v19 }
 0x127   :  { %16606 = vmatprep.mubr.f32.mxu1 %v479_v50 }
 0x128   :  { %16607 = vmatmul.mubr.f32.gmra.mrb[4].mxu1 %v489_v53 }
 0x129   :  { %v192_v54 = vpop.permute.xlu1 %191 }
 0x12a   :  { %vm200_vm12 = vcmp.eq.s32.totalorder %v192_v54, %v24405_v44 }
 0x12b   :  { %v14436_v62 = vsel %vm200_vm12, 1.0, %v28661_v47 }
 0x12c   :  { %v224_v9 = vadd.f32 %v14436_v62, %v14428_v6  ;;  %v1216_v62 = vand.u32 4294901760, %v24692_v40 }
 0x12e   :  { %v245_v59 = vpop.permute.xlu1 %244  ;;  %v280_v17 = vadd.f32 %v14444_v15, %v224_v9 }
 0x12f   :  { %vm255_vm13 = vcmp.eq.s32.totalorder %v245_v59, %v24405_v44  ;;  %v24690_v59 = vld [vmem:[#allocation5 + $0x60] sm:$0xff] }
 0x130   :  { %v14443_v3 = vsel %vm255_vm13, 1.0, %v28661_v47  ;;  %v1213_v61 = vand.u32 4294901760, %v24690_v59 }
 0x131   :  { %v279_v10 = vadd.f32 %v14443_v3, %v223_v5  ;;  %v24702_v3 = vld [vmem:[#allocation5 + $0x70] sm:$0xff]  ;;  %v24704_v5 = vld [vmem:[#allocation5 + $0x78] sm:$0xff] }
 0x132   :  { %v24700_v0 = vpack.c.bf16 %v1216_v62, %v1213_v61  ;;  %v1219_v6 = vand.u32 4294901760, %v24702_v3 }
 0x133   :  { %v301_v8 = vpop.permute.xlu1 %300 }
 0x134   :  { %vm311_vm0 = vcmp.eq.s32.totalorder %v301_v8, %v24405_v44  ;;  %v1222_v8 = vand.u32 4294901760, %v24704_v5 }
 0x135   :  { %v14451_v11 = vsel %vm311_vm0, 1.0, %v28661_v47 }
 0x136   :  { %v335_v12 = vadd.f32 %v14451_v11, %v279_v10  ;;  %v24716_v9 = vpack.c.bf16 %v1222_v8, %v1219_v6  ;;  %v24721_v10 = vsub.f32 %v24594_v14, %v1177_v24  ;;  %v24726_v11 = vsub.f32 %v24596_v18, %v1180_v25 }
 0x137   :  { %v304_v16 = vpop.permute.xlu1 %303 }
 0x138   :  { %v361_v20 = vsel %vm341_vm4, %v335_v12, 0  ;;  %vm312_vm1 = vcmp.eq.s32.totalorder %v304_v16, %v24405_v44  ;;  %v1340_v12 = vand.u32 4294901760, %v24721_v10  ;;  %v1347_v15 = vand.u32 4294901760, %v24726_v11 }
 0x139   :  { %v495_v21 = vand.u32 4294901760, %v361_v20  ;;  %v14452_v22 = vsel %vm312_vm1, 1.0, %v28661_v47 }
 0x13a   :  { %v336_v23 = vadd.f32 %v14452_v22, %v280_v17  ;;  %v24734_v16 = vpack.c.bf16 %v1347_v15, %v1340_v12  ;;  %v1341_v17 = vsub.f32 %v24721_v10, %v1340_v12 }
 0x13b   :  { %v496_v26 = vsub.f32 %v361_v20, %v495_v21  ;;  %16629 = vmatprep.mubr.f32.mxu0 %v495_v21  ;;  %v1348_v20 = vsub.f32 %v24726_v11, %v1347_v15 }
 0x13c   :  { %v364_v27 = vsel %vm341_vm4, %v336_v23, 0  ;;  %v1342_v23 = vand.u32 4294901760, %v1341_v17  ;;  %vm24175_vm4 = vmmov 0  }
 0x13d   :  { %v505_v7 = vand.u32 4294901760, %v364_v27  ;;  %v497_v30 = vand.u32 4294901760, %v496_v26 }
 0x13f   :  { %v506_v32 = vsub.f32 %v364_v27, %v505_v7  ;;  %16630 = vmatmul.mubr.f32.gmra.mrb[6].mxu0 %v505_v7  ;;  %v498_v33 = vsub.f32 %v496_v26, %v497_v30 }
 0x140   :  { %16640 = vmatprep.mubr.f32.mxu0 %v24420_v63  ;;  %v24614_v63 = vpack.c.bf16 %v1180_v25, %v1177_v24 }
 0x141   :  { %v499_v4 = vand.u32 4294901760, %v498_v33  ;;  %v507_v41 = vand.u32 4294901760, %v506_v32 }
 0x142   :  { %21009 = vmatprep.subr.bf16.mxu1 %v24614_v63 }
 0x143   :  { %16609 = vmatprep.mubr.f32.mxu1 %v499_v4  ;;  %16641 = vmatmul.mubr.f32.vlgmr.msra.gmra.mrb[0].mxu0 %v24466_v52  ;;  %v508_v43 = vsub.f32 %v506_v32, %v507_v41  ;;  %v24626_v52 = vld [vmem:[#allocation5 + $0x38] sm:$0xff] }
 0x144   :  { %20891 = vmatpush3.bf16.msra.mxu0 %v24375_v36  ;;  %16643 = vmatprep.mubr.f32.mxu0 %v24463_v51  ;;  %v24624_v51 = vld [vmem:[#allocation5 + $0x30] sm:$0xff] }
 0x145   :  { %v509_v45 = vand.u32 4294901760, %v508_v43  ;;  %20893 = vmatprep.subr.bf16.mxu0 %v24383_v38  ;;  %21011 = vmatpush3.bf16.msra.mxu1 %v24614_v63 }
 0x147   :  { %16610 = vmatmul.mubr.f32.gmra.mrb[6].mxu1 %v509_v45  ;;  %16644 = vmatmul.mubr.f32.gmra.mrb[2].mxu0 %v24477_v58  ;;  %v24642_v58 = vld [vmem:[#allocation5 + $0x40] sm:$0xff] }
 0x148   :  { %16646 = vmatprep.mubr.f32.mxu0 %v24520_v39  ;;  %20895 = vmatpush3.bf16.msra.mxu0 %v24383_v38  ;;  %v24660_v39 = vld [vmem:[#allocation5 + $0x58] sm:$0xff] }
 0x149   :  { %20897 = vmatprep.subr.bf16.mxu0 %v20896_v49  ;;  %v1210_v53 = vand.u32 4294901760, %v24660_v39 }
 0x14b   :  { %16647 = vmatmul.mubr.f32.gmra.mrb[4].mxu0 %v24513_v34  ;;  %v1201_v34 = vand.u32 4294901760, %v24642_v58 }
 0x14c   :  { %16649 = vmatprep.mubr.f32.mxu0 %v496_v26  ;;  %v1349_v26 = vand.u32 4294901760, %v1348_v20 }
 0x14f   :  { %16650 = vmatmul.mubr.f32.gmra.mrb[6].mxu0 %v506_v32 }
 0x150   :  { %16660 = vmatprep.mubr.f32.mxu0 %v437_v1 }
 0x153   :  { %16661 = vmatmul.mubr.f32.vlgmr.msra.gmra.mrb[0].mxu0 %v447_v56  ;;  %v1195_v56 = vand.u32 4294901760, %v24624_v51 }
 0x154   :  { %20899 = vmatpush3.bf16.msra.mxu0 %v20896_v49  ;;  %16663 = vmatprep.mubr.f32.mxu0 %v457_v57  ;;  %v1198_v57 = vand.u32 4294901760, %v24626_v52 }
 0x155   :  { %20901 = vmatprep.subr.bf16.mxu0 %v20900_v13 }
 0x156   :  { %v24780_v24 = vsub.f32 %v24626_v52, %v1198_v57  ;;  %v1395_v52 = vsub.f32 %v24642_v58, %v1201_v34  ;;  %v1416_v58 = vsub.f32 %v24660_v39, %v1210_v53  ;;  %v1430_v39 = vsub.f32 %v24692_v40, %v1216_v62 }
 0x157   :  { %16664 = vmatmul.mubr.f32.gmra.mrb[2].mxu0 %v467_v2  ;;  %v24644_v2 = vld [vmem:[#allocation5 + $0x48] sm:$0xff] }
 0x158   :  { %16666 = vmatprep.mubr.f32.mxu0 %v477_v42  ;;  %20903 = vmatpush3.bf16.msra.mxu0 %v20900_v13  ;;  %v1396_v20 = vand.u32 4294901760, %v1395_v52 }
 0x159   :  { %20905 = vmatprep.subr.bf16.mxu0 %v24375_v36 }
 0x15b   :  { %16667 = vmatmul.mubr.f32.gmra.mrb[4].mxu0 %v487_v37  ;;  %v24658_v37 = vld [vmem:[#allocation5 + $0x50] sm:$0xff] }
 0x15c   :  { %16669 = vmatprep.mubr.f32.mxu0 %v497_v30  ;;  %v1207_v50 = vand.u32 4294901760, %v24658_v37  ;;  %v24751_v30 = vpack.c.bf16 %v1349_v26, %v1342_v23 }
 0x15e   :  { %v24682_v54 = vpack.c.bf16 %v1210_v53, %v1207_v50 }
 0x15f   :  { %16670 = vmatmul.mubr.f32.gmra.mrb[6].mxu0 %v507_v41 }
 0x160   :  { %16680 = vmatprep.mubr.f32.mxu0 %v24416_v60 }
 0x163   :  { %16681 = vmatmul.mubr.f32.vlgmr.msra.gmra.mrb[0].mxu0 %v24458_v48 }
 0x164   :  { %20907 = vmatpush3.bf16.msra.mxu0 %v24375_v36  ;;  %16683 = vmatprep.mubr.f32.mxu0 %v24456_v46  ;;  %v24605_v36 = vld [vmem:[#allocation5 + $0x20] sm:$0xff] }
 0x165   :  { %20909 = vmatprep.subr.bf16.mxu0 %v24383_v38  ;;  %v1189_v1 = vand.u32 4294901760, %v24605_v36 }
 0x167   :  { %16684 = vmatmul.mubr.f32.gmra.mrb[2].mxu0 %v24472_v55  ;;  %v24760_v41 = vsub.f32 %v24605_v36, %v1189_v1 }
 0x168   :  { %16686 = vmatprep.mubr.f32.mxu0 %v24516_v35  ;;  %20911 = vmatpush3.bf16.msra.mxu0 %v24383_v38  ;;  %v24607_v38 = vld [vmem:[#allocation5 + $0x28] sm:$0xff] }
 0x169   :  { %20913 = vmatprep.subr.bf16.mxu0 %v24614_v63  ;;  %v1368_v13 = vand.u32 4294901760, %v24760_v41 }
 0x16b   :  { %16687 = vmatmul.mubr.f32.gmra.mrb[4].mxu0 %v24510_v31 }
 0x16c   :  { %16689 = vmatprep.mubr.f32.mxu0 %v495_v21 }
 0x16f   :  { %16690 = vmatmul.mubr.f32.gmra.mrb[6].mxu0 %v505_v7 }
 0x170   :  { %16700 = vmatprep.mubr.f32.mxu0 %v24416_v60  ;;  %v1186_v60 = vand.u32 4294901760, %v24602_v28 }
 0x172   :  { %v24746_v22 = vsub.f32 %v24602_v28, %v1186_v60  ;;  %v1369_v28 = vsub.f32 %v24760_v41, %v1368_v13 }
 0x173   :  { %16701 = vmatmul.mubr.f32.vlgmr.msra.gmra.mrb[0].mxu0 %v24458_v48  ;;  %v24622_v48 = vpack.c.bf16 %v1186_v60, %v1183_v29 }
 0x174   :  { %16703 = vmatprep.mubr.f32.mxu0 %v24456_v46  ;;  %v1192_v46 = vand.u32 4294901760, %v24607_v38  ;;  %20915 = vmatpush3.bf16.msra.mxu0 %v24614_v63  ;;  %v1370_v60 = vand.u32 4294901760, %v1369_v28 }
 0x175   :  { %21013 = vmatprep.subr.bf16.mxu1 %v24622_v48  ;;  %20917 = vmatprep.subr.bf16.mxu0 %v24622_v48 }
 0x176   :  { %21015 = vmatpush3.bf16.msra.mxu1 %v24622_v48  ;;  %v24765_v43 = vsub.f32 %v24607_v38, %v1192_v46  ;;  %v1389_v38 = vand.u32 4294901760, %v24780_v24 }
 0x177   :  { %16704 = vmatmul.mubr.f32.gmra.mrb[2].mxu0 %v24472_v55  ;;  %v24638_v55 = vpack.c.bf16 %v1192_v46, %v1189_v1 }
 0x178   :  { %16706 = vmatprep.mubr.f32.mxu0 %v24516_v35  ;;  %20919 = vmatpush3.bf16.msra.mxu0 %v24622_v48  ;;  %v1204_v35 = vand.u32 4294901760, %v24644_v2  ;;  %v1375_v14 = vand.u32 4294901760, %v24765_v43 }
 0x179   :  { %21017 = vmatprep.subr.bf16.mxu1 %v24638_v55  ;;  %20921 = vmatprep.subr.bf16.mxu0 %v24638_v55 }
 0x17a   :  { %21019 = vmatpush3.bf16.msra.mxu1 %v24638_v55  ;;  %v24670_v42 = vpack.c.bf16 %v1204_v35, %v1201_v34  ;;  %v24782_v25 = vpack.c.bf16 %v1375_v14, %v1368_v13  ;;  %v1402_v12 = vsub.f32 %v24644_v2, %v1204_v35 }
 0x17b   :  { %16707 = vmatmul.mubr.f32.gmra.mrb[4].mxu0 %v24510_v31  ;;  %v24654_v31 = vpack.c.bf16 %v1198_v57, %v1195_v56 }
 0x17c   :  { %16709 = vmatprep.mubr.f32.mxu0 %v495_v21  ;;  %20923 = vmatpush3.bf16.msra.mxu0 %v24638_v55  ;;  %v24741_v21 = vsub.f32 %v24598_v19, %v1183_v29  ;;  %v24775_v19 = vsub.f32 %v24624_v51, %v1195_v56  ;;  %v1376_v29 = vsub.f32 %v24765_v43, %v1375_v14  ;;  %v1403_v23 = vand.u32 4294901760, %v1402_v12 }
 0x17d   :  { %21021 = vmatprep.subr.bf16.mxu1 %v24654_v31  ;;  %20925 = vmatprep.subr.bf16.mxu0 %v24654_v31  ;;  %v1390_v56 = vsub.f32 %v24780_v24, %v1389_v38 }
 0x17e   :  { %21023 = vmatpush3.bf16.msra.mxu1 %v24654_v31  ;;  %v1354_v27 = vand.u32 4294901760, %v24741_v21  ;;  %v1382_v36 = vand.u32 4294901760, %v24775_v19  ;;  %v1377_v1 = vand.u32 4294901760, %v1376_v29  ;;  %v24808_v34 = vpack.c.bf16 %v1403_v23, %v1396_v20 }
 0x17f   :  { %16710 = vmatmul.mubr.f32.gmra.mrb[6].mxu0 %v505_v7  ;;  %21025 = vmatprep.subr.bf16.mxu1 %v24670_v42  ;;  %v1361_v7 = vand.u32 4294901760, %v24746_v22  ;;  %v1391_v17 = vand.u32 4294901760, %v1390_v56 }
 0x180   :  { %20927 = vmatpush3.bf16.msra.mxu0 %v24654_v31  ;;  %v1355_v33 = vsub.f32 %v24741_v21, %v1354_v27  ;;  %v24788_v46 = vpack.c.bf16 %v1389_v38, %v1382_v36  ;;  %v1383_v51 = vsub.f32 %v24775_v19, %v1382_v36  ;;  %v24795_v57 = vpack.c.bf16 %v1377_v1, %v1370_v60 }
 0x181   :  { %20929 = vmatprep.subr.bf16.mxu0 %v24670_v42  ;;  %v24753_v32 = vpack.c.bf16 %v1361_v7, %v1354_v27  ;;  %v1362_v4 = vsub.f32 %v24746_v22, %v1361_v7  ;;  %v1397_v27 = vsub.f32 %v1395_v52, %v1396_v20  ;;  %v1409_v7 = vsub.f32 %v24658_v37, %v1207_v50 }
 0x182   :  { %21027 = vmatpush3.bf16.msra.mxu1 %v24670_v42  ;;  %v1356_v45 = vand.u32 4294901760, %v1355_v33  ;;  %v1384_v15 = vand.u32 4294901760, %v1383_v51  ;;  %v1404_v33 = vsub.f32 %v1402_v12, %v1403_v23  ;;  %v1423_v37 = vsub.f32 %v24690_v59, %v1213_v61 }
 0x183   :  { %21029 = vmatprep.subr.bf16.mxu1 %v24682_v54  ;;  %v1363_v49 = vand.u32 4294901760, %v1362_v4  ;;  %v1398_v2 = vand.u32 4294901760, %v1397_v27  ;;  %v1410_v35 = vand.u32 4294901760, %v1409_v7  ;;  %v1431_v51 = vand.u32 4294901760, %v1430_v39 }
 0x184   :  { %20931 = vmatpush3.bf16.msra.mxu0 %v24670_v42  ;;  %v24800_v26 = vpack.c.bf16 %v1391_v17, %v1384_v15  ;;  %v1405_v13 = vand.u32 4294901760, %v1404_v33  ;;  %v1424_v60 = vand.u32 4294901760, %v1423_v37  ;;  %v1437_v17 = vsub.f32 %v24702_v3, %v1219_v6 }
 0x185   :  { %20933 = vmatprep.subr.bf16.mxu0 %v24682_v54  ;;  %v24770_v18 = vpack.c.bf16 %v1363_v49, %v1356_v45  ;;  %v1417_v45 = vand.u32 4294901760, %v1416_v58  ;;  %v1411_v28 = vsub.f32 %v1409_v7, %v1410_v35  ;;  %v1444_v59 = vsub.f32 %v24704_v5, %v1222_v8 }
 0x186   :  { %21031 = vmatpush3.bf16.msra.mxu1 %v24682_v54  ;;  %v24815_v50 = vpack.c.bf16 %v1405_v13, %v1398_v2  ;;  %v1425_v15 = vsub.f32 %v1423_v37, %v1424_v60  ;;  %v24828_v61 = vpack.c.bf16 %v1431_v51, %v1424_v60  ;;  %v1432_v40 = vsub.f32 %v1430_v39, %v1431_v51 }
 0x187   :  { %21033 = vmatprep.subr.bf16.mxu1 %v24700_v0  ;;  %v24810_v14 = vpack.c.bf16 %v1417_v45, %v1410_v35  ;;  %v1418_v29 = vsub.f32 %v1416_v58, %v1417_v45  ;;  %v1412_v36 = vand.u32 4294901760, %v1411_v28  ;;  %v1438_v20 = vand.u32 4294901760, %v1437_v17 }
 0x188   :  { %20935 = vmatpush3.bf16.msra.mxu0 %v24682_v54  ;;  %v1426_v62 = vand.u32 4294901760, %v1425_v15  ;;  %v1445_v23 = vand.u32 4294901760, %v1444_v59  ;;  %v1433_v27 = vand.u32 4294901760, %v1432_v40  ;;  %v24838_v5 = vpack.c.bf16 %v24726_v11, %v24721_v10 }
 0x189   :  { %20937 = vmatprep.subr.bf16.mxu0 %v24700_v0  ;;  %v1419_v38 = vand.u32 4294901760, %v1418_v29  ;;  %v1439_v2 = vsub.f32 %v1437_v17, %v1438_v20  ;;  %v24842_v6 = vpack.c.bf16 %v24746_v22, %v24741_v21  ;;  %v24852_v60 = vpack.c.bf16 %v1402_v12, %v1395_v52 }
 0x18a   :  { %21035 = vmatpush3.bf16.msra.mxu1 %v24700_v0  ;;  %v24830_v33 = vpack.c.bf16 %v1445_v23, %v1438_v20  ;;  %v1446_v35 = vsub.f32 %v1444_v59, %v1445_v23  ;;  %v24832_v45 = vpack.c.bf16 %v1433_v27, %v1426_v62  ;;  %v24854_v51 = vpack.c.bf16 %v1416_v58, %v1409_v7  ;;  %v24880_v27 = vld [vmem:[#allocation7 + $0x10] sm:$0xff] }
 0x18b   :  { %21037 = vmatprep.subr.bf16.mxu1 %v24716_v9  ;;  %v24820_v56 = vpack.c.bf16 %v1419_v38, %v1412_v36  ;;  %v1440_v13 = vand.u32 4294901760, %v1439_v2  ;;  %v24846_v36 = vpack.c.bf16 %v24765_v43, %v24760_v41  ;;  %v24850_v38 = vpack.c.bf16 %v24780_v24, %v24775_v19 }
 0x18c   :  { %20939 = vmatpush3.bf16.msra.mxu0 %v24700_v0  ;;  %v1447_v28 = vand.u32 4294901760, %v1446_v35  ;;  %v24856_v10 = vpack.c.bf16 %v1430_v39, %v1423_v37  ;;  %v24858_v11 = vpack.c.bf16 %v1444_v59, %v1437_v17  ;;  %v24870_v37 = vld [vmem:[#allocation7] sm:$0xff] }
 0x18d   :  { %20941 = vmatprep.subr.bf16.mxu0 %v24716_v9 }
 0x18e   :  { %21039 = vmatpush3.bf16.msra.mxu1 %v24716_v9  ;;  %v24834_v3 = vpack.c.bf16 %v1447_v28, %v1440_v13  ;;  %v28663_v13 = vand.u32 4294901760, %v24870_v37 }
 0x18f   :  { %21041 = vmatprep.subr.bf16.mxu1 %v24734_v16 }
 0x190   :  { %20943 = vmatpush3.bf16.msra.mxu0 %v24716_v9 }
 0x191   :  { %20945 = vmatprep.subr.bf16.mxu0 %v24751_v30 }
 0x1e1   :  { %v16602_v4 = vpop.f32.mrb[0].mxu1 }
 0x1e2   :  { %v441_v49 = vpop.f32.mrb[1].mxu1 }
 0x1e5   :  { %v16605_v53 = vpop.f32.mrb[2].mxu1 }
 0x1e6   :  { %v461_v1 = vpop.f32.mrb[3].mxu1 }
 0x1fb   :  { %v16608_v8 = vpop.f32.mrb[4].mxu1 }
 0x1fc   :  { %v481_v29 = vpop.f32.mrb[5].mxu1 }
 0x21a   :  { %v16611_v21 = vpop.f32.mrb[6].mxu1 }
 0x21b   :  { %v501_v22 = vpop.f32.mrb[7].mxu1 }
 0x246   :  { %v16702_v15 = vpop.f32.mrb[0].mxu0 }
 0x247   :  { %v23792_v40 = vadd.f32 %v16702_v15, %v16602_v4  ;;  %v1106_v62 = vpop.f32.mrb[1].mxu0 }
 0x248   :  { %v23793_v20 = vadd.f32 %v1106_v62, %v441_v49  ;;  %v24875_v49 = vld [vmem:[#allocation7 + $0x8] sm:$0xff] }
 0x249   :  { %v24860_v41 = vand.u32 4294901760, %v23792_v40  ;;  %v28667_v62 = vand.u32 4294901760, %v24875_v49 }
 0x24a   :  { %v24862_v43 = vand.u32 4294901760, %v23793_v20  ;;  %v16705_v19 = vpop.f32.mrb[2].mxu0 }
 0x24b   :  { %v24865_v24 = vsub.f32 %v23792_v40, %v24860_v41  ;;  %v23794_v52 = vadd.f32 %v16705_v19, %v16605_v53  ;;  %v1118_v12 = vpop.f32.mrb[3].mxu0 }
 0x24c   :  { %v24868_v7 = vsub.f32 %v23793_v20, %v24862_v43  ;;  %v23795_v58 = vadd.f32 %v1118_v12, %v461_v1  ;;  %v24901_v12 = vsub.f32 %v24870_v37, %v28663_v13 }
 0x24d   :  { %28852 = vst [vmem:[#allocation15_spill] sm:$0xff] %v24865_v24  ;;  %v1269_v4 = vand.u32 4294901760, %v24865_v24  ;;  %v24873_v39 = vand.u32 4294901760, %v23794_v52 }
 0x24e   :  { %v24877_v17 = vand.u32 4294901760, %v23795_v58  ;;  %v16708_v59 = vpop.f32.mrb[4].mxu0  ;;  %v1259_v23 = vand.u32 4294901760, %v24868_v7 }
 0x24f   :  { %v1270_v53 = vsub.f32 %v24865_v24, %v1269_v4  ;;  %v24884_v2 = vsub.f32 %v23794_v52, %v24873_v39  ;;  %v23796_v1 = vadd.f32 %v16708_v59, %v16608_v8  ;;  %v1130_v35 = vpop.f32.mrb[5].mxu0  ;;  %v24895_v52 = vld [vmem:[#allocation7 + $0x18] sm:$0xff] }
 0x250   :  { %v24888_v28 = vsub.f32 %v23795_v58, %v24877_v17  ;;  %v23797_v15 = vadd.f32 %v1130_v35, %v481_v29  ;;  %16876 = vmatprep.mubr.f32.mxu1 %v1259_v23  ;;  %v1260_v40 = vsub.f32 %v24868_v7, %v1259_v23 }
 0x251   :  { %28853 = vst [vmem:[#allocation16_spill] sm:$0xff] %v24884_v2  ;;  %v24892_v20 = vand.u32 4294901760, %v23796_v1  ;;  %16877 = vmatmul.mubr.f32.vlgmr.msra.gmra.mrb[8].mxu1 %v1269_v4  ;;  %v1289_v19 = vand.u32 4294901760, %v24884_v2  ;;  %v24910_v4 = vsub.f32 %v24875_v49, %v28667_v62  ;;  %v1271_v35 = vand.u32 4294901760, %v1270_v53  ;;  %v24922_v53 = vld [vmem:[#allocation7 + $0x20] sm:$0xff] }
 0x252   :  { %v24903_v29 = vand.u32 4294901760, %v23797_v15  ;;  %21043 = vmatpush3.bf16.msra.mxu1 %v24734_v16  ;;  %v16711_v58 = vpop.f32.mrb[6].mxu0  ;;  %v1261_v59 = vand.u32 4294901760, %v1260_v40  ;;  %v1279_v23 = vand.u32 4294901760, %v24888_v28  ;;  %v28669_v62 = vand.u32 4294901760, %v24895_v52  ;;  %28855 = vst [vmem:[#allocation18_spill] sm:$0xff] %v24922_v53 }
 0x253   :  { %v24913_v47 = vsub.f32 %v23796_v1, %v24892_v20  ;;  %v23798_v8 = vadd.f32 %v16711_v58, %v16611_v21  ;;  %v1142_v13 = vpop.f32.mrb[7].mxu0  ;;  %21045 = vmatprep.subr.bf16.mxu1 %v24753_v32  ;;  %v1290_v44 = vsub.f32 %v24884_v2, %v1289_v19  ;;  %v24927_v58 = vld [vmem:[#allocation7 + $0x28] sm:$0xff] }
 0x254   :  { %v24918_v16 = vsub.f32 %v23797_v15, %v24903_v29  ;;  %v23799_v40 = vadd.f32 %v1142_v13, %v501_v22  ;;  %16744 = vmatprep.mubr.f32.mxu0 %v1261_v59  ;;  %16879 = vmatprep.mubr.f32.mxu1 %v1279_v23  ;;  %v1280_v24 = vsub.f32 %v24888_v28, %v1279_v23  ;;  %v28857_v15 = vand.u32 4294901760, %v24880_v27 }
 0x255   :  { %28854 = vst [vmem:[#allocation17_spill] sm:$0xff] %v24913_v47  ;;  %v24924_v1 = vand.u32 4294901760, %v23798_v8  ;;  %16745 = vmatmul.mubr.f32.vlgmr.msra.gmra.mrb[8].mxu0 %v1271_v35  ;;  %16880 = vmatmul.mubr.f32.gmra.mrb[10].mxu1 %v1289_v19  ;;  %v1309_v21 = vand.u32 4294901760, %v24913_v47  ;;  %28856 = vst [vmem:[#allocation19_spill] sm:$0xff] %v24927_v58  ;;  %v24936_v13 = vpack.c.bf16 %v24910_v4, %v24901_v12 }
 0x256   :  { %v24932_v22 = vsub.f32 %v24880_v27, %v28857_v15  ;;  %v24938_v59 = vand.u32 4294901760, %v23799_v40  ;;  %20947 = vmatpush3.bf16.msra.mxu0 %v24751_v30  ;;  %21047 = vmatpush3.bf16.msra.mxu1 %v24753_v32  ;;  %v1281_v19 = vand.u32 4294901760, %v1280_v24  ;;  %v1299_v23 = vand.u32 4294901760, %v24918_v16  ;;  %v24967_v32 = vld [vmem:[#allocation7 + $0x38] sm:$0xff] }
 0x257   :  { %28858 = vst [vmem:[#allocation20_spill] sm:$0xff] %v24936_v13  ;;  %v24946_v35 = vsub.f32 %v24895_v52, %v28669_v62  ;;  %v24949_v15 = vsub.f32 %v23798_v8, %v24924_v1  ;;  %20949 = vmatprep.subr.bf16.mxu0 %v24770_v18  ;;  %21049 = vmatprep.subr.bf16.mxu1 %v24782_v25  ;;  %v1291_v13 = vand.u32 4294901760, %v1290_v44 }
 0x258   :  { %v1310_v30 = vsub.f32 %v24913_v47, %v1309_v21  ;;  %v24956_v24 = vsub.f32 %v23799_v40, %v24938_v59  ;;  %16747 = vmatprep.mubr.f32.mxu0 %v1281_v19  ;;  %16882 = vmatprep.mubr.f32.mxu1 %v1299_v23  ;;  %v1300_v62 = vsub.f32 %v24918_v16, %v1299_v23  ;;  %v24965_v47 = vld [vmem:[#allocation7 + $0x30] sm:$0xff]  ;;  %v28860_v23 = vand.u32 4294901760, %v24922_v53 }
 0x259   :  { %v24962_v8 = vpack.c.bf16 %v24946_v35, %v24932_v22  ;;  %16748 = vmatmul.mubr.f32.gmra.mrb[10].mxu0 %v1291_v13  ;;  %16883 = vmatmul.mubr.f32.gmra.mrb[12].mxu1 %v1309_v21  ;;  %v1329_v44 = vand.u32 4294901760, %v24949_v15  ;;  %v28861_v21 = vand.u32 4294901760, %v24927_v58 }
 0x25a   :  { %20951 = vmatpush3.bf16.msra.mxu0 %v24770_v18  ;;  %21051 = vmatpush3.bf16.msra.mxu1 %v24782_v25  ;;  %v1301_v40 = vand.u32 4294901760, %v1300_v62  ;;  %v1319_v19 = vand.u32 4294901760, %v24956_v24  ;;  %v24975_v2 = vsub.f32 %v24922_v53, %v28860_v23  ;;  %v1311_v18 = vand.u32 4294901760, %v1310_v30 }
 0x25b   :  { %28859 = vst [vmem:[#allocation21_spill] sm:$0xff] %v24962_v8  ;;  %v24980_v13 = vsub.f32 %v24927_v58, %v28861_v21  ;;  %20953 = vmatprep.subr.bf16.mxu0 %v24795_v57  ;;  %21053 = vmatprep.subr.bf16.mxu1 %v24788_v46  ;;  %v1330_v25 = vsub.f32 %v24949_v15, %v1329_v44  ;;  %v28677_v8 = vand.u32 4294901760, %v24965_v47  ;;  %v28675_v23 = vand.u32 4294901760, %v24967_v32  ;;  %v24992_v21 = vld [vmem:[#allocation7 + $0x40] sm:$0xff]  ;;  %v24994_v58 = vld [vmem:[#allocation7 + $0x48] sm:$0xff] }
 0x25c   :  { %16750 = vmatprep.mubr.f32.mxu0 %v1301_v40  ;;  %16885 = vmatprep.mubr.f32.mxu1 %v1319_v19  ;;  %v1320_v62 = vsub.f32 %v24956_v24, %v1319_v19 }
 0x25d   :  { %v24990_v53 = vpack.c.bf16 %v24980_v13, %v24975_v2  ;;  %16751 = vmatmul.mubr.f32.gmra.mrb[12].mxu0 %v1311_v18  ;;  %16886 = vmatmul.mubr.f32.gmra.mrb[14].mxu1 %v1329_v44  ;;  %v25001_v40 = vsub.f32 %v24965_v47, %v28677_v8  ;;  %v25006_v19 = vsub.f32 %v24967_v32, %v28675_v23  ;;  %v1331_v44 = vand.u32 4294901760, %v1330_v25  ;;  %v25019_v23 = vld [vmem:[#allocation7 + $0x58] sm:$0xff]  ;;  %v25044_v8 = vld [vmem:[#allocation7 + $0x68] sm:$0xff] }
 0x25e   :  { %20955 = vmatpush3.bf16.msra.mxu0 %v24795_v57  ;;  %21055 = vmatpush3.bf16.msra.mxu1 %v24788_v46  ;;  %v1321_v30 = vand.u32 4294901760, %v1320_v62  ;;  %v28676_v46 = vand.u32 4294901760, %v24992_v21  ;;  %v28678_v57 = vand.u32 4294901760, %v24994_v58  ;;  %v25017_v62 = vld [vmem:[#allocation7 + $0x50] sm:$0xff]  ;;  %28864 = vst [vmem:[#allocation24_spill] sm:$0xff] %v25019_v23 }
 0x25f   :  { %28862 = vst [vmem:[#allocation22_spill] sm:$0xff] %v24990_v53  ;;  %16920 = vmatprep.mubr.f32.mxu1 %v24862_v43  ;;  %20957 = vmatprep.subr.bf16.mxu0 %v24800_v26  ;;  %v25015_v18 = vpack.c.bf16 %v25006_v19, %v25001_v40  ;;  %v25066_v53 = vld [vmem:[#allocation7 + $0x70] sm:$0xff] }
 0x260   :  { %16753 = vmatprep.mubr.f32.mxu0 %v1321_v30  ;;  %21057 = vmatprep.subr.bf16.mxu1 %v24808_v34  ;;  %v25026_v25 = vsub.f32 %v24992_v21, %v28676_v46  ;;  %v25031_v30 = vsub.f32 %v24994_v58, %v28678_v57  ;;  %v25042_v46 = vld [vmem:[#allocation7 + $0x60] sm:$0xff] }
 0x261   :  { %28863 = vst [vmem:[#allocation23_spill] sm:$0xff] %v25015_v18  ;;  %16754 = vmatmul.mubr.f32.gmra.mrb[14].mxu0 %v1331_v44 }
 0x262   :  { %20959 = vmatpush3.bf16.msra.mxu0 %v24800_v26  ;;  %21059 = vmatpush3.bf16.msra.mxu1 %v24808_v34  ;;  %v28682_v26 = vand.u32 4294901760, %v25017_v62  ;;  %v28683_v34 = vand.u32 4294901760, %v25019_v23  ;;  %v25040_v44 = vpack.c.bf16 %v25031_v30, %v25026_v25 }
 0x263   :  { %16788 = vmatprep.mubr.f32.mxu0 %v24862_v43  ;;  %20961 = vmatprep.subr.bf16.mxu0 %v24815_v50 }
 0x264   :  { %21061 = vmatprep.subr.bf16.mxu1 %v24810_v14  ;;  %28865 = vst [vmem:[#allocation25_spill] sm:$0xff] %v25040_v44  ;;  %v25051_v57 = vsub.f32 %v25017_v62, %v28682_v26  ;;  %v25056_v18 = vsub.f32 %v25019_v23, %v28683_v34  ;;  %v28687_v44 = vand.u32 4294901760, %v25042_v46  ;;  %v25068_v26 = vld [vmem:[#allocation7 + $0x78] sm:$0xff] }
 0x266   :  { %20963 = vmatpush3.bf16.msra.mxu0 %v24815_v50  ;;  %21063 = vmatpush3.bf16.msra.mxu1 %v24810_v14  ;;  %v28686_v50 = vand.u32 4294901760, %v25044_v8  ;;  %v25064_v14 = vpack.c.bf16 %v25056_v18, %v25051_v57  ;;  %v25075_v34 = vsub.f32 %v25042_v46, %v28687_v44 }
 0x267   :  { %20965 = vmatprep.subr.bf16.mxu0 %v24820_v56  ;;  %21065 = vmatprep.subr.bf16.mxu1 %v24828_v61 }
 0x268   :  { %28866 = vst [vmem:[#allocation26_spill] sm:$0xff] %v25064_v14  ;;  %v25080_v23 = vsub.f32 %v25044_v8, %v28686_v50  ;;  %v2194_v14 = vand.u32 4294901760, %v25066_v53 }
 0x26a   :  { %20967 = vmatpush3.bf16.msra.mxu0 %v24820_v56  ;;  %21067 = vmatpush3.bf16.msra.mxu1 %v24828_v61  ;;  %v2197_v56 = vand.u32 4294901760, %v25068_v26  ;;  %v25088_v61 = vpack.c.bf16 %v25080_v23, %v25075_v34  ;;  %v25095_v50 = vsub.f32 %v25066_v53, %v2194_v14 }
 0x26b   :  { %20969 = vmatprep.subr.bf16.mxu0 %v24832_v45  ;;  %21069 = vmatprep.subr.bf16.mxu1 %v24830_v33 }
 0x26c   :  { %28867 = vst [vmem:[#allocation27_spill] sm:$0xff] %v25088_v61  ;;  %v25100_v44 = vsub.f32 %v25068_v26, %v2197_v56 }
 0x26e   :  { %20971 = vmatpush3.bf16.msra.mxu0 %v24832_v45  ;;  %21071 = vmatpush3.bf16.msra.mxu1 %v24830_v33  ;;  %v25106_v61 = vpack.c.bf16 %v25100_v44, %v25095_v50 }
 0x26f   :  { %20973 = vmatprep.subr.bf16.mxu0 %v24834_v3  ;;  %21073 = vmatprep.subr.bf16.mxu1 %v24614_v63 }
 0x271   :  { %16921 = vmatmul.mubr.f32.vlgmr.msra.gmra.mrb[8].mxu1 %v24860_v41 }
 0x272   :  { %20975 = vmatpush3.bf16.msra.mxu0 %v24834_v3  ;;  %16923 = vmatprep.mubr.f32.mxu1 %v24877_v17  ;;  %v28870_v3 = vld [vmem:[#allocation15_spill] sm:$0xff] }
 0x273   :  { %21075 = vmatpush3.bf16.msra.mxu1 %v24614_v63  ;;  %20977 = vmatprep.subr.bf16.mxu0 %v24838_v5  ;;  %v2240_v63 = vand.u32 4294901760, %v24901_v12 }
 0x274   :  { %21077 = vmatprep.subr.bf16.mxu1 %v24622_v48 }
 0x275   :  { %16789 = vmatmul.mubr.f32.vlgmr.msra.gmra.mrb[8].mxu0 %v24860_v41  ;;  %16924 = vmatmul.mubr.f32.gmra.mrb[10].mxu1 %v24873_v39 }
 0x276   :  { %16791 = vmatprep.mubr.f32.mxu0 %v24877_v17  ;;  %20979 = vmatpush3.bf16.msra.mxu0 %v24838_v5  ;;  %v2268_v5 = vand.u32 4294901760, %v24975_v2 }
 0x277   :  { %16926 = vmatprep.mubr.f32.mxu1 %v24903_v29  ;;  %21079 = vmatpush3.bf16.msra.mxu1 %v24622_v48  ;;  %v2247_v48 = vand.u32 4294901760, %v24910_v4 }
 0x278   :  { %20981 = vmatprep.subr.bf16.mxu0 %v24842_v6  ;;  %21081 = vmatprep.subr.bf16.mxu1 %v24638_v55  ;;  %v2269_v53 = vsub.f32 %v24975_v2, %v2268_v5 }
 0x279   :  { %16792 = vmatmul.mubr.f32.gmra.mrb[10].mxu0 %v24873_v39  ;;  %16927 = vmatmul.mubr.f32.gmra.mrb[12].mxu1 %v24892_v20 }
 0x27a   :  { %16794 = vmatprep.mubr.f32.mxu0 %v24903_v29  ;;  %20983 = vmatpush3.bf16.msra.mxu0 %v24842_v6  ;;  %v2275_v6 = vand.u32 4294901760, %v24980_v13  ;;  %v2270_v2 = vand.u32 4294901760, %v2269_v53 }
 0x27b   :  { %16929 = vmatprep.mubr.f32.mxu1 %v24938_v59  ;;  %21083 = vmatpush3.bf16.msra.mxu1 %v24638_v55  ;;  %v28709_v55 = vmov 0.0|0.0  }
 0x27c   :  { %20985 = vmatprep.subr.bf16.mxu0 %v24846_v36  ;;  %21085 = vmatprep.subr.bf16.mxu1 %v24654_v31  ;;  %v2276_v26 = vsub.f32 %v24980_v13, %v2275_v6 }
 0x27d   :  { %16795 = vmatmul.mubr.f32.gmra.mrb[12].mxu0 %v24892_v20  ;;  %16930 = vmatmul.mubr.f32.gmra.mrb[14].mxu1 %v24924_v1 }
 0x27e   :  { %16797 = vmatprep.mubr.f32.mxu0 %v24938_v59  ;;  %20987 = vmatpush3.bf16.msra.mxu0 %v24846_v36  ;;  %v28871_v36 = vand.u32 4294901760, %v24880_v27  ;;  %v28878_v27 = vld [vmem:[#allocation17_spill] sm:$0xff]  ;;  %v2277_v13 = vand.u32 4294901760, %v2276_v26 }
 0x27f   :  { %21087 = vmatpush3.bf16.msra.mxu1 %v24654_v31  ;;  %16964 = vmatprep.mubr.f32.mxu1 %v24862_v43  ;;  %v25162_v31 = vpack.c.bf16 %v2247_v48, %v2240_v63  ;;  %v28874_v43 = vld [vmem:[#allocation18_spill] sm:$0xff] }
 0x280   :  { %20989 = vmatprep.subr.bf16.mxu0 %v24850_v38  ;;  %21089 = vmatprep.subr.bf16.mxu1 %v24670_v42 }
 0x281   :  { %16798 = vmatmul.mubr.f32.gmra.mrb[14].mxu0 %v24924_v1 }
 0x282   :  { %20991 = vmatpush3.bf16.msra.mxu0 %v24850_v38  ;;  %16832 = vmatprep.mubr.f32.mxu0 %v24868_v7  ;;  %v28872_v38 = vand.u32 4294901760, %v24895_v52  ;;  %v28875_v7 = vand.u32 4294901760, %v28874_v43  ;;  %v28879_v52 = vand.u32 4294901760, %v24965_v47  ;;  %v2310_v47 = vand.u32 4294901760, %v25051_v57 }
 0x283   :  { %21091 = vmatpush3.bf16.msra.mxu1 %v24670_v42  ;;  %20993 = vmatprep.subr.bf16.mxu0 %v24852_v60  ;;  %v2254_v42 = vand.u32 4294901760, %v24932_v22 }
 0x284   :  { %21093 = vmatprep.subr.bf16.mxu1 %v24682_v54 }
 0x286   :  { %20995 = vmatpush3.bf16.msra.mxu0 %v24852_v60  ;;  %v25195_v60 = vpack.c.bf16 %v28872_v38, %v28871_v36  ;;  %v28885_v36 = vld [vmem:[#allocation24_spill] sm:$0xff] }
 0x287   :  { %21095 = vmatpush3.bf16.msra.mxu1 %v24682_v54  ;;  %20997 = vmatprep.subr.bf16.mxu0 %v24854_v51  ;;  %v2261_v54 = vand.u32 4294901760, %v24946_v35  ;;  %v28886_v38 = vand.u32 4294901760, %v28885_v36 }
 0x288   :  { %21097 = vmatprep.subr.bf16.mxu1 %v24700_v0 }
 0x289   :  { %v25181_v45 = vpack.c.bf16 %v2261_v54, %v2254_v42 }
 0x28a   :  { %20999 = vmatpush3.bf16.msra.mxu0 %v24854_v51  ;;  %v25203_v51 = vpack.c.bf16 %v2275_v6, %v2268_v5  ;;  %v25360_v5 = vpack.c.bf16 %v2277_v13, %v2270_v2 }
 0x28b   :  { %21099 = vmatpush3.bf16.msra.mxu1 %v24700_v0  ;;  %21001 = vmatprep.subr.bf16.mxu0 %v24856_v10  ;;  %v28868_v0 = vand.u32 4294901760, %v24870_v37  ;;  %v28876_v37 = vld [vmem:[#allocation19_spill] sm:$0xff] }
 0x28c   :  { %21101 = vmatprep.subr.bf16.mxu1 %v24716_v9 }
 0x28e   :  { %21003 = vmatpush3.bf16.msra.mxu0 %v24856_v10  ;;  %v28873_v10 = vld [vmem:[#allocation16_spill] sm:$0xff] }
 0x28f   :  { %21103 = vmatpush3.bf16.msra.mxu1 %v24716_v9  ;;  %21005 = vmatprep.subr.bf16.mxu0 %v24858_v11  ;;  %v28869_v9 = vand.u32 4294901760, %v24875_v49 }
 0x290   :  { %21200 = vmatprep.subr.bf16.mxu1 %v28709_v55 }
 0x291   :  { %v25174_v33 = vpack.c.bf16 %v28869_v9, %v28868_v0  ;;  %v28883_v0 = vand.u32 4294901760, %v24994_v58  ;;  %v28884_v58 = vand.u32 4294901760, %v25017_v62  ;;  %v2345_v62 = vand.u32 4294901760, %v25100_v44 }
 0x292   :  { %16965 = vmatmul.mubr.f32.vlgmr.msra.gmra.mrb[8].mxu1 %v24860_v41  ;;  %21007 = vmatpush3.bf16.msra.mxu0 %v24858_v11  ;;  %v2282_v11 = vand.u32 4294901760, %v25001_v40  ;;  %v2289_v41 = vand.u32 4294901760, %v25006_v19 }
 0x293   :  { %16967 = vmatprep.mubr.f32.mxu1 %v24877_v17  ;;  %21104 = vmatprep.subr.bf16.mxu0 %v28709_v55 }
 0x294   :  { %21202 = vmatpush3.bf16.msra.mxu1 %v25162_v31  ;;  %v25225_v17 = vpack.c.bf16 %v2289_v41, %v2282_v11 }
 0x295   :  { %16833 = vmatmul.mubr.f32.vlgmr.msra.gmra.mrb[8].mxu0 %v28870_v3  ;;  %21203 = vmatprep.subr.bf16.mxu1 %v28709_v55  ;;  %v2324_v3 = vand.u32 4294901760, %v25075_v34 }
 0x296   :  { %16968 = vmatmul.mubr.f32.gmra.mrb[10].mxu1 %v24873_v39  ;;  %16835 = vmatprep.mubr.f32.mxu0 %v24888_v28  ;;  %v28877_v39 = vand.u32 4294901760, %v28876_v37  ;;  %v2296_v28 = vand.u32 4294901760, %v25026_v25  ;;  %v28887_v37 = vand.u32 4294901760, %v25042_v46 }
 0x297   :  { %16970 = vmatprep.mubr.f32.mxu1 %v24903_v29  ;;  %21106 = vmatpush3.bf16.msra.mxu0 %v25174_v33  ;;  %v28880_v29 = vand.u32 4294901760, %v24967_v32  ;;  %v2317_v32 = vand.u32 4294901760, %v25056_v18 }
 0x298   :  { %21107 = vmatprep.subr.bf16.mxu0 %v28709_v55  ;;  %21205 = vmatpush3.bf16.msra.mxu1 %v25181_v45  ;;  %v25217_v49 = vpack.c.bf16 %v28877_v39, %v28875_v7  ;;  %v2338_v7 = vand.u32 4294901760, %v25095_v50  ;;  %v28888_v39 = vand.u32 4294901760, %v25044_v8 }
 0x299   :  { %16836 = vmatmul.mubr.f32.gmra.mrb[10].mxu0 %v28873_v10  ;;  %21206 = vmatprep.subr.bf16.mxu1 %v28709_v55  ;;  %v25279_v10 = vpack.c.bf16 %v28886_v38, %v28884_v58 }
 0x29a   :  { %16971 = vmatmul.mubr.f32.gmra.mrb[12].mxu1 %v24892_v20  ;;  %16838 = vmatprep.mubr.f32.mxu0 %v24918_v16  ;;  %v2303_v20 = vand.u32 4294901760, %v25031_v30  ;;  %v25238_v16 = vpack.c.bf16 %v28880_v29, %v28879_v52  ;;  %v2241_v52 = vsub.f32 %v24901_v12, %v2240_v63  ;;  %v2248_v29 = vsub.f32 %v24910_v4, %v2247_v48 }
 0x29b   :  { %16973 = vmatprep.mubr.f32.mxu1 %v24938_v59  ;;  %21109 = vmatpush3.bf16.msra.mxu0 %v25195_v60  ;;  %v28881_v59 = vmov 0.0   ;;  %v25311_v46 = vpack.c.bf16 %v2345_v62, %v2338_v7  ;;  %v25318_v12 = vpack.c.bf16 %v2197_v56, %v2194_v14  ;;  %v2255_v63 = vsub.f32 %v24932_v22, %v2254_v42 }
 0x29c   :  { %21110 = vmatprep.subr.bf16.mxu0 %v28709_v55  ;;  %21208 = vmatpush3.bf16.msra.mxu1 %v25203_v51  ;;  %v2242_v4 = vand.u32 4294901760, %v2241_v52  ;;  %v2249_v8 = vand.u32 4294901760, %v2248_v29  ;;  %v2262_v48 = vsub.f32 %v24946_v35, %v2261_v54  ;;  %v2283_v42 = vsub.f32 %v25001_v40, %v2282_v11  ;;  %v28894_v52 = vld [vmem:[#allocation26_spill] sm:$0xff]  ;;  %v28895_v29 = vld [vmem:[#allocation27_spill] sm:$0xff] }
 0x29d   :  { %16839 = vmatmul.mubr.f32.gmra.mrb[12].mxu0 %v28878_v27  ;;  %21209 = vmatprep.subr.bf16.mxu1 %v28709_v55  ;;  %v25297_v27 = vpack.c.bf16 %v28888_v39, %v28887_v37  ;;  %v2256_v14 = vand.u32 4294901760, %v2255_v63  ;;  %v2290_v54 = vsub.f32 %v25006_v19, %v2289_v41  ;;  %v2297_v40 = vsub.f32 %v25026_v25, %v2296_v28  ;;  %v28892_v37 = vld [vmem:[#allocation23_spill] sm:$0xff]  ;;  %v28893_v39 = vld [vmem:[#allocation25_spill] sm:$0xff]  ;;  %v14453_v63 = vld [vmem:[%s28653_s3] ss:$0 sm:$0xff] }
 0x29e   :  { %16974 = vmatmul.mubr.f32.gmra.mrb[14].mxu1 %v24924_v1  ;;  %16841 = vmatprep.mubr.f32.mxu0 %v24956_v24  ;;  %v25248_v1 = vpack.c.bf16 %v2303_v20, %v2296_v28  ;;  %v28882_v24 = vand.u32 4294901760, %v24992_v21  ;;  %v2331_v21 = vand.u32 4294901760, %v25080_v23  ;;  %v25337_v22 = vpack.c.bf16 %v2249_v8, %v2242_v4 }
 0x29f   :  { %21112 = vmatpush3.bf16.msra.mxu0 %v25217_v49  ;;  %17148 = vmatprep.mubr.msk.f32.mxu1 %vm24175_vm4, %v28881_v59  ;;  %v2263_v35 = vand.u32 4294901760, %v2262_v48  ;;  %v2284_v6 = vand.u32 4294901760, %v2283_v42  ;;  %v2304_v19 = vsub.f32 %v25031_v30, %v2303_v20  ;;  %v2311_v11 = vsub.f32 %v25051_v57, %v2310_v47 }
 0x2a0   :  { %21113 = vmatprep.subr.bf16.mxu0 %v28709_v55  ;;  %21211 = vmatpush3.bf16.msra.mxu1 %v25225_v17  ;;  %v25261_v9 = vpack.c.bf16 %v28883_v0, %v28882_v24  ;;  %v25287_v43 = vpack.c.bf16 %v2331_v21, %v2324_v3  ;;  %v2291_v24 = vand.u32 4294901760, %v2290_v54  ;;  %v2318_v41 = vsub.f32 %v25056_v18, %v2317_v32 }
 0x2a1   :  { %16842 = vmatmul.mubr.f32.gmra.mrb[14].mxu0 %v24949_v15  ;;  %21212 = vmatprep.subr.bf16.mxu1 %v28709_v55  ;;  %v25269_v15 = vpack.c.bf16 %v2317_v32, %v2310_v47  ;;  %v25347_v56 = vpack.c.bf16 %v2263_v35, %v2256_v14  ;;  %v2298_v28 = vand.u32 4294901760, %v2297_v40  ;;  %v2305_v30 = vand.u32 4294901760, %v2304_v19 }
 0x2a2   :  { %17008 = vmatprep.mubr.msk.f32.mxu0 %vm24175_vm4, %v28881_v59  ;;  %v25379_v25 = vpack.c.bf16 %v2291_v24, %v2284_v6  ;;  %v2312_v20 = vand.u32 4294901760, %v2311_v11  ;;  %v2319_v0 = vand.u32 4294901760, %v2318_v41  ;;  %v2325_v18 = vsub.f32 %v25075_v34, %v2324_v3 }
 0x2a3   :  { %21115 = vmatpush3.bf16.msra.mxu0 %v25238_v16  ;;  %v25385_v57 = vpack.c.bf16 %v2305_v30, %v2298_v28  ;;  %v2332_v47 = vsub.f32 %v25080_v23, %v2331_v21  ;;  %v2339_v34 = vsub.f32 %v25095_v50, %v2338_v7  ;;  %v2346_v23 = vsub.f32 %v25100_v44, %v2345_v62  ;;  %v28889_v50 = vld [vmem:[#allocation20_spill] sm:$0xff]  ;;  %v28890_v7 = vld [vmem:[#allocation21_spill] sm:$0xff]  ;;  %v28891_v62 = vld [vmem:[#allocation22_spill] sm:$0xff] }
 0x2a4   :  { %21116 = vmatprep.subr.bf16.mxu0 %v28709_v55  ;;  %21214 = vmatpush3.bf16.msra.mxu1 %v25248_v1  ;;  %v25396_v32 = vpack.c.bf16 %v2319_v0, %v2312_v20  ;;  %v2326_v58 = vand.u32 4294901760, %v2325_v18 }
 0x2a5   :  { %21215 = vmatprep.subr.bf16.mxu1 %v28709_v55  ;;  %v2333_v36 = vand.u32 4294901760, %v2332_v47  ;;  %v2340_v21 = vand.u32 4294901760, %v2339_v34  ;;  %v2347_v38 = vand.u32 4294901760, %v2346_v23 }
 0x2a7   :  { %21118 = vmatpush3.bf16.msra.mxu0 %v25261_v9  ;;  %v25409_v3 = vpack.c.bf16 %v2333_v36, %v2326_v58  ;;  %v25415_v44 = vpack.c.bf16 %v2347_v38, %v2340_v21  ;;  %v28896_v36 = vld [vmem:[#allocation14_spill] sm:$0xff] }
 0x2a8   :  { %21119 = vmatprep.subr.bf16.mxu0 %v28709_v55  ;;  %21217 = vmatpush3.bf16.msra.mxu1 %v25269_v15  ;;  %vm1152_vm2 = vcmp.lt.s32.totalorder %v28896_v36, 64 }
 0x2a9   :  { %21218 = vmatprep.subr.bf16.mxu1 %v28709_v55 }
 0x2ab   :  { %21121 = vmatpush3.bf16.msra.mxu0 %v25279_v10 }
 0x2ac   :  { %21122 = vmatprep.subr.bf16.mxu0 %v28709_v55  ;;  %21220 = vmatpush3.bf16.msra.mxu1 %v25287_v43 }
 0x2ad   :  { %21221 = vmatprep.subr.bf16.mxu1 %v28709_v55 }
 0x2af   :  { %21124 = vmatpush3.bf16.msra.mxu0 %v25297_v27 }
 0x2b0   :  { %21125 = vmatprep.subr.bf16.mxu0 %v28709_v55  ;;  %21223 = vmatpush3.bf16.msra.mxu1 %v25311_v46 }
 0x2b1   :  { %21248 = vmatprep.subr.bf16.mxu1 %v28709_v55 }
 0x2b3   :  { %21127 = vmatpush3.bf16.msra.mxu0 %v25318_v12  ;;  %17149 = vmatmul.mubr.f32.vlgmr.msra.gmra.mrb[16].mxu1 %v28881_v59 }
 0x2b4   :  { %21128 = vmatprep.subr.bf16.mxu0 %v28709_v55  ;;  %21250 = vmatpush3.bf16.msra.mxu1 %v25174_v33 }
 0x2b5   :  { %21251 = vmatprep.subr.bf16.mxu1 %v28709_v55  ;;  %17218 = vmatprep.mubr.msk.f32.mxu1 %vm24175_vm4, %v28881_v59 }
 0x2b6   :  { %17009 = vmatmul.mubr.f32.vlgmr.msra.gmra.mrb[16].mxu0 %v28881_v59 }
 0x2b7   :  { %21130 = vmatpush3.bf16.msra.mxu0 %v25337_v22  ;;  %17043 = vmatprep.mubr.msk.f32.mxu0 %vm24175_vm4, %v28881_v59 }
 0x2b8   :  { %21131 = vmatprep.subr.bf16.mxu0 %v28709_v55  ;;  %21253 = vmatpush3.bf16.msra.mxu1 %v25195_v60 }
 0x2b9   :  { %21254 = vmatprep.subr.bf16.mxu1 %v28709_v55 }
 0x2bb   :  { %21133 = vmatpush3.bf16.msra.mxu0 %v25347_v56 }
 0x2bc   :  { %21134 = vmatprep.subr.bf16.mxu0 %v28709_v55  ;;  %21256 = vmatpush3.bf16.msra.mxu1 %v25217_v49 }
 0x2bd   :  { %21257 = vmatprep.subr.bf16.mxu1 %v28709_v55 }
 0x2bf   :  { %21136 = vmatpush3.bf16.msra.mxu0 %v25360_v5 }
 0x2c0   :  { %21137 = vmatprep.subr.bf16.mxu0 %v28709_v55  ;;  %21259 = vmatpush3.bf16.msra.mxu1 %v25238_v16 }
 0x2c1   :  { %21260 = vmatprep.subr.bf16.mxu1 %v28709_v55 }
 0x2c3   :  { %21139 = vmatpush3.bf16.msra.mxu0 %v25379_v25 }
 0x2c4   :  { %21140 = vmatprep.subr.bf16.mxu0 %v28709_v55  ;;  %21262 = vmatpush3.bf16.msra.mxu1 %v25261_v9 }
 0x2c5   :  { %21263 = vmatprep.subr.bf16.mxu1 %v28709_v55 }
 0x2c7   :  { %21142 = vmatpush3.bf16.msra.mxu0 %v25385_v57 }
 0x2c8   :  { %21143 = vmatprep.subr.bf16.mxu0 %v28709_v55  ;;  %21265 = vmatpush3.bf16.msra.mxu1 %v25279_v10 }
 0x2c9   :  { %21266 = vmatprep.subr.bf16.mxu1 %v28709_v55 }
 0x2cb   :  { %21145 = vmatpush3.bf16.msra.mxu0 %v25396_v32 }
 0x2cc   :  { %21146 = vmatprep.subr.bf16.mxu0 %v28709_v55  ;;  %21268 = vmatpush3.bf16.msra.mxu1 %v25297_v27 }
 0x2cd   :  { %21269 = vmatprep.subr.bf16.mxu1 %v28709_v55 }
 0x2cf   :  { %21148 = vmatpush3.bf16.msra.mxu0 %v25409_v3 }
 0x2d0   :  { %21149 = vmatprep.subr.bf16.mxu0 %v28709_v55  ;;  %21271 = vmatpush3.bf16.msra.mxu1 %v25318_v12 }
 0x2d1   :  { %21296 = vmatprep.subr.bf16.mxu1 %v28709_v55 }
 0x2d3   :  { %21151 = vmatpush3.bf16.msra.mxu0 %v25415_v44 }
 0x2d4   :  { %21152 = vmatprep.subr.bf16.mxu0 %v28709_v55 }
 0x2d6   :  { %17044 = vmatmul.mubr.f32.vlgmr.msra.gmra.mrb[18].mxu0 %v28881_v59 }
 0x2d7   :  { %21154 = vmatpush3.bf16.msra.mxu0 %v28889_v50  ;;  %17078 = vmatprep.mubr.msk.f32.mxu0 %vm24175_vm4, %v28881_v59 }
 0x2d8   :  { %21155 = vmatprep.subr.bf16.mxu0 %v28709_v55 }
 0x2db   :  { %21157 = vmatpush3.bf16.msra.mxu0 %v28890_v7 }
 0x2dc   :  { %21158 = vmatprep.subr.bf16.mxu0 %v28709_v55 }
 0x2df   :  { %21160 = vmatpush3.bf16.msra.mxu0 %v28891_v62 }
 0x2e0   :  { %21161 = vmatprep.subr.bf16.mxu0 %v28709_v55 }
 0x2e3   :  { %21163 = vmatpush3.bf16.msra.mxu0 %v28892_v37 }
 0x2e4   :  { %21164 = vmatprep.subr.bf16.mxu0 %v28709_v55 }
 0x2e7   :  { %21166 = vmatpush3.bf16.msra.mxu0 %v28893_v39 }
 0x2e8   :  { %21167 = vmatprep.subr.bf16.mxu0 %v28709_v55 }
 0x2eb   :  { %21169 = vmatpush3.bf16.msra.mxu0 %v28894_v52 }
 0x2ec   :  { %21170 = vmatprep.subr.bf16.mxu0 %v28709_v55 }
 0x2ef   :  { %21172 = vmatpush3.bf16.msra.mxu0 %v28895_v29 }
 0x2f0   :  { %21173 = vmatprep.subr.bf16.mxu0 %v28709_v55 }
 0x2f3   :  { %21175 = vmatpush3.bf16.msra.mxu0 %v25106_v61 }
 0x2f4   :  { %21176 = vmatprep.subr.bf16.mxu0 %v28709_v55 }
 0x2f6   :  { %17079 = vmatmul.mubr.f32.vlgmr.msra.gmra.mrb[20].mxu0 %v28881_v59 }
 0x2f7   :  { %21178 = vmatpush3.bf16.msra.mxu0 %v25174_v33  ;;  %17113 = vmatprep.mubr.msk.f32.mxu0 %vm24175_vm4, %v28881_v59 }
 0x2f8   :  { %21179 = vmatprep.subr.bf16.mxu0 %v28709_v55 }
 0x2fb   :  { %21181 = vmatpush3.bf16.msra.mxu0 %v25195_v60 }
 0x2fc   :  { %21182 = vmatprep.subr.bf16.mxu0 %v28709_v55 }
 0x2ff   :  { %21184 = vmatpush3.bf16.msra.mxu0 %v25217_v49 }
 0x300   :  { %21185 = vmatprep.subr.bf16.mxu0 %v28709_v55 }
 0x303   :  { %21187 = vmatpush3.bf16.msra.mxu0 %v25238_v16 }
 0x304   :  { %21188 = vmatprep.subr.bf16.mxu0 %v28709_v55 }
 0x307   :  { %21190 = vmatpush3.bf16.msra.mxu0 %v25261_v9 }
 0x308   :  { %21191 = vmatprep.subr.bf16.mxu0 %v28709_v55 }
 0x30b   :  { %21193 = vmatpush3.bf16.msra.mxu0 %v25279_v10 }
 0x30c   :  { %21194 = vmatprep.subr.bf16.mxu0 %v28709_v55 }
 0x30f   :  { %21196 = vmatpush3.bf16.msra.mxu0 %v25297_v27 }
 0x310   :  { %21197 = vmatprep.subr.bf16.mxu0 %v28709_v55 }
 0x313   :  { %21199 = vmatpush3.bf16.msra.mxu0 %v25318_v12 }
 0x314   :  { %21224 = vmatprep.subr.bf16.mxu0 %v28709_v55 }
 0x316   :  { %17114 = vmatmul.mubr.f32.vlgmr.msra.gmra.mrb[22].mxu0 %v28881_v59 }
 0x317   :  { %21226 = vmatpush3.bf16.msra.mxu0 %v25174_v33  ;;  %17183 = vmatprep.mubr.msk.f32.mxu0 %vm24175_vm4, %v28881_v59 }
 0x318   :  { %21227 = vmatprep.subr.bf16.mxu0 %v28709_v55 }
 0x31b   :  { %21229 = vmatpush3.bf16.msra.mxu0 %v25195_v60 }
 0x31c   :  { %21230 = vmatprep.subr.bf16.mxu0 %v28709_v55 }
 0x31f   :  { %21232 = vmatpush3.bf16.msra.mxu0 %v25217_v49 }
 0x320   :  { %21233 = vmatprep.subr.bf16.mxu0 %v28709_v55 }
 0x323   :  { %21235 = vmatpush3.bf16.msra.mxu0 %v25238_v16 }
 0x324   :  { %21236 = vmatprep.subr.bf16.mxu0 %v28709_v55 }
 0x327   :  { %21238 = vmatpush3.bf16.msra.mxu0 %v25261_v9 }
 0x328   :  { %21239 = vmatprep.subr.bf16.mxu0 %v28709_v55 }
 0x32b   :  { %21241 = vmatpush3.bf16.msra.mxu0 %v25279_v10 }
 0x32c   :  { %21242 = vmatprep.subr.bf16.mxu0 %v28709_v55 }
 0x32f   :  { %21244 = vmatpush3.bf16.msra.mxu0 %v25297_v27 }
 0x330   :  { %21245 = vmatprep.subr.bf16.mxu0 %v28709_v55 }
 0x333   :  { %21247 = vmatpush3.bf16.msra.mxu0 %v25318_v12 }
 0x334   :  { %21272 = vmatprep.subr.bf16.mxu0 %v28709_v55 }
 0x336   :  { %17184 = vmatmul.mubr.f32.vlgmr.msra.gmra.mrb[24].mxu0 %v28881_v59 }
 0x337   :  { %21274 = vmatpush3.bf16.msra.mxu0 %v25337_v22  ;;  %17253 = vmatprep.mubr.msk.f32.mxu0 %vm24175_vm4, %v28881_v59 }
 0x338   :  { %21275 = vmatprep.subr.bf16.mxu0 %v28709_v55 }
 0x33b   :  { %21277 = vmatpush3.bf16.msra.mxu0 %v25347_v56 }
 0x33c   :  { %21278 = vmatprep.subr.bf16.mxu0 %v28709_v55 }
 0x33f   :  { %21280 = vmatpush3.bf16.msra.mxu0 %v25360_v5 }
 0x340   :  { %21281 = vmatprep.subr.bf16.mxu0 %v28709_v55 }
 0x343   :  { %21283 = vmatpush3.bf16.msra.mxu0 %v25379_v25 }
 0x344   :  { %21284 = vmatprep.subr.bf16.mxu0 %v28709_v55 }
 0x347   :  { %21286 = vmatpush3.bf16.msra.mxu0 %v25385_v57 }
 0x348   :  { %21287 = vmatprep.subr.bf16.mxu0 %v28709_v55 }
 0x34b   :  { %21289 = vmatpush3.bf16.msra.mxu0 %v25396_v32 }
 0x34c   :  { %21290 = vmatprep.subr.bf16.mxu0 %v28709_v55 }
 0x34f   :  { %21292 = vmatpush3.bf16.msra.mxu0 %v25409_v3 }
 0x350   :  { %21293 = vmatprep.subr.bf16.mxu0 %v28709_v55 }
 0x353   :  { %21295 = vmatpush3.bf16.msra.mxu0 %v25415_v44 }
 0x354   :  { %21320 = vmatprep.subr.bf16.mxu0 %v28709_v55 }
 0x365   :  { %v16966_v4 = vpop.f32.mrb[8].mxu1 }
 0x366   :  { %v2072_v8 = vpop.f32.mrb[9].mxu1 }
 0x368   :  { %v16834_v48 = vpop.f32.mrb[8].mxu0 }
 0x369   :  { %v23800_v53 = vadd.f32 %v16834_v48, %v14453_v63  ;;  %v16969_v26 = vpop.f32.mrb[10].mxu1  ;;  %v1630_v14 = vpop.f32.mrb[9].mxu0 }
 0x36a   :  { %v23802_v35 = vadd.f32 %v14453_v63, %v1630_v14  ;;  %v2084_v2 = vpop.f32.mrb[11].mxu1 }
 0x36b   :  { %v23801_v13 = vadd.f32 %v23800_v53, %v16966_v4 }
 0x36c   :  { %v23803_v42 = vadd.f32 %v23802_v35, %v2072_v8  ;;  %v16837_v54 = vpop.f32.mrb[10].mxu0 }
 0x36d   :  { %v23804_v6 = vadd.f32 %v16837_v54, %v14453_v63  ;;  %v16972_v24 = vpop.f32.mrb[12].mxu1  ;;  %v1644_v40 = vpop.f32.mrb[11].mxu0 }
 0x36e   :  { %v23806_v19 = vadd.f32 %v14453_v63, %v1644_v40  ;;  %v2096_v11 = vpop.f32.mrb[13].mxu1 }
 0x36f   :  { %v23805_v41 = vadd.f32 %v23804_v6, %v16969_v26 }
 0x370   :  { %v23807_v28 = vadd.f32 %v23806_v19, %v2084_v2  ;;  %v16840_v30 = vpop.f32.mrb[12].mxu0 }
 0x371   :  { %v23808_v20 = vadd.f32 %v16840_v30, %v14453_v63  ;;  %v16975_v0 = vpop.f32.mrb[14].mxu1  ;;  %v1658_v18 = vpop.f32.mrb[13].mxu0 }
 0x372   :  { %v23810_v47 = vadd.f32 %v14453_v63, %v1658_v18  ;;  %v2108_v58 = vpop.f32.mrb[15].mxu1 }
 0x373   :  { %v23809_v34 = vadd.f32 %v23808_v20, %v16972_v24 }
 0x374   :  { %v23811_v23 = vadd.f32 %v23810_v47, %v2096_v11  ;;  %v16843_v21 = vpop.f32.mrb[14].mxu0 }
 0x375   :  { %v23812_v38 = vadd.f32 %v16843_v21, %v14453_v63  ;;  %v1672_v4 = vpop.f32.mrb[15].mxu0  ;;  %v25504_v8 = vsel %vm1152_vm2, %v23807_v28, %v23809_v34  ;;  %v25508_v48 = vsel %vm1152_vm2, %v23809_v34, %v23807_v28 }
 0x376   :  { %v23814_v53 = vadd.f32 %v14453_v63, %v1672_v4  ;;  %v25512_v26 = vsel %vm1152_vm2, %v23805_v41, %v23811_v23  ;;  %v25516_v14 = vsel %vm1152_vm2, %v23811_v23, %v23805_v41 }
 0x377   :  { %v23813_v35 = vadd.f32 %v23812_v38, %v16975_v0 }
 0x378   :  { %v23815_v2 = vadd.f32 %v23814_v53, %v2108_v58 }
 0x379   :  { %v2118_v54 = vsel %vm1152_vm2, %v23803_v42, %v23813_v35  ;;  %v25522_v6 = vsel %vm1152_vm2, %v23813_v35, %v23803_v42 }
 0x37a   :  { %v25526_v63 = vsel %vm1152_vm2, %v23801_v13, %v23815_v2  ;;  %v25530_v24 = vsel %vm1152_vm2, %v23815_v2, %v23801_v13 }
 0x386   :  { %v2689_v40 = vpop.f32.mrb[16].mxu1 }
 0x387   :  { %v17150_v19 = vpop.f32.mrb[17].mxu1 }
 0x389   :  { %v2233_v11 = vpop.f32.mrb[16].mxu0 }
 0x38a   :  { %v17010_v41 = vpop.f32.mrb[17].mxu0 }
 0x3a9   :  { %v2383_v28 = vpop.f32.mrb[18].mxu0 }
 0x3aa   :  { %v2384_v30 = vadd.f32 %v2383_v28, %v2233_v11  ;;  %v17045_v20 = vpop.f32.mrb[19].mxu0 }
 0x3c9   :  { %v2485_v0 = vpop.f32.mrb[20].mxu0 }
 0x3ca   :  { %v2486_v18 = vadd.f32 %v2485_v0, %v2384_v30  ;;  %v17080_v47 = vpop.f32.mrb[21].mxu0 }
 0x3e9   :  { %v2571_v42 = vpop.f32.mrb[22].mxu0 }
 0x3ea   :  { %v2572_v58 = vadd.f32 %v2571_v42, %v2486_v18  ;;  %v17115_v34 = vpop.f32.mrb[23].mxu0 }
 0x3ec   :  { %v2690_v23 = vadd.f32 %v2689_v40, %v2572_v58 }
 0x409   :  { %v2775_v21 = vpop.f32.mrb[24].mxu0 }
 0x40a   :  { %v2776_v38 = vadd.f32 %v2775_v21, %v2690_v23  ;;  %v17185_v4 = vpop.f32.mrb[25].mxu0 }
 0x40c   :  { %v2779_v53 = vadd.f32 %v2776_v38, %v2118_v54 }
 0x40e   :  { %24014 = vtanh.f32 %v2779_v53 }
 0x418   :  { %v25532_v13 = vpop.eup %24014 }
 0x419   :  { %28897 = vst [vmem:[#allocation15_spill] sm:$0xff] %v25532_v13  ;;  %v25535_v35 = vand.u32 4294901760, %v25532_v13 }
 0x41b   :  { %17254 = vmatmul.mubr.f32.vlgmr.msra.gmra.mrb[26].mxu0 %v25535_v35  ;;  %v2864_v2 = vsub.f32 %v25532_v13, %v25535_v35 }
 0x41c   :  { %21322 = vmatpush3.bf16.msra.mxu0 %v25174_v33  ;;  %17323 = vmatprep.mubr.msk.f32.mxu0 %vm24175_vm4, %v28881_v59 }
 0x41d   :  { %21323 = vmatprep.subr.bf16.mxu0 %v28709_v55  ;;  %v2865_v40 = vand.u32 4294901760, %v2864_v2 }
 0x41f   :  { %v2866_v54 = vsub.f32 %v2864_v2, %v2865_v40 }
 0x420   :  { %21325 = vmatpush3.bf16.msra.mxu0 %v25195_v60 }
 0x421   :  { %21326 = vmatprep.subr.bf16.mxu0 %v28709_v55  ;;  %v2867_v19 = vand.u32 4294901760, %v2866_v54 }
 0x423   :  { %17219 = vmatmul.mubr.f32.vlgmr.msra.gmra.mrb[18].mxu1 %v2867_v19 }
 0x424   :  { %21298 = vmatpush3.bf16.msra.mxu1 %v28889_v50  ;;  %21328 = vmatpush3.bf16.msra.mxu0 %v25217_v49 }
 0x425   :  { %21299 = vmatprep.subr.bf16.mxu1 %v28709_v55  ;;  %21329 = vmatprep.subr.bf16.mxu0 %v28709_v55 }
 0x426   :  { %17288 = vmatprep.mubr.msk.f32.mxu1 %vm24175_vm4, %v28881_v59 }
 0x428   :  { %21301 = vmatpush3.bf16.msra.mxu1 %v28890_v7  ;;  %21331 = vmatpush3.bf16.msra.mxu0 %v25238_v16 }
 0x429   :  { %21302 = vmatprep.subr.bf16.mxu1 %v28709_v55  ;;  %21332 = vmatprep.subr.bf16.mxu0 %v28709_v55 }
 0x42c   :  { %21304 = vmatpush3.bf16.msra.mxu1 %v28891_v62  ;;  %21334 = vmatpush3.bf16.msra.mxu0 %v25261_v9 }
 0x42d   :  { %21305 = vmatprep.subr.bf16.mxu1 %v28709_v55  ;;  %21335 = vmatprep.subr.bf16.mxu0 %v28709_v55 }
 0x430   :  { %21307 = vmatpush3.bf16.msra.mxu1 %v28892_v37  ;;  %21337 = vmatpush3.bf16.msra.mxu0 %v25279_v10 }
 0x431   :  { %21308 = vmatprep.subr.bf16.mxu1 %v28709_v55  ;;  %21338 = vmatprep.subr.bf16.mxu0 %v28709_v55 }
 0x434   :  { %21310 = vmatpush3.bf16.msra.mxu1 %v28893_v39  ;;  %21340 = vmatpush3.bf16.msra.mxu0 %v25297_v27 }
 0x435   :  { %21311 = vmatprep.subr.bf16.mxu1 %v28709_v55  ;;  %21341 = vmatprep.subr.bf16.mxu0 %v28709_v55 }
 0x438   :  { %21313 = vmatpush3.bf16.msra.mxu1 %v28894_v52  ;;  %21343 = vmatpush3.bf16.msra.mxu0 %v25318_v12 }
 0x439   :  { %21314 = vmatprep.subr.bf16.mxu1 %v28709_v55  ;;  %21368 = vmatprep.subr.bf16.mxu0 %v28709_v55 }
 0x43b   :  { %17324 = vmatmul.mubr.f32.vlgmr.msra.gmra.mrb[28].mxu0 %v2865_v40 }
 0x43c   :  { %21316 = vmatpush3.bf16.msra.mxu1 %v28895_v29  ;;  %21370 = vmatpush3.bf16.msra.mxu0 %v25174_v33 }
 0x43d   :  { %21317 = vmatprep.subr.bf16.mxu1 %v28709_v55  ;;  %21371 = vmatprep.subr.bf16.mxu0 %v28709_v55 }
 0x43e   :  { %17393 = vmatprep.mubr.msk.f32.mxu0 %vm24175_vm4, %v28881_v59 }
 0x440   :  { %21319 = vmatpush3.bf16.msra.mxu1 %v25106_v61  ;;  %21373 = vmatpush3.bf16.msra.mxu0 %v25195_v60 }
 0x441   :  { %21344 = vmatprep.subr.bf16.mxu1 %v28709_v55  ;;  %21374 = vmatprep.subr.bf16.mxu0 %v28709_v55 }
 0x443   :  { %17289 = vmatmul.mubr.f32.vlgmr.msra.gmra.mrb[20].mxu1 %v2864_v2 }
 0x444   :  { %21346 = vmatpush3.bf16.msra.mxu1 %v25162_v31  ;;  %21376 = vmatpush3.bf16.msra.mxu0 %v25217_v49 }
 0x445   :  { %21347 = vmatprep.subr.bf16.mxu1 %v28709_v55  ;;  %21377 = vmatprep.subr.bf16.mxu0 %v28709_v55 }
 0x446   :  { %17358 = vmatprep.mubr.msk.f32.mxu1 %vm24175_vm4, %v28881_v59 }
 0x448   :  { %21349 = vmatpush3.bf16.msra.mxu1 %v25181_v45  ;;  %21379 = vmatpush3.bf16.msra.mxu0 %v25238_v16 }
 0x449   :  { %21350 = vmatprep.subr.bf16.mxu1 %v28709_v55  ;;  %21380 = vmatprep.subr.bf16.mxu0 %v28709_v55 }
 0x44c   :  { %21352 = vmatpush3.bf16.msra.mxu1 %v25203_v51  ;;  %21382 = vmatpush3.bf16.msra.mxu0 %v25261_v9 }
 0x44d   :  { %21353 = vmatprep.subr.bf16.mxu1 %v28709_v55  ;;  %21383 = vmatprep.subr.bf16.mxu0 %v28709_v55 }
 0x450   :  { %21355 = vmatpush3.bf16.msra.mxu1 %v25225_v17  ;;  %21385 = vmatpush3.bf16.msra.mxu0 %v25279_v10 }
 0x451   :  { %21356 = vmatprep.subr.bf16.mxu1 %v28709_v55  ;;  %21386 = vmatprep.subr.bf16.mxu0 %v28709_v55 }
 0x454   :  { %21358 = vmatpush3.bf16.msra.mxu1 %v25248_v1  ;;  %21388 = vmatpush3.bf16.msra.mxu0 %v25297_v27 }
 0x455   :  { %21359 = vmatprep.subr.bf16.mxu1 %v28709_v55  ;;  %21389 = vmatprep.subr.bf16.mxu0 %v28709_v55 }
 0x458   :  { %21361 = vmatpush3.bf16.msra.mxu1 %v25269_v15  ;;  %21391 = vmatpush3.bf16.msra.mxu0 %v25318_v12 }
 0x459   :  { %21362 = vmatprep.subr.bf16.mxu1 %v28709_v55  ;;  %21416 = vmatprep.subr.bf16.mxu0 %v28709_v55 }
 0x45b   :  { %17394 = vmatmul.mubr.f32.vlgmr.msra.gmra.mrb[30].mxu0 %v25535_v35 }
 0x45c   :  { %21364 = vmatpush3.bf16.msra.mxu1 %v25287_v43  ;;  %21418 = vmatpush3.bf16.msra.mxu0 %v25337_v22 }
 0x45d   :  { %21365 = vmatprep.subr.bf16.mxu1 %v28709_v55  ;;  %21419 = vmatprep.subr.bf16.mxu0 %v28709_v55 }
 0x45e   :  { %17463 = vmatprep.mubr.msk.f32.mxu0 %vm24175_vm4, %v28881_v59 }
 0x460   :  { %21367 = vmatpush3.bf16.msra.mxu1 %v25311_v46  ;;  %21421 = vmatpush3.bf16.msra.mxu0 %v25347_v56 }
 0x461   :  { %21392 = vmatprep.subr.bf16.mxu1 %v28709_v55  ;;  %21422 = vmatprep.subr.bf16.mxu0 %v28709_v55 }
 0x463   :  { %17359 = vmatmul.mubr.f32.vlgmr.msra.gmra.mrb[22].mxu1 %v25535_v35 }
 0x464   :  { %21394 = vmatpush3.bf16.msra.mxu1 %v25174_v33  ;;  %21424 = vmatpush3.bf16.msra.mxu0 %v25360_v5 }
 0x465   :  { %21395 = vmatprep.subr.bf16.mxu1 %v28709_v55  ;;  %21425 = vmatprep.subr.bf16.mxu0 %v28709_v55 }
 0x466   :  { %17428 = vmatprep.mubr.msk.f32.mxu1 %vm24175_vm4, %v28881_v59 }
 0x468   :  { %21397 = vmatpush3.bf16.msra.mxu1 %v25195_v60  ;;  %21427 = vmatpush3.bf16.msra.mxu0 %v25379_v25 }
 0x469   :  { %21398 = vmatprep.subr.bf16.mxu1 %v28709_v55  ;;  %21428 = vmatprep.subr.bf16.mxu0 %v28709_v55 }
 0x46c   :  { %21400 = vmatpush3.bf16.msra.mxu1 %v25217_v49  ;;  %21430 = vmatpush3.bf16.msra.mxu0 %v25385_v57 }
 0x46d   :  { %21401 = vmatprep.subr.bf16.mxu1 %v28709_v55  ;;  %21431 = vmatprep.subr.bf16.mxu0 %v28709_v55 }
 0x470   :  { %21403 = vmatpush3.bf16.msra.mxu1 %v25238_v16  ;;  %21433 = vmatpush3.bf16.msra.mxu0 %v25396_v32 }
 0x471   :  { %21404 = vmatprep.subr.bf16.mxu1 %v28709_v55  ;;  %21434 = vmatprep.subr.bf16.mxu0 %v28709_v55 }
 0x474   :  { %21406 = vmatpush3.bf16.msra.mxu1 %v25261_v9  ;;  %21436 = vmatpush3.bf16.msra.mxu0 %v25409_v3 }
 0x475   :  { %21407 = vmatprep.subr.bf16.mxu1 %v28709_v55  ;;  %21437 = vmatprep.subr.bf16.mxu0 %v28709_v55 }
 0x478   :  { %21409 = vmatpush3.bf16.msra.mxu1 %v25279_v10  ;;  %21439 = vmatpush3.bf16.msra.mxu0 %v25415_v44 }
 0x479   :  { %21410 = vmatprep.subr.bf16.mxu1 %v28709_v55  ;;  %21464 = vmatprep.subr.bf16.mxu0 %v28709_v55 }
 0x47c   :  { %21412 = vmatpush3.bf16.msra.mxu1 %v25297_v27 }
 0x47d   :  { %21413 = vmatprep.subr.bf16.mxu1 %v28709_v55 }
 0x480   :  { %21415 = vmatpush3.bf16.msra.mxu1 %v25318_v12 }
 0x481   :  { %21440 = vmatprep.subr.bf16.mxu1 %v28709_v55 }
 0x4ee   :  { %v3020_v11 = vpop.f32.mrb[26].mxu0 }
 0x4ef   :  { %v17255_v41 = vpop.f32.mrb[27].mxu0 }
 0x4f6   :  { %v2869_v28 = vpop.f32.mrb[18].mxu1 }
 0x4f7   :  { %v3021_v30 = vadd.f32 %v3020_v11, %v2869_v28  ;;  %v17220_v20 = vpop.f32.mrb[19].mxu1 }
 0x50e   :  { %v3213_v0 = vpop.f32.mrb[28].mxu0 }
 0x50f   :  { %v17325_v18 = vpop.f32.mrb[29].mxu0 }
 0x516   :  { %v3124_v47 = vpop.f32.mrb[20].mxu1 }
 0x517   :  { %v3125_v42 = vadd.f32 %v3124_v47, %v3021_v30  ;;  %v17290_v58 = vpop.f32.mrb[21].mxu1 }
 0x519   :  { %v3214_v34 = vadd.f32 %v3213_v0, %v3125_v42 }
 0x52e   :  { %v3419_v23 = vpop.f32.mrb[30].mxu0 }
 0x52f   :  { %v17395_v21 = vpop.f32.mrb[31].mxu0 }
 0x536   :  { %v3332_v38 = vpop.f32.mrb[22].mxu1 }
 0x537   :  { %v3333_v4 = vadd.f32 %v3332_v38, %v3214_v34  ;;  %v17360_v53 = vpop.f32.mrb[23].mxu1 }
 0x539   :  { %v3420_v35 = vadd.f32 %v3419_v23, %v3333_v4 }
 0x53b   :  { %v3423_v2 = vadd.f32 %v3420_v35, %v25526_v63 }
 0x53d   :  { %24016 = vtanh.f32 %v3423_v2 }
 0x547   :  { %v25651_v40 = vpop.eup %24016 }
 0x548   :  { %28898 = vst [vmem:[#allocation16_spill] sm:$0xff] %v25651_v40  ;;  %v25654_v54 = vand.u32 4294901760, %v25651_v40 }
 0x54a   :  { %17464 = vmatmul.mubr.f32.vlgmr.msra.gmra.mrb[32].mxu0 %v25654_v54  ;;  %v3508_v19 = vsub.f32 %v25651_v40, %v25654_v54 }
 0x54b   :  { %21466 = vmatpush3.bf16.msra.mxu0 %v25174_v33  ;;  %17533 = vmatprep.mubr.msk.f32.mxu0 %vm24175_vm4, %v28881_v59 }
 0x54c   :  { %21467 = vmatprep.subr.bf16.mxu0 %v28709_v55  ;;  %v3509_v11 = vand.u32 4294901760, %v3508_v19 }
 0x54e   :  { %v3510_v63 = vsub.f32 %v3508_v19, %v3509_v11 }
 0x54f   :  { %21469 = vmatpush3.bf16.msra.mxu0 %v25195_v60 }
 0x550   :  { %21470 = vmatprep.subr.bf16.mxu0 %v28709_v55  ;;  %v3511_v41 = vand.u32 4294901760, %v3510_v63 }
 0x552   :  { %17429 = vmatmul.mubr.f32.vlgmr.msra.gmra.mrb[24].mxu1 %v3511_v41 }
 0x553   :  { %21442 = vmatpush3.bf16.msra.mxu1 %v28889_v50  ;;  %21472 = vmatpush3.bf16.msra.mxu0 %v25217_v49 }
 0x554   :  { %21443 = vmatprep.subr.bf16.mxu1 %v28709_v55  ;;  %21473 = vmatprep.subr.bf16.mxu0 %v28709_v55 }
 0x555   :  { %17498 = vmatprep.mubr.msk.f32.mxu1 %vm24175_vm4, %v28881_v59 }
 0x557   :  { %21445 = vmatpush3.bf16.msra.mxu1 %v28890_v7  ;;  %21475 = vmatpush3.bf16.msra.mxu0 %v25238_v16 }
 0x558   :  { %21446 = vmatprep.subr.bf16.mxu1 %v28709_v55  ;;  %21476 = vmatprep.subr.bf16.mxu0 %v28709_v55 }
 0x55b   :  { %21448 = vmatpush3.bf16.msra.mxu1 %v28891_v62  ;;  %21478 = vmatpush3.bf16.msra.mxu0 %v25261_v9 }
 0x55c   :  { %21449 = vmatprep.subr.bf16.mxu1 %v28709_v55  ;;  %21479 = vmatprep.subr.bf16.mxu0 %v28709_v55 }
 0x55f   :  { %21451 = vmatpush3.bf16.msra.mxu1 %v28892_v37  ;;  %21481 = vmatpush3.bf16.msra.mxu0 %v25279_v10 }
 0x560   :  { %21452 = vmatprep.subr.bf16.mxu1 %v28709_v55  ;;  %21482 = vmatprep.subr.bf16.mxu0 %v28709_v55 }
 0x563   :  { %21454 = vmatpush3.bf16.msra.mxu1 %v28893_v39  ;;  %21484 = vmatpush3.bf16.msra.mxu0 %v25297_v27 }
 0x564   :  { %21455 = vmatprep.subr.bf16.mxu1 %v28709_v55  ;;  %21485 = vmatprep.subr.bf16.mxu0 %v28709_v55 }
 0x567   :  { %21457 = vmatpush3.bf16.msra.mxu1 %v28894_v52  ;;  %21487 = vmatpush3.bf16.msra.mxu0 %v25318_v12 }
 0x568   :  { %21458 = vmatprep.subr.bf16.mxu1 %v28709_v55  ;;  %21512 = vmatprep.subr.bf16.mxu0 %v28709_v55 }
 0x56a   :  { %17534 = vmatmul.mubr.f32.vlgmr.msra.gmra.mrb[34].mxu0 %v3509_v11 }
 0x56b   :  { %21460 = vmatpush3.bf16.msra.mxu1 %v28895_v29  ;;  %21514 = vmatpush3.bf16.msra.mxu0 %v25174_v33 }
 0x56c   :  { %21461 = vmatprep.subr.bf16.mxu1 %v28709_v55  ;;  %21515 = vmatprep.subr.bf16.mxu0 %v28709_v55 }
 0x56d   :  { %17603 = vmatprep.mubr.msk.f32.mxu0 %vm24175_vm4, %v28881_v59 }
 0x56f   :  { %21463 = vmatpush3.bf16.msra.mxu1 %v25106_v61  ;;  %21517 = vmatpush3.bf16.msra.mxu0 %v25195_v60 }
 0x570   :  { %21488 = vmatprep.subr.bf16.mxu1 %v28709_v55  ;;  %21518 = vmatprep.subr.bf16.mxu0 %v28709_v55 }
 0x572   :  { %17499 = vmatmul.mubr.f32.vlgmr.msra.gmra.mrb[26].mxu1 %v3508_v19 }
 0x573   :  { %21490 = vmatpush3.bf16.msra.mxu1 %v25162_v31  ;;  %21520 = vmatpush3.bf16.msra.mxu0 %v25217_v49 }
 0x574   :  { %21491 = vmatprep.subr.bf16.mxu1 %v28709_v55  ;;  %21521 = vmatprep.subr.bf16.mxu0 %v28709_v55 }
 0x575   :  { %17568 = vmatprep.mubr.msk.f32.mxu1 %vm24175_vm4, %v28881_v59 }
 0x577   :  { %21493 = vmatpush3.bf16.msra.mxu1 %v25181_v45  ;;  %21523 = vmatpush3.bf16.msra.mxu0 %v25238_v16 }
 0x578   :  { %21494 = vmatprep.subr.bf16.mxu1 %v28709_v55  ;;  %21524 = vmatprep.subr.bf16.mxu0 %v28709_v55 }
 0x57b   :  { %21496 = vmatpush3.bf16.msra.mxu1 %v25203_v51  ;;  %21526 = vmatpush3.bf16.msra.mxu0 %v25261_v9 }
 0x57c   :  { %21497 = vmatprep.subr.bf16.mxu1 %v28709_v55  ;;  %21527 = vmatprep.subr.bf16.mxu0 %v28709_v55 }
 0x57f   :  { %21499 = vmatpush3.bf16.msra.mxu1 %v25225_v17  ;;  %21529 = vmatpush3.bf16.msra.mxu0 %v25279_v10 }
 0x580   :  { %21500 = vmatprep.subr.bf16.mxu1 %v28709_v55  ;;  %21530 = vmatprep.subr.bf16.mxu0 %v28709_v55 }
 0x583   :  { %21502 = vmatpush3.bf16.msra.mxu1 %v25248_v1  ;;  %21532 = vmatpush3.bf16.msra.mxu0 %v25297_v27 }
 0x584   :  { %21503 = vmatprep.subr.bf16.mxu1 %v28709_v55  ;;  %21533 = vmatprep.subr.bf16.mxu0 %v28709_v55 }
 0x587   :  { %21505 = vmatpush3.bf16.msra.mxu1 %v25269_v15  ;;  %21535 = vmatpush3.bf16.msra.mxu0 %v25318_v12 }
 0x588   :  { %21506 = vmatprep.subr.bf16.mxu1 %v28709_v55  ;;  %21560 = vmatprep.subr.bf16.mxu0 %v28709_v55 }
 0x58a   :  { %17604 = vmatmul.mubr.f32.vlgmr.msra.gmra.mrb[36].mxu0 %v25654_v54 }
 0x58b   :  { %21508 = vmatpush3.bf16.msra.mxu1 %v25287_v43  ;;  %21562 = vmatpush3.bf16.msra.mxu0 %v25337_v22 }
 0x58c   :  { %21509 = vmatprep.subr.bf16.mxu1 %v28709_v55  ;;  %21563 = vmatprep.subr.bf16.mxu0 %v28709_v55 }
 0x58d   :  { %17673 = vmatprep.mubr.msk.f32.mxu0 %vm24175_vm4, %v28881_v59 }
 0x58f   :  { %21511 = vmatpush3.bf16.msra.mxu1 %v25311_v46  ;;  %21565 = vmatpush3.bf16.msra.mxu0 %v25347_v56 }
 0x590   :  { %21536 = vmatprep.subr.bf16.mxu1 %v28709_v55  ;;  %21566 = vmatprep.subr.bf16.mxu0 %v28709_v55 }
 0x592   :  { %17569 = vmatmul.mubr.f32.vlgmr.msra.gmra.mrb[28].mxu1 %v25654_v54 }
 0x593   :  { %21538 = vmatpush3.bf16.msra.mxu1 %v25174_v33  ;;  %21568 = vmatpush3.bf16.msra.mxu0 %v25360_v5 }
 0x594   :  { %21539 = vmatprep.subr.bf16.mxu1 %v28709_v55  ;;  %21569 = vmatprep.subr.bf16.mxu0 %v28709_v55 }
 0x595   :  { %17638 = vmatprep.mubr.msk.f32.mxu1 %vm24175_vm4, %v28881_v59 }
 0x597   :  { %21541 = vmatpush3.bf16.msra.mxu1 %v25195_v60  ;;  %21571 = vmatpush3.bf16.msra.mxu0 %v25379_v25 }
 0x598   :  { %21542 = vmatprep.subr.bf16.mxu1 %v28709_v55  ;;  %21572 = vmatprep.subr.bf16.mxu0 %v28709_v55 }
 0x59b   :  { %21544 = vmatpush3.bf16.msra.mxu1 %v25217_v49  ;;  %21574 = vmatpush3.bf16.msra.mxu0 %v25385_v57 }
 0x59c   :  { %21545 = vmatprep.subr.bf16.mxu1 %v28709_v55  ;;  %21575 = vmatprep.subr.bf16.mxu0 %v28709_v55 }
 0x59f   :  { %21547 = vmatpush3.bf16.msra.mxu1 %v25238_v16  ;;  %21577 = vmatpush3.bf16.msra.mxu0 %v25396_v32 }
 0x5a0   :  { %21548 = vmatprep.subr.bf16.mxu1 %v28709_v55  ;;  %21578 = vmatprep.subr.bf16.mxu0 %v28709_v55 }
 0x5a3   :  { %21550 = vmatpush3.bf16.msra.mxu1 %v25261_v9  ;;  %21580 = vmatpush3.bf16.msra.mxu0 %v25409_v3 }
 0x5a4   :  { %21551 = vmatprep.subr.bf16.mxu1 %v28709_v55  ;;  %21581 = vmatprep.subr.bf16.mxu0 %v28709_v55 }
 0x5a7   :  { %21553 = vmatpush3.bf16.msra.mxu1 %v25279_v10  ;;  %21583 = vmatpush3.bf16.msra.mxu0 %v25415_v44 }
 0x5a8   :  { %21554 = vmatprep.subr.bf16.mxu1 %v28709_v55  ;;  %21608 = vmatprep.subr.bf16.mxu0 %v28709_v55 }
 0x5ab   :  { %21556 = vmatpush3.bf16.msra.mxu1 %v25297_v27 }
 0x5ac   :  { %21557 = vmatprep.subr.bf16.mxu1 %v28709_v55 }
 0x5af   :  { %21559 = vmatpush3.bf16.msra.mxu1 %v25318_v12 }
 0x5b0   :  { %21584 = vmatprep.subr.bf16.mxu1 %v28709_v55 }
 0x61d   :  { %v3664_v28 = vpop.f32.mrb[32].mxu0 }
 0x61e   :  { %v17465_v30 = vpop.f32.mrb[33].mxu0 }
 0x625   :  { %v3513_v20 = vpop.f32.mrb[24].mxu1 }
 0x626   :  { %v3665_v0 = vadd.f32 %v3664_v28, %v3513_v20  ;;  %v17430_v18 = vpop.f32.mrb[25].mxu1 }
 0x63d   :  { %v3857_v47 = vpop.f32.mrb[34].mxu0 }
 0x63e   :  { %v17535_v42 = vpop.f32.mrb[35].mxu0 }
 0x645   :  { %v3768_v58 = vpop.f32.mrb[26].mxu1 }
 0x646   :  { %v3769_v34 = vadd.f32 %v3768_v58, %v3665_v0  ;;  %v17500_v23 = vpop.f32.mrb[27].mxu1 }
 0x648   :  { %v3858_v21 = vadd.f32 %v3857_v47, %v3769_v34 }
 0x65d   :  { %v4063_v38 = vpop.f32.mrb[36].mxu0 }
 0x65e   :  { %v17605_v4 = vpop.f32.mrb[37].mxu0 }
 0x665   :  { %v3976_v53 = vpop.f32.mrb[28].mxu1 }
 0x666   :  { %v3977_v35 = vadd.f32 %v3976_v53, %v3858_v21  ;;  %v17570_v2 = vpop.f32.mrb[29].mxu1 }
 0x668   :  { %v4064_v54 = vadd.f32 %v4063_v38, %v3977_v35 }
 0x66a   :  { %v4067_v19 = vadd.f32 %v4064_v54, %v25504_v8 }
 0x66c   :  { %24018 = vtanh.f32 %v4067_v19 }
 0x676   :  { %v25770_v11 = vpop.eup %24018 }
 0x677   :  { %28899 = vst [vmem:[#allocation18_spill] sm:$0xff] %v25770_v11  ;;  %v25773_v63 = vand.u32 4294901760, %v25770_v11 }
 0x679   :  { %17674 = vmatmul.mubr.f32.vlgmr.msra.gmra.mrb[38].mxu0 %v25773_v63  ;;  %v4152_v41 = vsub.f32 %v25770_v11, %v25773_v63 }
 0x67a   :  { %21610 = vmatpush3.bf16.msra.mxu0 %v25174_v33  ;;  %17743 = vmatprep.mubr.msk.f32.mxu0 %vm24175_vm4, %v28881_v59 }
 0x67b   :  { %21611 = vmatprep.subr.bf16.mxu0 %v28709_v55  ;;  %v4153_v28 = vand.u32 4294901760, %v4152_v41 }
 0x67d   :  { %v4154_v8 = vsub.f32 %v4152_v41, %v4153_v28 }
 0x67e   :  { %21613 = vmatpush3.bf16.msra.mxu0 %v25195_v60 }
 0x67f   :  { %21614 = vmatprep.subr.bf16.mxu0 %v28709_v55  ;;  %v4155_v30 = vand.u32 4294901760, %v4154_v8 }
 0x681   :  { %17639 = vmatmul.mubr.f32.vlgmr.msra.gmra.mrb[30].mxu1 %v4155_v30 }
 0x682   :  { %21586 = vmatpush3.bf16.msra.mxu1 %v28889_v50  ;;  %21616 = vmatpush3.bf16.msra.mxu0 %v25217_v49 }
 0x683   :  { %21587 = vmatprep.subr.bf16.mxu1 %v28709_v55  ;;  %21617 = vmatprep.subr.bf16.mxu0 %v28709_v55 }
 0x684   :  { %17708 = vmatprep.mubr.msk.f32.mxu1 %vm24175_vm4, %v28881_v59 }
 0x686   :  { %21589 = vmatpush3.bf16.msra.mxu1 %v28890_v7  ;;  %21619 = vmatpush3.bf16.msra.mxu0 %v25238_v16 }
 0x687   :  { %21590 = vmatprep.subr.bf16.mxu1 %v28709_v55  ;;  %21620 = vmatprep.subr.bf16.mxu0 %v28709_v55 }
 0x68a   :  { %21592 = vmatpush3.bf16.msra.mxu1 %v28891_v62  ;;  %21622 = vmatpush3.bf16.msra.mxu0 %v25261_v9 }
 0x68b   :  { %21593 = vmatprep.subr.bf16.mxu1 %v28709_v55  ;;  %21623 = vmatprep.subr.bf16.mxu0 %v28709_v55 }
 0x68e   :  { %21595 = vmatpush3.bf16.msra.mxu1 %v28892_v37  ;;  %21625 = vmatpush3.bf16.msra.mxu0 %v25279_v10 }
 0x68f   :  { %21596 = vmatprep.subr.bf16.mxu1 %v28709_v55  ;;  %21626 = vmatprep.subr.bf16.mxu0 %v28709_v55 }
 0x692   :  { %21598 = vmatpush3.bf16.msra.mxu1 %v28893_v39  ;;  %21628 = vmatpush3.bf16.msra.mxu0 %v25297_v27 }
 0x693   :  { %21599 = vmatprep.subr.bf16.mxu1 %v28709_v55  ;;  %21629 = vmatprep.subr.bf16.mxu0 %v28709_v55 }
 0x696   :  { %21601 = vmatpush3.bf16.msra.mxu1 %v28894_v52  ;;  %21631 = vmatpush3.bf16.msra.mxu0 %v25318_v12 }
 0x697   :  { %21602 = vmatprep.subr.bf16.mxu1 %v28709_v55  ;;  %21656 = vmatprep.subr.bf16.mxu0 %v28709_v55 }
 0x699   :  { %17744 = vmatmul.mubr.f32.vlgmr.msra.gmra.mrb[40].mxu0 %v4153_v28 }
 0x69a   :  { %21604 = vmatpush3.bf16.msra.mxu1 %v28895_v29  ;;  %21658 = vmatpush3.bf16.msra.mxu0 %v25174_v33 }
 0x69b   :  { %21605 = vmatprep.subr.bf16.mxu1 %v28709_v55  ;;  %21659 = vmatprep.subr.bf16.mxu0 %v28709_v55 }
 0x69c   :  { %17813 = vmatprep.mubr.msk.f32.mxu0 %vm24175_vm4, %v28881_v59 }
 0x69e   :  { %21607 = vmatpush3.bf16.msra.mxu1 %v25106_v61  ;;  %21661 = vmatpush3.bf16.msra.mxu0 %v25195_v60 }
 0x69f   :  { %21632 = vmatprep.subr.bf16.mxu1 %v28709_v55  ;;  %21662 = vmatprep.subr.bf16.mxu0 %v28709_v55 }
 0x6a1   :  { %17709 = vmatmul.mubr.f32.vlgmr.msra.gmra.mrb[32].mxu1 %v4152_v41 }
 0x6a2   :  { %21634 = vmatpush3.bf16.msra.mxu1 %v25162_v31  ;;  %21664 = vmatpush3.bf16.msra.mxu0 %v25217_v49 }
 0x6a3   :  { %21635 = vmatprep.subr.bf16.mxu1 %v28709_v55  ;;  %21665 = vmatprep.subr.bf16.mxu0 %v28709_v55 }
 0x6a4   :  { %17778 = vmatprep.mubr.msk.f32.mxu1 %vm24175_vm4, %v28881_v59 }
 0x6a6   :  { %21637 = vmatpush3.bf16.msra.mxu1 %v25181_v45  ;;  %21667 = vmatpush3.bf16.msra.mxu0 %v25238_v16 }
 0x6a7   :  { %21638 = vmatprep.subr.bf16.mxu1 %v28709_v55  ;;  %21668 = vmatprep.subr.bf16.mxu0 %v28709_v55 }
 0x6aa   :  { %21640 = vmatpush3.bf16.msra.mxu1 %v25203_v51  ;;  %21670 = vmatpush3.bf16.msra.mxu0 %v25261_v9 }
 0x6ab   :  { %21641 = vmatprep.subr.bf16.mxu1 %v28709_v55  ;;  %21671 = vmatprep.subr.bf16.mxu0 %v28709_v55 }
 0x6ae   :  { %21643 = vmatpush3.bf16.msra.mxu1 %v25225_v17  ;;  %21673 = vmatpush3.bf16.msra.mxu0 %v25279_v10 }
 0x6af   :  { %21644 = vmatprep.subr.bf16.mxu1 %v28709_v55  ;;  %21674 = vmatprep.subr.bf16.mxu0 %v28709_v55 }
 0x6b2   :  { %21646 = vmatpush3.bf16.msra.mxu1 %v25248_v1  ;;  %21676 = vmatpush3.bf16.msra.mxu0 %v25297_v27 }
 0x6b3   :  { %21647 = vmatprep.subr.bf16.mxu1 %v28709_v55  ;;  %21677 = vmatprep.subr.bf16.mxu0 %v28709_v55 }
 0x6b6   :  { %21649 = vmatpush3.bf16.msra.mxu1 %v25269_v15  ;;  %21679 = vmatpush3.bf16.msra.mxu0 %v25318_v12 }
 0x6b7   :  { %21650 = vmatprep.subr.bf16.mxu1 %v28709_v55  ;;  %21704 = vmatprep.subr.bf16.mxu0 %v28709_v55 }
 0x6b9   :  { %17814 = vmatmul.mubr.f32.vlgmr.msra.gmra.mrb[42].mxu0 %v25773_v63 }
 0x6ba   :  { %21652 = vmatpush3.bf16.msra.mxu1 %v25287_v43  ;;  %21706 = vmatpush3.bf16.msra.mxu0 %v25337_v22 }
 0x6bb   :  { %21653 = vmatprep.subr.bf16.mxu1 %v28709_v55  ;;  %21707 = vmatprep.subr.bf16.mxu0 %v28709_v55 }
 0x6bc   :  { %17883 = vmatprep.mubr.msk.f32.mxu0 %vm24175_vm4, %v28881_v59 }
 0x6be   :  { %21655 = vmatpush3.bf16.msra.mxu1 %v25311_v46  ;;  %21709 = vmatpush3.bf16.msra.mxu0 %v25347_v56 }
 0x6bf   :  { %21680 = vmatprep.subr.bf16.mxu1 %v28709_v55  ;;  %21710 = vmatprep.subr.bf16.mxu0 %v28709_v55 }
 0x6c1   :  { %17779 = vmatmul.mubr.f32.vlgmr.msra.gmra.mrb[34].mxu1 %v25773_v63 }
 0x6c2   :  { %21682 = vmatpush3.bf16.msra.mxu1 %v25174_v33  ;;  %21712 = vmatpush3.bf16.msra.mxu0 %v25360_v5 }
 0x6c3   :  { %21683 = vmatprep.subr.bf16.mxu1 %v28709_v55  ;;  %21713 = vmatprep.subr.bf16.mxu0 %v28709_v55 }
 0x6c4   :  { %17848 = vmatprep.mubr.msk.f32.mxu1 %vm24175_vm4, %v28881_v59 }
 0x6c6   :  { %21685 = vmatpush3.bf16.msra.mxu1 %v25195_v60  ;;  %21715 = vmatpush3.bf16.msra.mxu0 %v25379_v25 }
 0x6c7   :  { %21686 = vmatprep.subr.bf16.mxu1 %v28709_v55  ;;  %21716 = vmatprep.subr.bf16.mxu0 %v28709_v55 }
 0x6ca   :  { %21688 = vmatpush3.bf16.msra.mxu1 %v25217_v49  ;;  %21718 = vmatpush3.bf16.msra.mxu0 %v25385_v57 }
 0x6cb   :  { %21689 = vmatprep.subr.bf16.mxu1 %v28709_v55  ;;  %21719 = vmatprep.subr.bf16.mxu0 %v28709_v55 }
 0x6ce   :  { %21691 = vmatpush3.bf16.msra.mxu1 %v25238_v16  ;;  %21721 = vmatpush3.bf16.msra.mxu0 %v25396_v32 }
 0x6cf   :  { %21692 = vmatprep.subr.bf16.mxu1 %v28709_v55  ;;  %21722 = vmatprep.subr.bf16.mxu0 %v28709_v55 }
 0x6d2   :  { %21694 = vmatpush3.bf16.msra.mxu1 %v25261_v9  ;;  %21724 = vmatpush3.bf16.msra.mxu0 %v25409_v3 }
 0x6d3   :  { %21695 = vmatprep.subr.bf16.mxu1 %v28709_v55  ;;  %21725 = vmatprep.subr.bf16.mxu0 %v28709_v55 }
 0x6d6   :  { %21697 = vmatpush3.bf16.msra.mxu1 %v25279_v10  ;;  %21727 = vmatpush3.bf16.msra.mxu0 %v25415_v44 }
 0x6d7   :  { %21698 = vmatprep.subr.bf16.mxu1 %v28709_v55  ;;  %21752 = vmatprep.subr.bf16.mxu0 %v28709_v55 }
 0x6da   :  { %21700 = vmatpush3.bf16.msra.mxu1 %v25297_v27 }
 0x6db   :  { %21701 = vmatprep.subr.bf16.mxu1 %v28709_v55 }
 0x6de   :  { %21703 = vmatpush3.bf16.msra.mxu1 %v25318_v12 }
 0x6df   :  { %21728 = vmatprep.subr.bf16.mxu1 %v28709_v55 }
 0x74c   :  { %v4308_v20 = vpop.f32.mrb[38].mxu0 }
 0x74d   :  { %v17675_v0 = vpop.f32.mrb[39].mxu0 }
 0x754   :  { %v4157_v18 = vpop.f32.mrb[30].mxu1 }
 0x755   :  { %v4309_v47 = vadd.f32 %v4308_v20, %v4157_v18  ;;  %v17640_v42 = vpop.f32.mrb[31].mxu1 }
 0x76c   :  { %v4501_v58 = vpop.f32.mrb[40].mxu0 }
 0x76d   :  { %v17745_v34 = vpop.f32.mrb[41].mxu0 }
 0x774   :  { %v4412_v23 = vpop.f32.mrb[32].mxu1 }
 0x775   :  { %v4413_v21 = vadd.f32 %v4412_v23, %v4309_v47  ;;  %v17710_v38 = vpop.f32.mrb[33].mxu1 }
 0x777   :  { %v4502_v4 = vadd.f32 %v4501_v58, %v4413_v21 }
 0x78c   :  { %v4707_v53 = vpop.f32.mrb[42].mxu0 }
 0x78d   :  { %v17815_v35 = vpop.f32.mrb[43].mxu0 }
 0x794   :  { %v4620_v2 = vpop.f32.mrb[34].mxu1 }
 0x795   :  { %v4621_v54 = vadd.f32 %v4620_v2, %v4502_v4  ;;  %v17780_v19 = vpop.f32.mrb[35].mxu1 }
 0x797   :  { %v4708_v63 = vadd.f32 %v4707_v53, %v4621_v54 }
 0x799   :  { %v4711_v41 = vadd.f32 %v4708_v63, %v25512_v26 }
 0x79b   :  { %24020 = vtanh.f32 %v4711_v41 }
 0x7a5   :  { %v25889_v28 = vpop.eup %24020 }
 0x7a6   :  { %28900 = vst [vmem:[#allocation19_spill] sm:$0xff] %v25889_v28  ;;  %v25892_v8 = vand.u32 4294901760, %v25889_v28 }
 0x7a8   :  { %17884 = vmatmul.mubr.f32.vlgmr.msra.gmra.mrb[44].mxu0 %v25892_v8  ;;  %v4796_v30 = vsub.f32 %v25889_v28, %v25892_v8 }
 0x7a9   :  { %21754 = vmatpush3.bf16.msra.mxu0 %v25174_v33  ;;  %17953 = vmatprep.mubr.msk.f32.mxu0 %vm24175_vm4, %v28881_v59 }
 0x7aa   :  { %21755 = vmatprep.subr.bf16.mxu0 %v28709_v55  ;;  %v4797_v20 = vand.u32 4294901760, %v4796_v30 }
 0x7ac   :  { %v4798_v26 = vsub.f32 %v4796_v30, %v4797_v20 }
 0x7ad   :  { %21757 = vmatpush3.bf16.msra.mxu0 %v25195_v60 }
 0x7ae   :  { %21758 = vmatprep.subr.bf16.mxu0 %v28709_v55  ;;  %v4799_v0 = vand.u32 4294901760, %v4798_v26 }
 0x7b0   :  { %17849 = vmatmul.mubr.f32.vlgmr.msra.gmra.mrb[36].mxu1 %v4799_v0 }
 0x7b1   :  { %21730 = vmatpush3.bf16.msra.mxu1 %v28889_v50  ;;  %21760 = vmatpush3.bf16.msra.mxu0 %v25217_v49 }
 0x7b2   :  { %21731 = vmatprep.subr.bf16.mxu1 %v28709_v55  ;;  %21761 = vmatprep.subr.bf16.mxu0 %v28709_v55 }
 0x7b3   :  { %17918 = vmatprep.mubr.msk.f32.mxu1 %vm24175_vm4, %v28881_v59 }
 0x7b5   :  { %21733 = vmatpush3.bf16.msra.mxu1 %v28890_v7  ;;  %21763 = vmatpush3.bf16.msra.mxu0 %v25238_v16 }
 0x7b6   :  { %21734 = vmatprep.subr.bf16.mxu1 %v28709_v55  ;;  %21764 = vmatprep.subr.bf16.mxu0 %v28709_v55 }
 0x7b9   :  { %21736 = vmatpush3.bf16.msra.mxu1 %v28891_v62  ;;  %21766 = vmatpush3.bf16.msra.mxu0 %v25261_v9 }
 0x7ba   :  { %21737 = vmatprep.subr.bf16.mxu1 %v28709_v55  ;;  %21767 = vmatprep.subr.bf16.mxu0 %v28709_v55 }
 0x7bd   :  { %21739 = vmatpush3.bf16.msra.mxu1 %v28892_v37  ;;  %21769 = vmatpush3.bf16.msra.mxu0 %v25279_v10 }
 0x7be   :  { %21740 = vmatprep.subr.bf16.mxu1 %v28709_v55  ;;  %21770 = vmatprep.subr.bf16.mxu0 %v28709_v55 }
 0x7c1   :  { %21742 = vmatpush3.bf16.msra.mxu1 %v28893_v39  ;;  %21772 = vmatpush3.bf16.msra.mxu0 %v25297_v27 }
 0x7c2   :  { %21743 = vmatprep.subr.bf16.mxu1 %v28709_v55  ;;  %21773 = vmatprep.subr.bf16.mxu0 %v28709_v55 }
 0x7c5   :  { %21745 = vmatpush3.bf16.msra.mxu1 %v28894_v52  ;;  %21775 = vmatpush3.bf16.msra.mxu0 %v25318_v12 }
 0x7c6   :  { %21746 = vmatprep.subr.bf16.mxu1 %v28709_v55  ;;  %21800 = vmatprep.subr.bf16.mxu0 %v28709_v55 }
 0x7c8   :  { %17954 = vmatmul.mubr.f32.vlgmr.msra.gmra.mrb[46].mxu0 %v4797_v20 }
 0x7c9   :  { %21748 = vmatpush3.bf16.msra.mxu1 %v28895_v29  ;;  %21802 = vmatpush3.bf16.msra.mxu0 %v25174_v33 }
 0x7ca   :  { %21749 = vmatprep.subr.bf16.mxu1 %v28709_v55  ;;  %21803 = vmatprep.subr.bf16.mxu0 %v28709_v55 }
 0x7cb   :  { %18023 = vmatprep.mubr.msk.f32.mxu0 %vm24175_vm4, %v28881_v59 }
 0x7cd   :  { %21751 = vmatpush3.bf16.msra.mxu1 %v25106_v61  ;;  %21805 = vmatpush3.bf16.msra.mxu0 %v25195_v60 }
 0x7ce   :  { %21776 = vmatprep.subr.bf16.mxu1 %v28709_v55  ;;  %21806 = vmatprep.subr.bf16.mxu0 %v28709_v55 }
 0x7d0   :  { %17919 = vmatmul.mubr.f32.vlgmr.msra.gmra.mrb[38].mxu1 %v4796_v30 }
 0x7d1   :  { %21778 = vmatpush3.bf16.msra.mxu1 %v25162_v31  ;;  %21808 = vmatpush3.bf16.msra.mxu0 %v25217_v49 }
 0x7d2   :  { %21779 = vmatprep.subr.bf16.mxu1 %v28709_v55  ;;  %21809 = vmatprep.subr.bf16.mxu0 %v28709_v55 }
 0x7d3   :  { %17988 = vmatprep.mubr.msk.f32.mxu1 %vm24175_vm4, %v28881_v59 }
 0x7d5   :  { %21781 = vmatpush3.bf16.msra.mxu1 %v25181_v45  ;;  %21811 = vmatpush3.bf16.msra.mxu0 %v25238_v16 }
 0x7d6   :  { %21782 = vmatprep.subr.bf16.mxu1 %v28709_v55  ;;  %21812 = vmatprep.subr.bf16.mxu0 %v28709_v55 }
 0x7d9   :  { %21784 = vmatpush3.bf16.msra.mxu1 %v25203_v51  ;;  %21814 = vmatpush3.bf16.msra.mxu0 %v25261_v9 }
 0x7da   :  { %21785 = vmatprep.subr.bf16.mxu1 %v28709_v55  ;;  %21815 = vmatprep.subr.bf16.mxu0 %v28709_v55 }
 0x7dd   :  { %21787 = vmatpush3.bf16.msra.mxu1 %v25225_v17  ;;  %21817 = vmatpush3.bf16.msra.mxu0 %v25279_v10 }
 0x7de   :  { %21788 = vmatprep.subr.bf16.mxu1 %v28709_v55  ;;  %21818 = vmatprep.subr.bf16.mxu0 %v28709_v55 }
 0x7e1   :  { %21790 = vmatpush3.bf16.msra.mxu1 %v25248_v1  ;;  %21820 = vmatpush3.bf16.msra.mxu0 %v25297_v27 }
 0x7e2   :  { %21791 = vmatprep.subr.bf16.mxu1 %v28709_v55  ;;  %21821 = vmatprep.subr.bf16.mxu0 %v28709_v55 }
 0x7e5   :  { %21793 = vmatpush3.bf16.msra.mxu1 %v25269_v15  ;;  %21823 = vmatpush3.bf16.msra.mxu0 %v25318_v12 }
 0x7e6   :  { %21794 = vmatprep.subr.bf16.mxu1 %v28709_v55  ;;  %21848 = vmatprep.subr.bf16.mxu0 %v28709_v55 }
 0x7e8   :  { %18024 = vmatmul.mubr.f32.vlgmr.msra.gmra.mrb[48].mxu0 %v25892_v8 }
 0x7e9   :  { %21796 = vmatpush3.bf16.msra.mxu1 %v25287_v43  ;;  %21850 = vmatpush3.bf16.msra.mxu0 %v25337_v22 }
 0x7ea   :  { %21797 = vmatprep.subr.bf16.mxu1 %v28709_v55  ;;  %21851 = vmatprep.subr.bf16.mxu0 %v28709_v55 }
 0x7eb   :  { %18093 = vmatprep.mubr.msk.f32.mxu0 %vm24175_vm4, %v28881_v59 }
 0x7ed   :  { %21799 = vmatpush3.bf16.msra.mxu1 %v25311_v46  ;;  %21853 = vmatpush3.bf16.msra.mxu0 %v25347_v56 }
 0x7ee   :  { %21824 = vmatprep.subr.bf16.mxu1 %v28709_v55  ;;  %21854 = vmatprep.subr.bf16.mxu0 %v28709_v55 }
 0x7f0   :  { %17989 = vmatmul.mubr.f32.vlgmr.msra.gmra.mrb[40].mxu1 %v25892_v8 }
 0x7f1   :  { %21826 = vmatpush3.bf16.msra.mxu1 %v25174_v33  ;;  %21856 = vmatpush3.bf16.msra.mxu0 %v25360_v5 }
 0x7f2   :  { %21827 = vmatprep.subr.bf16.mxu1 %v28709_v55  ;;  %21857 = vmatprep.subr.bf16.mxu0 %v28709_v55 }
 0x7f3   :  { %18058 = vmatprep.mubr.msk.f32.mxu1 %vm24175_vm4, %v28881_v59 }
 0x7f5   :  { %21829 = vmatpush3.bf16.msra.mxu1 %v25195_v60  ;;  %21859 = vmatpush3.bf16.msra.mxu0 %v25379_v25 }
 0x7f6   :  { %21830 = vmatprep.subr.bf16.mxu1 %v28709_v55  ;;  %21860 = vmatprep.subr.bf16.mxu0 %v28709_v55 }
 0x7f9   :  { %21832 = vmatpush3.bf16.msra.mxu1 %v25217_v49  ;;  %21862 = vmatpush3.bf16.msra.mxu0 %v25385_v57 }
 0x7fa   :  { %21833 = vmatprep.subr.bf16.mxu1 %v28709_v55  ;;  %21863 = vmatprep.subr.bf16.mxu0 %v28709_v55 }
 0x7fd   :  { %21835 = vmatpush3.bf16.msra.mxu1 %v25238_v16  ;;  %21865 = vmatpush3.bf16.msra.mxu0 %v25396_v32 }
 0x7fe   :  { %21836 = vmatprep.subr.bf16.mxu1 %v28709_v55  ;;  %21866 = vmatprep.subr.bf16.mxu0 %v28709_v55 }
 0x801   :  { %21838 = vmatpush3.bf16.msra.mxu1 %v25261_v9  ;;  %21868 = vmatpush3.bf16.msra.mxu0 %v25409_v3 }
 0x802   :  { %21839 = vmatprep.subr.bf16.mxu1 %v28709_v55  ;;  %21869 = vmatprep.subr.bf16.mxu0 %v28709_v55 }
 0x805   :  { %21841 = vmatpush3.bf16.msra.mxu1 %v25279_v10  ;;  %21871 = vmatpush3.bf16.msra.mxu0 %v25415_v44 }
 0x806   :  { %21842 = vmatprep.subr.bf16.mxu1 %v28709_v55  ;;  %21896 = vmatprep.subr.bf16.mxu0 %v28709_v55 }
 0x809   :  { %21844 = vmatpush3.bf16.msra.mxu1 %v25297_v27 }
 0x80a   :  { %21845 = vmatprep.subr.bf16.mxu1 %v28709_v55 }
 0x80d   :  { %21847 = vmatpush3.bf16.msra.mxu1 %v25318_v12 }
 0x80e   :  { %21872 = vmatprep.subr.bf16.mxu1 %v28709_v55 }
 0x87b   :  { %v4952_v18 = vpop.f32.mrb[44].mxu0 }
 0x87c   :  { %v17885_v47 = vpop.f32.mrb[45].mxu0 }
 0x883   :  { %v4801_v42 = vpop.f32.mrb[36].mxu1 }
 0x884   :  { %v4953_v58 = vadd.f32 %v4952_v18, %v4801_v42  ;;  %v17850_v34 = vpop.f32.mrb[37].mxu1 }
 0x89b   :  { %v5145_v23 = vpop.f32.mrb[46].mxu0 }
 0x89c   :  { %v17955_v21 = vpop.f32.mrb[47].mxu0 }
 0x8a3   :  { %v5056_v38 = vpop.f32.mrb[38].mxu1 }
 0x8a4   :  { %v5057_v4 = vadd.f32 %v5056_v38, %v4953_v58  ;;  %v17920_v53 = vpop.f32.mrb[39].mxu1 }
 0x8a6   :  { %v5146_v35 = vadd.f32 %v5145_v23, %v5057_v4 }
 0x8bb   :  { %v5351_v2 = vpop.f32.mrb[48].mxu0 }
 0x8bc   :  { %v18025_v54 = vpop.f32.mrb[49].mxu0 }
 0x8c3   :  { %v5264_v19 = vpop.f32.mrb[40].mxu1 }
 0x8c4   :  { %v5265_v63 = vadd.f32 %v5264_v19, %v5146_v35  ;;  %v17990_v41 = vpop.f32.mrb[41].mxu1 }
 0x8c6   :  { %v5352_v8 = vadd.f32 %v5351_v2, %v5265_v63 }
 0x8c8   :  { %v5355_v30 = vadd.f32 %v5352_v8, %v25516_v14 }
 0x8ca   :  { %24022 = vtanh.f32 %v5355_v30 }
 0x8d4   :  { %v26008_v20 = vpop.eup %24022 }
 0x8d5   :  { %28901 = vst [vmem:[#allocation17_spill] sm:$0xff] %v26008_v20  ;;  %v26011_v26 = vand.u32 4294901760, %v26008_v20 }
 0x8d7   :  { %18094 = vmatmul.mubr.f32.vlgmr.msra.gmra.mrb[50].mxu0 %v26011_v26  ;;  %v5440_v0 = vsub.f32 %v26008_v20, %v26011_v26 }
 0x8d8   :  { %21898 = vmatpush3.bf16.msra.mxu0 %v25174_v33  ;;  %18163 = vmatprep.mubr.msk.f32.mxu0 %vm24175_vm4, %v28881_v59 }
 0x8d9   :  { %21899 = vmatprep.subr.bf16.mxu0 %v28709_v55  ;;  %v5441_v18 = vand.u32 4294901760, %v5440_v0 }
 0x8db   :  { %v5442_v14 = vsub.f32 %v5440_v0, %v5441_v18 }
 0x8dc   :  { %21901 = vmatpush3.bf16.msra.mxu0 %v25195_v60 }
 0x8dd   :  { %21902 = vmatprep.subr.bf16.mxu0 %v28709_v55  ;;  %v5443_v47 = vand.u32 4294901760, %v5442_v14 }
 0x8df   :  { %18059 = vmatmul.mubr.f32.vlgmr.msra.gmra.mrb[42].mxu1 %v5443_v47 }
 0x8e0   :  { %21874 = vmatpush3.bf16.msra.mxu1 %v28889_v50  ;;  %21904 = vmatpush3.bf16.msra.mxu0 %v25217_v49 }
 0x8e1   :  { %21875 = vmatprep.subr.bf16.mxu1 %v28709_v55  ;;  %21905 = vmatprep.subr.bf16.mxu0 %v28709_v55 }
 0x8e2   :  { %18128 = vmatprep.mubr.msk.f32.mxu1 %vm24175_vm4, %v28881_v59 }
 0x8e4   :  { %21877 = vmatpush3.bf16.msra.mxu1 %v28890_v7  ;;  %21907 = vmatpush3.bf16.msra.mxu0 %v25238_v16 }
 0x8e5   :  { %21878 = vmatprep.subr.bf16.mxu1 %v28709_v55  ;;  %21908 = vmatprep.subr.bf16.mxu0 %v28709_v55 }
 0x8e8   :  { %21880 = vmatpush3.bf16.msra.mxu1 %v28891_v62  ;;  %21910 = vmatpush3.bf16.msra.mxu0 %v25261_v9 }
 0x8e9   :  { %21881 = vmatprep.subr.bf16.mxu1 %v28709_v55  ;;  %21911 = vmatprep.subr.bf16.mxu0 %v28709_v55 }
 0x8ec   :  { %21883 = vmatpush3.bf16.msra.mxu1 %v28892_v37  ;;  %21913 = vmatpush3.bf16.msra.mxu0 %v25279_v10 }
 0x8ed   :  { %21884 = vmatprep.subr.bf16.mxu1 %v28709_v55  ;;  %21914 = vmatprep.subr.bf16.mxu0 %v28709_v55 }
 0x8f0   :  { %21886 = vmatpush3.bf16.msra.mxu1 %v28893_v39  ;;  %21916 = vmatpush3.bf16.msra.mxu0 %v25297_v27 }
 0x8f1   :  { %21887 = vmatprep.subr.bf16.mxu1 %v28709_v55  ;;  %21917 = vmatprep.subr.bf16.mxu0 %v28709_v55 }
 0x8f4   :  { %21889 = vmatpush3.bf16.msra.mxu1 %v28894_v52  ;;  %21919 = vmatpush3.bf16.msra.mxu0 %v25318_v12 }
 0x8f5   :  { %21890 = vmatprep.subr.bf16.mxu1 %v28709_v55  ;;  %21944 = vmatprep.subr.bf16.mxu0 %v28709_v55 }
 0x8f7   :  { %18164 = vmatmul.mubr.f32.vlgmr.msra.gmra.mrb[52].mxu0 %v5441_v18 }
 0x8f8   :  { %21892 = vmatpush3.bf16.msra.mxu1 %v28895_v29  ;;  %21946 = vmatpush3.bf16.msra.mxu0 %v25174_v33 }
 0x8f9   :  { %21893 = vmatprep.subr.bf16.mxu1 %v28709_v55  ;;  %21947 = vmatprep.subr.bf16.mxu0 %v28709_v55 }
 0x8fa   :  { %18233 = vmatprep.mubr.msk.f32.mxu0 %vm24175_vm4, %v28881_v59 }
 0x8fc   :  { %21895 = vmatpush3.bf16.msra.mxu1 %v25106_v61  ;;  %21949 = vmatpush3.bf16.msra.mxu0 %v25195_v60 }
 0x8fd   :  { %21920 = vmatprep.subr.bf16.mxu1 %v28709_v55  ;;  %21950 = vmatprep.subr.bf16.mxu0 %v28709_v55 }
 0x8ff   :  { %18129 = vmatmul.mubr.f32.vlgmr.msra.gmra.mrb[44].mxu1 %v5440_v0 }
 0x900   :  { %21922 = vmatpush3.bf16.msra.mxu1 %v25162_v31  ;;  %21952 = vmatpush3.bf16.msra.mxu0 %v25217_v49 }
 0x901   :  { %21923 = vmatprep.subr.bf16.mxu1 %v28709_v55  ;;  %21953 = vmatprep.subr.bf16.mxu0 %v28709_v55 }
 0x902   :  { %18198 = vmatprep.mubr.msk.f32.mxu1 %vm24175_vm4, %v28881_v59 }
 0x904   :  { %21925 = vmatpush3.bf16.msra.mxu1 %v25181_v45  ;;  %21955 = vmatpush3.bf16.msra.mxu0 %v25238_v16 }
 0x905   :  { %21926 = vmatprep.subr.bf16.mxu1 %v28709_v55  ;;  %21956 = vmatprep.subr.bf16.mxu0 %v28709_v55 }
 0x908   :  { %21928 = vmatpush3.bf16.msra.mxu1 %v25203_v51  ;;  %21958 = vmatpush3.bf16.msra.mxu0 %v25261_v9 }
 0x909   :  { %21929 = vmatprep.subr.bf16.mxu1 %v28709_v55  ;;  %21959 = vmatprep.subr.bf16.mxu0 %v28709_v55 }
 0x90c   :  { %21931 = vmatpush3.bf16.msra.mxu1 %v25225_v17  ;;  %21961 = vmatpush3.bf16.msra.mxu0 %v25279_v10 }
 0x90d   :  { %21932 = vmatprep.subr.bf16.mxu1 %v28709_v55  ;;  %21962 = vmatprep.subr.bf16.mxu0 %v28709_v55 }
 0x910   :  { %21934 = vmatpush3.bf16.msra.mxu1 %v25248_v1  ;;  %21964 = vmatpush3.bf16.msra.mxu0 %v25297_v27 }
 0x911   :  { %21935 = vmatprep.subr.bf16.mxu1 %v28709_v55  ;;  %21965 = vmatprep.subr.bf16.mxu0 %v28709_v55 }
 0x914   :  { %21937 = vmatpush3.bf16.msra.mxu1 %v25269_v15  ;;  %21967 = vmatpush3.bf16.msra.mxu0 %v25318_v12 }
 0x915   :  { %21938 = vmatprep.subr.bf16.mxu1 %v28709_v55  ;;  %21992 = vmatprep.subr.bf16.mxu0 %v28709_v55 }
 0x917   :  { %18234 = vmatmul.mubr.f32.vlgmr.msra.gmra.mrb[54].mxu0 %v26011_v26 }
 0x918   :  { %21940 = vmatpush3.bf16.msra.mxu1 %v25287_v43  ;;  %21994 = vmatpush3.bf16.msra.mxu0 %v25337_v22 }
 0x919   :  { %21941 = vmatprep.subr.bf16.mxu1 %v28709_v55  ;;  %21995 = vmatprep.subr.bf16.mxu0 %v28709_v55 }
 0x91a   :  { %18303 = vmatprep.mubr.msk.f32.mxu0 %vm24175_vm4, %v28881_v59 }
 0x91c   :  { %21943 = vmatpush3.bf16.msra.mxu1 %v25311_v46  ;;  %21997 = vmatpush3.bf16.msra.mxu0 %v25347_v56 }
 0x91d   :  { %21968 = vmatprep.subr.bf16.mxu1 %v28709_v55  ;;  %21998 = vmatprep.subr.bf16.mxu0 %v28709_v55 }
 0x91f   :  { %18199 = vmatmul.mubr.f32.vlgmr.msra.gmra.mrb[46].mxu1 %v26011_v26 }
 0x920   :  { %21970 = vmatpush3.bf16.msra.mxu1 %v25174_v33  ;;  %22000 = vmatpush3.bf16.msra.mxu0 %v25360_v5 }
 0x921   :  { %21971 = vmatprep.subr.bf16.mxu1 %v28709_v55  ;;  %22001 = vmatprep.subr.bf16.mxu0 %v28709_v55 }
 0x922   :  { %18268 = vmatprep.mubr.msk.f32.mxu1 %vm24175_vm4, %v28881_v59 }
 0x924   :  { %21973 = vmatpush3.bf16.msra.mxu1 %v25195_v60  ;;  %22003 = vmatpush3.bf16.msra.mxu0 %v25379_v25 }
 0x925   :  { %21974 = vmatprep.subr.bf16.mxu1 %v28709_v55  ;;  %22004 = vmatprep.subr.bf16.mxu0 %v28709_v55 }
 0x928   :  { %21976 = vmatpush3.bf16.msra.mxu1 %v25217_v49  ;;  %22006 = vmatpush3.bf16.msra.mxu0 %v25385_v57 }
 0x929   :  { %21977 = vmatprep.subr.bf16.mxu1 %v28709_v55  ;;  %22007 = vmatprep.subr.bf16.mxu0 %v28709_v55 }
 0x92c   :  { %21979 = vmatpush3.bf16.msra.mxu1 %v25238_v16  ;;  %22009 = vmatpush3.bf16.msra.mxu0 %v25396_v32 }
 0x92d   :  { %21980 = vmatprep.subr.bf16.mxu1 %v28709_v55  ;;  %22010 = vmatprep.subr.bf16.mxu0 %v28709_v55 }
 0x930   :  { %21982 = vmatpush3.bf16.msra.mxu1 %v25261_v9  ;;  %22012 = vmatpush3.bf16.msra.mxu0 %v25409_v3 }
 0x931   :  { %21983 = vmatprep.subr.bf16.mxu1 %v28709_v55  ;;  %22013 = vmatprep.subr.bf16.mxu0 %v28709_v55 }
 0x934   :  { %21985 = vmatpush3.bf16.msra.mxu1 %v25279_v10  ;;  %22015 = vmatpush3.bf16.msra.mxu0 %v25415_v44 }
 0x935   :  { %21986 = vmatprep.subr.bf16.mxu1 %v28709_v55  ;;  %22040 = vmatprep.subr.bf16.mxu0 %v28709_v55 }
 0x938   :  { %21988 = vmatpush3.bf16.msra.mxu1 %v25297_v27 }
 0x939   :  { %21989 = vmatprep.subr.bf16.mxu1 %v28709_v55 }
 0x93c   :  { %21991 = vmatpush3.bf16.msra.mxu1 %v25318_v12 }
 0x93d   :  { %22016 = vmatprep.subr.bf16.mxu1 %v28709_v55 }
 0x9aa   :  { %v5596_v42 = vpop.f32.mrb[50].mxu0 }
 0x9ab   :  { %v18095_v58 = vpop.f32.mrb[51].mxu0 }
 0x9b2   :  { %v5445_v34 = vpop.f32.mrb[42].mxu1 }
 0x9b3   :  { %v5597_v23 = vadd.f32 %v5596_v42, %v5445_v34  ;;  %v18060_v21 = vpop.f32.mrb[43].mxu1 }
 0x9ca   :  { %v5789_v38 = vpop.f32.mrb[52].mxu0 }
 0x9cb   :  { %v18165_v4 = vpop.f32.mrb[53].mxu0 }
 0x9d2   :  { %v5700_v53 = vpop.f32.mrb[44].mxu1 }
 0x9d3   :  { %v5701_v35 = vadd.f32 %v5700_v53, %v5597_v23  ;;  %v18130_v2 = vpop.f32.mrb[45].mxu1 }
 0x9d5   :  { %v5790_v54 = vadd.f32 %v5789_v38, %v5701_v35 }
 0x9ea   :  { %v5995_v19 = vpop.f32.mrb[54].mxu0 }
 0x9eb   :  { %v18235_v63 = vpop.f32.mrb[55].mxu0 }
 0x9f2   :  { %v5908_v41 = vpop.f32.mrb[46].mxu1 }
 0x9f3   :  { %v5909_v8 = vadd.f32 %v5908_v41, %v5790_v54  ;;  %v18200_v30 = vpop.f32.mrb[47].mxu1 }
 0x9f5   :  { %v5996_v26 = vadd.f32 %v5995_v19, %v5909_v8 }
 0x9f7   :  { %v5999_v0 = vadd.f32 %v5996_v26, %v25508_v48 }
 0x9f9   :  { %24024 = vtanh.f32 %v5999_v0 }
 0xa03   :  { %v26127_v18 = vpop.eup %24024 }
 0xa04   :  { %28902 = vst [vmem:[#allocation24_spill] sm:$0xff] %v26127_v18  ;;  %v26130_v14 = vand.u32 4294901760, %v26127_v18 }
 0xa06   :  { %18304 = vmatmul.mubr.f32.vlgmr.msra.gmra.mrb[56].mxu0 %v26130_v14  ;;  %v6084_v47 = vsub.f32 %v26127_v18, %v26130_v14 }
 0xa07   :  { %22042 = vmatpush3.bf16.msra.mxu0 %v25174_v33  ;;  %18373 = vmatprep.mubr.msk.f32.mxu0 %vm24175_vm4, %v28881_v59 }
 0xa08   :  { %22043 = vmatprep.subr.bf16.mxu0 %v28709_v55  ;;  %v6085_v42 = vand.u32 4294901760, %v6084_v47 }
 0xa0a   :  { %v6086_v48 = vsub.f32 %v6084_v47, %v6085_v42 }
 0xa0b   :  { %22045 = vmatpush3.bf16.msra.mxu0 %v25195_v60 }
 0xa0c   :  { %22046 = vmatprep.subr.bf16.mxu0 %v28709_v55  ;;  %v6087_v58 = vand.u32 4294901760, %v6086_v48 }
 0xa0e   :  { %18269 = vmatmul.mubr.f32.vlgmr.msra.gmra.mrb[48].mxu1 %v6087_v58 }
 0xa0f   :  { %22018 = vmatpush3.bf16.msra.mxu1 %v28889_v50  ;;  %22048 = vmatpush3.bf16.msra.mxu0 %v25217_v49 }
 0xa10   :  { %22019 = vmatprep.subr.bf16.mxu1 %v28709_v55  ;;  %22049 = vmatprep.subr.bf16.mxu0 %v28709_v55 }
 0xa11   :  { %18338 = vmatprep.mubr.msk.f32.mxu1 %vm24175_vm4, %v28881_v59 }
 0xa13   :  { %22021 = vmatpush3.bf16.msra.mxu1 %v28890_v7  ;;  %22051 = vmatpush3.bf16.msra.mxu0 %v25238_v16 }
 0xa14   :  { %22022 = vmatprep.subr.bf16.mxu1 %v28709_v55  ;;  %22052 = vmatprep.subr.bf16.mxu0 %v28709_v55 }
 0xa17   :  { %22024 = vmatpush3.bf16.msra.mxu1 %v28891_v62  ;;  %22054 = vmatpush3.bf16.msra.mxu0 %v25261_v9 }
 0xa18   :  { %22025 = vmatprep.subr.bf16.mxu1 %v28709_v55  ;;  %22055 = vmatprep.subr.bf16.mxu0 %v28709_v55 }
 0xa1b   :  { %22027 = vmatpush3.bf16.msra.mxu1 %v28892_v37  ;;  %22057 = vmatpush3.bf16.msra.mxu0 %v25279_v10 }
 0xa1c   :  { %22028 = vmatprep.subr.bf16.mxu1 %v28709_v55  ;;  %22058 = vmatprep.subr.bf16.mxu0 %v28709_v55 }
 0xa1f   :  { %22030 = vmatpush3.bf16.msra.mxu1 %v28893_v39  ;;  %22060 = vmatpush3.bf16.msra.mxu0 %v25297_v27 }
 0xa20   :  { %22031 = vmatprep.subr.bf16.mxu1 %v28709_v55  ;;  %22061 = vmatprep.subr.bf16.mxu0 %v28709_v55 }
 0xa23   :  { %22033 = vmatpush3.bf16.msra.mxu1 %v28894_v52  ;;  %22063 = vmatpush3.bf16.msra.mxu0 %v25318_v12 }
 0xa24   :  { %22034 = vmatprep.subr.bf16.mxu1 %v28709_v55  ;;  %22088 = vmatprep.subr.bf16.mxu0 %v28709_v55 }
 0xa26   :  { %18374 = vmatmul.mubr.f32.vlgmr.msra.gmra.mrb[58].mxu0 %v6085_v42  ;;  %v26345_v42 = vld [vmem:[#allocation8 + $0x68] sm:$0xff] }
 0xa27   :  { %22036 = vmatpush3.bf16.msra.mxu1 %v28895_v29  ;;  %22090 = vmatpush3.bf16.msra.mxu0 %v25174_v33 }
 0xa28   :  { %22037 = vmatprep.subr.bf16.mxu1 %v28709_v55  ;;  %22091 = vmatprep.subr.bf16.mxu0 %v28709_v55 }
 0xa29   :  { %18443 = vmatprep.mubr.msk.f32.mxu0 %vm24175_vm4, %v28881_v59 }
 0xa2b   :  { %22039 = vmatpush3.bf16.msra.mxu1 %v25106_v61  ;;  %22093 = vmatpush3.bf16.msra.mxu0 %v25195_v60 }
 0xa2c   :  { %22064 = vmatprep.subr.bf16.mxu1 %v28709_v55  ;;  %22094 = vmatprep.subr.bf16.mxu0 %v28709_v55 }
 0xa2e   :  { %18339 = vmatmul.mubr.f32.vlgmr.msra.gmra.mrb[50].mxu1 %v6084_v47  ;;  %v26343_v47 = vld [vmem:[#allocation8 + $0x60] sm:$0xff] }
 0xa2f   :  { %22066 = vmatpush3.bf16.msra.mxu1 %v25162_v31  ;;  %22096 = vmatpush3.bf16.msra.mxu0 %v25217_v49 }
 0xa30   :  { %22067 = vmatprep.subr.bf16.mxu1 %v28709_v55  ;;  %22097 = vmatprep.subr.bf16.mxu0 %v28709_v55 }
 0xa31   :  { %18408 = vmatprep.mubr.msk.f32.mxu1 %vm24175_vm4, %v28881_v59 }
 0xa33   :  { %22069 = vmatpush3.bf16.msra.mxu1 %v25181_v45  ;;  %22099 = vmatpush3.bf16.msra.mxu0 %v25238_v16 }
 0xa34   :  { %22070 = vmatprep.subr.bf16.mxu1 %v28709_v55  ;;  %22100 = vmatprep.subr.bf16.mxu0 %v28709_v55 }
 0xa37   :  { %22072 = vmatpush3.bf16.msra.mxu1 %v25203_v51  ;;  %22102 = vmatpush3.bf16.msra.mxu0 %v25261_v9 }
 0xa38   :  { %22073 = vmatprep.subr.bf16.mxu1 %v28709_v55  ;;  %22103 = vmatprep.subr.bf16.mxu0 %v28709_v55 }
 0xa3b   :  { %22075 = vmatpush3.bf16.msra.mxu1 %v25225_v17  ;;  %22105 = vmatpush3.bf16.msra.mxu0 %v25279_v10 }
 0xa3c   :  { %22076 = vmatprep.subr.bf16.mxu1 %v28709_v55  ;;  %22106 = vmatprep.subr.bf16.mxu0 %v28709_v55 }
 0xa3f   :  { %22078 = vmatpush3.bf16.msra.mxu1 %v25248_v1  ;;  %22108 = vmatpush3.bf16.msra.mxu0 %v25297_v27 }
 0xa40   :  { %22079 = vmatprep.subr.bf16.mxu1 %v28709_v55  ;;  %22109 = vmatprep.subr.bf16.mxu0 %v28709_v55 }
 0xa43   :  { %22081 = vmatpush3.bf16.msra.mxu1 %v25269_v15  ;;  %22111 = vmatpush3.bf16.msra.mxu0 %v25318_v12 }
 0xa44   :  { %22082 = vmatprep.subr.bf16.mxu1 %v28709_v55  ;;  %22136 = vmatprep.subr.bf16.mxu0 %v28709_v55 }
 0xa46   :  { %18444 = vmatmul.mubr.f32.vlgmr.msra.gmra.mrb[60].mxu0 %v26130_v14 }
 0xa47   :  { %22084 = vmatpush3.bf16.msra.mxu1 %v25287_v43  ;;  %22138 = vmatpush3.bf16.msra.mxu0 %v25337_v22 }
 0xa48   :  { %22085 = vmatprep.subr.bf16.mxu1 %v28709_v55  ;;  %22139 = vmatprep.subr.bf16.mxu0 %v28709_v55 }
 0xa49   :  { %18513 = vmatprep.mubr.msk.f32.mxu0 %vm24175_vm4, %v28881_v59 }
 0xa4b   :  { %22087 = vmatpush3.bf16.msra.mxu1 %v25311_v46  ;;  %22141 = vmatpush3.bf16.msra.mxu0 %v25347_v56 }
 0xa4c   :  { %22112 = vmatprep.subr.bf16.mxu1 %v28709_v55  ;;  %22142 = vmatprep.subr.bf16.mxu0 %v28709_v55 }
 0xa4e   :  { %18409 = vmatmul.mubr.f32.vlgmr.msra.gmra.mrb[52].mxu1 %v26130_v14  ;;  %v8289_v14 = vld [vmem:[#allocation8 + $0x58] sm:$0xff] }
 0xa4f   :  { %22114 = vmatpush3.bf16.msra.mxu1 %v25174_v33  ;;  %22144 = vmatpush3.bf16.msra.mxu0 %v25360_v5 }
 0xa50   :  { %22115 = vmatprep.subr.bf16.mxu1 %v28709_v55  ;;  %22145 = vmatprep.subr.bf16.mxu0 %v28709_v55 }
 0xa51   :  { %18478 = vmatprep.mubr.msk.f32.mxu1 %vm24175_vm4, %v28881_v59 }
 0xa53   :  { %22117 = vmatpush3.bf16.msra.mxu1 %v25195_v60  ;;  %22147 = vmatpush3.bf16.msra.mxu0 %v25379_v25 }
 0xa54   :  { %22118 = vmatprep.subr.bf16.mxu1 %v28709_v55  ;;  %22148 = vmatprep.subr.bf16.mxu0 %v28709_v55 }
 0xa57   :  { %22120 = vmatpush3.bf16.msra.mxu1 %v25217_v49  ;;  %22150 = vmatpush3.bf16.msra.mxu0 %v25385_v57 }
 0xa58   :  { %22121 = vmatprep.subr.bf16.mxu1 %v28709_v55  ;;  %22151 = vmatprep.subr.bf16.mxu0 %v28709_v55 }
 0xa5b   :  { %22123 = vmatpush3.bf16.msra.mxu1 %v25238_v16  ;;  %22153 = vmatpush3.bf16.msra.mxu0 %v25396_v32 }
 0xa5c   :  { %22124 = vmatprep.subr.bf16.mxu1 %v28709_v55  ;;  %22154 = vmatprep.subr.bf16.mxu0 %v28709_v55 }
 0xa5f   :  { %22126 = vmatpush3.bf16.msra.mxu1 %v25261_v9  ;;  %22156 = vmatpush3.bf16.msra.mxu0 %v25409_v3 }
 0xa60   :  { %22127 = vmatprep.subr.bf16.mxu1 %v28709_v55  ;;  %22157 = vmatprep.subr.bf16.mxu0 %v28709_v55 }
 0xa63   :  { %22129 = vmatpush3.bf16.msra.mxu1 %v25279_v10  ;;  %22159 = vmatpush3.bf16.msra.mxu0 %v25415_v44 }
 0xa64   :  { %22130 = vmatprep.subr.bf16.mxu1 %v28709_v55  ;;  %22184 = vmatprep.subr.bf16.mxu0 %v28709_v55 }
 0xa67   :  { %22132 = vmatpush3.bf16.msra.mxu1 %v25297_v27 }
 0xa68   :  { %22133 = vmatprep.subr.bf16.mxu1 %v28709_v55 }
 0xa6b   :  { %22135 = vmatpush3.bf16.msra.mxu1 %v25318_v12 }
 0xa6c   :  { %22160 = vmatprep.subr.bf16.mxu1 %v28709_v55 }
 0xad9   :  { %v6240_v22 = vpop.f32.mrb[56].mxu0 }
 0xada   :  { %v18305_v56 = vpop.f32.mrb[57].mxu0 }
 0xae1   :  { %v6089_v5 = vpop.f32.mrb[48].mxu1 }
 0xae2   :  { %v6241_v25 = vadd.f32 %v6240_v22, %v6089_v5  ;;  %v18270_v57 = vpop.f32.mrb[49].mxu1  ;;  %v8329_v5 = vand.u32 4294901760, %v8289_v14 }
 0xae3   :  { %v8335_v57 = vand.u32 4294901760, %v26345_v42 }
 0xaf9   :  { %v6433_v32 = vpop.f32.mrb[58].mxu0 }
 0xafa   :  { %v18375_v3 = vpop.f32.mrb[59].mxu0 }
 0xb01   :  { %v6344_v44 = vpop.f32.mrb[50].mxu1 }
 0xb02   :  { %v6345_v34 = vadd.f32 %v6344_v44, %v6241_v25  ;;  %v18340_v23 = vpop.f32.mrb[51].mxu1  ;;  %v8332_v25 = vand.u32 4294901760, %v26343_v47 }
 0xb03   :  { %v26364_v23 = vld [vmem:[#allocation8 + $0x78] sm:$0xff] }
 0xb04   :  { %v6434_v21 = vadd.f32 %v6433_v32, %v6345_v34  ;;  %v26362_v34 = vld [vmem:[#allocation8 + $0x70] sm:$0xff] }
 0xb19   :  { %v6639_v38 = vpop.f32.mrb[60].mxu0 }
 0xb1a   :  { %v18445_v4 = vpop.f32.mrb[61].mxu0 }
 0xb1b   :  { %v26375_v4 = vpack.c.bf16 %v8335_v57, %v8332_v25 }
 0xb1d   :  { %28905 = vst [vmem:[#allocation22_spill] sm:$0xff] %v26375_v4 }
 0xb21   :  { %v6552_v53 = vpop.f32.mrb[52].mxu1 }
 0xb22   :  { %v6553_v35 = vadd.f32 %v6552_v53, %v6434_v21  ;;  %v18410_v2 = vpop.f32.mrb[53].mxu1  ;;  %v8338_v53 = vand.u32 4294901760, %v26362_v34 }
 0xb24   :  { %v6640_v54 = vadd.f32 %v6639_v38, %v6553_v35  ;;  %v8341_v35 = vand.u32 4294901760, %v26364_v23 }
 0xb26   :  { %v6643_v19 = vadd.f32 %v6640_v54, %v25530_v24 }
 0xb28   :  { %24026 = vtanh.f32 %v6643_v19 }
 0xb32   :  { %v26246_v63 = vpop.eup %24026 }
 0xb33   :  { %v26249_v41 = vand.u32 4294901760, %v26246_v63 }
 0xb35   :  { %18514 = vmatmul.mubr.f32.vlgmr.msra.gmra.mrb[62].mxu0 %v26249_v41  ;;  %v6728_v8 = vsub.f32 %v26246_v63, %v26249_v41 }
 0xb36   :  { %22186 = vmatpush3.bf16.msra.mxu0 %v25174_v33  ;;  %18583 = vmatprep.mubr.msk.f32.mxu0 %vm24175_vm4, %v28881_v59 }
 0xb37   :  { %22187 = vmatprep.subr.bf16.mxu0 %v28709_v55  ;;  %v6729_v30 = vand.u32 4294901760, %v6728_v8 }
 0xb39   :  { %v6730_v24 = vsub.f32 %v6728_v8, %v6729_v30 }
 0xb3a   :  { %22189 = vmatpush3.bf16.msra.mxu0 %v25195_v60 }
 0xb3b   :  { %22190 = vmatprep.subr.bf16.mxu0 %v28709_v55  ;;  %v6731_v26 = vand.u32 4294901760, %v6730_v24 }
 0xb3d   :  { %18479 = vmatmul.mubr.f32.vlgmr.msra.gmra.mrb[54].mxu1 %v6731_v26 }
 0xb3e   :  { %22162 = vmatpush3.bf16.msra.mxu1 %v28889_v50  ;;  %22192 = vmatpush3.bf16.msra.mxu0 %v25217_v49  ;;  %v8285_v50 = vld [vmem:[#allocation8 + $0x38] sm:$0xff] }
 0xb3f   :  { %22163 = vmatprep.subr.bf16.mxu1 %v28709_v55  ;;  %22193 = vmatprep.subr.bf16.mxu0 %v28709_v55 }
 0xb40   :  { %18548 = vmatprep.mubr.msk.f32.mxu1 %vm24175_vm4, %v28881_v59 }
 0xb42   :  { %22165 = vmatpush3.bf16.msra.mxu1 %v28890_v7  ;;  %22195 = vmatpush3.bf16.msra.mxu0 %v25238_v16 }
 0xb43   :  { %22166 = vmatprep.subr.bf16.mxu1 %v28709_v55  ;;  %22196 = vmatprep.subr.bf16.mxu0 %v28709_v55 }
 0xb46   :  { %22168 = vmatpush3.bf16.msra.mxu1 %v28891_v62  ;;  %22198 = vmatpush3.bf16.msra.mxu0 %v25261_v9  ;;  %v8317_v62 = vand.u32 4294901760, %v8285_v50 }
 0xb47   :  { %22169 = vmatprep.subr.bf16.mxu1 %v28709_v55  ;;  %22199 = vmatprep.subr.bf16.mxu0 %v28709_v55 }
 0xb48   :  { %v26395_v26 = vsub.f32 %v8285_v50, %v8317_v62 }
 0xb4a   :  { %22171 = vmatpush3.bf16.msra.mxu1 %v28892_v37  ;;  %22201 = vmatpush3.bf16.msra.mxu0 %v25279_v10  ;;  %v8286_v37 = vld [vmem:[#allocation8 + $0x40] sm:$0xff] }
 0xb4b   :  { %22172 = vmatprep.subr.bf16.mxu1 %v28709_v55  ;;  %22202 = vmatprep.subr.bf16.mxu0 %v28709_v55 }
 0xb4e   :  { %22174 = vmatpush3.bf16.msra.mxu1 %v28893_v39  ;;  %22204 = vmatpush3.bf16.msra.mxu0 %v25297_v27  ;;  %v8287_v39 = vld [vmem:[#allocation8 + $0x48] sm:$0xff] }
 0xb4f   :  { %22175 = vmatprep.subr.bf16.mxu1 %v28709_v55  ;;  %22205 = vmatprep.subr.bf16.mxu0 %v28709_v55  ;;  %v8323_v0 = vand.u32 4294901760, %v8287_v39 }
 0xb52   :  { %22177 = vmatpush3.bf16.msra.mxu1 %v28894_v52  ;;  %22207 = vmatpush3.bf16.msra.mxu0 %v25318_v12 }
 0xb53   :  { %22178 = vmatprep.subr.bf16.mxu1 %v28709_v55  ;;  %22232 = vmatprep.subr.bf16.mxu0 %v28709_v55 }
 0xb55   :  { %18584 = vmatmul.mubr.f32.vlgmr.msra.gmra.mrb[64].mxu0 %v6729_v30 }
 0xb56   :  { %22180 = vmatpush3.bf16.msra.mxu1 %v28895_v29  ;;  %22234 = vmatpush3.bf16.msra.mxu0 %v25174_v33  ;;  %v8320_v29 = vand.u32 4294901760, %v8286_v37 }
 0xb57   :  { %22181 = vmatprep.subr.bf16.mxu1 %v28709_v55  ;;  %22235 = vmatprep.subr.bf16.mxu0 %v28709_v55 }
 0xb58   :  { %18653 = vmatprep.mubr.msk.f32.mxu0 %vm24175_vm4, %v28881_v59  ;;  %v26352_v22 = vpack.c.bf16 %v8323_v0, %v8320_v29 }
 0xb5a   :  { %22183 = vmatpush3.bf16.msra.mxu1 %v25106_v61  ;;  %22237 = vmatpush3.bf16.msra.mxu0 %v25195_v60  ;;  %v8278_v61 = vld [vmem:[#allocation8] sm:$0xff]  ;;  %v8280_v60 = vld [vmem:[#allocation8 + $0x10] sm:$0xff]  ;;  %28903 = vst [vmem:[#allocation20_spill] sm:$0xff] %v26352_v22 }
 0xb5b   :  { %22208 = vmatprep.subr.bf16.mxu1 %v28709_v55  ;;  %22238 = vmatprep.subr.bf16.mxu0 %v28709_v55  ;;  %v8296_v33 = vand.u32 4294901760, %v8278_v61 }
 0xb5d   :  { %18549 = vmatmul.mubr.f32.vlgmr.msra.gmra.mrb[56].mxu1 %v6728_v8  ;;  %v26347_v48 = vsub.f32 %v8278_v61, %v8296_v33  ;;  %v26401_v61 = vpack.c.bf16 %v8341_v35, %v8338_v53 }
 0xb5e   :  { %22210 = vmatpush3.bf16.msra.mxu1 %v25162_v31  ;;  %22240 = vmatpush3.bf16.msra.mxu0 %v25217_v49  ;;  %v8279_v31 = vld [vmem:[#allocation8 + $0x8] sm:$0xff] }
 0xb5f   :  { %22211 = vmatprep.subr.bf16.mxu1 %v28709_v55  ;;  %22241 = vmatprep.subr.bf16.mxu0 %v28709_v55  ;;  %v28704_v32 = vand.u32 4294901760, %v26347_v48  ;;  %28906 = vst [vmem:[#allocation23_spill] sm:$0xff] %v26401_v61 }
 0xb60   :  { %18618 = vmatprep.mubr.msk.f32.mxu1 %vm24175_vm4, %v28881_v59 }
 0xb61   :  { %v8385_v2 = vsub.f32 %v26347_v48, %v28704_v32 }
 0xb62   :  { %22213 = vmatpush3.bf16.msra.mxu1 %v25181_v45  ;;  %22243 = vmatpush3.bf16.msra.mxu0 %v25238_v16  ;;  %v8299_v45 = vand.u32 4294901760, %v8279_v31 }
 0xb63   :  { %22214 = vmatprep.subr.bf16.mxu1 %v28709_v55  ;;  %22244 = vmatprep.subr.bf16.mxu0 %v28709_v55 }
 0xb64   :  { %v26320_v49 = vpack.c.bf16 %v8299_v45, %v8296_v33  ;;  %v26349_v58 = vsub.f32 %v8279_v31, %v8299_v45  ;;  %v8386_v31 = vand.u32 4294901760, %v8385_v2 }
 0xb66   :  { %22216 = vmatpush3.bf16.msra.mxu1 %v25203_v51  ;;  %22246 = vmatpush3.bf16.msra.mxu0 %v25261_v9  ;;  %v8281_v51 = vld [vmem:[#allocation8 + $0x18] sm:$0xff]  ;;  %v8283_v9 = vld [vmem:[#allocation8 + $0x28] sm:$0xff]  ;;  %v28703_v3 = vand.u32 4294901760, %v26349_v58 }
 0xb67   :  { %22217 = vmatprep.subr.bf16.mxu1 %v28709_v55  ;;  %22247 = vmatprep.subr.bf16.mxu0 %v28709_v55  ;;  %v8305_v16 = vand.u32 4294901760, %v8281_v51 }
 0xb68   :  { %v8392_v54 = vsub.f32 %v26349_v58, %v28703_v3  ;;  %v26619_v3 = vld [vmem:[%s28655_s5 + $0x28] sm:$0xff] }
 0xb69   :  { %v26368_v38 = vsub.f32 %v8281_v51, %v8305_v16 }
 0xb6a   :  { %22219 = vmatpush3.bf16.msra.mxu1 %v25225_v17  ;;  %22249 = vmatpush3.bf16.msra.mxu0 %v25279_v10  ;;  %v8302_v17 = vand.u32 4294901760, %v8280_v60  ;;  %v8393_v33 = vand.u32 4294901760, %v8392_v54  ;;  %v26440_v54 = vsub.f32 %v8289_v14, %v8329_v5 }
 0xb6b   :  { %22220 = vmatprep.subr.bf16.mxu1 %v28709_v55  ;;  %22250 = vmatprep.subr.bf16.mxu0 %v28709_v55 }
 0xb6c   :  { %v26327_v10 = vpack.c.bf16 %v8305_v16, %v8302_v17  ;;  %v26366_v21 = vsub.f32 %v8280_v60, %v8302_v17 }
 0xb6e   :  { %22222 = vmatpush3.bf16.msra.mxu1 %v25248_v1  ;;  %22252 = vmatpush3.bf16.msra.mxu0 %v25297_v27  ;;  %v8282_v1 = vld [vmem:[#allocation8 + $0x20] sm:$0xff]  ;;  %v8311_v27 = vand.u32 4294901760, %v8283_v9  ;;  %v28702_v19 = vand.u32 4294901760, %v26366_v21 }
 0xb6f   :  { %22223 = vmatprep.subr.bf16.mxu1 %v28709_v55  ;;  %22253 = vmatprep.subr.bf16.mxu0 %v28709_v55 }
 0xb70   :  { %v26390_v30 = vsub.f32 %v8283_v9, %v8311_v27  ;;  %v8399_v45 = vsub.f32 %v26366_v21, %v28702_v19  ;;  %v26415_v9 = vpack.c.bf16 %v8393_v33, %v8386_v31  ;;  %v26614_v19 = vld [vmem:[%s28655_s5 + $0x20] sm:$0xff] }
 0xb71   :  { %v28714_v32 = vand.u32 4294901760, %v26614_v19 }
 0xb72   :  { %22225 = vmatpush3.bf16.msra.mxu1 %v25269_v15  ;;  %22255 = vmatpush3.bf16.msra.mxu0 %v25318_v12  ;;  %v8308_v15 = vand.u32 4294901760, %v8282_v1  ;;  %v8284_v12 = vld [vmem:[#allocation8 + $0x30] sm:$0xff]  ;;  %v28699_v17 = vand.u32 4294901760, %v26390_v30  ;;  %28907 = vst [vmem:[#allocation25_spill] sm:$0xff] %v26415_v9 }
 0xb73   :  { %22226 = vmatprep.subr.bf16.mxu1 %v28709_v55  ;;  %22448 = vmatprep.subr.bf16.mxu0 %v28709_v55  ;;  %v8314_v7 = vand.u32 4294901760, %v8284_v12 }
 0xb74   :  { %v26388_v8 = vsub.f32 %v8282_v1, %v8308_v15  ;;  %v28689_v1 = vand.u32 4294901760, %v26395_v26 }
 0xb75   :  { %18654 = vmatmul.mubr.f32.vlgmr.msra.gmra.mrb[66].mxu0 %v26249_v41  ;;  %v26340_v52 = vpack.c.bf16 %v8317_v62, %v8314_v7  ;;  %v26393_v24 = vsub.f32 %v8284_v12, %v8314_v7  ;;  %v8400_v12 = vand.u32 4294901760, %v8399_v45  ;;  %v8420_v62 = vsub.f32 %v26390_v30, %v28699_v17 }
 0xb76   :  { %22228 = vmatpush3.bf16.msra.mxu1 %v25287_v43  ;;  %22450 = vmatpush3.bf16.msra.mxu0 %v26320_v49  ;;  %v26335_v43 = vpack.c.bf16 %v8311_v27, %v8308_v15  ;;  %v28700_v51 = vand.u32 4294901760, %v26388_v8  ;;  %v26417_v15 = vsub.f32 %v8286_v37, %v8320_v29  ;;  %v26419_v27 = vsub.f32 %v8287_v39, %v8323_v0 }
 0xb77   :  { %22229 = vmatprep.subr.bf16.mxu1 %v28709_v55  ;;  %22451 = vmatprep.subr.bf16.mxu0 %v28709_v55  ;;  %v28698_v16 = vand.u32 4294901760, %v26393_v24  ;;  %v8434_v39 = vsub.f32 %v26395_v26, %v28689_v1  ;;  %v8421_v45 = vand.u32 4294901760, %v8420_v62 }
 0xb78   :  { %18952 = vmatprep.mubr.msk.f32.mxu0 %vm24175_vm4, %v28881_v59  ;;  %v8413_v7 = vsub.f32 %v26388_v8, %v28700_v51  ;;  %v28697_v29 = vand.u32 4294901760, %v26417_v15  ;;  %v28696_v0 = vand.u32 4294901760, %v26419_v27 }
 0xb79   :  { %v8427_v37 = vsub.f32 %v26393_v24, %v28698_v16  ;;  %v8435_v1 = vand.u32 4294901760, %v8434_v39 }
 0xb7a   :  { %22231 = vmatpush3.bf16.msra.mxu1 %v25311_v46  ;;  %22453 = vmatpush3.bf16.msra.mxu0 %v26327_v10  ;;  %v8288_v46 = vld [vmem:[#allocation8 + $0x50] sm:$0xff]  ;;  %v8414_v33 = vand.u32 4294901760, %v8413_v7  ;;  %v8448_v14 = vsub.f32 %v26419_v27, %v28696_v0  ;;  %v26467_v7 = vsub.f32 %v26345_v42, %v8335_v57  ;;  %v26484_v57 = vsub.f32 %v26362_v34, %v8338_v53 }
 0xb7b   :  { %22454 = vmatprep.subr.bf16.mxu0 %v28709_v55  ;;  %v8326_v56 = vand.u32 4294901760, %v8288_v46  ;;  %v26588_v0 = vld [vmem:[%s28655_s5 + $0x10] sm:$0xff] }
 0xb7c   :  { %v8449_v39 = vand.u32 4294901760, %v8448_v14  ;;  %v28690_v42 = vand.u32 4294901760, %v26467_v7  ;;  %v28692_v53 = vand.u32 4294901760, %v26484_v57  ;;  %v28707_v16 = vand.u32 4294901760, %v26588_v0 }
 0xb7d   :  { %18619 = vmatmul.mubr.f32.vlgmr.msra.gmra.mrb[58].mxu1 %v26249_v41  ;;  %v26360_v44 = vpack.c.bf16 %v8329_v5, %v8326_v56  ;;  %v28701_v41 = vand.u32 4294901760, %v26368_v38  ;;  %v26438_v2 = vsub.f32 %v8288_v46, %v8326_v56  ;;  %v8441_v46 = vsub.f32 %v26417_v15, %v28697_v29  ;;  %v26593_v29 = vld [vmem:[%s28655_s5 + $0x18] sm:$0xff] }
 0xb7e   :  { %22456 = vmatpush3.bf16.msra.mxu0 %v26335_v43  ;;  %v28694_v5 = vand.u32 4294901760, %v26440_v54  ;;  %v8476_v34 = vsub.f32 %v26467_v7, %v28690_v42  ;;  %v28706_v17 = vand.u32 4294901760, %v26593_v29 }
 0xb7f   :  { %22457 = vmatprep.subr.bf16.mxu0 %v28709_v55  ;;  %28904 = vst [vmem:[#allocation21_spill] sm:$0xff] %v26360_v44  ;;  %v8406_v60 = vsub.f32 %v26368_v38, %v28701_v41  ;;  %v28695_v56 = vand.u32 4294901760, %v26438_v2 }
 0xb80   :  { %v26609_v41 = vpack.c.bf16 %v28706_v17, %v28707_v16  ;;  %v26636_v16 = vld [vmem:[%s28655_s5 + $0x30] sm:$0xff] }
 0xb81   :  { %v8407_v50 = vand.u32 4294901760, %v8406_v60  ;;  %v8428_v60 = vand.u32 4294901760, %v8427_v37  ;;  %v8442_v37 = vand.u32 4294901760, %v8441_v46 }
 0xb82   :  { %22459 = vmatpush3.bf16.msra.mxu0 %v26340_v52  ;;  %28924 = vst [vmem:[#allocation42_spill] sm:$0xff] %v26609_v41 }
 0xb83   :  { %22460 = vmatprep.subr.bf16.mxu0 %v28709_v55  ;;  %v26443_v31 = vpack.c.bf16 %v8407_v50, %v8400_v12  ;;  %v26457_v12 = vpack.c.bf16 %v8421_v45, %v8414_v33  ;;  %v26462_v50 = vsub.f32 %v26343_v47, %v8332_v25  ;;  %v26470_v62 = vpack.c.bf16 %v8435_v1, %v8428_v60 }
 0xb84   :  { %v8455_v33 = vsub.f32 %v26438_v2, %v28695_v56  ;;  %v8462_v47 = vsub.f32 %v26440_v54, %v28694_v5  ;;  %v26489_v1 = vsub.f32 %v26364_v23, %v8341_v35  ;;  %v26492_v45 = vpack.c.bf16 %v8449_v39, %v8442_v37 }
 0xb85   :  { %28908 = vst [vmem:[#allocation26_spill] sm:$0xff] %v26443_v31  ;;  %28909 = vst [vmem:[#allocation27_spill] sm:$0xff] %v26457_v12  ;;  %v28693_v25 = vand.u32 4294901760, %v26462_v50  ;;  %v8477_v39 = vand.u32 4294901760, %v8476_v34  ;;  %v26525_v34 = vpack.c.bf16 %v26349_v58, %v26347_v48  ;;  %v26576_v5 = vpack.c.bf16 %v26467_v7, %v26462_v50 }
 0xb86   :  { %22462 = vmatpush3.bf16.msra.mxu0 %v26352_v22  ;;  %28910 = vst [vmem:[#allocation28_spill] sm:$0xff] %v26470_v62  ;;  %28911 = vst [vmem:[#allocation29_spill] sm:$0xff] %v26492_v45  ;;  %v8456_v60 = vand.u32 4294901760, %v8455_v33  ;;  %v8463_v46 = vand.u32 4294901760, %v8462_v47  ;;  %v28691_v23 = vand.u32 4294901760, %v26489_v1  ;;  %v8483_v33 = vsub.f32 %v26484_v57, %v28692_v53 }
 0xb87   :  { %22463 = vmatprep.subr.bf16.mxu0 %v28709_v55  ;;  %v8469_v14 = vsub.f32 %v26462_v50, %v28693_v25  ;;  %28915 = vst [vmem:[#allocation33_spill] sm:$0xff] %v26525_v34  ;;  %28921 = vst [vmem:[#allocation39_spill] sm:$0xff] %v26576_v5  ;;  %v26601_v51 = vpack.c.bf16 %v26489_v1, %v26484_v57 }
 0xb88   :  { %v26504_v35 = vpack.c.bf16 %v8463_v46, %v8456_v60  ;;  %v8490_v47 = vsub.f32 %v26489_v1, %v28691_v23  ;;  %v8484_v60 = vand.u32 4294901760, %v8483_v33  ;;  %v26546_v33 = vpack.c.bf16 %v26395_v26, %v26393_v24  ;;  %v26569_v23 = vld [vmem:[%s28655_s5 + $0x8] sm:$0xff] }
 0xb89   :  { %v8470_v37 = vand.u32 4294901760, %v8469_v14  ;;  %v28705_v25 = vand.u32 4294901760, %v26569_v23  ;;  %28923 = vst [vmem:[#allocation41_spill] sm:$0xff] %v26601_v51  ;;  %v28935_v11 = vand.u32 4294901760, %v26569_v23 }
 0xb8a   :  { %22465 = vmatpush3.bf16.msra.mxu0 %v26360_v44  ;;  %28912 = vst [vmem:[#allocation30_spill] sm:$0xff] %v26504_v35  ;;  %v8491_v46 = vand.u32 4294901760, %v8490_v47  ;;  %28918 = vst [vmem:[#allocation36_spill] sm:$0xff] %v26546_v33  ;;  %v26552_v47 = vpack.c.bf16 %v26419_v27, %v26417_v15 }
 0xb8b   :  { %22466 = vmatprep.subr.bf16.mxu0 %v28709_v55  ;;  %v26515_v42 = vpack.c.bf16 %v8477_v39, %v8470_v37  ;;  %v26532_v37 = vpack.c.bf16 %v26368_v38, %v26366_v21  ;;  %v26540_v39 = vpack.c.bf16 %v26390_v30, %v26388_v8 }
 0xb8c   :  { %v26519_v14 = vpack.c.bf16 %v8491_v46, %v8484_v60  ;;  %28919 = vst [vmem:[#allocation37_spill] sm:$0xff] %v26552_v47  ;;  %v26558_v60 = vpack.c.bf16 %v26440_v54, %v26438_v2  ;;  %v26564_v46 = vld [vmem:[%s28655_s5] sm:$0xff] }
 0xb8d   :  { %28913 = vst [vmem:[#allocation31_spill] sm:$0xff] %v26515_v42  ;;  %28916 = vst [vmem:[#allocation34_spill] sm:$0xff] %v26532_v37  ;;  %v28708_v53 = vand.u32 4294901760, %v26564_v46 }
 0xb8e   :  { %22468 = vmatpush3.bf16.msra.mxu0 %v26375_v4  ;;  %28914 = vst [vmem:[#allocation32_spill] sm:$0xff] %v26519_v14  ;;  %28917 = vst [vmem:[#allocation35_spill] sm:$0xff] %v26540_v39 }
 0xb8f   :  { %22469 = vmatprep.subr.bf16.mxu0 %v28709_v55  ;;  %28920 = vst [vmem:[#allocation38_spill] sm:$0xff] %v26558_v60  ;;  %v26583_v56 = vpack.c.bf16 %v28705_v25, %v28708_v53  ;;  %v28713_v25 = vand.u32 4294901760, %v26619_v3  ;;  %v26641_v53 = vld [vmem:[%s28655_s5 + $0x38] sm:$0xff] }
 0xb91   :  { %28922 = vst [vmem:[#allocation40_spill] sm:$0xff] %v26583_v56  ;;  %22257 = vmatprep.subr.bf16.mxu1 %v26583_v56  ;;  %v26631_v17 = vpack.c.bf16 %v28713_v25, %v28714_v32  ;;  %v28926_v25 = vmov 0.0|0.0  }
 0xb92   :  { %22471 = vmatpush3.bf16.msra.mxu0 %v26401_v61  ;;  %22259 = vmatpush3.bf16.msra.mxu1 %v26583_v56 }
 0xb93   :  { %22472 = vmatprep.subr.bf16.mxu0 %v28709_v55  ;;  %22261 = vmatprep.subr.bf16.mxu1 %v26609_v41  ;;  %28925 = vst [vmem:[#allocation43_spill] sm:$0xff] %v26631_v17 }
 0xb95   :  { %18953 = vmatmul.mubr.f32.vlgmr.msra.gmra.mrb[68].mxu0 %v28881_v59 }
 0xb96   :  { %22474 = vmatpush3.bf16.msra.mxu0 %v26415_v9  ;;  %18987 = vmatprep.mubr.msk.f32.mxu0 %vm24175_vm4, %v28881_v59 }
 0xb97   :  { %22475 = vmatprep.subr.bf16.mxu0 %v28709_v55  ;;  %22263 = vmatpush3.bf16.msra.mxu1 %v26609_v41 }
 0xb98   :  { %22265 = vmatprep.subr.bf16.mxu1 %v26631_v17 }
 0xb9a   :  { %22477 = vmatpush3.bf16.msra.mxu0 %v26443_v31 }
 0xb9b   :  { %22478 = vmatprep.subr.bf16.mxu0 %v28709_v55  ;;  %22267 = vmatpush3.bf16.msra.mxu1 %v26631_v17 }
 0xb9e   :  { %22480 = vmatpush3.bf16.msra.mxu0 %v26457_v12 }
 0xb9f   :  { %22481 = vmatprep.subr.bf16.mxu0 %v28709_v55 }
 0xba2   :  { %22483 = vmatpush3.bf16.msra.mxu0 %v26470_v62 }
 0xba3   :  { %22484 = vmatprep.subr.bf16.mxu0 %v28709_v55 }
 0xba6   :  { %22486 = vmatpush3.bf16.msra.mxu0 %v26492_v45 }
 0xba7   :  { %22487 = vmatprep.subr.bf16.mxu0 %v28709_v55 }
 0xbaa   :  { %22489 = vmatpush3.bf16.msra.mxu0 %v26504_v35 }
 0xbab   :  { %22490 = vmatprep.subr.bf16.mxu0 %v28709_v55 }
 0xbae   :  { %22492 = vmatpush3.bf16.msra.mxu0 %v26515_v42 }
 0xbaf   :  { %22493 = vmatprep.subr.bf16.mxu0 %v28709_v55 }
 0xbb2   :  { %22495 = vmatpush3.bf16.msra.mxu0 %v26519_v14 }
 0xbb3   :  { %22496 = vmatprep.subr.bf16.mxu0 %v28709_v55 }
 0xbb5   :  { %18988 = vmatmul.mubr.f32.vlgmr.msra.gmra.mrb[70].mxu0 %v28881_v59 }
 0xbb6   :  { %22498 = vmatpush3.bf16.msra.mxu0 %v26525_v34  ;;  %19022 = vmatprep.mubr.msk.f32.mxu0 %vm24175_vm4, %v28881_v59  ;;  %v26686_v34 = vld [vmem:[%s28655_s5 + $0x60] sm:$0xff] }
 0xbb7   :  { %22499 = vmatprep.subr.bf16.mxu0 %v28709_v55  ;;  %v28751_v13 = vand.u32 4294901760, %v26686_v34 }
 0xbba   :  { %22501 = vmatpush3.bf16.msra.mxu0 %v26532_v37 }
 0xbbb   :  { %22502 = vmatprep.subr.bf16.mxu0 %v28709_v55 }
 0xbbe   :  { %22504 = vmatpush3.bf16.msra.mxu0 %v26540_v39 }
 0xbbf   :  { %22505 = vmatprep.subr.bf16.mxu0 %v28709_v55 }
 0xbc2   :  { %22507 = vmatpush3.bf16.msra.mxu0 %v26546_v33 }
 0xbc3   :  { %22508 = vmatprep.subr.bf16.mxu0 %v28709_v55 }
 0xbc6   :  { %22510 = vmatpush3.bf16.msra.mxu0 %v26552_v47  ;;  %v26671_v47 = vld [vmem:[%s28655_s5 + $0x50] sm:$0xff] }
 0xbc7   :  { %22511 = vmatprep.subr.bf16.mxu0 %v28709_v55  ;;  %v28930_v37 = vand.u32 4294901760, %v26671_v47 }
 0xbca   :  { %22513 = vmatpush3.bf16.msra.mxu0 %v26558_v60  ;;  %v26666_v60 = vld [vmem:[%s28655_s5 + $0x48] sm:$0xff] }
 0xbcb   :  { %22514 = vmatprep.subr.bf16.mxu0 %v28709_v55  ;;  %v28928_v39 = vand.u32 4294901760, %v26666_v60 }
 0xbce   :  { %22516 = vmatpush3.bf16.msra.mxu0 %v26576_v5  ;;  %v26661_v5 = vld [vmem:[%s28655_s5 + $0x40] sm:$0xff] }
 0xbcf   :  { %22517 = vmatprep.subr.bf16.mxu0 %v28709_v55  ;;  %v28741_v33 = vand.u32 4294901760, %v26661_v5 }
 0xbd1   :  { %v26698_v17 = vpack.c.bf16 %v28928_v39, %v28741_v33  ;;  %v26714_v39 = vld [vmem:[%s28655_s5 + $0x70] sm:$0xff]  ;;  %v26719_v33 = vld [vmem:[%s28655_s5 + $0x78] sm:$0xff] }
 0xbd2   :  { %22519 = vmatpush3.bf16.msra.mxu0 %v26601_v51  ;;  %v28723_v51 = vand.u32 4294901760, %v26641_v53 }
 0xbd3   :  { %22520 = vmatprep.subr.bf16.mxu0 %v28709_v55  ;;  %v28724_v55 = vand.u32 4294901760, %v26636_v16  ;;  %28929 = vst [vmem:[#allocation45_spill] sm:$0xff] %v26698_v17 }
 0xbd5   :  { %19023 = vmatmul.mubr.f32.vlgmr.msra.gmra.mrb[72].mxu0 %v28881_v59  ;;  %v26656_v32 = vpack.c.bf16 %v28723_v51, %v28724_v55  ;;  %v26678_v55 = vld [vmem:[%s28655_s5 + $0x58] sm:$0xff]  ;;  %v26691_v51 = vld [vmem:[%s28655_s5 + $0x68] sm:$0xff] }
 0xbd6   :  { %22522 = vmatpush3.bf16.msra.mxu0 %v26320_v49  ;;  %19057 = vmatprep.mubr.msk.f32.mxu0 %vm24175_vm4, %v28881_v59  ;;  %v28931_v41 = vand.u32 4294901760, %v26678_v55  ;;  %v28750_v28 = vand.u32 4294901760, %v26691_v51 }
 0xbd7   :  { %22523 = vmatprep.subr.bf16.mxu0 %v28926_v25  ;;  %28927 = vst [vmem:[#allocation44_spill] sm:$0xff] %v26656_v32  ;;  %22269 = vmatprep.subr.bf16.mxu1 %v26656_v32 }
 0xbd8   :  { %22271 = vmatpush3.bf16.msra.mxu1 %v26656_v32  ;;  %v26707_v56 = vpack.c.bf16 %v28931_v41, %v28930_v37  ;;  %v26729_v41 = vpack.c.bf16 %v28750_v28, %v28751_v13  ;;  %v28757_v37 = vand.u32 4294901760, %v26714_v39  ;;  %v28756_v32 = vand.u32 4294901760, %v26719_v33 }
 0xbd9   :  { %22273 = vmatprep.subr.bf16.mxu1 %v26698_v17  ;;  %v26744_v28 = vsub.f32 %v26569_v23, %v28935_v11  ;;  %v28937_v23 = vand.u32 4294901760, %v26588_v0 }
 0xbda   :  { %22525 = vmatpush3.bf16.msra.mxu0 %v26327_v10  ;;  %28932 = vst [vmem:[#allocation46_spill] sm:$0xff] %v26707_v56  ;;  %28933 = vst [vmem:[#allocation47_spill] sm:$0xff] %v26729_v41  ;;  %v26751_v13 = vpack.c.bf16 %v28756_v32, %v28757_v37  ;;  %v28938_v32 = vand.u32 4294901760, %v26593_v29 }
 0xbdb   :  { %22526 = vmatprep.subr.bf16.mxu0 %v28926_v25  ;;  %v28762_v18 = vand.u32 4294901760, %v26744_v28 }
 0xbdc   :  { %22275 = vmatpush3.bf16.msra.mxu1 %v26698_v17  ;;  %v28934_v17 = vand.u32 4294901760, %v26564_v46  ;;  %28936 = vst [vmem:[#allocation48_spill] sm:$0xff] %v26751_v13  ;;  %v26773_v37 = vsub.f32 %v26593_v29, %v28938_v32  ;;  %v28940_v29 = vand.u32 4294901760, %v26614_v19 }
 0xbdd   :  { %22277 = vmatprep.subr.bf16.mxu1 %v26707_v56 }
 0xbde   :  { %22528 = vmatpush3.bf16.msra.mxu0 %v26335_v43  ;;  %v26739_v20 = vsub.f32 %v26564_v46, %v28934_v17  ;;  %v7492_v17 = vsub.f32 %v26744_v28, %v28762_v18  ;;  %v26768_v46 = vsub.f32 %v26588_v0, %v28937_v23  ;;  %v28766_v18 = vand.u32 4294901760, %v26773_v37 }
 0xbdf   :  { %22529 = vmatprep.subr.bf16.mxu0 %v28926_v25 }
 0xbe0   :  { %22279 = vmatpush3.bf16.msra.mxu1 %v26707_v56  ;;  %v28761_v56 = vand.u32 4294901760, %v26739_v20  ;;  %v7493_v36 = vand.u32 4294901760, %v7492_v17  ;;  %v7506_v32 = vsub.f32 %v26773_v37, %v28766_v18  ;;  %v28941_v17 = vand.u32 4294901760, %v26619_v3 }
 0xbe1   :  { %22281 = vmatprep.subr.bf16.mxu1 %v26729_v41 }
 0xbe2   :  { %22531 = vmatpush3.bf16.msra.mxu0 %v26340_v52  ;;  %v7485_v11 = vsub.f32 %v26739_v20, %v28761_v56  ;;  %v28765_v56 = vand.u32 4294901760, %v26768_v46  ;;  %v26796_v23 = vsub.f32 %v26619_v3, %v28941_v17 }
 0xbe3   :  { %22532 = vmatprep.subr.bf16.mxu0 %v28926_v25 }
 0xbe4   :  { %22283 = vmatpush3.bf16.msra.mxu1 %v26729_v41  ;;  %v7486_v41 = vand.u32 4294901760, %v7485_v11  ;;  %v7499_v0 = vsub.f32 %v26768_v46, %v28765_v56  ;;  %v26791_v11 = vsub.f32 %v26614_v19, %v28940_v29  ;;  %v28771_v18 = vand.u32 4294901760, %v26796_v23 }
 0xbe5   :  { %22285 = vmatprep.subr.bf16.mxu1 %v26751_v13  ;;  %v28943_v29 = vand.u32 4294901760, %v26636_v16 }
 0xbe6   :  { %22534 = vmatpush3.bf16.msra.mxu0 %v26352_v22  ;;  %v26780_v40 = vpack.c.bf16 %v7493_v36, %v7486_v41  ;;  %v7500_v36 = vand.u32 4294901760, %v7499_v0  ;;  %v7507_v41 = vand.u32 4294901760, %v7506_v32  ;;  %v28769_v56 = vand.u32 4294901760, %v26791_v11 }
 0xbe7   :  { %22535 = vmatprep.subr.bf16.mxu0 %v28926_v25  ;;  %v7520_v3 = vsub.f32 %v26796_v23, %v28771_v18  ;;  %v26814_v0 = vsub.f32 %v26636_v16, %v28943_v29  ;;  %v28944_v32 = vand.u32 4294901760, %v26641_v53 }
 0xbe8   :  { %22287 = vmatpush3.bf16.msra.mxu1 %v26751_v13  ;;  %28939 = vst [vmem:[#allocation49_spill] sm:$0xff] %v26780_v40  ;;  %v26803_v13 = vpack.c.bf16 %v7507_v41, %v7500_v36  ;;  %v7513_v19 = vsub.f32 %v26791_v11, %v28769_v56  ;;  %v28945_v36 = vand.u32 4294901760, %v26347_v48  ;;  %v28946_v41 = vand.u32 4294901760, %v26349_v58 }
 0xbe9   :  { %22289 = vmatprep.subr.bf16.mxu1 %v26780_v40  ;;  %v26819_v17 = vsub.f32 %v26641_v53, %v28944_v32  ;;  %v7521_v18 = vand.u32 4294901760, %v7520_v3  ;;  %v28774_v40 = vand.u32 4294901760, %v26814_v0  ;;  %v28948_v48 = vand.u32 4294901760, %v26661_v5 }
 0xbea   :  { %22537 = vmatpush3.bf16.msra.mxu0 %v26360_v44  ;;  %28942 = vst [vmem:[#allocation50_spill] sm:$0xff] %v26803_v13  ;;  %v26826_v56 = vpack.c.bf16 %v28946_v41, %v28945_v36  ;;  %v7514_v13 = vand.u32 4294901760, %v7513_v19  ;;  %v28949_v19 = vand.u32 4294901760, %v26666_v60  ;;  %v28951_v32 = vand.u32 4294901760, %v26368_v38 }
 0xbeb   :  { %22538 = vmatprep.subr.bf16.mxu0 %v28926_v25  ;;  %v28773_v16 = vand.u32 4294901760, %v26819_v17  ;;  %v7527_v53 = vsub.f32 %v26814_v0, %v28774_v40  ;;  %v26839_v58 = vsub.f32 %v26661_v5, %v28948_v48  ;;  %v28953_v38 = vand.u32 4294901760, %v26671_v47 }
 0xbec   :  { %28947 = vst [vmem:[#allocation51_spill] sm:$0xff] %v26826_v56  ;;  %v26831_v29 = vpack.c.bf16 %v7521_v18, %v7514_v13  ;;  %v26844_v3 = vsub.f32 %v26666_v60, %v28949_v19  ;;  %v28950_v18 = vand.u32 4294901760, %v26366_v21 }
 0xbed   :  { %v7534_v13 = vsub.f32 %v26819_v17, %v28773_v16  ;;  %v7528_v5 = vand.u32 4294901760, %v7527_v53  ;;  %v28775_v60 = vand.u32 4294901760, %v26839_v58  ;;  %v28954_v53 = vand.u32 4294901760, %v26678_v55 }
 0xbee   :  { %22540 = vmatpush3.bf16.msra.mxu0 %v26375_v4  ;;  %v26855_v36 = vpack.c.bf16 %v28951_v32, %v28950_v18  ;;  %v28776_v41 = vand.u32 4294901760, %v26844_v3  ;;  %v26871_v18 = vsub.f32 %v26671_v47, %v28953_v38  ;;  %v28956_v16 = vand.u32 4294901760, %v26390_v30 }
 0xbef   :  { %22541 = vmatprep.subr.bf16.mxu0 %v28926_v25  ;;  %v7535_v48 = vand.u32 4294901760, %v7534_v13  ;;  %v7541_v19 = vsub.f32 %v26839_v58, %v28775_v60  ;;  %v26876_v32 = vsub.f32 %v26678_v55, %v28954_v53  ;;  %v28955_v13 = vand.u32 4294901760, %v26388_v8 }
 0xbf0   :  { %28952 = vst [vmem:[#allocation52_spill] sm:$0xff] %v26855_v36  ;;  %v7548_v21 = vsub.f32 %v26844_v3, %v28776_v41  ;;  %v28783_v47 = vand.u32 4294901760, %v26871_v18 }
 0xbf1   :  { %v26882_v40 = vpack.c.bf16 %v28956_v16, %v28955_v13  ;;  %v26884_v60 = vpack.c.bf16 %v7535_v48, %v7528_v5  ;;  %v7542_v41 = vand.u32 4294901760, %v7541_v19  ;;  %v28779_v38 = vand.u32 4294901760, %v26876_v32 }
 0xbf2   :  { %22543 = vmatpush3.bf16.msra.mxu0 %v26401_v61  ;;  %v7555_v8 = vsub.f32 %v26871_v18, %v28783_v47  ;;  %v28958_v16 = vand.u32 4294901760, %v26686_v34  ;;  %v28959_v48 = vand.u32 4294901760, %v26691_v51 }
 0xbf3   :  { %22544 = vmatprep.subr.bf16.mxu0 %v28926_v25  ;;  %28957 = vst [vmem:[#allocation53_spill] sm:$0xff] %v26882_v40  ;;  %v7562_v30 = vsub.f32 %v26876_v32, %v28779_v38 }
 0xbf4   :  { %v26901_v5 = vsub.f32 %v26686_v34, %v28958_v16  ;;  %v26906_v19 = vsub.f32 %v26691_v51, %v28959_v48  ;;  %v7556_v53 = vand.u32 4294901760, %v7555_v8  ;;  %v28964_v8 = vand.u32 4294901760, %v26719_v33 }
 0xbf5   :  { %19058 = vmatmul.mubr.f32.vlgmr.msra.gmra.mrb[74].mxu0 %v28881_v59  ;;  %v7563_v13 = vand.u32 4294901760, %v7562_v30 }
 0xbf6   :  { %22546 = vmatpush3.bf16.msra.mxu0 %v26826_v56  ;;  %19092 = vmatprep.mubr.msk.f32.mxu0 %vm24175_vm4, %v28881_v59  ;;  %v7549_v56 = vand.u32 4294901760, %v7548_v21  ;;  %v28781_v38 = vand.u32 4294901760, %v26901_v5  ;;  %v28780_v34 = vand.u32 4294901760, %v26906_v19  ;;  %v26931_v30 = vsub.f32 %v26719_v33, %v28964_v8 }
 0xbf7   :  { %22547 = vmatprep.subr.bf16.mxu0 %v28926_v25  ;;  %v26918_v16 = vpack.c.bf16 %v7563_v13, %v7556_v53 }
 0xbf8   :  { %v26890_v55 = vpack.c.bf16 %v7549_v56, %v7542_v41  ;;  %v28960_v56 = vand.u32 4294901760, %v26393_v24  ;;  %v28961_v41 = vand.u32 4294901760, %v26395_v26  ;;  %v7569_v51 = vsub.f32 %v26901_v5, %v28781_v38 }
 0xbf9   :  { %v28963_v24 = vand.u32 4294901760, %v26714_v39  ;;  %v7576_v48 = vsub.f32 %v26906_v19, %v28780_v34 }
 0xbfa   :  { %22549 = vmatpush3.bf16.msra.mxu0 %v26855_v36  ;;  %v26913_v21 = vpack.c.bf16 %v28961_v41, %v28960_v56  ;;  %v28965_v56 = vand.u32 4294901760, %v26417_v15  ;;  %v28966_v41 = vand.u32 4294901760, %v26419_v27  ;;  %v7570_v13 = vand.u32 4294901760, %v7569_v51 }
 0xbfb   :  { %22550 = vmatprep.subr.bf16.mxu0 %v28926_v25  ;;  %v26926_v26 = vsub.f32 %v26714_v39, %v28963_v24  ;;  %v28784_v24 = vand.u32 4294901760, %v26931_v30  ;;  %v7577_v33 = vand.u32 4294901760, %v7576_v48  ;;  %v28968_v27 = vand.u32 4294901760, %v26438_v2 }
 0xbfc   :  { %28962 = vst [vmem:[#allocation54_spill] sm:$0xff] %v26913_v21  ;;  %v26941_v53 = vpack.c.bf16 %v28966_v41, %v28965_v56  ;;  %v28969_v51 = vand.u32 4294901760, %v26440_v54  ;;  %v26974_v2 = vpack.c.bf16 %v26744_v28, %v26739_v20  ;;  %v28974_v54 = vand.u32 4294901760, %v26484_v57 }
 0xbfd   :  { %v28782_v39 = vand.u32 4294901760, %v26926_v26  ;;  %v7590_v15 = vsub.f32 %v26931_v30, %v28784_v24  ;;  %v26952_v34 = vpack.c.bf16 %v7577_v33, %v7570_v13  ;;  %v28971_v13 = vand.u32 4294901760, %v26462_v50 }
 0xbfe   :  { %22552 = vmatpush3.bf16.msra.mxu0 %v26882_v40  ;;  %28967 = vst [vmem:[#allocation55_spill] sm:$0xff] %v26941_v53  ;;  %v26959_v56 = vpack.c.bf16 %v28969_v51, %v28968_v27  ;;  %v28972_v33 = vand.u32 4294901760, %v26467_v7  ;;  %v26986_v7 = vpack.c.bf16 %v26773_v37, %v26768_v46  ;;  %v26992_v57 = vpack.c.bf16 %v26796_v23, %v26791_v11 }
 0xbff   :  { %22553 = vmatprep.subr.bf16.mxu0 %v28926_v25  ;;  %v7583_v8 = vsub.f32 %v26926_v26, %v28782_v39  ;;  %v7591_v48 = vand.u32 4294901760, %v7590_v15  ;;  %v27013_v51 = vpack.c.bf16 %v26876_v32, %v26871_v18 }
 0xc00   :  { %28970 = vst [vmem:[#allocation56_spill] sm:$0xff] %v26959_v56  ;;  %v26969_v24 = vpack.c.bf16 %v28972_v33, %v28971_v13 }
 0xc01   :  { %v7584_v41 = vand.u32 4294901760, %v7583_v8 }
 0xc02   :  { %22555 = vmatpush3.bf16.msra.mxu0 %v26913_v21  ;;  %28973 = vst [vmem:[#allocation57_spill] sm:$0xff] %v26969_v24 }
 0xc03   :  { %22556 = vmatprep.subr.bf16.mxu0 %v28926_v25  ;;  %v26962_v39 = vpack.c.bf16 %v7591_v48, %v7584_v41  ;;  %v27019_v41 = vpack.c.bf16 %v26906_v19, %v26901_v5  ;;  %v27025_v48 = vpack.c.bf16 %v26931_v30, %v26926_v26 }
 0xc06   :  { %22558 = vmatpush3.bf16.msra.mxu0 %v26941_v53 }
 0xc07   :  { %22559 = vmatprep.subr.bf16.mxu0 %v28926_v25 }
 0xc08   :  { %v6884_v38 = vpop.f32.mrb[62].mxu0 }
 0xc09   :  { %v18515_v47 = vpop.f32.mrb[63].mxu0 }
 0xc0a   :  { %22561 = vmatpush3.bf16.msra.mxu0 %v26959_v56  ;;  %v28975_v47 = vand.u32 4294901760, %v26489_v1  ;;  %v27001_v1 = vpack.c.bf16 %v26819_v17, %v26814_v0  ;;  %v28983_v56 = vld [vmem:[#allocation15_spill] sm:$0xff] }
 0xc0b   :  { %22562 = vmatprep.subr.bf16.mxu0 %v28926_v25 }
 0xc0c   :  { %v26981_v8 = vpack.c.bf16 %v28975_v47, %v28974_v54 }
 0xc0e   :  { %22564 = vmatpush3.bf16.msra.mxu0 %v26969_v24  ;;  %28976 = vst [vmem:[#allocation58_spill] sm:$0xff] %v26981_v8 }
 0xc0f   :  { %22565 = vmatprep.subr.bf16.mxu0 %v28926_v25 }
 0xc10   :  { %v6733_v50 = vpop.f32.mrb[54].mxu1 }
 0xc11   :  { %v6885_v15 = vadd.f32 %v6884_v38, %v6733_v50  ;;  %v18480_v27 = vpop.f32.mrb[55].mxu1  ;;  %v27007_v38 = vpack.c.bf16 %v26844_v3, %v26839_v58 }
 0xc12   :  { %22567 = vmatpush3.bf16.msra.mxu0 %v26981_v8 }
 0xc13   :  { %22568 = vmatprep.subr.bf16.mxu0 %v28926_v25 }
 0xc15   :  { %19093 = vmatmul.mubr.f32.vlgmr.msra.gmra.mrb[76].mxu0 %v28881_v59 }
 0xc16   :  { %22570 = vmatpush3.bf16.msra.mxu0 %v26320_v49  ;;  %19127 = vmatprep.mubr.msk.f32.mxu0 %vm24175_vm4, %v28881_v59 }
 0xc17   :  { %22571 = vmatprep.subr.bf16.mxu0 %v28926_v25 }
 0xc1a   :  { %22573 = vmatpush3.bf16.msra.mxu0 %v26327_v10 }
 0xc1b   :  { %22574 = vmatprep.subr.bf16.mxu0 %v28926_v25 }
 0xc1e   :  { %22576 = vmatpush3.bf16.msra.mxu0 %v26335_v43 }
 0xc1f   :  { %22577 = vmatprep.subr.bf16.mxu0 %v28926_v25 }
 0xc22   :  { %22579 = vmatpush3.bf16.msra.mxu0 %v26340_v52 }
 0xc23   :  { %22580 = vmatprep.subr.bf16.mxu0 %v28926_v25 }
 0xc26   :  { %22582 = vmatpush3.bf16.msra.mxu0 %v26352_v22 }
 0xc27   :  { %22583 = vmatprep.subr.bf16.mxu0 %v28926_v25 }
 0xc28   :  { %v7077_v13 = vpop.f32.mrb[64].mxu0 }
 0xc29   :  { %v18585_v33 = vpop.f32.mrb[65].mxu0 }
 0xc2a   :  { %22585 = vmatpush3.bf16.msra.mxu0 %v26360_v44 }
 0xc2b   :  { %22586 = vmatprep.subr.bf16.mxu0 %v28926_v25 }
 0xc2e   :  { %22588 = vmatpush3.bf16.msra.mxu0 %v26375_v4 }
 0xc2f   :  { %22589 = vmatprep.subr.bf16.mxu0 %v28926_v25 }
 0xc30   :  { %v6988_v54 = vpop.f32.mrb[56].mxu1 }
 0xc31   :  { %v6989_v47 = vadd.f32 %v6988_v54, %v6885_v15  ;;  %v18550_v50 = vpop.f32.mrb[57].mxu1 }
 0xc32   :  { %22591 = vmatpush3.bf16.msra.mxu0 %v26401_v61 }
 0xc33   :  { %v7078_v27 = vadd.f32 %v7077_v13, %v6989_v47  ;;  %22616 = vmatprep.subr.bf16.mxu0 %v28926_v25 }
 0xc35   :  { %19128 = vmatmul.mubr.f32.vlgmr.msra.gmra.mrb[78].mxu0 %v28881_v59 }
 0xc36   :  { %22618 = vmatpush3.bf16.msra.mxu0 %v26415_v9  ;;  %19197 = vmatprep.mubr.msk.f32.mxu0 %vm24175_vm4, %v28881_v59 }
 0xc37   :  { %22619 = vmatprep.subr.bf16.mxu0 %v28926_v25 }
 0xc3a   :  { %22621 = vmatpush3.bf16.msra.mxu0 %v26443_v31 }
 0xc3b   :  { %22622 = vmatprep.subr.bf16.mxu0 %v28926_v25 }
 0xc3e   :  { %22624 = vmatpush3.bf16.msra.mxu0 %v26457_v12  ;;  %v28979_v12 = vld [vmem:[#allocation24_spill] sm:$0xff] }
 0xc3f   :  { %22625 = vmatprep.subr.bf16.mxu0 %v28926_v25 }
 0xc42   :  { %22627 = vmatpush3.bf16.msra.mxu0 %v26470_v62 }
 0xc43   :  { %22628 = vmatprep.subr.bf16.mxu0 %v28926_v25 }
 0xc46   :  { %22630 = vmatpush3.bf16.msra.mxu0 %v26492_v45 }
 0xc47   :  { %22631 = vmatprep.subr.bf16.mxu0 %v28926_v25 }
 0xc48   :  { %v7283_v15 = vpop.f32.mrb[66].mxu0 }
 0xc49   :  { %v18655_v13 = vpop.f32.mrb[67].mxu0 }
 0xc4a   :  { %22633 = vmatpush3.bf16.msra.mxu0 %v26504_v35  ;;  %v28977_v13 = vld [vmem:[#allocation16_spill] sm:$0xff] }
 0xc4b   :  { %22634 = vmatprep.subr.bf16.mxu0 %v28926_v25  ;;  %v7290_v62 = vsel %vm1152_vm2, %v28977_v13, %v26246_v63 }
 0xc4e   :  { %22636 = vmatpush3.bf16.msra.mxu0 %v26515_v42  ;;  %v28980_v42 = vld [vmem:[#allocation18_spill] sm:$0xff] }
 0xc4f   :  { %22637 = vmatprep.subr.bf16.mxu0 %v28926_v25  ;;  %v7291_v31 = vsel %vm1152_vm2, %v28980_v42, %v28979_v12  ;;  %v7294_v24 = vsel %vm1152_vm2, %v28979_v12, %v28980_v42 }
 0xc50   :  { %v7196_v33 = vpop.f32.mrb[58].mxu1  ;;  %v27103_v12 = vand.u32 4294901760, %v7294_v24 }
 0xc51   :  { %v7197_v54 = vadd.f32 %v7196_v33, %v7078_v27  ;;  %v18620_v47 = vpop.f32.mrb[59].mxu1  ;;  %v27061_v27 = vand.u32 4294901760, %v7290_v62  ;;  %v27063_v33 = vand.u32 4294901760, %v7291_v31 }
 0xc52   :  { %22639 = vmatpush3.bf16.msra.mxu0 %v26519_v14  ;;  %v27120_v61 = vsub.f32 %v7294_v24, %v27103_v12 }
 0xc53   :  { %v7284_v50 = vadd.f32 %v7283_v15, %v7197_v54  ;;  %22664 = vmatprep.subr.bf16.mxu0 %v28926_v25  ;;  %v28981_v15 = vld [vmem:[#allocation17_spill] sm:$0xff]  ;;  %v28982_v54 = vld [vmem:[#allocation19_spill] sm:$0xff]  ;;  %v27074_v47 = vsub.f32 %v7290_v62, %v27061_v27  ;;  %v27081_v9 = vsub.f32 %v7291_v31, %v27063_v33  ;;  %v7295_v62 = vsel %vm1152_vm2, %v26246_v63, %v28977_v13 }
 0xc54   :  { %v27109_v36 = vand.u32 4294901760, %v7295_v62  ;;  %v7453_v22 = vand.u32 4294901760, %v27120_v61 }
 0xc55   :  { %v7287_v45 = vadd.f32 %v7284_v50, %v25522_v6  ;;  %v7292_v6 = vsel %vm1152_vm2, %v28982_v54, %v28981_v15  ;;  %v28820_v53 = vand.u32 4294901760, %v27074_v47  ;;  %v28984_v35 = vand.u32 4294901760, %v27081_v9 }
 0xc56   :  { %v27076_v50 = vand.u32 4294901760, %v7292_v6  ;;  %v27132_v4 = vsub.f32 %v7295_v62, %v27109_v36 }
 0xc57   :  { %24028 = vtanh.f32 %v7287_v45  ;;  %v7293_v45 = vsel %vm1152_vm2, %v28981_v15, %v28982_v54 }
 0xc58   :  { %v27078_v14 = vand.u32 4294901760, %v7293_v45  ;;  %v27098_v31 = vsub.f32 %v7292_v6, %v27076_v50  ;;  %v7414_v6 = vsub.f32 %v27074_v47, %v28820_v53  ;;  %v7463_v62 = vand.u32 4294901760, %v27132_v4 }
 0xc5a   :  { %v27101_v21 = vsub.f32 %v7293_v45, %v27078_v14  ;;  %v7415_v45 = vand.u32 4294901760, %v7414_v6  ;;  %v28985_v24 = vand.u32 4294901760, %v27098_v31  ;;  %v28987_v6 = vld [vmem:[#allocation50_spill] sm:$0xff] }
 0xc5c   :  { %v7434_v44 = vsub.f32 %v27098_v31, %v28985_v24 }
 0xc5e   :  { %v7435_v24 = vand.u32 4294901760, %v7434_v44 }
 0xc61   :  { %v24029_v8 = vpop.eup %24028 }
 0xc62   :  { %v7289_v15 = vsel %vm1152_vm2, %v28983_v56, %v24029_v8  ;;  %v7296_v63 = vsel %vm1152_vm2, %v24029_v8, %v28983_v56  ;;  %v7424_v56 = vsub.f32 %v27081_v9, %v28984_v35  ;;  %v28827_v8 = vand.u32 4294901760, %v27101_v21 }
 0xc63   :  { %v27094_v54 = vand.u32 4294901760, %v7289_v15 }
 0xc64   :  { %v7444_v35 = vsub.f32 %v27101_v21, %v28827_v8  ;;  %v7464_v8 = vsub.f32 %v27132_v4, %v7463_v62 }
 0xc65   :  { %v27106_v42 = vsub.f32 %v7289_v15, %v27094_v54  ;;  %v27122_v15 = vand.u32 4294901760, %v7296_v63 }
 0xc67   :  { %v28826_v13 = vand.u32 4294901760, %v27106_v42  ;;  %v27139_v59 = vsub.f32 %v7296_v63, %v27122_v15  ;;  %v7454_v63 = vsub.f32 %v27120_v61, %v7453_v22 }
 0xc69   :  { %v7404_v40 = vsub.f32 %v27106_v42, %v28826_v13  ;;  %v7425_v13 = vand.u32 4294901760, %v7424_v56  ;;  %v7445_v56 = vand.u32 4294901760, %v7444_v35 }
 0xc6b   :  { %v7405_v53 = vand.u32 4294901760, %v7404_v40  ;;  %v28986_v40 = vld [vmem:[#allocation49_spill] sm:$0xff] }
 0xc6d   :  { %18688 = vmatprep.mubr.f32.mxu1 %v7405_v53  ;;  %v7473_v53 = vand.u32 4294901760, %v27139_v59 }
 0xc6e   :  { %18689 = vmatmul.mubr.f32.vlgmr.msra.gmra.mrb[60].mxu1 %v7415_v45  ;;  %v7465_v45 = vand.u32 4294901760, %v7464_v8  ;;  %v28994_v8 = vld [vmem:[#allocation46_spill] sm:$0xff] }
 0xc6f   :  { %22291 = vmatpush3.bf16.msra.mxu1 %v28986_v40  ;;  %18691 = vmatprep.mubr.f32.mxu1 %v7425_v13  ;;  %v7455_v13 = vand.u32 4294901760, %v7454_v63  ;;  %v7474_v44 = vsub.f32 %v27139_v59, %v7473_v53  ;;  %v28995_v40 = vld [vmem:[#allocation47_spill] sm:$0xff]  ;;  %v28998_v63 = vand.u32 4294901760, %v26744_v28  ;;  %v29003_v28 = vand.u32 4294901760, %v26791_v11 }
 0xc70   :  { %22293 = vmatprep.subr.bf16.mxu1 %v28987_v6  ;;  %v29009_v11 = vand.u32 4294901760, %v26839_v58 }
 0xc71   :  { %v7475_v35 = vand.u32 4294901760, %v7474_v44 }
 0xc72   :  { %18692 = vmatmul.mubr.f32.gmra.mrb[62].mxu1 %v7435_v24  ;;  %v28997_v24 = vand.u32 4294901760, %v26739_v20  ;;  %v29004_v20 = vand.u32 4294901760, %v26796_v23  ;;  %v29010_v23 = vand.u32 4294901760, %v26844_v3  ;;  %v29016_v3 = vand.u32 4294901760, %v26931_v30 }
 0xc73   :  { %22295 = vmatpush3.bf16.msra.mxu1 %v28987_v6  ;;  %18694 = vmatprep.mubr.f32.mxu1 %v7445_v56  ;;  %v28996_v6 = vld [vmem:[#allocation48_spill] sm:$0xff]  ;;  %v29017_v30 = vmov 0.0  }
 0xc74   :  { %22297 = vmatprep.subr.bf16.mxu1 %v26831_v29 }
 0xc76   :  { %18695 = vmatmul.mubr.f32.gmra.mrb[64].mxu1 %v7455_v13 }
 0xc77   :  { %22299 = vmatpush3.bf16.msra.mxu1 %v26831_v29  ;;  %18697 = vmatprep.mubr.f32.mxu1 %v7465_v45  ;;  %v8377_v29 = vpop.f32.mrb[68].mxu0  ;;  %v28999_v45 = vand.u32 4294901760, %v26768_v46  ;;  %v29006_v46 = vand.u32 4294901760, %v27101_v21 }
 0xc78   :  { %22301 = vmatprep.subr.bf16.mxu1 %v26884_v60 }
 0xc7a   :  { %18698 = vmatmul.mubr.f32.gmra.mrb[66].mxu1 %v7475_v35  ;;  %v29000_v35 = vand.u32 4294901760, %v26773_v37  ;;  %v29007_v37 = vand.u32 4294901760, %v26814_v0  ;;  %v29013_v0 = vand.u32 4294901760, %v26901_v5 }
 0xc7b   :  { %22303 = vmatpush3.bf16.msra.mxu1 %v26884_v60  ;;  %18732 = vmatprep.mubr.f32.mxu1 %v27094_v54  ;;  %v18954_v60 = vpop.f32.mrb[69].mxu0 }
 0xc7c   :  { %22305 = vmatprep.subr.bf16.mxu1 %v26890_v55  ;;  %v29001_v60 = vand.u32 4294901760, %v27074_v47 }
 0xc7f   :  { %22307 = vmatpush3.bf16.msra.mxu1 %v26890_v55 }
 0xc80   :  { %22309 = vmatprep.subr.bf16.mxu1 %v26918_v16 }
 0xc83   :  { %22311 = vmatpush3.bf16.msra.mxu1 %v26918_v16 }
 0xc84   :  { %22313 = vmatprep.subr.bf16.mxu1 %v26952_v34 }
 0xc87   :  { %22315 = vmatpush3.bf16.msra.mxu1 %v26952_v34 }
 0xc88   :  { %22317 = vmatprep.subr.bf16.mxu1 %v26962_v39  ;;  %v8527_v55 = vpop.f32.mrb[70].mxu0 }
 0xc89   :  { %v8528_v34 = vadd.f32 %v8527_v55, %v8377_v29  ;;  %v18989_v16 = vpop.f32.mrb[71].mxu0  ;;  %v22388_v29 = vpack.c.bf16 %v29000_v35, %v28999_v45  ;;  %v29002_v55 = vand.u32 4294901760, %v27081_v9 }
 0xc8a   :  { %v29005_v16 = vand.u32 4294901760, %v27098_v31 }
 0xc8b   :  { %22319 = vmatpush3.bf16.msra.mxu1 %v26962_v39 }
 0xc8c   :  { %22321 = vmatprep.subr.bf16.mxu1 %v26974_v2 }
 0xc8e   :  { %18733 = vmatmul.mubr.f32.vlgmr.msra.gmra.mrb[60].mxu1 %v27061_v27 }
 0xc8f   :  { %18735 = vmatprep.mubr.f32.mxu1 %v27063_v33  ;;  %22323 = vmatpush3.bf16.msra.mxu1 %v26974_v2 }
 0xc90   :  { %22325 = vmatprep.subr.bf16.mxu1 %v26986_v7 }
 0xc92   :  { %18736 = vmatmul.mubr.f32.gmra.mrb[62].mxu1 %v27076_v50 }
 0xc93   :  { %18738 = vmatprep.mubr.f32.mxu1 %v27078_v14  ;;  %22327 = vmatpush3.bf16.msra.mxu1 %v26986_v7 }
 0xc94   :  { %22329 = vmatprep.subr.bf16.mxu1 %v26992_v57 }
 0xc96   :  { %18739 = vmatmul.mubr.f32.gmra.mrb[64].mxu1 %v27103_v12 }
 0xc97   :  { %18741 = vmatprep.mubr.f32.mxu1 %v27109_v36  ;;  %22331 = vmatpush3.bf16.msra.mxu1 %v26992_v57  ;;  %v28988_v57 = vld [vmem:[#allocation40_spill] sm:$0xff] }
 0xc98   :  { %22333 = vmatprep.subr.bf16.mxu1 %v27001_v1 }
 0xc9a   :  { %18742 = vmatmul.mubr.f32.gmra.mrb[66].mxu1 %v27122_v15 }
 0xc9b   :  { %22335 = vmatpush3.bf16.msra.mxu1 %v27001_v1  ;;  %18776 = vmatprep.mubr.f32.mxu1 %v27106_v42  ;;  %v28989_v1 = vld [vmem:[#allocation42_spill] sm:$0xff] }
 0xc9c   :  { %22337 = vmatprep.subr.bf16.mxu1 %v27007_v38 }
 0xc9f   :  { %22339 = vmatpush3.bf16.msra.mxu1 %v27007_v38  ;;  %v28990_v38 = vld [vmem:[#allocation43_spill] sm:$0xff] }
 0xca0   :  { %22341 = vmatprep.subr.bf16.mxu1 %v27013_v51 }
 0xca3   :  { %22343 = vmatpush3.bf16.msra.mxu1 %v27013_v51  ;;  %v28991_v51 = vld [vmem:[#allocation44_spill] sm:$0xff] }
 0xca4   :  { %22345 = vmatprep.subr.bf16.mxu1 %v27019_v41 }
 0xca7   :  { %22347 = vmatpush3.bf16.msra.mxu1 %v27019_v41  ;;  %v28992_v41 = vand.u32 4294901760, %v27106_v42  ;;  %v22384_v42 = vpack.c.bf16 %v28998_v63, %v28997_v24 }
 0xca8   :  { %22349 = vmatprep.subr.bf16.mxu1 %v27025_v48  ;;  %v8629_v39 = vpop.f32.mrb[72].mxu0 }
 0xca9   :  { %v8630_v2 = vadd.f32 %v8629_v39, %v8528_v34  ;;  %v19024_v7 = vpop.f32.mrb[73].mxu0  ;;  %v22392_v34 = vpack.c.bf16 %v29004_v20, %v29003_v28 }
 0xcab   :  { %22351 = vmatpush3.bf16.msra.mxu1 %v27025_v48  ;;  %v28993_v48 = vld [vmem:[#allocation45_spill] sm:$0xff] }
 0xcac   :  { %22353 = vmatprep.subr.bf16.mxu1 %v28988_v57 }
 0xcae   :  { %18777 = vmatmul.mubr.f32.vlgmr.msra.gmra.mrb[60].mxu1 %v27074_v47 }
 0xcaf   :  { %18779 = vmatprep.mubr.f32.mxu1 %v27081_v9  ;;  %22355 = vmatpush3.bf16.msra.mxu1 %v28988_v57  ;;  %v29008_v9 = vand.u32 4294901760, %v26819_v17  ;;  %v29014_v17 = vand.u32 4294901760, %v26906_v19 }
 0xcb0   :  { %22357 = vmatprep.subr.bf16.mxu1 %v28989_v1 }
 0xcb1   :  { %v22396_v47 = vpack.c.bf16 %v29008_v9, %v29007_v37  ;;  %v22408_v58 = vpack.c.bf16 %v29014_v17, %v29013_v0  ;;  %v29023_v37 = vld [vmem:[#allocation33_spill] sm:$0xff]  ;;  %v29024_v9 = vld [vmem:[#allocation34_spill] sm:$0xff]  ;;  %v29032_v0 = vld [vmem:[#allocation52_spill] sm:$0xff] }
 0xcb2   :  { %18780 = vmatmul.mubr.f32.gmra.mrb[62].mxu1 %v27098_v31  ;;  %v29033_v17 = vld [vmem:[#allocation53_spill] sm:$0xff] }
 0xcb3   :  { %18782 = vmatprep.mubr.f32.mxu1 %v27101_v21  ;;  %22359 = vmatpush3.bf16.msra.mxu1 %v28989_v1  ;;  %v22400_v21 = vpack.c.bf16 %v29010_v23, %v29009_v11  ;;  %v29026_v11 = vld [vmem:[#allocation36_spill] sm:$0xff]  ;;  %v29027_v23 = vld [vmem:[#allocation37_spill] sm:$0xff] }
 0xcb4   :  { %22361 = vmatprep.subr.bf16.mxu1 %v28990_v38 }
 0xcb6   :  { %18783 = vmatmul.mubr.f32.gmra.mrb[64].mxu1 %v27120_v61  ;;  %v29011_v61 = vand.u32 4294901760, %v26871_v18 }
 0xcb7   :  { %18785 = vmatprep.mubr.f32.mxu1 %v27132_v4  ;;  %22363 = vmatpush3.bf16.msra.mxu1 %v28990_v38 }
 0xcb8   :  { %22365 = vmatprep.subr.bf16.mxu1 %v28991_v51 }
 0xcba   :  { %18786 = vmatmul.mubr.f32.gmra.mrb[66].mxu1 %v27139_v59  ;;  %v29015_v59 = vand.u32 4294901760, %v26926_v26 }
 0xcbb   :  { %22367 = vmatpush3.bf16.msra.mxu1 %v28991_v51  ;;  %18820 = vmatprep.mubr.f32.mxu1 %v28992_v41 }
 0xcbc   :  { %22369 = vmatprep.subr.bf16.mxu1 %v28993_v48  ;;  %v22412_v31 = vpack.c.bf16 %v29016_v3, %v29015_v59  ;;  %v29035_v59 = vld [vmem:[#allocation55_spill] sm:$0xff]  ;;  %v29036_v3 = vld [vmem:[#allocation56_spill] sm:$0xff] }
 0xcbf   :  { %22371 = vmatpush3.bf16.msra.mxu1 %v28993_v48 }
 0xcc0   :  { %22373 = vmatprep.subr.bf16.mxu1 %v28994_v8 }
 0xcc3   :  { %22375 = vmatpush3.bf16.msra.mxu1 %v28994_v8 }
 0xcc4   :  { %22377 = vmatprep.subr.bf16.mxu1 %v28995_v40 }
 0xcc7   :  { %22379 = vmatpush3.bf16.msra.mxu1 %v28995_v40 }
 0xcc8   :  { %22381 = vmatprep.subr.bf16.mxu1 %v28996_v6  ;;  %v8715_v56 = vpop.f32.mrb[74].mxu0 }
 0xcc9   :  { %v8716_v13 = vadd.f32 %v8715_v56, %v8630_v2  ;;  %v19059_v44 = vpop.f32.mrb[75].mxu0 }
 0xccb   :  { %22383 = vmatpush3.bf16.msra.mxu1 %v28996_v6 }
 0xccc   :  { %22385 = vmatprep.subr.bf16.mxu1 %v22384_v42 }
 0xcce   :  { %18821 = vmatmul.mubr.f32.vlgmr.msra.gmra.mrb[60].mxu1 %v29001_v60 }
 0xccf   :  { %18823 = vmatprep.mubr.f32.mxu1 %v29002_v55  ;;  %22387 = vmatpush3.bf16.msra.mxu1 %v22384_v42 }
 0xcd0   :  { %22389 = vmatprep.subr.bf16.mxu1 %v22388_v29 }
 0xcd2   :  { %18824 = vmatmul.mubr.f32.gmra.mrb[62].mxu1 %v29005_v16 }
 0xcd3   :  { %18826 = vmatprep.mubr.f32.mxu1 %v29006_v46  ;;  %22391 = vmatpush3.bf16.msra.mxu1 %v22388_v29 }
 0xcd4   :  { %22393 = vmatprep.subr.bf16.mxu1 %v22392_v34 }
 0xcd6   :  { %18827 = vmatmul.mubr.f32.gmra.mrb[64].mxu1 %v7453_v22  ;;  %v29012_v22 = vand.u32 4294901760, %v26876_v32 }
 0xcd7   :  { %18829 = vmatprep.mubr.f32.mxu1 %v7463_v62  ;;  %22395 = vmatpush3.bf16.msra.mxu1 %v22392_v34 }
 0xcd8   :  { %22397 = vmatprep.subr.bf16.mxu1 %v22396_v47  ;;  %v22404_v4 = vpack.c.bf16 %v29012_v22, %v29011_v61  ;;  %v29029_v61 = vld [vmem:[#allocation39_spill] sm:$0xff]  ;;  %v29030_v22 = vld [vmem:[#allocation41_spill] sm:$0xff] }
 0xcda   :  { %18830 = vmatmul.mubr.f32.gmra.mrb[66].mxu1 %v7473_v53 }
 0xcdb   :  { %22399 = vmatpush3.bf16.msra.mxu1 %v22396_v47  ;;  %18864 = vmatprep.mubr.f32.mxu1 %v27094_v54  ;;  %v29025_v47 = vld [vmem:[#allocation35_spill] sm:$0xff] }
 0xcdc   :  { %22401 = vmatprep.subr.bf16.mxu1 %v22400_v21 }
 0xcdf   :  { %22403 = vmatpush3.bf16.msra.mxu1 %v22400_v21  ;;  %v29028_v21 = vld [vmem:[#allocation38_spill] sm:$0xff] }
 0xce0   :  { %22405 = vmatprep.subr.bf16.mxu1 %v22404_v4 }
 0xce3   :  { %22407 = vmatpush3.bf16.msra.mxu1 %v22404_v4  ;;  %v29031_v4 = vld [vmem:[#allocation51_spill] sm:$0xff] }
 0xce4   :  { %22409 = vmatprep.subr.bf16.mxu1 %v22408_v58 }
 0xce7   :  { %22411 = vmatpush3.bf16.msra.mxu1 %v22408_v58  ;;  %v29034_v58 = vld [vmem:[#allocation54_spill] sm:$0xff] }
 0xce8   :  { %22413 = vmatprep.subr.bf16.mxu1 %v22412_v31  ;;  %v8833_v18 = vpop.f32.mrb[76].mxu0 }
 0xce9   :  { %v8834_v62 = vadd.f32 %v8833_v18, %v8716_v13  ;;  %v19094_v32 = vpop.f32.mrb[77].mxu0  ;;  %v29038_v18 = vld [vmem:[#allocation25_spill] sm:$0xff] }
 0xcea   :  { %v29040_v32 = vld [vmem:[#allocation26_spill] sm:$0xff] }
 0xceb   :  { %22415 = vmatpush3.bf16.msra.mxu1 %v22412_v31  ;;  %v29037_v31 = vld [vmem:[#allocation57_spill] sm:$0xff] }
 0xcec   :  { %22417 = vmatprep.subr.bf16.mxu1 %v28988_v57 }
 0xcee   :  { %18865 = vmatmul.mubr.f32.vlgmr.msra.gmra.mrb[60].mxu1 %v27061_v27 }
 0xcef   :  { %18867 = vmatprep.mubr.f32.mxu1 %v27063_v33  ;;  %22419 = vmatpush3.bf16.msra.mxu1 %v28988_v57 }
 0xcf0   :  { %22421 = vmatprep.subr.bf16.mxu1 %v28989_v1 }
 0xcf2   :  { %18868 = vmatmul.mubr.f32.gmra.mrb[62].mxu1 %v27076_v50 }
 0xcf3   :  { %18870 = vmatprep.mubr.f32.mxu1 %v27078_v14  ;;  %22423 = vmatpush3.bf16.msra.mxu1 %v28989_v1 }
 0xcf4   :  { %22425 = vmatprep.subr.bf16.mxu1 %v28990_v38 }
 0xcf6   :  { %18871 = vmatmul.mubr.f32.gmra.mrb[64].mxu1 %v27103_v12 }
 0xcf7   :  { %18873 = vmatprep.mubr.f32.mxu1 %v27109_v36  ;;  %22427 = vmatpush3.bf16.msra.mxu1 %v28990_v38 }
 0xcf8   :  { %22429 = vmatprep.subr.bf16.mxu1 %v28991_v51 }
 0xcfa   :  { %18874 = vmatmul.mubr.f32.gmra.mrb[66].mxu1 %v27122_v15 }
 0xcfb   :  { %22431 = vmatpush3.bf16.msra.mxu1 %v28991_v51  ;;  %18908 = vmatprep.mubr.f32.mxu1 %v27094_v54 }
 0xcfc   :  { %22433 = vmatprep.subr.bf16.mxu1 %v28993_v48 }
 0xcff   :  { %22435 = vmatpush3.bf16.msra.mxu1 %v28993_v48 }
 0xd00   :  { %22437 = vmatprep.subr.bf16.mxu1 %v28994_v8 }
 0xd03   :  { %22439 = vmatpush3.bf16.msra.mxu1 %v28994_v8 }
 0xd04   :  { %22441 = vmatprep.subr.bf16.mxu1 %v28995_v40 }
 0xd07   :  { %22443 = vmatpush3.bf16.msra.mxu1 %v28995_v40 }
 0xd08   :  { %22445 = vmatprep.subr.bf16.mxu1 %v28996_v6  ;;  %v8919_v5 = vpop.f32.mrb[78].mxu0 }
 0xd09   :  { %v8920_v19 = vadd.f32 %v8919_v5, %v8834_v62  ;;  %v19129_v26 = vpop.f32.mrb[79].mxu0  ;;  %v29039_v62 = vld [vmem:[#allocation58_spill] sm:$0xff]  ;;  %v29041_v5 = vld [vmem:[#allocation27_spill] sm:$0xff] }
 0xd0a   :  { %v29043_v26 = vld [vmem:[#allocation29_spill] sm:$0xff] }
 0xd0b   :  { %22447 = vmatpush3.bf16.msra.mxu1 %v28996_v6 }
 0xd0c   :  { %22592 = vmatprep.subr.bf16.mxu1 %v28926_v25 }
 0xd0e   :  { %18909 = vmatmul.mubr.f32.vlgmr.msra.gmra.mrb[60].mxu1 %v27061_v27  ;;  %v29019_v27 = vld [vmem:[#allocation21_spill] sm:$0xff] }
 0xd0f   :  { %18911 = vmatprep.mubr.f32.mxu1 %v27063_v33  ;;  %22594 = vmatpush3.bf16.msra.mxu1 %v26320_v49  ;;  %v29021_v33 = vld [vmem:[#allocation23_spill] sm:$0xff] }
 0xd10   :  { %22595 = vmatprep.subr.bf16.mxu1 %v28926_v25 }
 0xd12   :  { %18912 = vmatmul.mubr.f32.gmra.mrb[62].mxu1 %v27076_v50  ;;  %v14454_v50 = vld [vmem:[%s28656_s6] ss:$0 sm:$0xff] }
 0xd13   :  { %18914 = vmatprep.mubr.f32.mxu1 %v27078_v14  ;;  %22597 = vmatpush3.bf16.msra.mxu1 %v26327_v10  ;;  %v29018_v14 = vld [vmem:[#allocation20_spill] sm:$0xff] }
 0xd14   :  { %22598 = vmatprep.subr.bf16.mxu1 %v28926_v25 }
 0xd16   :  { %18915 = vmatmul.mubr.f32.gmra.mrb[64].mxu1 %v27103_v12 }
 0xd17   :  { %18917 = vmatprep.mubr.f32.mxu1 %v27109_v36  ;;  %22600 = vmatpush3.bf16.msra.mxu1 %v26335_v43  ;;  %v29020_v36 = vld [vmem:[#allocation22_spill] sm:$0xff] }
 0xd18   :  { %22601 = vmatprep.subr.bf16.mxu1 %v28926_v25 }
 0xd1a   :  { %18918 = vmatmul.mubr.f32.gmra.mrb[66].mxu1 %v27122_v15 }
 0xd1b   :  { %22603 = vmatpush3.bf16.msra.mxu1 %v26340_v52  ;;  %19162 = vmatprep.mubr.msk.f32.mxu1 %vm24175_vm4, %v29017_v30 }
 0xd1c   :  { %22604 = vmatprep.subr.bf16.mxu1 %v28926_v25 }
 0xd1f   :  { %22606 = vmatpush3.bf16.msra.mxu1 %v29018_v14 }
 0xd20   :  { %22607 = vmatprep.subr.bf16.mxu1 %v28926_v25 }
 0xd23   :  { %22609 = vmatpush3.bf16.msra.mxu1 %v29019_v27 }
 0xd24   :  { %22610 = vmatprep.subr.bf16.mxu1 %v28926_v25 }
 0xd27   :  { %22612 = vmatpush3.bf16.msra.mxu1 %v29020_v36 }
 0xd28   :  { %22613 = vmatprep.subr.bf16.mxu1 %v28926_v25 }
 0xd2b   :  { %22615 = vmatpush3.bf16.msra.mxu1 %v29021_v33 }
 0xd2c   :  { %22640 = vmatprep.subr.bf16.mxu1 %v28926_v25 }
 0xde1   :  { %v18910_v54 = vpop.f32.mrb[60].mxu1 }
 0xde2   :  { %v23816_v12 = vadd.f32 %v18910_v54, %v14454_v50  ;;  %v8216_v15 = vpop.f32.mrb[61].mxu1  ;;  %v29045_v54 = vld [vmem:[#allocation31_spill] sm:$0xff] }
 0xde3   :  { %v23817_v63 = vadd.f32 %v14454_v50, %v8216_v15 }
 0xde5   :  { %v18913_v53 = vpop.f32.mrb[62].mxu1 }
 0xde6   :  { %v23818_v39 = vadd.f32 %v18913_v53, %v14454_v50  ;;  %v8228_v2 = vpop.f32.mrb[63].mxu1 }
 0xde7   :  { %v23819_v7 = vadd.f32 %v14454_v50, %v8228_v2 }
 0xde9   :  { %v18916_v57 = vpop.f32.mrb[64].mxu1 }
 0xdea   :  { %v23820_v1 = vadd.f32 %v18916_v57, %v14454_v50  ;;  %v8240_v38 = vpop.f32.mrb[65].mxu1 }
 0xdeb   :  { %v23821_v51 = vadd.f32 %v14454_v50, %v8240_v38 }
 0xdec   :  { %v27322_v48 = vsel %vm1152_vm2, %v23819_v7, %v23820_v1  ;;  %v27326_v8 = vsel %vm1152_vm2, %v23820_v1, %v23819_v7 }
 0xded   :  { %v27330_v40 = vsel %vm1152_vm2, %v23818_v39, %v23821_v51  ;;  %v27334_v6 = vsel %vm1152_vm2, %v23821_v51, %v23818_v39  ;;  %v18919_v24 = vpop.f32.mrb[66].mxu1 }
 0xdee   :  { %v23822_v42 = vadd.f32 %v18919_v24, %v14454_v50  ;;  %v8252_v56 = vpop.f32.mrb[67].mxu1 }
 0xdef   :  { %v23823_v13 = vadd.f32 %v14454_v50, %v8252_v56  ;;  %v29044_v50 = vld [vmem:[#allocation30_spill] sm:$0xff] }
 0xdf0   :  { %v8262_v44 = vsel %vm1152_vm2, %v23817_v63, %v23822_v42  ;;  %v27340_v45 = vsel %vm1152_vm2, %v23822_v42, %v23817_v63 }
 0xdf1   :  { %v8923_v35 = vadd.f32 %v8920_v19, %v8262_v44  ;;  %v27344_v29 = vsel %vm1152_vm2, %v23816_v12, %v23823_v13  ;;  %v27348_v60 = vsel %vm1152_vm2, %v23823_v13, %v23816_v12  ;;  %v29042_v19 = vld [vmem:[#allocation28_spill] sm:$0xff] }
 0xdf2   :  { %v29046_v12 = vld [vmem:[#allocation32_spill] sm:$0xff] }
 0xdf3   :  { %24030 = vtanh.f32 %v8923_v35 }
 0xdfd   :  { %v27350_v55 = vpop.eup %24030 }
 0xdfe   :  { %v27353_v28 = vand.u32 4294901760, %v27350_v55 }
 0xe00   :  { %v9008_v20 = vsub.f32 %v27350_v55, %v27353_v28  ;;  %19198 = vmatmul.mubr.f32.vlgmr.msra.gmra.mrb[80].mxu0 %v27353_v28 }
 0xe01   :  { %22666 = vmatpush3.bf16.msra.mxu0 %v26320_v49  ;;  %19267 = vmatprep.mubr.msk.f32.mxu0 %vm24175_vm4, %v29017_v30 }
 0xe02   :  { %22667 = vmatprep.subr.bf16.mxu0 %v28926_v25  ;;  %v9009_v34 = vand.u32 4294901760, %v9008_v20 }
 0xe04   :  { %v9010_v16 = vsub.f32 %v9008_v20, %v9009_v34 }
 0xe05   :  { %22669 = vmatpush3.bf16.msra.mxu0 %v26327_v10 }
 0xe06   :  { %22670 = vmatprep.subr.bf16.mxu0 %v28926_v25  ;;  %v9011_v46 = vand.u32 4294901760, %v9010_v16 }
 0xe08   :  { %19163 = vmatmul.mubr.f32.vlgmr.msra.gmra.mrb[68].mxu1 %v9011_v46 }
 0xe09   :  { %22642 = vmatpush3.bf16.msra.mxu1 %v29023_v37  ;;  %22672 = vmatpush3.bf16.msra.mxu0 %v26335_v43 }
 0xe0a   :  { %22643 = vmatprep.subr.bf16.mxu1 %v28926_v25  ;;  %22673 = vmatprep.subr.bf16.mxu0 %v28926_v25 }
 0xe0b   :  { %19232 = vmatprep.mubr.msk.f32.mxu1 %vm24175_vm4, %v29017_v30 }
 0xe0d   :  { %22645 = vmatpush3.bf16.msra.mxu1 %v29024_v9  ;;  %22675 = vmatpush3.bf16.msra.mxu0 %v26340_v52 }
 0xe0e   :  { %22646 = vmatprep.subr.bf16.mxu1 %v28926_v25  ;;  %22676 = vmatprep.subr.bf16.mxu0 %v28926_v25 }
 0xe11   :  { %22648 = vmatpush3.bf16.msra.mxu1 %v29025_v47  ;;  %22678 = vmatpush3.bf16.msra.mxu0 %v29018_v14 }
 0xe12   :  { %22649 = vmatprep.subr.bf16.mxu1 %v28926_v25  ;;  %22679 = vmatprep.subr.bf16.mxu0 %v28926_v25 }
 0xe15   :  { %22651 = vmatpush3.bf16.msra.mxu1 %v29026_v11  ;;  %22681 = vmatpush3.bf16.msra.mxu0 %v29019_v27 }
 0xe16   :  { %22652 = vmatprep.subr.bf16.mxu1 %v28926_v25  ;;  %22682 = vmatprep.subr.bf16.mxu0 %v28926_v25 }
 0xe19   :  { %22654 = vmatpush3.bf16.msra.mxu1 %v29027_v23  ;;  %22684 = vmatpush3.bf16.msra.mxu0 %v29020_v36 }
 0xe1a   :  { %22655 = vmatprep.subr.bf16.mxu1 %v28926_v25  ;;  %22685 = vmatprep.subr.bf16.mxu0 %v28926_v25 }
 0xe1d   :  { %22657 = vmatpush3.bf16.msra.mxu1 %v29028_v21  ;;  %22687 = vmatpush3.bf16.msra.mxu0 %v29021_v33 }
 0xe1e   :  { %22658 = vmatprep.subr.bf16.mxu1 %v28926_v25  ;;  %22712 = vmatprep.subr.bf16.mxu0 %v28926_v25 }
 0xe20   :  { %19268 = vmatmul.mubr.f32.vlgmr.msra.gmra.mrb[82].mxu0 %v9009_v34 }
 0xe21   :  { %22660 = vmatpush3.bf16.msra.mxu1 %v29029_v61  ;;  %22714 = vmatpush3.bf16.msra.mxu0 %v26320_v49 }
 0xe22   :  { %22661 = vmatprep.subr.bf16.mxu1 %v28926_v25  ;;  %22715 = vmatprep.subr.bf16.mxu0 %v28926_v25 }
 0xe23   :  { %19337 = vmatprep.mubr.msk.f32.mxu0 %vm24175_vm4, %v29017_v30 }
 0xe25   :  { %22663 = vmatpush3.bf16.msra.mxu1 %v29030_v22  ;;  %22717 = vmatpush3.bf16.msra.mxu0 %v26327_v10 }
 0xe26   :  { %22688 = vmatprep.subr.bf16.mxu1 %v28926_v25  ;;  %22718 = vmatprep.subr.bf16.mxu0 %v28926_v25 }
 0xe28   :  { %19233 = vmatmul.mubr.f32.vlgmr.msra.gmra.mrb[70].mxu1 %v9008_v20 }
 0xe29   :  { %22690 = vmatpush3.bf16.msra.mxu1 %v29031_v4  ;;  %22720 = vmatpush3.bf16.msra.mxu0 %v26335_v43 }
 0xe2a   :  { %22691 = vmatprep.subr.bf16.mxu1 %v28926_v25  ;;  %22721 = vmatprep.subr.bf16.mxu0 %v28926_v25 }
 0xe2b   :  { %19302 = vmatprep.mubr.msk.f32.mxu1 %vm24175_vm4, %v29017_v30 }
 0xe2d   :  { %22693 = vmatpush3.bf16.msra.mxu1 %v29032_v0  ;;  %22723 = vmatpush3.bf16.msra.mxu0 %v26340_v52 }
 0xe2e   :  { %22694 = vmatprep.subr.bf16.mxu1 %v28926_v25  ;;  %22724 = vmatprep.subr.bf16.mxu0 %v28926_v25 }
 0xe31   :  { %22696 = vmatpush3.bf16.msra.mxu1 %v29033_v17  ;;  %22726 = vmatpush3.bf16.msra.mxu0 %v29018_v14 }
 0xe32   :  { %22697 = vmatprep.subr.bf16.mxu1 %v28926_v25  ;;  %22727 = vmatprep.subr.bf16.mxu0 %v28926_v25 }
 0xe35   :  { %22699 = vmatpush3.bf16.msra.mxu1 %v29034_v58  ;;  %22729 = vmatpush3.bf16.msra.mxu0 %v29019_v27 }
 0xe36   :  { %22700 = vmatprep.subr.bf16.mxu1 %v28926_v25  ;;  %22730 = vmatprep.subr.bf16.mxu0 %v28926_v25 }
 0xe39   :  { %22702 = vmatpush3.bf16.msra.mxu1 %v29035_v59  ;;  %22732 = vmatpush3.bf16.msra.mxu0 %v29020_v36 }
 0xe3a   :  { %22703 = vmatprep.subr.bf16.mxu1 %v28926_v25  ;;  %22733 = vmatprep.subr.bf16.mxu0 %v28926_v25 }
 0xe3d   :  { %22705 = vmatpush3.bf16.msra.mxu1 %v29036_v3  ;;  %22735 = vmatpush3.bf16.msra.mxu0 %v29021_v33 }
 0xe3e   :  { %22706 = vmatprep.subr.bf16.mxu1 %v28926_v25  ;;  %22760 = vmatprep.subr.bf16.mxu0 %v28926_v25 }
 0xe40   :  { %19338 = vmatmul.mubr.f32.vlgmr.msra.gmra.mrb[84].mxu0 %v27353_v28 }
 0xe41   :  { %22708 = vmatpush3.bf16.msra.mxu1 %v29037_v31  ;;  %22762 = vmatpush3.bf16.msra.mxu0 %v29038_v18 }
 0xe42   :  { %22709 = vmatprep.subr.bf16.mxu1 %v28926_v25  ;;  %22763 = vmatprep.subr.bf16.mxu0 %v28926_v25 }
 0xe43   :  { %19407 = vmatprep.mubr.msk.f32.mxu0 %vm24175_vm4, %v29017_v30 }
 0xe45   :  { %22711 = vmatpush3.bf16.msra.mxu1 %v29039_v62  ;;  %22765 = vmatpush3.bf16.msra.mxu0 %v29040_v32 }
 0xe46   :  { %22736 = vmatprep.subr.bf16.mxu1 %v28926_v25  ;;  %22766 = vmatprep.subr.bf16.mxu0 %v28926_v25 }
 0xe48   :  { %19303 = vmatmul.mubr.f32.vlgmr.msra.gmra.mrb[72].mxu1 %v27353_v28 }
 0xe49   :  { %22738 = vmatpush3.bf16.msra.mxu1 %v26320_v49  ;;  %22768 = vmatpush3.bf16.msra.mxu0 %v29041_v5 }
 0xe4a   :  { %22739 = vmatprep.subr.bf16.mxu1 %v28926_v25  ;;  %22769 = vmatprep.subr.bf16.mxu0 %v28926_v25 }
 0xe4b   :  { %19372 = vmatprep.mubr.msk.f32.mxu1 %vm24175_vm4, %v29017_v30 }
 0xe4d   :  { %22741 = vmatpush3.bf16.msra.mxu1 %v26327_v10  ;;  %22771 = vmatpush3.bf16.msra.mxu0 %v29042_v19 }
 0xe4e   :  { %22742 = vmatprep.subr.bf16.mxu1 %v28926_v25  ;;  %22772 = vmatprep.subr.bf16.mxu0 %v28926_v25 }
 0xe51   :  { %22744 = vmatpush3.bf16.msra.mxu1 %v26335_v43  ;;  %22774 = vmatpush3.bf16.msra.mxu0 %v29043_v26 }
 0xe52   :  { %22745 = vmatprep.subr.bf16.mxu1 %v28926_v25  ;;  %22775 = vmatprep.subr.bf16.mxu0 %v28926_v25 }
 0xe55   :  { %22747 = vmatpush3.bf16.msra.mxu1 %v26340_v52  ;;  %22777 = vmatpush3.bf16.msra.mxu0 %v29044_v50 }
 0xe56   :  { %22748 = vmatprep.subr.bf16.mxu1 %v28926_v25  ;;  %22778 = vmatprep.subr.bf16.mxu0 %v28926_v25 }
 0xe59   :  { %22750 = vmatpush3.bf16.msra.mxu1 %v29018_v14  ;;  %22780 = vmatpush3.bf16.msra.mxu0 %v29045_v54 }
 0xe5a   :  { %22751 = vmatprep.subr.bf16.mxu1 %v28926_v25  ;;  %22781 = vmatprep.subr.bf16.mxu0 %v28926_v25 }
 0xe5d   :  { %22753 = vmatpush3.bf16.msra.mxu1 %v29019_v27  ;;  %22783 = vmatpush3.bf16.msra.mxu0 %v29046_v12 }
 0xe5e   :  { %22754 = vmatprep.subr.bf16.mxu1 %v28926_v25  ;;  %22808 = vmatprep.subr.bf16.mxu0 %v28926_v25 }
 0xe61   :  { %22756 = vmatpush3.bf16.msra.mxu1 %v29020_v36 }
 0xe62   :  { %22757 = vmatprep.subr.bf16.mxu1 %v28926_v25 }
 0xe65   :  { %22759 = vmatpush3.bf16.msra.mxu1 %v29021_v33 }
 0xe66   :  { %22784 = vmatprep.subr.bf16.mxu1 %v28926_v25 }
 0xed3   :  { %v9164_v15 = vpop.f32.mrb[80].mxu0 }
 0xed4   :  { %v19199_v53 = vpop.f32.mrb[81].mxu0 }
 0xedb   :  { %v9013_v39 = vpop.f32.mrb[68].mxu1 }
 0xedc   :  { %v9165_v2 = vadd.f32 %v9164_v15, %v9013_v39  ;;  %v19164_v7 = vpop.f32.mrb[69].mxu1 }
 0xef3   :  { %v9357_v57 = vpop.f32.mrb[82].mxu0 }
 0xef4   :  { %v19269_v1 = vpop.f32.mrb[83].mxu0 }
 0xefb   :  { %v9268_v38 = vpop.f32.mrb[70].mxu1 }
 0xefc   :  { %v9269_v51 = vadd.f32 %v9268_v38, %v9165_v2  ;;  %v19234_v24 = vpop.f32.mrb[71].mxu1 }
 0xefe   :  { %v9358_v63 = vadd.f32 %v9357_v57, %v9269_v51 }
 0xf13   :  { %v9563_v42 = vpop.f32.mrb[84].mxu0 }
 0xf14   :  { %v19339_v56 = vpop.f32.mrb[85].mxu0 }
 0xf1b   :  { %v9476_v13 = vpop.f32.mrb[72].mxu1 }
 0xf1c   :  { %v9477_v44 = vadd.f32 %v9476_v13, %v9358_v63  ;;  %v19304_v35 = vpop.f32.mrb[73].mxu1 }
 0xf1e   :  { %v9564_v28 = vadd.f32 %v9563_v42, %v9477_v44 }
 0xf20   :  { %v9567_v20 = vadd.f32 %v9564_v28, %v27344_v29 }
 0xf22   :  { %24032 = vtanh.f32 %v9567_v20 }
 0xf2c   :  { %v27469_v34 = vpop.eup %24032 }
 0xf2d   :  { %v27472_v16 = vand.u32 4294901760, %v27469_v34 }
 0xf2f   :  { %19408 = vmatmul.mubr.f32.vlgmr.msra.gmra.mrb[86].mxu0 %v27472_v16  ;;  %v9652_v46 = vsub.f32 %v27469_v34, %v27472_v16 }
 0xf30   :  { %22810 = vmatpush3.bf16.msra.mxu0 %v26320_v49  ;;  %19477 = vmatprep.mubr.msk.f32.mxu0 %vm24175_vm4, %v29017_v30 }
 0xf31   :  { %22811 = vmatprep.subr.bf16.mxu0 %v28926_v25  ;;  %v9653_v15 = vand.u32 4294901760, %v9652_v46 }
 0xf33   :  { %v9654_v29 = vsub.f32 %v9652_v46, %v9653_v15 }
 0xf34   :  { %22813 = vmatpush3.bf16.msra.mxu0 %v26327_v10 }
 0xf35   :  { %22814 = vmatprep.subr.bf16.mxu0 %v28926_v25  ;;  %v9655_v53 = vand.u32 4294901760, %v9654_v29 }
 0xf37   :  { %19373 = vmatmul.mubr.f32.vlgmr.msra.gmra.mrb[74].mxu1 %v9655_v53 }
 0xf38   :  { %22786 = vmatpush3.bf16.msra.mxu1 %v29023_v37  ;;  %22816 = vmatpush3.bf16.msra.mxu0 %v26335_v43 }
 0xf39   :  { %22787 = vmatprep.subr.bf16.mxu1 %v28926_v25  ;;  %22817 = vmatprep.subr.bf16.mxu0 %v28926_v25 }
 0xf3a   :  { %19442 = vmatprep.mubr.msk.f32.mxu1 %vm24175_vm4, %v29017_v30 }
 0xf3c   :  { %22789 = vmatpush3.bf16.msra.mxu1 %v29024_v9  ;;  %22819 = vmatpush3.bf16.msra.mxu0 %v26340_v52 }
 0xf3d   :  { %22790 = vmatprep.subr.bf16.mxu1 %v28926_v25  ;;  %22820 = vmatprep.subr.bf16.mxu0 %v28926_v25 }
 0xf40   :  { %22792 = vmatpush3.bf16.msra.mxu1 %v29025_v47  ;;  %22822 = vmatpush3.bf16.msra.mxu0 %v29018_v14 }
 0xf41   :  { %22793 = vmatprep.subr.bf16.mxu1 %v28926_v25  ;;  %22823 = vmatprep.subr.bf16.mxu0 %v28926_v25 }
 0xf44   :  { %22795 = vmatpush3.bf16.msra.mxu1 %v29026_v11  ;;  %22825 = vmatpush3.bf16.msra.mxu0 %v29019_v27 }
 0xf45   :  { %22796 = vmatprep.subr.bf16.mxu1 %v28926_v25  ;;  %22826 = vmatprep.subr.bf16.mxu0 %v28926_v25 }
 0xf48   :  { %22798 = vmatpush3.bf16.msra.mxu1 %v29027_v23  ;;  %22828 = vmatpush3.bf16.msra.mxu0 %v29020_v36 }
 0xf49   :  { %22799 = vmatprep.subr.bf16.mxu1 %v28926_v25  ;;  %22829 = vmatprep.subr.bf16.mxu0 %v28926_v25 }
 0xf4c   :  { %22801 = vmatpush3.bf16.msra.mxu1 %v29028_v21  ;;  %22831 = vmatpush3.bf16.msra.mxu0 %v29021_v33 }
 0xf4d   :  { %22802 = vmatprep.subr.bf16.mxu1 %v28926_v25  ;;  %22856 = vmatprep.subr.bf16.mxu0 %v28926_v25 }
 0xf4f   :  { %19478 = vmatmul.mubr.f32.vlgmr.msra.gmra.mrb[88].mxu0 %v9653_v15 }
 0xf50   :  { %22804 = vmatpush3.bf16.msra.mxu1 %v29029_v61  ;;  %22858 = vmatpush3.bf16.msra.mxu0 %v26320_v49 }
 0xf51   :  { %22805 = vmatprep.subr.bf16.mxu1 %v28926_v25  ;;  %22859 = vmatprep.subr.bf16.mxu0 %v28926_v25 }
 0xf52   :  { %19547 = vmatprep.mubr.msk.f32.mxu0 %vm24175_vm4, %v29017_v30 }
 0xf54   :  { %22807 = vmatpush3.bf16.msra.mxu1 %v29030_v22  ;;  %22861 = vmatpush3.bf16.msra.mxu0 %v26327_v10 }
 0xf55   :  { %22832 = vmatprep.subr.bf16.mxu1 %v28926_v25  ;;  %22862 = vmatprep.subr.bf16.mxu0 %v28926_v25 }
 0xf57   :  { %19443 = vmatmul.mubr.f32.vlgmr.msra.gmra.mrb[76].mxu1 %v9652_v46 }
 0xf58   :  { %22834 = vmatpush3.bf16.msra.mxu1 %v29031_v4  ;;  %22864 = vmatpush3.bf16.msra.mxu0 %v26335_v43 }
 0xf59   :  { %22835 = vmatprep.subr.bf16.mxu1 %v28926_v25  ;;  %22865 = vmatprep.subr.bf16.mxu0 %v28926_v25 }
 0xf5a   :  { %19512 = vmatprep.mubr.msk.f32.mxu1 %vm24175_vm4, %v29017_v30 }
 0xf5c   :  { %22837 = vmatpush3.bf16.msra.mxu1 %v29032_v0  ;;  %22867 = vmatpush3.bf16.msra.mxu0 %v26340_v52 }
 0xf5d   :  { %22838 = vmatprep.subr.bf16.mxu1 %v28926_v25  ;;  %22868 = vmatprep.subr.bf16.mxu0 %v28926_v25 }
 0xf60   :  { %22840 = vmatpush3.bf16.msra.mxu1 %v29033_v17  ;;  %22870 = vmatpush3.bf16.msra.mxu0 %v29018_v14 }
 0xf61   :  { %22841 = vmatprep.subr.bf16.mxu1 %v28926_v25  ;;  %22871 = vmatprep.subr.bf16.mxu0 %v28926_v25 }
 0xf64   :  { %22843 = vmatpush3.bf16.msra.mxu1 %v29034_v58  ;;  %22873 = vmatpush3.bf16.msra.mxu0 %v29019_v27 }
 0xf65   :  { %22844 = vmatprep.subr.bf16.mxu1 %v28926_v25  ;;  %22874 = vmatprep.subr.bf16.mxu0 %v28926_v25 }
 0xf68   :  { %22846 = vmatpush3.bf16.msra.mxu1 %v29035_v59  ;;  %22876 = vmatpush3.bf16.msra.mxu0 %v29020_v36 }
 0xf69   :  { %22847 = vmatprep.subr.bf16.mxu1 %v28926_v25  ;;  %22877 = vmatprep.subr.bf16.mxu0 %v28926_v25 }
 0xf6c   :  { %22849 = vmatpush3.bf16.msra.mxu1 %v29036_v3  ;;  %22879 = vmatpush3.bf16.msra.mxu0 %v29021_v33 }
 0xf6d   :  { %22850 = vmatprep.subr.bf16.mxu1 %v28926_v25  ;;  %22904 = vmatprep.subr.bf16.mxu0 %v28926_v25 }
 0xf6f   :  { %19548 = vmatmul.mubr.f32.vlgmr.msra.gmra.mrb[90].mxu0 %v27472_v16 }
 0xf70   :  { %22852 = vmatpush3.bf16.msra.mxu1 %v29037_v31  ;;  %22906 = vmatpush3.bf16.msra.mxu0 %v29038_v18 }
 0xf71   :  { %22853 = vmatprep.subr.bf16.mxu1 %v28926_v25  ;;  %22907 = vmatprep.subr.bf16.mxu0 %v28926_v25 }
 0xf72   :  { %19617 = vmatprep.mubr.msk.f32.mxu0 %vm24175_vm4, %v29017_v30 }
 0xf74   :  { %22855 = vmatpush3.bf16.msra.mxu1 %v29039_v62  ;;  %22909 = vmatpush3.bf16.msra.mxu0 %v29040_v32 }
 0xf75   :  { %22880 = vmatprep.subr.bf16.mxu1 %v28926_v25  ;;  %22910 = vmatprep.subr.bf16.mxu0 %v28926_v25 }
 0xf77   :  { %19513 = vmatmul.mubr.f32.vlgmr.msra.gmra.mrb[78].mxu1 %v27472_v16 }
 0xf78   :  { %22882 = vmatpush3.bf16.msra.mxu1 %v26320_v49  ;;  %22912 = vmatpush3.bf16.msra.mxu0 %v29041_v5 }
 0xf79   :  { %22883 = vmatprep.subr.bf16.mxu1 %v28926_v25  ;;  %22913 = vmatprep.subr.bf16.mxu0 %v28926_v25 }
 0xf7a   :  { %19582 = vmatprep.mubr.msk.f32.mxu1 %vm24175_vm4, %v29017_v30 }
 0xf7c   :  { %22885 = vmatpush3.bf16.msra.mxu1 %v26327_v10  ;;  %22915 = vmatpush3.bf16.msra.mxu0 %v29042_v19 }
 0xf7d   :  { %22886 = vmatprep.subr.bf16.mxu1 %v28926_v25  ;;  %22916 = vmatprep.subr.bf16.mxu0 %v28926_v25 }
 0xf80   :  { %22888 = vmatpush3.bf16.msra.mxu1 %v26335_v43  ;;  %22918 = vmatpush3.bf16.msra.mxu0 %v29043_v26 }
 0xf81   :  { %22889 = vmatprep.subr.bf16.mxu1 %v28926_v25  ;;  %22919 = vmatprep.subr.bf16.mxu0 %v28926_v25 }
 0xf84   :  { %22891 = vmatpush3.bf16.msra.mxu1 %v26340_v52  ;;  %22921 = vmatpush3.bf16.msra.mxu0 %v29044_v50 }
 0xf85   :  { %22892 = vmatprep.subr.bf16.mxu1 %v28926_v25  ;;  %22922 = vmatprep.subr.bf16.mxu0 %v28926_v25 }
 0xf88   :  { %22894 = vmatpush3.bf16.msra.mxu1 %v29018_v14  ;;  %22924 = vmatpush3.bf16.msra.mxu0 %v29045_v54 }
 0xf89   :  { %22895 = vmatprep.subr.bf16.mxu1 %v28926_v25  ;;  %22925 = vmatprep.subr.bf16.mxu0 %v28926_v25 }
 0xf8c   :  { %22897 = vmatpush3.bf16.msra.mxu1 %v29019_v27  ;;  %22927 = vmatpush3.bf16.msra.mxu0 %v29046_v12 }
 0xf8d   :  { %22898 = vmatprep.subr.bf16.mxu1 %v28926_v25  ;;  %22952 = vmatprep.subr.bf16.mxu0 %v28926_v25 }
 0xf90   :  { %22900 = vmatpush3.bf16.msra.mxu1 %v29020_v36 }
 0xf91   :  { %22901 = vmatprep.subr.bf16.mxu1 %v28926_v25 }
 0xf94   :  { %22903 = vmatpush3.bf16.msra.mxu1 %v29021_v33 }
 0xf95   :  { %22928 = vmatprep.subr.bf16.mxu1 %v28926_v25 }
0x1002   :  { %v9808_v39 = vpop.f32.mrb[86].mxu0 }
0x1003   :  { %v19409_v2 = vpop.f32.mrb[87].mxu0 }
0x100a   :  { %v9657_v7 = vpop.f32.mrb[74].mxu1 }
0x100b   :  { %v9809_v57 = vadd.f32 %v9808_v39, %v9657_v7  ;;  %v19374_v1 = vpop.f32.mrb[75].mxu1 }
0x1022   :  { %v10001_v38 = vpop.f32.mrb[88].mxu0 }
0x1023   :  { %v19479_v51 = vpop.f32.mrb[89].mxu0 }
0x102a   :  { %v9912_v24 = vpop.f32.mrb[76].mxu1 }
0x102b   :  { %v9913_v63 = vadd.f32 %v9912_v24, %v9809_v57  ;;  %v19444_v42 = vpop.f32.mrb[77].mxu1 }
0x102d   :  { %v10002_v56 = vadd.f32 %v10001_v38, %v9913_v63 }
0x1042   :  { %v10207_v13 = vpop.f32.mrb[90].mxu0 }
0x1043   :  { %v19549_v44 = vpop.f32.mrb[91].mxu0 }
0x104a   :  { %v10120_v35 = vpop.f32.mrb[78].mxu1 }
0x104b   :  { %v10121_v28 = vadd.f32 %v10120_v35, %v10002_v56  ;;  %v19514_v20 = vpop.f32.mrb[79].mxu1 }
0x104d   :  { %v10208_v16 = vadd.f32 %v10207_v13, %v10121_v28 }
0x104f   :  { %v10211_v46 = vadd.f32 %v10208_v16, %v27322_v48 }
0x1051   :  { %24034 = vtanh.f32 %v10211_v46 }
0x105b   :  { %v27588_v15 = vpop.eup %24034 }
0x105c   :  { %v27591_v29 = vand.u32 4294901760, %v27588_v15 }
0x105e   :  { %19618 = vmatmul.mubr.f32.vlgmr.msra.gmra.mrb[92].mxu0 %v27591_v29  ;;  %v10296_v53 = vsub.f32 %v27588_v15, %v27591_v29 }
0x105f   :  { %22954 = vmatpush3.bf16.msra.mxu0 %v26320_v49  ;;  %19687 = vmatprep.mubr.msk.f32.mxu0 %vm24175_vm4, %v29017_v30 }
0x1060   :  { %22955 = vmatprep.subr.bf16.mxu0 %v28926_v25  ;;  %v10297_v39 = vand.u32 4294901760, %v10296_v53 }
0x1062   :  { %v10298_v48 = vsub.f32 %v10296_v53, %v10297_v39 }
0x1063   :  { %22957 = vmatpush3.bf16.msra.mxu0 %v26327_v10 }
0x1064   :  { %22958 = vmatprep.subr.bf16.mxu0 %v28926_v25  ;;  %v10299_v2 = vand.u32 4294901760, %v10298_v48 }
0x1066   :  { %19583 = vmatmul.mubr.f32.vlgmr.msra.gmra.mrb[80].mxu1 %v10299_v2 }
0x1067   :  { %22930 = vmatpush3.bf16.msra.mxu1 %v29023_v37  ;;  %22960 = vmatpush3.bf16.msra.mxu0 %v26335_v43 }
0x1068   :  { %22931 = vmatprep.subr.bf16.mxu1 %v28926_v25  ;;  %22961 = vmatprep.subr.bf16.mxu0 %v28926_v25 }
0x1069   :  { %19652 = vmatprep.mubr.msk.f32.mxu1 %vm24175_vm4, %v29017_v30 }
0x106b   :  { %22933 = vmatpush3.bf16.msra.mxu1 %v29024_v9  ;;  %22963 = vmatpush3.bf16.msra.mxu0 %v26340_v52 }
0x106c   :  { %22934 = vmatprep.subr.bf16.mxu1 %v28926_v25  ;;  %22964 = vmatprep.subr.bf16.mxu0 %v28926_v25 }
0x106f   :  { %22936 = vmatpush3.bf16.msra.mxu1 %v29025_v47  ;;  %22966 = vmatpush3.bf16.msra.mxu0 %v29018_v14 }
0x1070   :  { %22937 = vmatprep.subr.bf16.mxu1 %v28926_v25  ;;  %22967 = vmatprep.subr.bf16.mxu0 %v28926_v25 }
0x1073   :  { %22939 = vmatpush3.bf16.msra.mxu1 %v29026_v11  ;;  %22969 = vmatpush3.bf16.msra.mxu0 %v29019_v27 }
0x1074   :  { %22940 = vmatprep.subr.bf16.mxu1 %v28926_v25  ;;  %22970 = vmatprep.subr.bf16.mxu0 %v28926_v25 }
0x1077   :  { %22942 = vmatpush3.bf16.msra.mxu1 %v29027_v23  ;;  %22972 = vmatpush3.bf16.msra.mxu0 %v29020_v36 }
0x1078   :  { %22943 = vmatprep.subr.bf16.mxu1 %v28926_v25  ;;  %22973 = vmatprep.subr.bf16.mxu0 %v28926_v25 }
0x107b   :  { %22945 = vmatpush3.bf16.msra.mxu1 %v29028_v21  ;;  %22975 = vmatpush3.bf16.msra.mxu0 %v29021_v33 }
0x107c   :  { %22946 = vmatprep.subr.bf16.mxu1 %v28926_v25  ;;  %23000 = vmatprep.subr.bf16.mxu0 %v28926_v25 }
0x107e   :  { %19688 = vmatmul.mubr.f32.vlgmr.msra.gmra.mrb[94].mxu0 %v10297_v39 }
0x107f   :  { %22948 = vmatpush3.bf16.msra.mxu1 %v29029_v61  ;;  %23002 = vmatpush3.bf16.msra.mxu0 %v26320_v49 }
0x1080   :  { %22949 = vmatprep.subr.bf16.mxu1 %v28926_v25  ;;  %23003 = vmatprep.subr.bf16.mxu0 %v28926_v25 }
0x1081   :  { %19757 = vmatprep.mubr.msk.f32.mxu0 %vm24175_vm4, %v29017_v30 }
0x1083   :  { %22951 = vmatpush3.bf16.msra.mxu1 %v29030_v22  ;;  %23005 = vmatpush3.bf16.msra.mxu0 %v26327_v10 }
0x1084   :  { %22976 = vmatprep.subr.bf16.mxu1 %v28926_v25  ;;  %23006 = vmatprep.subr.bf16.mxu0 %v28926_v25 }
0x1086   :  { %19653 = vmatmul.mubr.f32.vlgmr.msra.gmra.mrb[82].mxu1 %v10296_v53 }
0x1087   :  { %22978 = vmatpush3.bf16.msra.mxu1 %v29031_v4  ;;  %23008 = vmatpush3.bf16.msra.mxu0 %v26335_v43 }
0x1088   :  { %22979 = vmatprep.subr.bf16.mxu1 %v28926_v25  ;;  %23009 = vmatprep.subr.bf16.mxu0 %v28926_v25 }
0x1089   :  { %19722 = vmatprep.mubr.msk.f32.mxu1 %vm24175_vm4, %v29017_v30 }
0x108b   :  { %22981 = vmatpush3.bf16.msra.mxu1 %v29032_v0  ;;  %23011 = vmatpush3.bf16.msra.mxu0 %v26340_v52 }
0x108c   :  { %22982 = vmatprep.subr.bf16.mxu1 %v28926_v25  ;;  %23012 = vmatprep.subr.bf16.mxu0 %v28926_v25 }
0x108f   :  { %22984 = vmatpush3.bf16.msra.mxu1 %v29033_v17  ;;  %23014 = vmatpush3.bf16.msra.mxu0 %v29018_v14 }
0x1090   :  { %22985 = vmatprep.subr.bf16.mxu1 %v28926_v25  ;;  %23015 = vmatprep.subr.bf16.mxu0 %v28926_v25 }
0x1093   :  { %22987 = vmatpush3.bf16.msra.mxu1 %v29034_v58  ;;  %23017 = vmatpush3.bf16.msra.mxu0 %v29019_v27 }
0x1094   :  { %22988 = vmatprep.subr.bf16.mxu1 %v28926_v25  ;;  %23018 = vmatprep.subr.bf16.mxu0 %v28926_v25 }
0x1097   :  { %22990 = vmatpush3.bf16.msra.mxu1 %v29035_v59  ;;  %23020 = vmatpush3.bf16.msra.mxu0 %v29020_v36 }
0x1098   :  { %22991 = vmatprep.subr.bf16.mxu1 %v28926_v25  ;;  %23021 = vmatprep.subr.bf16.mxu0 %v28926_v25 }
0x109b   :  { %22993 = vmatpush3.bf16.msra.mxu1 %v29036_v3  ;;  %23023 = vmatpush3.bf16.msra.mxu0 %v29021_v33 }
0x109c   :  { %22994 = vmatprep.subr.bf16.mxu1 %v28926_v25  ;;  %23048 = vmatprep.subr.bf16.mxu0 %v28926_v25 }
0x109e   :  { %19758 = vmatmul.mubr.f32.vlgmr.msra.gmra.mrb[96].mxu0 %v27591_v29 }
0x109f   :  { %22996 = vmatpush3.bf16.msra.mxu1 %v29037_v31  ;;  %23050 = vmatpush3.bf16.msra.mxu0 %v29038_v18 }
0x10a0   :  { %22997 = vmatprep.subr.bf16.mxu1 %v28926_v25  ;;  %23051 = vmatprep.subr.bf16.mxu0 %v28926_v25 }
0x10a1   :  { %19827 = vmatprep.mubr.msk.f32.mxu0 %vm24175_vm4, %v29017_v30 }
0x10a3   :  { %22999 = vmatpush3.bf16.msra.mxu1 %v29039_v62  ;;  %23053 = vmatpush3.bf16.msra.mxu0 %v29040_v32 }
0x10a4   :  { %23024 = vmatprep.subr.bf16.mxu1 %v28926_v25  ;;  %23054 = vmatprep.subr.bf16.mxu0 %v28926_v25 }
0x10a6   :  { %19723 = vmatmul.mubr.f32.vlgmr.msra.gmra.mrb[84].mxu1 %v27591_v29 }
0x10a7   :  { %23026 = vmatpush3.bf16.msra.mxu1 %v26320_v49  ;;  %23056 = vmatpush3.bf16.msra.mxu0 %v29041_v5 }
0x10a8   :  { %23027 = vmatprep.subr.bf16.mxu1 %v28926_v25  ;;  %23057 = vmatprep.subr.bf16.mxu0 %v28926_v25 }
0x10a9   :  { %19792 = vmatprep.mubr.msk.f32.mxu1 %vm24175_vm4, %v29017_v30 }
0x10ab   :  { %23029 = vmatpush3.bf16.msra.mxu1 %v26327_v10  ;;  %23059 = vmatpush3.bf16.msra.mxu0 %v29042_v19 }
0x10ac   :  { %23030 = vmatprep.subr.bf16.mxu1 %v28926_v25  ;;  %23060 = vmatprep.subr.bf16.mxu0 %v28926_v25 }
0x10af   :  { %23032 = vmatpush3.bf16.msra.mxu1 %v26335_v43  ;;  %23062 = vmatpush3.bf16.msra.mxu0 %v29043_v26 }
0x10b0   :  { %23033 = vmatprep.subr.bf16.mxu1 %v28926_v25  ;;  %23063 = vmatprep.subr.bf16.mxu0 %v28926_v25 }
0x10b3   :  { %23035 = vmatpush3.bf16.msra.mxu1 %v26340_v52  ;;  %23065 = vmatpush3.bf16.msra.mxu0 %v29044_v50 }
0x10b4   :  { %23036 = vmatprep.subr.bf16.mxu1 %v28926_v25  ;;  %23066 = vmatprep.subr.bf16.mxu0 %v28926_v25 }
0x10b7   :  { %23038 = vmatpush3.bf16.msra.mxu1 %v29018_v14  ;;  %23068 = vmatpush3.bf16.msra.mxu0 %v29045_v54 }
0x10b8   :  { %23039 = vmatprep.subr.bf16.mxu1 %v28926_v25  ;;  %23069 = vmatprep.subr.bf16.mxu0 %v28926_v25 }
0x10bb   :  { %23041 = vmatpush3.bf16.msra.mxu1 %v29019_v27  ;;  %23071 = vmatpush3.bf16.msra.mxu0 %v29046_v12 }
0x10bc   :  { %23042 = vmatprep.subr.bf16.mxu1 %v28926_v25  ;;  %23096 = vmatprep.subr.bf16.mxu0 %v28926_v25 }
0x10bf   :  { %23044 = vmatpush3.bf16.msra.mxu1 %v29020_v36 }
0x10c0   :  { %23045 = vmatprep.subr.bf16.mxu1 %v28926_v25 }
0x10c3   :  { %23047 = vmatpush3.bf16.msra.mxu1 %v29021_v33 }
0x10c4   :  { %23072 = vmatprep.subr.bf16.mxu1 %v28926_v25 }
0x1131   :  { %v10452_v7 = vpop.f32.mrb[92].mxu0 }
0x1132   :  { %v19619_v57 = vpop.f32.mrb[93].mxu0 }
0x1139   :  { %v10301_v1 = vpop.f32.mrb[80].mxu1 }
0x113a   :  { %v10453_v38 = vadd.f32 %v10452_v7, %v10301_v1  ;;  %v19584_v51 = vpop.f32.mrb[81].mxu1 }
0x1151   :  { %v10645_v24 = vpop.f32.mrb[94].mxu0 }
0x1152   :  { %v19689_v63 = vpop.f32.mrb[95].mxu0 }
0x1159   :  { %v10556_v42 = vpop.f32.mrb[82].mxu1 }
0x115a   :  { %v10557_v56 = vadd.f32 %v10556_v42, %v10453_v38  ;;  %v19654_v13 = vpop.f32.mrb[83].mxu1 }
0x115c   :  { %v10646_v44 = vadd.f32 %v10645_v24, %v10557_v56 }
0x1171   :  { %v10851_v35 = vpop.f32.mrb[96].mxu0 }
0x1172   :  { %v19759_v28 = vpop.f32.mrb[97].mxu0 }
0x1179   :  { %v10764_v20 = vpop.f32.mrb[84].mxu1 }
0x117a   :  { %v10765_v16 = vadd.f32 %v10764_v20, %v10646_v44  ;;  %v19724_v46 = vpop.f32.mrb[85].mxu1 }
0x117c   :  { %v10852_v29 = vadd.f32 %v10851_v35, %v10765_v16 }
0x117e   :  { %v10855_v53 = vadd.f32 %v10852_v29, %v27330_v40 }
0x1180   :  { %24036 = vtanh.f32 %v10855_v53 }
0x118a   :  { %v27707_v39 = vpop.eup %24036 }
0x118b   :  { %v27710_v48 = vand.u32 4294901760, %v27707_v39 }
0x118d   :  { %19828 = vmatmul.mubr.f32.vlgmr.msra.gmra.mrb[98].mxu0 %v27710_v48  ;;  %v10940_v2 = vsub.f32 %v27707_v39, %v27710_v48 }
0x118e   :  { %23098 = vmatpush3.bf16.msra.mxu0 %v26320_v49  ;;  %19897 = vmatprep.mubr.msk.f32.mxu0 %vm24175_vm4, %v29017_v30 }
0x118f   :  { %23099 = vmatprep.subr.bf16.mxu0 %v28926_v25  ;;  %v10941_v7 = vand.u32 4294901760, %v10940_v2 }
0x1191   :  { %v10942_v40 = vsub.f32 %v10940_v2, %v10941_v7 }
0x1192   :  { %23101 = vmatpush3.bf16.msra.mxu0 %v26327_v10 }
0x1193   :  { %23102 = vmatprep.subr.bf16.mxu0 %v28926_v25  ;;  %v10943_v57 = vand.u32 4294901760, %v10942_v40 }
0x1195   :  { %19793 = vmatmul.mubr.f32.vlgmr.msra.gmra.mrb[86].mxu1 %v10943_v57 }
0x1196   :  { %23074 = vmatpush3.bf16.msra.mxu1 %v29023_v37  ;;  %23104 = vmatpush3.bf16.msra.mxu0 %v26335_v43 }
0x1197   :  { %23075 = vmatprep.subr.bf16.mxu1 %v28926_v25  ;;  %23105 = vmatprep.subr.bf16.mxu0 %v28926_v25 }
0x1198   :  { %19862 = vmatprep.mubr.msk.f32.mxu1 %vm24175_vm4, %v29017_v30 }
0x119a   :  { %23077 = vmatpush3.bf16.msra.mxu1 %v29024_v9  ;;  %23107 = vmatpush3.bf16.msra.mxu0 %v26340_v52 }
0x119b   :  { %23078 = vmatprep.subr.bf16.mxu1 %v28926_v25  ;;  %23108 = vmatprep.subr.bf16.mxu0 %v28926_v25 }
0x119e   :  { %23080 = vmatpush3.bf16.msra.mxu1 %v29025_v47  ;;  %23110 = vmatpush3.bf16.msra.mxu0 %v29018_v14 }
0x119f   :  { %23081 = vmatprep.subr.bf16.mxu1 %v28926_v25  ;;  %23111 = vmatprep.subr.bf16.mxu0 %v28926_v25 }
0x11a2   :  { %23083 = vmatpush3.bf16.msra.mxu1 %v29026_v11  ;;  %23113 = vmatpush3.bf16.msra.mxu0 %v29019_v27 }
0x11a3   :  { %23084 = vmatprep.subr.bf16.mxu1 %v28926_v25  ;;  %23114 = vmatprep.subr.bf16.mxu0 %v28926_v25 }
0x11a6   :  { %23086 = vmatpush3.bf16.msra.mxu1 %v29027_v23  ;;  %23116 = vmatpush3.bf16.msra.mxu0 %v29020_v36 }
0x11a7   :  { %23087 = vmatprep.subr.bf16.mxu1 %v28926_v25  ;;  %23117 = vmatprep.subr.bf16.mxu0 %v28926_v25 }
0x11aa   :  { %23089 = vmatpush3.bf16.msra.mxu1 %v29028_v21  ;;  %23119 = vmatpush3.bf16.msra.mxu0 %v29021_v33 }
0x11ab   :  { %23090 = vmatprep.subr.bf16.mxu1 %v28926_v25  ;;  %23144 = vmatprep.subr.bf16.mxu0 %v28926_v25 }
0x11ad   :  { %19898 = vmatmul.mubr.f32.vlgmr.msra.gmra.mrb[100].mxu0 %v10941_v7 }
0x11ae   :  { %23092 = vmatpush3.bf16.msra.mxu1 %v29029_v61  ;;  %23146 = vmatpush3.bf16.msra.mxu0 %v26320_v49 }
0x11af   :  { %23093 = vmatprep.subr.bf16.mxu1 %v28926_v25  ;;  %23147 = vmatprep.subr.bf16.mxu0 %v28926_v25 }
0x11b0   :  { %19967 = vmatprep.mubr.msk.f32.mxu0 %vm24175_vm4, %v29017_v30 }
0x11b2   :  { %23095 = vmatpush3.bf16.msra.mxu1 %v29030_v22  ;;  %23149 = vmatpush3.bf16.msra.mxu0 %v26327_v10 }
0x11b3   :  { %23120 = vmatprep.subr.bf16.mxu1 %v28926_v25  ;;  %23150 = vmatprep.subr.bf16.mxu0 %v28926_v25 }
0x11b5   :  { %19863 = vmatmul.mubr.f32.vlgmr.msra.gmra.mrb[88].mxu1 %v10940_v2 }
0x11b6   :  { %23122 = vmatpush3.bf16.msra.mxu1 %v29031_v4  ;;  %23152 = vmatpush3.bf16.msra.mxu0 %v26335_v43 }
0x11b7   :  { %23123 = vmatprep.subr.bf16.mxu1 %v28926_v25  ;;  %23153 = vmatprep.subr.bf16.mxu0 %v28926_v25 }
0x11b8   :  { %19932 = vmatprep.mubr.msk.f32.mxu1 %vm24175_vm4, %v29017_v30 }
0x11ba   :  { %23125 = vmatpush3.bf16.msra.mxu1 %v29032_v0  ;;  %23155 = vmatpush3.bf16.msra.mxu0 %v26340_v52 }
0x11bb   :  { %23126 = vmatprep.subr.bf16.mxu1 %v28926_v25  ;;  %23156 = vmatprep.subr.bf16.mxu0 %v28926_v25 }
0x11be   :  { %23128 = vmatpush3.bf16.msra.mxu1 %v29033_v17  ;;  %23158 = vmatpush3.bf16.msra.mxu0 %v29018_v14 }
0x11bf   :  { %23129 = vmatprep.subr.bf16.mxu1 %v28926_v25  ;;  %23159 = vmatprep.subr.bf16.mxu0 %v28926_v25 }
0x11c2   :  { %23131 = vmatpush3.bf16.msra.mxu1 %v29034_v58  ;;  %23161 = vmatpush3.bf16.msra.mxu0 %v29019_v27 }
0x11c3   :  { %23132 = vmatprep.subr.bf16.mxu1 %v28926_v25  ;;  %23162 = vmatprep.subr.bf16.mxu0 %v28926_v25 }
0x11c6   :  { %23134 = vmatpush3.bf16.msra.mxu1 %v29035_v59  ;;  %23164 = vmatpush3.bf16.msra.mxu0 %v29020_v36 }
0x11c7   :  { %23135 = vmatprep.subr.bf16.mxu1 %v28926_v25  ;;  %23165 = vmatprep.subr.bf16.mxu0 %v28926_v25 }
0x11ca   :  { %23137 = vmatpush3.bf16.msra.mxu1 %v29036_v3  ;;  %23167 = vmatpush3.bf16.msra.mxu0 %v29021_v33 }
0x11cb   :  { %23138 = vmatprep.subr.bf16.mxu1 %v28926_v25  ;;  %23192 = vmatprep.subr.bf16.mxu0 %v28926_v25 }
0x11cd   :  { %19968 = vmatmul.mubr.f32.vlgmr.msra.gmra.mrb[102].mxu0 %v27710_v48 }
0x11ce   :  { %23140 = vmatpush3.bf16.msra.mxu1 %v29037_v31  ;;  %23194 = vmatpush3.bf16.msra.mxu0 %v29038_v18 }
0x11cf   :  { %23141 = vmatprep.subr.bf16.mxu1 %v28926_v25  ;;  %23195 = vmatprep.subr.bf16.mxu0 %v28926_v25 }
0x11d0   :  { %20037 = vmatprep.mubr.msk.f32.mxu0 %vm24175_vm4, %v29017_v30 }
0x11d2   :  { %23143 = vmatpush3.bf16.msra.mxu1 %v29039_v62  ;;  %23197 = vmatpush3.bf16.msra.mxu0 %v29040_v32 }
0x11d3   :  { %23168 = vmatprep.subr.bf16.mxu1 %v28926_v25  ;;  %23198 = vmatprep.subr.bf16.mxu0 %v28926_v25 }
0x11d5   :  { %19933 = vmatmul.mubr.f32.vlgmr.msra.gmra.mrb[90].mxu1 %v27710_v48 }
0x11d6   :  { %23170 = vmatpush3.bf16.msra.mxu1 %v26320_v49  ;;  %23200 = vmatpush3.bf16.msra.mxu0 %v29041_v5 }
0x11d7   :  { %23171 = vmatprep.subr.bf16.mxu1 %v28926_v25  ;;  %23201 = vmatprep.subr.bf16.mxu0 %v28926_v25 }
0x11d8   :  { %20002 = vmatprep.mubr.msk.f32.mxu1 %vm24175_vm4, %v29017_v30 }
0x11da   :  { %23173 = vmatpush3.bf16.msra.mxu1 %v26327_v10  ;;  %23203 = vmatpush3.bf16.msra.mxu0 %v29042_v19 }
0x11db   :  { %23174 = vmatprep.subr.bf16.mxu1 %v28926_v25  ;;  %23204 = vmatprep.subr.bf16.mxu0 %v28926_v25 }
0x11de   :  { %23176 = vmatpush3.bf16.msra.mxu1 %v26335_v43  ;;  %23206 = vmatpush3.bf16.msra.mxu0 %v29043_v26 }
0x11df   :  { %23177 = vmatprep.subr.bf16.mxu1 %v28926_v25  ;;  %23207 = vmatprep.subr.bf16.mxu0 %v28926_v25 }
0x11e2   :  { %23179 = vmatpush3.bf16.msra.mxu1 %v26340_v52  ;;  %23209 = vmatpush3.bf16.msra.mxu0 %v29044_v50 }
0x11e3   :  { %23180 = vmatprep.subr.bf16.mxu1 %v28926_v25  ;;  %23210 = vmatprep.subr.bf16.mxu0 %v28926_v25 }
0x11e6   :  { %23182 = vmatpush3.bf16.msra.mxu1 %v29018_v14  ;;  %23212 = vmatpush3.bf16.msra.mxu0 %v29045_v54 }
0x11e7   :  { %23183 = vmatprep.subr.bf16.mxu1 %v28926_v25  ;;  %23213 = vmatprep.subr.bf16.mxu0 %v28926_v25 }
0x11ea   :  { %23185 = vmatpush3.bf16.msra.mxu1 %v29019_v27  ;;  %23215 = vmatpush3.bf16.msra.mxu0 %v29046_v12 }
0x11eb   :  { %23186 = vmatprep.subr.bf16.mxu1 %v28926_v25  ;;  %23240 = vmatprep.subr.bf16.mxu0 %v28926_v25 }
0x11ee   :  { %23188 = vmatpush3.bf16.msra.mxu1 %v29020_v36 }
0x11ef   :  { %23189 = vmatprep.subr.bf16.mxu1 %v28926_v25 }
0x11f2   :  { %23191 = vmatpush3.bf16.msra.mxu1 %v29021_v33 }
0x11f3   :  { %23216 = vmatprep.subr.bf16.mxu1 %v28926_v25 }
0x1260   :  { %v11096_v1 = vpop.f32.mrb[98].mxu0 }
0x1261   :  { %v19829_v38 = vpop.f32.mrb[99].mxu0 }
0x1268   :  { %v10945_v51 = vpop.f32.mrb[86].mxu1 }
0x1269   :  { %v11097_v24 = vadd.f32 %v11096_v1, %v10945_v51  ;;  %v19794_v63 = vpop.f32.mrb[87].mxu1 }
0x1280   :  { %v11289_v42 = vpop.f32.mrb[100].mxu0 }
0x1281   :  { %v19899_v56 = vpop.f32.mrb[101].mxu0 }
0x1288   :  { %v11200_v13 = vpop.f32.mrb[88].mxu1 }
0x1289   :  { %v11201_v44 = vadd.f32 %v11200_v13, %v11097_v24  ;;  %v19864_v35 = vpop.f32.mrb[89].mxu1 }
0x128b   :  { %v11290_v28 = vadd.f32 %v11289_v42, %v11201_v44 }
0x12a0   :  { %v11495_v20 = vpop.f32.mrb[102].mxu0 }
0x12a1   :  { %v19969_v16 = vpop.f32.mrb[103].mxu0 }
0x12a8   :  { %v11408_v46 = vpop.f32.mrb[90].mxu1 }
0x12a9   :  { %v11409_v29 = vadd.f32 %v11408_v46, %v11290_v28  ;;  %v19934_v53 = vpop.f32.mrb[91].mxu1 }
0x12ab   :  { %v11496_v48 = vadd.f32 %v11495_v20, %v11409_v29 }
0x12ad   :  { %v11499_v2 = vadd.f32 %v11496_v48, %v27334_v6 }
0x12af   :  { %24038 = vtanh.f32 %v11499_v2 }
0x12b9   :  { %v27826_v7 = vpop.eup %24038 }
0x12ba   :  { %v27829_v40 = vand.u32 4294901760, %v27826_v7 }
0x12bc   :  { %20038 = vmatmul.mubr.f32.vlgmr.msra.gmra.mrb[104].mxu0 %v27829_v40  ;;  %v11584_v57 = vsub.f32 %v27826_v7, %v27829_v40 }
0x12bd   :  { %23242 = vmatpush3.bf16.msra.mxu0 %v26320_v49  ;;  %20107 = vmatprep.mubr.msk.f32.mxu0 %vm24175_vm4, %v29017_v30 }
0x12be   :  { %23243 = vmatprep.subr.bf16.mxu0 %v28926_v25  ;;  %v11585_v1 = vand.u32 4294901760, %v11584_v57 }
0x12c0   :  { %v11586_v6 = vsub.f32 %v11584_v57, %v11585_v1 }
0x12c1   :  { %23245 = vmatpush3.bf16.msra.mxu0 %v26327_v10 }
0x12c2   :  { %23246 = vmatprep.subr.bf16.mxu0 %v28926_v25  ;;  %v11587_v38 = vand.u32 4294901760, %v11586_v6 }
0x12c4   :  { %20003 = vmatmul.mubr.f32.vlgmr.msra.gmra.mrb[92].mxu1 %v11587_v38 }
0x12c5   :  { %23218 = vmatpush3.bf16.msra.mxu1 %v29023_v37  ;;  %23248 = vmatpush3.bf16.msra.mxu0 %v26335_v43 }
0x12c6   :  { %23219 = vmatprep.subr.bf16.mxu1 %v28926_v25  ;;  %23249 = vmatprep.subr.bf16.mxu0 %v28926_v25 }
0x12c7   :  { %20072 = vmatprep.mubr.msk.f32.mxu1 %vm24175_vm4, %v29017_v30 }
0x12c9   :  { %23221 = vmatpush3.bf16.msra.mxu1 %v29024_v9  ;;  %23251 = vmatpush3.bf16.msra.mxu0 %v26340_v52 }
0x12ca   :  { %23222 = vmatprep.subr.bf16.mxu1 %v28926_v25  ;;  %23252 = vmatprep.subr.bf16.mxu0 %v28926_v25 }
0x12cd   :  { %23224 = vmatpush3.bf16.msra.mxu1 %v29025_v47  ;;  %23254 = vmatpush3.bf16.msra.mxu0 %v29018_v14 }
0x12ce   :  { %23225 = vmatprep.subr.bf16.mxu1 %v28926_v25  ;;  %23255 = vmatprep.subr.bf16.mxu0 %v28926_v25 }
0x12d1   :  { %23227 = vmatpush3.bf16.msra.mxu1 %v29026_v11  ;;  %23257 = vmatpush3.bf16.msra.mxu0 %v29019_v27 }
0x12d2   :  { %23228 = vmatprep.subr.bf16.mxu1 %v28926_v25  ;;  %23258 = vmatprep.subr.bf16.mxu0 %v28926_v25 }
0x12d5   :  { %23230 = vmatpush3.bf16.msra.mxu1 %v29027_v23  ;;  %23260 = vmatpush3.bf16.msra.mxu0 %v29020_v36 }
0x12d6   :  { %23231 = vmatprep.subr.bf16.mxu1 %v28926_v25  ;;  %23261 = vmatprep.subr.bf16.mxu0 %v28926_v25 }
0x12d9   :  { %23233 = vmatpush3.bf16.msra.mxu1 %v29028_v21  ;;  %23263 = vmatpush3.bf16.msra.mxu0 %v29021_v33 }
0x12da   :  { %23234 = vmatprep.subr.bf16.mxu1 %v28926_v25  ;;  %23288 = vmatprep.subr.bf16.mxu0 %v28926_v25 }
0x12dc   :  { %20108 = vmatmul.mubr.f32.vlgmr.msra.gmra.mrb[106].mxu0 %v11585_v1 }
0x12dd   :  { %23236 = vmatpush3.bf16.msra.mxu1 %v29029_v61  ;;  %23290 = vmatpush3.bf16.msra.mxu0 %v26320_v49 }
0x12de   :  { %23237 = vmatprep.subr.bf16.mxu1 %v28926_v25  ;;  %23291 = vmatprep.subr.bf16.mxu0 %v28926_v25 }
0x12df   :  { %20177 = vmatprep.mubr.msk.f32.mxu0 %vm24175_vm4, %v29017_v30 }
0x12e1   :  { %23239 = vmatpush3.bf16.msra.mxu1 %v29030_v22  ;;  %23293 = vmatpush3.bf16.msra.mxu0 %v26327_v10 }
0x12e2   :  { %23264 = vmatprep.subr.bf16.mxu1 %v28926_v25  ;;  %23294 = vmatprep.subr.bf16.mxu0 %v28926_v25 }
0x12e4   :  { %20073 = vmatmul.mubr.f32.vlgmr.msra.gmra.mrb[94].mxu1 %v11584_v57 }
0x12e5   :  { %23266 = vmatpush3.bf16.msra.mxu1 %v29031_v4  ;;  %23296 = vmatpush3.bf16.msra.mxu0 %v26335_v43 }
0x12e6   :  { %23267 = vmatprep.subr.bf16.mxu1 %v28926_v25  ;;  %23297 = vmatprep.subr.bf16.mxu0 %v28926_v25 }
0x12e7   :  { %20142 = vmatprep.mubr.msk.f32.mxu1 %vm24175_vm4, %v29017_v30 }
0x12e9   :  { %23269 = vmatpush3.bf16.msra.mxu1 %v29032_v0  ;;  %23299 = vmatpush3.bf16.msra.mxu0 %v26340_v52 }
0x12ea   :  { %23270 = vmatprep.subr.bf16.mxu1 %v28926_v25  ;;  %23300 = vmatprep.subr.bf16.mxu0 %v28926_v25 }
0x12ed   :  { %23272 = vmatpush3.bf16.msra.mxu1 %v29033_v17  ;;  %23302 = vmatpush3.bf16.msra.mxu0 %v29018_v14 }
0x12ee   :  { %23273 = vmatprep.subr.bf16.mxu1 %v28926_v25  ;;  %23303 = vmatprep.subr.bf16.mxu0 %v28926_v25 }
0x12f1   :  { %23275 = vmatpush3.bf16.msra.mxu1 %v29034_v58  ;;  %23305 = vmatpush3.bf16.msra.mxu0 %v29019_v27 }
0x12f2   :  { %23276 = vmatprep.subr.bf16.mxu1 %v28926_v25  ;;  %23306 = vmatprep.subr.bf16.mxu0 %v28926_v25 }
0x12f5   :  { %23278 = vmatpush3.bf16.msra.mxu1 %v29035_v59  ;;  %23308 = vmatpush3.bf16.msra.mxu0 %v29020_v36 }
0x12f6   :  { %23279 = vmatprep.subr.bf16.mxu1 %v28926_v25  ;;  %23309 = vmatprep.subr.bf16.mxu0 %v28926_v25 }
0x12f9   :  { %23281 = vmatpush3.bf16.msra.mxu1 %v29036_v3  ;;  %23311 = vmatpush3.bf16.msra.mxu0 %v29021_v33 }
0x12fa   :  { %23282 = vmatprep.subr.bf16.mxu1 %v28926_v25  ;;  %23336 = vmatprep.subr.bf16.mxu0 %v28926_v25 }
0x12fc   :  { %20178 = vmatmul.mubr.f32.vlgmr.msra.gmra.mrb[108].mxu0 %v27829_v40 }
0x12fd   :  { %23284 = vmatpush3.bf16.msra.mxu1 %v29037_v31  ;;  %23338 = vmatpush3.bf16.msra.mxu0 %v29038_v18 }
0x12fe   :  { %23285 = vmatprep.subr.bf16.mxu1 %v28926_v25  ;;  %23339 = vmatprep.subr.bf16.mxu0 %v28926_v25 }
0x12ff   :  { %20247 = vmatprep.mubr.msk.f32.mxu0 %vm24175_vm4, %v29017_v30 }
0x1301   :  { %23287 = vmatpush3.bf16.msra.mxu1 %v29039_v62  ;;  %23341 = vmatpush3.bf16.msra.mxu0 %v29040_v32 }
0x1302   :  { %23312 = vmatprep.subr.bf16.mxu1 %v28926_v25  ;;  %23342 = vmatprep.subr.bf16.mxu0 %v28926_v25 }
0x1304   :  { %20143 = vmatmul.mubr.f32.vlgmr.msra.gmra.mrb[96].mxu1 %v27829_v40 }
0x1305   :  { %23314 = vmatpush3.bf16.msra.mxu1 %v26320_v49  ;;  %23344 = vmatpush3.bf16.msra.mxu0 %v29041_v5 }
0x1306   :  { %23315 = vmatprep.subr.bf16.mxu1 %v28926_v25  ;;  %23345 = vmatprep.subr.bf16.mxu0 %v28926_v25 }
0x1307   :  { %20212 = vmatprep.mubr.msk.f32.mxu1 %vm24175_vm4, %v29017_v30 }
0x1309   :  { %23317 = vmatpush3.bf16.msra.mxu1 %v26327_v10  ;;  %23347 = vmatpush3.bf16.msra.mxu0 %v29042_v19 }
0x130a   :  { %23318 = vmatprep.subr.bf16.mxu1 %v28926_v25  ;;  %23348 = vmatprep.subr.bf16.mxu0 %v28926_v25 }
0x130d   :  { %23320 = vmatpush3.bf16.msra.mxu1 %v26335_v43  ;;  %23350 = vmatpush3.bf16.msra.mxu0 %v29043_v26 }
0x130e   :  { %23321 = vmatprep.subr.bf16.mxu1 %v28926_v25  ;;  %23351 = vmatprep.subr.bf16.mxu0 %v28926_v25 }
0x1311   :  { %23323 = vmatpush3.bf16.msra.mxu1 %v26340_v52  ;;  %23353 = vmatpush3.bf16.msra.mxu0 %v29044_v50 }
0x1312   :  { %23324 = vmatprep.subr.bf16.mxu1 %v28926_v25  ;;  %23354 = vmatprep.subr.bf16.mxu0 %v28926_v25 }
0x1315   :  { %23326 = vmatpush3.bf16.msra.mxu1 %v29018_v14  ;;  %23356 = vmatpush3.bf16.msra.mxu0 %v29045_v54 }
0x1316   :  { %23327 = vmatprep.subr.bf16.mxu1 %v28926_v25  ;;  %23357 = vmatprep.subr.bf16.mxu0 %v28926_v25 }
0x1319   :  { %23329 = vmatpush3.bf16.msra.mxu1 %v29019_v27  ;;  %23359 = vmatpush3.bf16.msra.mxu0 %v29046_v12 }
0x131a   :  { %23330 = vmatprep.subr.bf16.mxu1 %v28926_v25  ;;  %23384 = vmatprep.subr.bf16.mxu0 %v28926_v25 }
0x131d   :  { %23332 = vmatpush3.bf16.msra.mxu1 %v29020_v36 }
0x131e   :  { %23333 = vmatprep.subr.bf16.mxu1 %v28926_v25 }
0x1321   :  { %23335 = vmatpush3.bf16.msra.mxu1 %v29021_v33 }
0x1322   :  { %23360 = vmatprep.subr.bf16.mxu1 %v28926_v25 }
0x138f   :  { %v11740_v51 = vpop.f32.mrb[104].mxu0 }
0x1390   :  { %v20039_v24 = vpop.f32.mrb[105].mxu0 }
0x1397   :  { %v11589_v63 = vpop.f32.mrb[92].mxu1 }
0x1398   :  { %v11741_v42 = vadd.f32 %v11740_v51, %v11589_v63  ;;  %v20004_v56 = vpop.f32.mrb[93].mxu1 }
0x13af   :  { %v11933_v13 = vpop.f32.mrb[106].mxu0 }
0x13b0   :  { %v20109_v44 = vpop.f32.mrb[107].mxu0 }
0x13b7   :  { %v11844_v35 = vpop.f32.mrb[94].mxu1 }
0x13b8   :  { %v11845_v28 = vadd.f32 %v11844_v35, %v11741_v42  ;;  %v20074_v20 = vpop.f32.mrb[95].mxu1 }
0x13ba   :  { %v11934_v16 = vadd.f32 %v11933_v13, %v11845_v28 }
0x13cf   :  { %v12139_v46 = vpop.f32.mrb[108].mxu0 }
0x13d0   :  { %v20179_v29 = vpop.f32.mrb[109].mxu0 }
0x13d7   :  { %v12052_v53 = vpop.f32.mrb[96].mxu1 }
0x13d8   :  { %v12053_v48 = vadd.f32 %v12052_v53, %v11934_v16  ;;  %v20144_v2 = vpop.f32.mrb[97].mxu1 }
0x13da   :  { %v12140_v40 = vadd.f32 %v12139_v46, %v12053_v48 }
0x13dc   :  { %v12143_v57 = vadd.f32 %v12140_v40, %v27326_v8 }
0x13de   :  { %24040 = vtanh.f32 %v12143_v57 }
0x13e8   :  { %v27945_v1 = vpop.eup %24040 }
0x13e9   :  { %v27948_v6 = vand.u32 4294901760, %v27945_v1 }
0x13eb   :  { %20248 = vmatmul.mubr.f32.vlgmr.msra.gmra.mrb[110].mxu0 %v27948_v6  ;;  %v12228_v38 = vsub.f32 %v27945_v1, %v27948_v6 }
0x13ec   :  { %23386 = vmatpush3.bf16.msra.mxu0 %v26320_v49  ;;  %20317 = vmatprep.mubr.msk.f32.mxu0 %vm24175_vm4, %v29017_v30 }
0x13ed   :  { %23387 = vmatprep.subr.bf16.mxu0 %v28926_v25  ;;  %v12229_v51 = vand.u32 4294901760, %v12228_v38 }
0x13ef   :  { %v12230_v8 = vsub.f32 %v12228_v38, %v12229_v51 }
0x13f0   :  { %23389 = vmatpush3.bf16.msra.mxu0 %v26327_v10 }
0x13f1   :  { %23390 = vmatprep.subr.bf16.mxu0 %v28926_v25  ;;  %v12231_v24 = vand.u32 4294901760, %v12230_v8 }
0x13f3   :  { %20213 = vmatmul.mubr.f32.vlgmr.msra.gmra.mrb[98].mxu1 %v12231_v24 }
0x13f4   :  { %23362 = vmatpush3.bf16.msra.mxu1 %v29023_v37  ;;  %23392 = vmatpush3.bf16.msra.mxu0 %v26335_v43 }
0x13f5   :  { %23363 = vmatprep.subr.bf16.mxu1 %v28926_v25  ;;  %23393 = vmatprep.subr.bf16.mxu0 %v28926_v25 }
0x13f6   :  { %20282 = vmatprep.mubr.msk.f32.mxu1 %vm24175_vm4, %v29017_v30 }
0x13f8   :  { %23365 = vmatpush3.bf16.msra.mxu1 %v29024_v9  ;;  %23395 = vmatpush3.bf16.msra.mxu0 %v26340_v52 }
0x13f9   :  { %23366 = vmatprep.subr.bf16.mxu1 %v28926_v25  ;;  %23396 = vmatprep.subr.bf16.mxu0 %v28926_v25 }
0x13fc   :  { %23368 = vmatpush3.bf16.msra.mxu1 %v29025_v47  ;;  %23398 = vmatpush3.bf16.msra.mxu0 %v29018_v14 }
0x13fd   :  { %23369 = vmatprep.subr.bf16.mxu1 %v28926_v25  ;;  %23399 = vmatprep.subr.bf16.mxu0 %v28926_v25 }
0x1400   :  { %23371 = vmatpush3.bf16.msra.mxu1 %v29026_v11  ;;  %23401 = vmatpush3.bf16.msra.mxu0 %v29019_v27 }
0x1401   :  { %23372 = vmatprep.subr.bf16.mxu1 %v28926_v25  ;;  %23402 = vmatprep.subr.bf16.mxu0 %v28926_v25 }
0x1404   :  { %23374 = vmatpush3.bf16.msra.mxu1 %v29027_v23  ;;  %23404 = vmatpush3.bf16.msra.mxu0 %v29020_v36 }
0x1405   :  { %23375 = vmatprep.subr.bf16.mxu1 %v28926_v25  ;;  %23405 = vmatprep.subr.bf16.mxu0 %v28926_v25 }
0x1408   :  { %23377 = vmatpush3.bf16.msra.mxu1 %v29028_v21  ;;  %23407 = vmatpush3.bf16.msra.mxu0 %v29021_v33 }
0x1409   :  { %23378 = vmatprep.subr.bf16.mxu1 %v28926_v25  ;;  %23432 = vmatprep.subr.bf16.mxu0 %v28926_v25 }
0x140b   :  { %20318 = vmatmul.mubr.f32.vlgmr.msra.gmra.mrb[112].mxu0 %v12229_v51 }
0x140c   :  { %23380 = vmatpush3.bf16.msra.mxu1 %v29029_v61  ;;  %23434 = vmatpush3.bf16.msra.mxu0 %v26320_v49 }
0x140d   :  { %23381 = vmatprep.subr.bf16.mxu1 %v28926_v25  ;;  %23435 = vmatprep.subr.bf16.mxu0 %v28926_v25 }
0x140e   :  { %20387 = vmatprep.mubr.msk.f32.mxu0 %vm24175_vm4, %v29017_v30 }
0x1410   :  { %23383 = vmatpush3.bf16.msra.mxu1 %v29030_v22  ;;  %23437 = vmatpush3.bf16.msra.mxu0 %v26327_v10 }
0x1411   :  { %23408 = vmatprep.subr.bf16.mxu1 %v28926_v25  ;;  %23438 = vmatprep.subr.bf16.mxu0 %v28926_v25 }
0x1413   :  { %20283 = vmatmul.mubr.f32.vlgmr.msra.gmra.mrb[100].mxu1 %v12228_v38  ;;  %v28171_v38 = vld [vmem:[#allocation10 + $0x68] sm:$0xff] }
0x1414   :  { %23410 = vmatpush3.bf16.msra.mxu1 %v29031_v4  ;;  %23440 = vmatpush3.bf16.msra.mxu0 %v26335_v43 }
0x1415   :  { %23411 = vmatprep.subr.bf16.mxu1 %v28926_v25  ;;  %23441 = vmatprep.subr.bf16.mxu0 %v28926_v25 }
0x1416   :  { %20352 = vmatprep.mubr.msk.f32.mxu1 %vm24175_vm4, %v29017_v30 }
0x1418   :  { %23413 = vmatpush3.bf16.msra.mxu1 %v29032_v0  ;;  %23443 = vmatpush3.bf16.msra.mxu0 %v26340_v52 }
0x1419   :  { %23414 = vmatprep.subr.bf16.mxu1 %v28926_v25  ;;  %23444 = vmatprep.subr.bf16.mxu0 %v28926_v25 }
0x141c   :  { %23416 = vmatpush3.bf16.msra.mxu1 %v29033_v17  ;;  %23446 = vmatpush3.bf16.msra.mxu0 %v29018_v14 }
0x141d   :  { %23417 = vmatprep.subr.bf16.mxu1 %v28926_v25  ;;  %23447 = vmatprep.subr.bf16.mxu0 %v28926_v25 }
0x1420   :  { %23419 = vmatpush3.bf16.msra.mxu1 %v29034_v58  ;;  %23449 = vmatpush3.bf16.msra.mxu0 %v29019_v27 }
0x1421   :  { %23420 = vmatprep.subr.bf16.mxu1 %v28926_v25  ;;  %23450 = vmatprep.subr.bf16.mxu0 %v28926_v25 }
0x1424   :  { %23422 = vmatpush3.bf16.msra.mxu1 %v29035_v59  ;;  %23452 = vmatpush3.bf16.msra.mxu0 %v29020_v36 }
0x1425   :  { %23423 = vmatprep.subr.bf16.mxu1 %v28926_v25  ;;  %23453 = vmatprep.subr.bf16.mxu0 %v28926_v25 }
0x1428   :  { %23425 = vmatpush3.bf16.msra.mxu1 %v29036_v3  ;;  %23455 = vmatpush3.bf16.msra.mxu0 %v29021_v33 }
0x1429   :  { %23426 = vmatprep.subr.bf16.mxu1 %v28926_v25  ;;  %23480 = vmatprep.subr.bf16.mxu0 %v28926_v25 }
0x142b   :  { %20388 = vmatmul.mubr.f32.vlgmr.msra.gmra.mrb[114].mxu0 %v27948_v6 }
0x142c   :  { %23428 = vmatpush3.bf16.msra.mxu1 %v29037_v31  ;;  %23482 = vmatpush3.bf16.msra.mxu0 %v29038_v18 }
0x142d   :  { %23429 = vmatprep.subr.bf16.mxu1 %v28926_v25  ;;  %23483 = vmatprep.subr.bf16.mxu0 %v28926_v25 }
0x142e   :  { %20457 = vmatprep.mubr.msk.f32.mxu0 %vm24175_vm4, %v29017_v30 }
0x1430   :  { %23431 = vmatpush3.bf16.msra.mxu1 %v29039_v62  ;;  %23485 = vmatpush3.bf16.msra.mxu0 %v29040_v32 }
0x1431   :  { %23456 = vmatprep.subr.bf16.mxu1 %v28926_v25  ;;  %23486 = vmatprep.subr.bf16.mxu0 %v28926_v25 }
0x1433   :  { %20353 = vmatmul.mubr.f32.vlgmr.msra.gmra.mrb[102].mxu1 %v27948_v6  ;;  %v28169_v6 = vld [vmem:[#allocation10 + $0x60] sm:$0xff] }
0x1434   :  { %23458 = vmatpush3.bf16.msra.mxu1 %v26320_v49  ;;  %23488 = vmatpush3.bf16.msra.mxu0 %v29041_v5 }
0x1435   :  { %23459 = vmatprep.subr.bf16.mxu1 %v28926_v25  ;;  %23489 = vmatprep.subr.bf16.mxu0 %v28926_v25 }
0x1436   :  { %20422 = vmatprep.mubr.msk.f32.mxu1 %vm24175_vm4, %v29017_v30 }
0x1438   :  { %23461 = vmatpush3.bf16.msra.mxu1 %v26327_v10  ;;  %23491 = vmatpush3.bf16.msra.mxu0 %v29042_v19 }
0x1439   :  { %23462 = vmatprep.subr.bf16.mxu1 %v28926_v25  ;;  %23492 = vmatprep.subr.bf16.mxu0 %v28926_v25 }
0x143c   :  { %23464 = vmatpush3.bf16.msra.mxu1 %v26335_v43  ;;  %23494 = vmatpush3.bf16.msra.mxu0 %v29043_v26 }
0x143d   :  { %23465 = vmatprep.subr.bf16.mxu1 %v28926_v25  ;;  %23495 = vmatprep.subr.bf16.mxu0 %v28926_v25 }
0x1440   :  { %23467 = vmatpush3.bf16.msra.mxu1 %v26340_v52  ;;  %23497 = vmatpush3.bf16.msra.mxu0 %v29044_v50 }
0x1441   :  { %23468 = vmatprep.subr.bf16.mxu1 %v28926_v25  ;;  %23498 = vmatprep.subr.bf16.mxu0 %v28926_v25 }
0x1444   :  { %23470 = vmatpush3.bf16.msra.mxu1 %v29018_v14  ;;  %23500 = vmatpush3.bf16.msra.mxu0 %v29045_v54 }
0x1445   :  { %23471 = vmatprep.subr.bf16.mxu1 %v28926_v25  ;;  %23501 = vmatprep.subr.bf16.mxu0 %v28926_v25 }
0x1448   :  { %23473 = vmatpush3.bf16.msra.mxu1 %v29019_v27  ;;  %23503 = vmatpush3.bf16.msra.mxu0 %v29046_v12 }
0x1449   :  { %23474 = vmatprep.subr.bf16.mxu1 %v28926_v25  ;;  %23528 = vmatprep.subr.bf16.mxu0 %v28926_v25 }
0x144c   :  { %23476 = vmatpush3.bf16.msra.mxu1 %v29020_v36 }
0x144d   :  { %23477 = vmatprep.subr.bf16.mxu1 %v28926_v25 }
0x1450   :  { %23479 = vmatpush3.bf16.msra.mxu1 %v29021_v33 }
0x1451   :  { %23504 = vmatprep.subr.bf16.mxu1 %v28926_v25 }
0x14be   :  { %v12384_v18 = vpop.f32.mrb[110].mxu0 }
0x14bf   :  { %v20249_v32 = vpop.f32.mrb[111].mxu0 }
0x14c0   :  { %v13504_v32 = vand.u32 4294901760, %v28171_v38 }
0x14c6   :  { %v12233_v5 = vpop.f32.mrb[98].mxu1 }
0x14c7   :  { %v12385_v19 = vadd.f32 %v12384_v18, %v12233_v5  ;;  %v20214_v26 = vpop.f32.mrb[99].mxu1  ;;  %v13501_v18 = vand.u32 4294901760, %v28169_v6  ;;  %v28187_v5 = vld [vmem:[#allocation10 + $0x70] sm:$0xff] }
0x14c9   :  { %v28197_v26 = vpack.c.bf16 %v13504_v32, %v13501_v18 }
0x14de   :  { %v12577_v50 = vpop.f32.mrb[112].mxu0 }
0x14df   :  { %v20319_v54 = vpop.f32.mrb[113].mxu0 }
0x14e6   :  { %v12488_v12 = vpop.f32.mrb[100].mxu1 }
0x14e7   :  { %v12489_v63 = vadd.f32 %v12488_v12, %v12385_v19  ;;  %v20284_v42 = vpop.f32.mrb[101].mxu1  ;;  %v28189_v19 = vld [vmem:[#allocation10 + $0x78] sm:$0xff] }
0x14e8   :  { %v13510_v54 = vand.u32 4294901760, %v28189_v19 }
0x14e9   :  { %v12578_v56 = vadd.f32 %v12577_v50, %v12489_v63  ;;  %v13507_v50 = vand.u32 4294901760, %v28187_v5 }
0x14eb   :  { %v28207_v12 = vpack.c.bf16 %v13510_v54, %v13507_v50 }
0x14fe   :  { %v12783_v13 = vpop.f32.mrb[114].mxu0 }
0x14ff   :  { %v20389_v44 = vpop.f32.mrb[115].mxu0 }
0x1506   :  { %v12696_v35 = vpop.f32.mrb[102].mxu1 }
0x1507   :  { %v12697_v28 = vadd.f32 %v12696_v35, %v12578_v56  ;;  %v20354_v20 = vpop.f32.mrb[103].mxu1 }
0x1509   :  { %v12784_v16 = vadd.f32 %v12783_v13, %v12697_v28 }
0x150b   :  { %v12787_v46 = vadd.f32 %v12784_v16, %v27348_v60 }
0x150d   :  { %24042 = vtanh.f32 %v12787_v46 }
0x1517   :  { %v28064_v29 = vpop.eup %24042 }
0x1518   :  { %v28067_v53 = vand.u32 4294901760, %v28064_v29 }
0x151a   :  { %20458 = vmatmul.mubr.f32.vlgmr.msra.gmra.mrb[116].mxu0 %v28067_v53  ;;  %v12872_v48 = vsub.f32 %v28064_v29, %v28067_v53 }
0x151b   :  { %23530 = vmatpush3.bf16.msra.mxu0 %v26320_v49  ;;  %20527 = vmatprep.mubr.msk.f32.mxu0 %vm24175_vm4, %v29017_v30 }
0x151c   :  { %23531 = vmatprep.subr.bf16.mxu0 %v28926_v25  ;;  %v12873_v2 = vand.u32 4294901760, %v12872_v48 }
0x151e   :  { %v12874_v60 = vsub.f32 %v12872_v48, %v12873_v2 }
0x151f   :  { %23533 = vmatpush3.bf16.msra.mxu0 %v26327_v10 }
0x1520   :  { %23534 = vmatprep.subr.bf16.mxu0 %v28926_v25  ;;  %v12875_v40 = vand.u32 4294901760, %v12874_v60 }
0x1522   :  { %20423 = vmatmul.mubr.f32.vlgmr.msra.gmra.mrb[104].mxu1 %v12875_v40 }
0x1523   :  { %23506 = vmatpush3.bf16.msra.mxu1 %v29023_v37  ;;  %23536 = vmatpush3.bf16.msra.mxu0 %v26335_v43 }
0x1524   :  { %23507 = vmatprep.subr.bf16.mxu1 %v28926_v25  ;;  %23537 = vmatprep.subr.bf16.mxu0 %v28926_v25 }
0x1525   :  { %20492 = vmatprep.mubr.msk.f32.mxu1 %vm24175_vm4, %v29017_v30 }
0x1527   :  { %23509 = vmatpush3.bf16.msra.mxu1 %v29024_v9  ;;  %23539 = vmatpush3.bf16.msra.mxu0 %v26340_v52  ;;  %v13446_v9 = vld [vmem:[#allocation10 + $0x28] sm:$0xff] }
0x1528   :  { %23510 = vmatprep.subr.bf16.mxu1 %v28926_v25  ;;  %23540 = vmatprep.subr.bf16.mxu0 %v28926_v25 }
0x152b   :  { %23512 = vmatpush3.bf16.msra.mxu1 %v29025_v47  ;;  %23542 = vmatpush3.bf16.msra.mxu0 %v29018_v14 }
0x152c   :  { %23513 = vmatprep.subr.bf16.mxu1 %v28926_v25  ;;  %23543 = vmatprep.subr.bf16.mxu0 %v28926_v25 }
0x152f   :  { %23515 = vmatpush3.bf16.msra.mxu1 %v29026_v11  ;;  %23545 = vmatpush3.bf16.msra.mxu0 %v29019_v27  ;;  %v13480_v11 = vand.u32 4294901760, %v13446_v9 }
0x1530   :  { %23516 = vmatprep.subr.bf16.mxu1 %v28926_v25  ;;  %23546 = vmatprep.subr.bf16.mxu0 %v28926_v25 }
0x1533   :  { %23518 = vmatpush3.bf16.msra.mxu1 %v29027_v23  ;;  %23548 = vmatpush3.bf16.msra.mxu0 %v29020_v36 }
0x1534   :  { %23519 = vmatprep.subr.bf16.mxu1 %v28926_v25  ;;  %23549 = vmatprep.subr.bf16.mxu0 %v28926_v25 }
0x1537   :  { %23521 = vmatpush3.bf16.msra.mxu1 %v29028_v21  ;;  %23551 = vmatpush3.bf16.msra.mxu0 %v29021_v33  ;;  %v13447_v21 = vld [vmem:[#allocation10 + $0x30] sm:$0xff] }
0x1538   :  { %23522 = vmatprep.subr.bf16.mxu1 %v28926_v25  ;;  %23576 = vmatprep.subr.bf16.mxu0 %v28926_v25 }
0x153a   :  { %20528 = vmatmul.mubr.f32.vlgmr.msra.gmra.mrb[118].mxu0 %v12873_v2 }
0x153b   :  { %23524 = vmatpush3.bf16.msra.mxu1 %v29029_v61  ;;  %23578 = vmatpush3.bf16.msra.mxu0 %v26320_v49  ;;  %v13441_v49 = vld [vmem:[#allocation10] sm:$0xff]  ;;  %v13448_v61 = vld [vmem:[#allocation10 + $0x38] sm:$0xff] }
0x153c   :  { %23525 = vmatprep.subr.bf16.mxu1 %v28926_v25  ;;  %23579 = vmatprep.subr.bf16.mxu0 %v28926_v25 }
0x153d   :  { %20597 = vmatprep.mubr.msk.f32.mxu0 %vm24175_vm4, %v29017_v30 }
0x153f   :  { %23527 = vmatpush3.bf16.msra.mxu1 %v29030_v22  ;;  %23581 = vmatpush3.bf16.msra.mxu0 %v26327_v10  ;;  %v13442_v10 = vld [vmem:[#allocation10 + $0x8] sm:$0xff]  ;;  %v13483_v22 = vand.u32 4294901760, %v13447_v21 }
0x1540   :  { %23552 = vmatprep.subr.bf16.mxu1 %v28926_v25  ;;  %23582 = vmatprep.subr.bf16.mxu0 %v28926_v25 }
0x1542   :  { %20493 = vmatmul.mubr.f32.vlgmr.msra.gmra.mrb[106].mxu1 %v12872_v48 }
0x1543   :  { %23554 = vmatpush3.bf16.msra.mxu1 %v29031_v4  ;;  %23584 = vmatpush3.bf16.msra.mxu0 %v26335_v43  ;;  %v13465_v43 = vand.u32 4294901760, %v13441_v49  ;;  %v13486_v4 = vand.u32 4294901760, %v13448_v61 }
0x1544   :  { %23555 = vmatprep.subr.bf16.mxu1 %v28926_v25  ;;  %23585 = vmatprep.subr.bf16.mxu0 %v28926_v25 }
0x1545   :  { %20562 = vmatprep.mubr.msk.f32.mxu1 %vm24175_vm4, %v29017_v30  ;;  %v28209_v63 = vsub.f32 %v13441_v49, %v13465_v43 }
0x1547   :  { %23557 = vmatpush3.bf16.msra.mxu1 %v29032_v0  ;;  %23587 = vmatpush3.bf16.msra.mxu0 %v26340_v52  ;;  %v13468_v52 = vand.u32 4294901760, %v13442_v10  ;;  %v28156_v0 = vpack.c.bf16 %v13486_v4, %v13483_v22  ;;  %v28843_v56 = vand.u32 4294901760, %v28209_v63 }
0x1548   :  { %23558 = vmatprep.subr.bf16.mxu1 %v28926_v25  ;;  %23588 = vmatprep.subr.bf16.mxu0 %v28926_v25 }
0x1549   :  { %v28144_v30 = vpack.c.bf16 %v13468_v52, %v13465_v43  ;;  %v28211_v42 = vsub.f32 %v13442_v10, %v13468_v52  ;;  %v13629_v44 = vsub.f32 %v28209_v63, %v28843_v56  ;;  %v28240_v10 = vsub.f32 %v13446_v9, %v13480_v11 }
0x154a   :  { %v28253_v9 = vsub.f32 %v13447_v21, %v13483_v22  ;;  %v13434_v56 = vsel %vm1152_vm2, %v27469_v34, %v28064_v29 }
0x154b   :  { %23560 = vmatpush3.bf16.msra.mxu1 %v29033_v17  ;;  %23590 = vmatpush3.bf16.msra.mxu0 %v29018_v14  ;;  %v13443_v14 = vld [vmem:[#allocation10 + $0x10] sm:$0xff]  ;;  %v28158_v17 = vld [vmem:[#allocation10 + $0x40] sm:$0xff]  ;;  %v28842_v13 = vand.u32 4294901760, %v28211_v42  ;;  %v13630_v16 = vand.u32 4294901760, %v13629_v44 }
0x154c   :  { %23561 = vmatprep.subr.bf16.mxu1 %v28926_v25  ;;  %23591 = vmatprep.subr.bf16.mxu0 %v28926_v25 }
0x154d   :  { %v13636_v35 = vsub.f32 %v28211_v42, %v28842_v13 }
0x154f   :  { %23563 = vmatpush3.bf16.msra.mxu1 %v29034_v58  ;;  %23593 = vmatpush3.bf16.msra.mxu0 %v29019_v27  ;;  %v13444_v27 = vld [vmem:[#allocation10 + $0x18] sm:$0xff]  ;;  %v28160_v58 = vld [vmem:[#allocation10 + $0x48] sm:$0xff]  ;;  %v13637_v46 = vand.u32 4294901760, %v13636_v35  ;;  %v28837_v35 = vand.u32 4294901760, %v28253_v9 }
0x1550   :  { %23564 = vmatprep.subr.bf16.mxu1 %v28926_v25  ;;  %23594 = vmatprep.subr.bf16.mxu0 %v28926_v25 }
0x1551   :  { %v28230_v2 = vpack.c.bf16 %v13637_v46, %v13630_v16 }
0x1553   :  { %23566 = vmatpush3.bf16.msra.mxu1 %v29035_v59  ;;  %23596 = vmatpush3.bf16.msra.mxu0 %v29020_v36  ;;  %v13471_v36 = vand.u32 4294901760, %v13443_v14  ;;  %v28162_v59 = vld [vmem:[#allocation10 + $0x50] sm:$0xff] }
0x1554   :  { %23567 = vmatprep.subr.bf16.mxu1 %v28926_v25  ;;  %23597 = vmatprep.subr.bf16.mxu0 %v28926_v25  ;;  %v13495_v57 = vand.u32 4294901760, %v28162_v59 }
0x1555   :  { %v28223_v28 = vsub.f32 %v13443_v14, %v13471_v36 }
0x1557   :  { %23569 = vmatpush3.bf16.msra.mxu1 %v29036_v3  ;;  %23599 = vmatpush3.bf16.msra.mxu0 %v29021_v33  ;;  %v13474_v33 = vand.u32 4294901760, %v13444_v27  ;;  %v13489_v3 = vand.u32 4294901760, %v28158_v17 }
0x1558   :  { %23570 = vmatprep.subr.bf16.mxu1 %v28926_v25 }
0x1559   :  { %v28148_v37 = vpack.c.bf16 %v13474_v33, %v13471_v36  ;;  %v28225_v20 = vsub.f32 %v13444_v27, %v13474_v33  ;;  %v28838_v27 = vand.u32 4294901760, %v28240_v10 }
0x155a   :  { %20598 = vmatmul.mubr.f32.vlgmr.msra.gmra.mrb[120].mxu0 %v28067_v53 }
0x155b   :  { %23572 = vmatpush3.bf16.msra.mxu1 %v29037_v31  ;;  %v13492_v31 = vand.u32 4294901760, %v28160_v58  ;;  %v28840_v48 = vand.u32 4294901760, %v28225_v20 }
0x155c   :  { %23573 = vmatprep.subr.bf16.mxu1 %v28926_v25  ;;  %v13445_v25 = vld [vmem:[#allocation10 + $0x20] sm:$0xff] }
0x155d   :  { %v13477_v47 = vand.u32 4294901760, %v13445_v25  ;;  %v28176_v8 = vpack.c.bf16 %v13492_v31, %v13489_v3  ;;  %v13650_v40 = vsub.f32 %v28225_v20, %v28840_v48  ;;  %v28268_v21 = vsub.f32 %v28160_v58, %v13492_v31 }
0x155e   :  { %v28284_v58 = vsub.f32 %v28162_v59, %v13495_v57 }
0x155f   :  { %23575 = vmatpush3.bf16.msra.mxu1 %v29039_v62  ;;  %v28152_v23 = vpack.c.bf16 %v13480_v11, %v13477_v47  ;;  %v28166_v62 = vld [vmem:[#allocation10 + $0x58] sm:$0xff]  ;;  %v28238_v49 = vsub.f32 %v13445_v25, %v13477_v47  ;;  %v13651_v52 = vand.u32 4294901760, %v13650_v40  ;;  %v13664_v25 = vsub.f32 %v28240_v10, %v28838_v27 }
0x1560   :  { %23601 = vmatprep.subr.bf16.mxu1 %v28144_v30  ;;  %v13498_v51 = vand.u32 4294901760, %v28166_v62  ;;  %v28255_v47 = vsub.f32 %v13448_v61, %v13486_v4  ;;  %v28265_v40 = vsub.f32 %v28158_v17, %v13489_v3 }
0x1561   :  { %v28839_v14 = vand.u32 4294901760, %v28238_v49  ;;  %v13665_v44 = vand.u32 4294901760, %v13664_v25 }
0x1562   :  { %20563 = vmatmul.mubr.f32.vlgmr.msra.gmra.mrb[108].mxu1 %v28067_v53  ;;  %v28182_v24 = vpack.c.bf16 %v13498_v51, %v13495_v57  ;;  %v28841_v53 = vand.u32 4294901760, %v28223_v28  ;;  %v28836_v16 = vand.u32 4294901760, %v28255_v47  ;;  %v28835_v4 = vand.u32 4294901760, %v28265_v40 }
0x1563   :  { %23603 = vmatpush3.bf16.msra.mxu1 %v28144_v30  ;;  %v13657_v33 = vsub.f32 %v28238_v49, %v28839_v14  ;;  %v28289_v3 = vsub.f32 %v28166_v62, %v13498_v51  ;;  %v28306_v62 = vsub.f32 %v28169_v6, %v13501_v18  ;;  %v28311_v51 = vsub.f32 %v28171_v38, %v13504_v32 }
0x1564   :  { %23605 = vmatprep.subr.bf16.mxu1 %v28148_v37  ;;  %v13643_v60 = vsub.f32 %v28223_v28, %v28841_v53  ;;  %v13678_v61 = vsub.f32 %v28255_v47, %v28836_v16  ;;  %v28323_v6 = vsub.f32 %v28187_v5, %v13507_v50  ;;  %v28328_v38 = vsub.f32 %v28189_v19, %v13510_v54 }
0x1565   :  { %v13658_v11 = vand.u32 4294901760, %v13657_v33  ;;  %v13685_v33 = vsub.f32 %v28265_v40, %v28835_v4  ;;  %29047 = vst [vmem:[#allocation16_spill] sm:$0xff] %v28289_v3  ;;  %29048 = vst [vmem:[#allocation24_spill] sm:$0xff] %v28306_v62 }
0x1566   :  { %v13644_v43 = vand.u32 4294901760, %v13643_v60  ;;  %v13671_v60 = vsub.f32 %v28253_v9, %v28837_v35  ;;  %29049 = vst [vmem:[#allocation18_spill] sm:$0xff] %v28311_v51  ;;  %29050 = vst [vmem:[#allocation17_spill] sm:$0xff] %v28323_v6 }
0x1567   :  { %23607 = vmatpush3.bf16.msra.mxu1 %v28148_v37  ;;  %v28259_v46 = vpack.c.bf16 %v13665_v44, %v13658_v11  ;;  %v13686_v25 = vand.u32 4294901760, %v13685_v33  ;;  %v28832_v44 = vand.u32 4294901760, %v28284_v58  ;;  %v28828_v33 = vand.u32 4294901760, %v28306_v62  ;;  %29051 = vst [vmem:[#allocation19_spill] sm:$0xff] %v28328_v38 }
0x1568   :  { %23609 = vmatprep.subr.bf16.mxu1 %v28152_v23  ;;  %v28245_v36 = vpack.c.bf16 %v13651_v52, %v13644_v43  ;;  %v13672_v22 = vand.u32 4294901760, %v13671_v60  ;;  %v28833_v43 = vand.u32 4294901760, %v28268_v21  ;;  %v13679_v52 = vand.u32 4294901760, %v13678_v61 }
0x1569   :  { %v28830_v60 = vand.u32 4294901760, %v28289_v3  ;;  %v13699_v59 = vsub.f32 %v28284_v58, %v28832_v44 }
0x156a   :  { %v13692_v17 = vsub.f32 %v28268_v21, %v28833_v43  ;;  %v28291_v31 = vpack.c.bf16 %v13679_v52, %v13672_v22 }
0x156b   :  { %23611 = vmatpush3.bf16.msra.mxu1 %v28152_v23  ;;  %v13706_v57 = vsub.f32 %v28289_v3, %v28830_v60  ;;  %v13700_v22 = vand.u32 4294901760, %v13699_v59  ;;  %v28831_v59 = vand.u32 4294901760, %v28323_v6  ;;  %v28347_v60 = vpack.c.bf16 %v28211_v42, %v28209_v63 }
0x156c   :  { %23613 = vmatprep.subr.bf16.mxu1 %v28156_v0  ;;  %v13693_v11 = vand.u32 4294901760, %v13692_v17  ;;  %v28829_v17 = vand.u32 4294901760, %v28311_v51 }
0x156d   :  { %v13707_v52 = vand.u32 4294901760, %v13706_v57  ;;  %v28834_v57 = vand.u32 4294901760, %v28328_v38  ;;  %v13727_v5 = vsub.f32 %v28323_v6, %v28831_v59  ;;  %v28351_v59 = vpack.c.bf16 %v28225_v20, %v28223_v28 }
0x156e   :  { %v28295_v61 = vpack.c.bf16 %v13693_v11, %v13686_v25  ;;  %v13713_v11 = vsub.f32 %v28306_v62, %v28828_v33  ;;  %v13720_v18 = vsub.f32 %v28311_v51, %v28829_v17 }
0x156f   :  { %23615 = vmatpush3.bf16.msra.mxu1 %v28156_v0  ;;  %v28315_v25 = vpack.c.bf16 %v13707_v52, %v13700_v22  ;;  %v13734_v50 = vsub.f32 %v28328_v38, %v28834_v57  ;;  %v13728_v54 = vand.u32 4294901760, %v13727_v5  ;;  %v28363_v5 = vpack.c.bf16 %v28268_v21, %v28265_v40 }
0x1570   :  { %23617 = vmatprep.subr.bf16.mxu1 %v28176_v8  ;;  %v13714_v32 = vand.u32 4294901760, %v13713_v11  ;;  %v13721_v22 = vand.u32 4294901760, %v13720_v18 }
0x1571   :  { %v13735_v52 = vand.u32 4294901760, %v13734_v50  ;;  %v28367_v50 = vpack.c.bf16 %v28289_v3, %v28284_v58 }
0x1572   :  { %v28341_v19 = vpack.c.bf16 %v13721_v22, %v13714_v32  ;;  %v28355_v32 = vpack.c.bf16 %v28240_v10, %v28238_v49  ;;  %v28359_v22 = vpack.c.bf16 %v28255_v47, %v28253_v9 }
0x1573   :  { %23619 = vmatpush3.bf16.msra.mxu1 %v28176_v8  ;;  %v28343_v17 = vpack.c.bf16 %v13735_v52, %v13728_v54 }
0x1574   :  { %23621 = vmatprep.subr.bf16.mxu1 %v28182_v24 }
0x1577   :  { %23623 = vmatpush3.bf16.msra.mxu1 %v28182_v24 }
0x1578   :  { %23625 = vmatprep.subr.bf16.mxu1 %v28197_v26 }
0x157b   :  { %23627 = vmatpush3.bf16.msra.mxu1 %v28197_v26 }
0x157c   :  { %23629 = vmatprep.subr.bf16.mxu1 %v28207_v12 }
0x157f   :  { %23631 = vmatpush3.bf16.msra.mxu1 %v28207_v12 }
0x1580   :  { %23633 = vmatprep.subr.bf16.mxu1 %v28230_v2 }
0x15ed   :  { %v13028_v33 = vpop.f32.mrb[116].mxu0 }
0x15ee   :  { %v20459_v11 = vpop.f32.mrb[117].mxu0 }
0x15f5   :  { %v12877_v18 = vpop.f32.mrb[104].mxu1 }
0x15f6   :  { %v13029_v44 = vadd.f32 %v13028_v33, %v12877_v18  ;;  %v20424_v43 = vpop.f32.mrb[105].mxu1  ;;  %v28371_v33 = vpack.c.bf16 %v28311_v51, %v28306_v62 }
0x15f7   :  { %v28375_v43 = vpack.c.bf16 %v28328_v38, %v28323_v6 }
0x160d   :  { %v13221_v54 = vpop.f32.mrb[118].mxu0 }
0x160e   :  { %v20529_v52 = vpop.f32.mrb[119].mxu0 }
0x1615   :  { %v13132_v11 = vpop.f32.mrb[106].mxu1 }
0x1616   :  { %v13133_v18 = vadd.f32 %v13132_v11, %v13029_v44  ;;  %v20494_v57 = vpop.f32.mrb[107].mxu1  ;;  %v13435_v44 = vsel %vm1152_vm2, %v27588_v15, %v27945_v1 }
0x1617   :  { %v28386_v57 = vand.u32 4294901760, %v13434_v56 }
0x1618   :  { %v13222_v4 = vadd.f32 %v13221_v54, %v13133_v18 }
0x162d   :  { %v13427_v16 = vpop.f32.mrb[120].mxu0 }
0x162e   :  { %v20599_v35 = vpop.f32.mrb[121].mxu0 }
0x162f   :  { %v28388_v35 = vand.u32 4294901760, %v13435_v44 }
0x1635   :  { %v13340_v27 = vpop.f32.mrb[108].mxu1 }
0x1636   :  { %v13341_v14 = vadd.f32 %v13340_v27, %v13222_v4  ;;  %v20564_v48 = vpop.f32.mrb[109].mxu1  ;;  %v13438_v4 = vsel %vm1152_vm2, %v27945_v1, %v27588_v15 }
0x1637   :  { %v28428_v15 = vand.u32 4294901760, %v13438_v4 }
0x1638   :  { %v13428_v53 = vadd.f32 %v13427_v16, %v13341_v14  ;;  %v28406_v16 = vsub.f32 %v13435_v44, %v28388_v35 }
0x1639   :  { %v28445_v38 = vsub.f32 %v13438_v4, %v28428_v15 }
0x163a   :  { %v13431_v13 = vadd.f32 %v13428_v53, %v27340_v45  ;;  %v13436_v45 = vsel %vm1152_vm2, %v27707_v39, %v27826_v7  ;;  %v28399_v53 = vsub.f32 %v13434_v56, %v28386_v57  ;;  %v29052_v41 = vand.u32 4294901760, %v28406_v16 }
0x163b   :  { %v28401_v48 = vand.u32 4294901760, %v13436_v45  ;;  %v13597_v62 = vand.u32 4294901760, %v28445_v38 }
0x163c   :  { %24044 = vtanh.f32 %v13431_v13  ;;  %v13437_v13 = vsel %vm1152_vm2, %v27826_v7, %v27707_v39  ;;  %v13439_v7 = vsel %vm1152_vm2, %v28064_v29, %v27469_v34  ;;  %v28846_v54 = vand.u32 4294901760, %v28399_v53 }
0x163d   :  { %v28403_v14 = vand.u32 4294901760, %v13437_v13  ;;  %v28423_v52 = vsub.f32 %v13436_v45, %v28401_v48  ;;  %v28434_v44 = vand.u32 4294901760, %v13439_v7 }
0x163e   :  { %v13558_v45 = vsub.f32 %v28399_v53, %v28846_v54 }
0x163f   :  { %v28426_v11 = vsub.f32 %v13437_v13, %v28403_v14  ;;  %v28457_v6 = vsub.f32 %v13439_v7, %v28434_v44  ;;  %v29053_v4 = vand.u32 4294901760, %v28423_v52 }
0x1640   :  { %v13559_v13 = vand.u32 4294901760, %v13558_v45 }
0x1641   :  { %v13578_v51 = vsub.f32 %v28423_v52, %v29053_v4  ;;  %v13607_v7 = vand.u32 4294901760, %v28457_v6 }
0x1646   :  { %v24045_v27 = vpop.eup %24044 }
0x1647   :  { %v13433_v39 = vsel %vm1152_vm2, %v27350_v55, %v24045_v27  ;;  %v13440_v34 = vsel %vm1152_vm2, %v24045_v27, %v27350_v55  ;;  %v13568_v55 = vsub.f32 %v28406_v16, %v29052_v41  ;;  %v13587_v27 = vand.u32 4294901760, %v28426_v11 }
0x1648   :  { %v28419_v56 = vand.u32 4294901760, %v13433_v39 }
0x1649   :  { %v13588_v41 = vsub.f32 %v28426_v11, %v13587_v27 }
0x164a   :  { %v28431_v1 = vsub.f32 %v13433_v39, %v28419_v56  ;;  %v28447_v39 = vand.u32 4294901760, %v13440_v34 }
0x164b   :  { %v13589_v45 = vand.u32 4294901760, %v13588_v41 }
0x164c   :  { %v28850_v29 = vand.u32 4294901760, %v28431_v1  ;;  %v28464_v3 = vsub.f32 %v13440_v34, %v28447_v39  ;;  %v13598_v34 = vsub.f32 %v28445_v38, %v13597_v62 }
0x164e   :  { %v13548_v18 = vsub.f32 %v28431_v1, %v28850_v29  ;;  %v13569_v29 = vand.u32 4294901760, %v13568_v55  ;;  %v13608_v55 = vsub.f32 %v28457_v6, %v13607_v7 }
0x1650   :  { %v13549_v54 = vand.u32 4294901760, %v13548_v18  ;;  %v13579_v18 = vand.u32 4294901760, %v13578_v51 }
0x1652   :  { %20632 = vmatprep.mubr.f32.mxu1 %v13549_v54  ;;  %v13617_v54 = vand.u32 4294901760, %v28464_v3 }
0x1653   :  { %20633 = vmatmul.mubr.f32.vlgmr.msra.gmra.mrb[110].mxu1 %v13559_v13 }
0x1654   :  { %23635 = vmatpush3.bf16.msra.mxu1 %v28230_v2  ;;  %20635 = vmatprep.mubr.f32.mxu1 %v13569_v29  ;;  %v13599_v2 = vand.u32 4294901760, %v13598_v34  ;;  %v13618_v51 = vsub.f32 %v28464_v3, %v13617_v54  ;;  %v13609_v29 = vand.u32 4294901760, %v13608_v55 }
0x1655   :  { %23637 = vmatprep.subr.bf16.mxu1 %v28245_v36 }
0x1656   :  { %v13619_v13 = vand.u32 4294901760, %v13618_v51 }
0x1657   :  { %20636 = vmatmul.mubr.f32.gmra.mrb[112].mxu1 %v13579_v18 }
0x1658   :  { %23639 = vmatpush3.bf16.msra.mxu1 %v28245_v36  ;;  %20638 = vmatprep.mubr.f32.mxu1 %v13589_v45  ;;  %v29054_v36 = vand.u32 4294901760, %v28431_v1 }
0x1659   :  { %23641 = vmatprep.subr.bf16.mxu1 %v28259_v46 }
0x165b   :  { %20639 = vmatmul.mubr.f32.gmra.mrb[114].mxu1 %v13599_v2 }
0x165c   :  { %23643 = vmatpush3.bf16.msra.mxu1 %v28259_v46  ;;  %20641 = vmatprep.mubr.f32.mxu1 %v13609_v29  ;;  %v29055_v46 = vand.u32 4294901760, %v28209_v63  ;;  %v29061_v63 = vand.u32 4294901760, %v28238_v49  ;;  %v29066_v49 = vand.u32 4294901760, %v28265_v40  ;;  %v29073_v40 = vld [vmem:[#allocation18_spill] sm:$0xff] }
0x165d   :  { %23645 = vmatprep.subr.bf16.mxu1 %v28291_v31 }
0x165f   :  { %20642 = vmatmul.mubr.f32.gmra.mrb[116].mxu1 %v13619_v13 }
0x1660   :  { %23647 = vmatpush3.bf16.msra.mxu1 %v28291_v31  ;;  %20676 = vmatprep.mubr.f32.mxu1 %v28419_v56  ;;  %v29056_v31 = vand.u32 4294901760, %v28211_v42  ;;  %v29062_v42 = vand.u32 4294901760, %v28240_v10  ;;  %v29067_v10 = vand.u32 4294901760, %v28268_v21 }
0x1661   :  { %23649 = vmatprep.subr.bf16.mxu1 %v28295_v61 }
0x1664   :  { %23651 = vmatpush3.bf16.msra.mxu1 %v28295_v61  ;;  %v29057_v61 = vand.u32 4294901760, %v28223_v28  ;;  %v29064_v28 = vand.u32 4294901760, %v28253_v9  ;;  %v29068_v9 = vand.u32 4294901760, %v28284_v58 }
0x1665   :  { %23653 = vmatprep.subr.bf16.mxu1 %v28315_v25 }
0x1668   :  { %23655 = vmatpush3.bf16.msra.mxu1 %v28315_v25 }
0x1669   :  { %23657 = vmatprep.subr.bf16.mxu1 %v28341_v19 }
0x166c   :  { %23659 = vmatpush3.bf16.msra.mxu1 %v28341_v19  ;;  %v29060_v19 = vand.u32 4294901760, %v28406_v16 }
0x166d   :  { %23661 = vmatprep.subr.bf16.mxu1 %v28343_v17 }
0x1670   :  { %23663 = vmatpush3.bf16.msra.mxu1 %v28343_v17  ;;  %v29058_v17 = vand.u32 4294901760, %v28225_v20  ;;  %v29065_v20 = vand.u32 4294901760, %v28255_v47  ;;  %v29069_v47 = vld [vmem:[#allocation16_spill] sm:$0xff] }
0x1671   :  { %23665 = vmatprep.subr.bf16.mxu1 %v28347_v60 }
0x1672   :  { %v23732_v25 = vpack.c.bf16 %v29058_v17, %v29057_v61 }
0x1673   :  { %20677 = vmatmul.mubr.f32.vlgmr.msra.gmra.mrb[110].mxu1 %v28386_v57 }
0x1674   :  { %20679 = vmatprep.mubr.f32.mxu1 %v28388_v35  ;;  %23667 = vmatpush3.bf16.msra.mxu1 %v28347_v60  ;;  %v23728_v60 = vpack.c.bf16 %v29056_v31, %v29055_v46 }
0x1675   :  { %23669 = vmatprep.subr.bf16.mxu1 %v28351_v59 }
0x1677   :  { %20680 = vmatmul.mubr.f32.gmra.mrb[112].mxu1 %v28401_v48 }
0x1678   :  { %20682 = vmatprep.mubr.f32.mxu1 %v28403_v14  ;;  %23671 = vmatpush3.bf16.msra.mxu1 %v28351_v59  ;;  %v29059_v59 = vand.u32 4294901760, %v28399_v53 }
0x1679   :  { %23673 = vmatprep.subr.bf16.mxu1 %v28355_v32 }
0x167b   :  { %20683 = vmatmul.mubr.f32.gmra.mrb[114].mxu1 %v28428_v15 }
0x167c   :  { %20685 = vmatprep.mubr.f32.mxu1 %v28434_v44  ;;  %23675 = vmatpush3.bf16.msra.mxu1 %v28355_v32  ;;  %v23736_v32 = vpack.c.bf16 %v29062_v42, %v29061_v63 }
0x167d   :  { %23677 = vmatprep.subr.bf16.mxu1 %v28359_v22 }
0x167f   :  { %20686 = vmatmul.mubr.f32.gmra.mrb[116].mxu1 %v28447_v39 }
0x1680   :  { %23679 = vmatpush3.bf16.msra.mxu1 %v28359_v22  ;;  %20720 = vmatprep.mubr.f32.mxu1 %v28431_v1  ;;  %v29063_v22 = vmov %v29053_v4 }
0x1681   :  { %23681 = vmatprep.subr.bf16.mxu1 %v28363_v5 }
0x1684   :  { %23683 = vmatpush3.bf16.msra.mxu1 %v28363_v5  ;;  %v23740_v5 = vpack.c.bf16 %v29065_v20, %v29064_v28 }
0x1685   :  { %23685 = vmatprep.subr.bf16.mxu1 %v28367_v50 }
0x1688   :  { %23687 = vmatpush3.bf16.msra.mxu1 %v28367_v50  ;;  %v23744_v50 = vpack.c.bf16 %v29067_v10, %v29066_v49 }
0x1689   :  { %23689 = vmatprep.subr.bf16.mxu1 %v28371_v33 }
0x168c   :  { %23691 = vmatpush3.bf16.msra.mxu1 %v28371_v33 }
0x168d   :  { %23693 = vmatprep.subr.bf16.mxu1 %v28375_v43 }
0x1690   :  { %23695 = vmatpush3.bf16.msra.mxu1 %v28375_v43  ;;  %v29074_v43 = vand.u32 4294901760, %v29073_v40 }
0x1691   :  { %23697 = vmatprep.subr.bf16.mxu1 %v28144_v30 }
0x1693   :  { %20721 = vmatmul.mubr.f32.vlgmr.msra.gmra.mrb[110].mxu1 %v28399_v53 }
0x1694   :  { %20723 = vmatprep.mubr.f32.mxu1 %v28406_v16  ;;  %23699 = vmatpush3.bf16.msra.mxu1 %v28144_v30  ;;  %v29077_v16 = vld [vmem:[#allocation19_spill] sm:$0xff] }
0x1695   :  { %23701 = vmatprep.subr.bf16.mxu1 %v28148_v37 }
0x1697   :  { %20724 = vmatmul.mubr.f32.gmra.mrb[112].mxu1 %v28423_v52  ;;  %v29078_v52 = vand.u32 4294901760, %v29077_v16 }
0x1698   :  { %20726 = vmatprep.mubr.f32.mxu1 %v28426_v11  ;;  %23703 = vmatpush3.bf16.msra.mxu1 %v28148_v37 }
0x1699   :  { %23705 = vmatprep.subr.bf16.mxu1 %v28152_v23 }
0x169b   :  { %20727 = vmatmul.mubr.f32.gmra.mrb[114].mxu1 %v28445_v38  ;;  %v29071_v38 = vld [vmem:[#allocation24_spill] sm:$0xff] }
0x169c   :  { %20729 = vmatprep.mubr.f32.mxu1 %v28457_v6  ;;  %23707 = vmatpush3.bf16.msra.mxu1 %v28152_v23  ;;  %v29072_v33 = vand.u32 4294901760, %v29071_v38 }
0x169d   :  { %23709 = vmatprep.subr.bf16.mxu1 %v28156_v0 }
0x169e   :  { %v23752_v21 = vpack.c.bf16 %v29074_v43, %v29072_v33 }
0x169f   :  { %20730 = vmatmul.mubr.f32.gmra.mrb[116].mxu1 %v28464_v3  ;;  %v29075_v3 = vld [vmem:[#allocation17_spill] sm:$0xff] }
0x16a0   :  { %23711 = vmatpush3.bf16.msra.mxu1 %v28156_v0  ;;  %20764 = vmatprep.mubr.f32.mxu1 %v29054_v36  ;;  %v29076_v53 = vand.u32 4294901760, %v29075_v3 }
0x16a1   :  { %23713 = vmatprep.subr.bf16.mxu1 %v28176_v8 }
0x16a2   :  { %v23756_v11 = vpack.c.bf16 %v29078_v52, %v29076_v53 }
0x16a4   :  { %23715 = vmatpush3.bf16.msra.mxu1 %v28176_v8 }
0x16a5   :  { %23717 = vmatprep.subr.bf16.mxu1 %v28182_v24 }
0x16a8   :  { %23719 = vmatpush3.bf16.msra.mxu1 %v28182_v24 }
0x16a9   :  { %23721 = vmatprep.subr.bf16.mxu1 %v28197_v26 }
0x16ac   :  { %23723 = vmatpush3.bf16.msra.mxu1 %v28197_v26 }
0x16ad   :  { %23725 = vmatprep.subr.bf16.mxu1 %v28207_v12 }
0x16b0   :  { %23727 = vmatpush3.bf16.msra.mxu1 %v28207_v12 }
0x16b1   :  { %23729 = vmatprep.subr.bf16.mxu1 %v23728_v60 }
0x16b3   :  { %20765 = vmatmul.mubr.f32.vlgmr.msra.gmra.mrb[110].mxu1 %v29059_v59 }
0x16b4   :  { %20767 = vmatprep.mubr.f32.mxu1 %v29060_v19  ;;  %23731 = vmatpush3.bf16.msra.mxu1 %v23728_v60 }
0x16b5   :  { %23733 = vmatprep.subr.bf16.mxu1 %v23732_v25 }
0x16b7   :  { %20768 = vmatmul.mubr.f32.gmra.mrb[112].mxu1 %v29063_v22 }
0x16b8   :  { %20770 = vmatprep.mubr.f32.mxu1 %v13587_v27  ;;  %23735 = vmatpush3.bf16.msra.mxu1 %v23732_v25 }
0x16b9   :  { %23737 = vmatprep.subr.bf16.mxu1 %v23736_v32 }
0x16bb   :  { %20771 = vmatmul.mubr.f32.gmra.mrb[114].mxu1 %v13597_v62  ;;  %v29070_v62 = vand.u32 4294901760, %v29069_v47 }
0x16bc   :  { %20773 = vmatprep.mubr.f32.mxu1 %v13607_v7  ;;  %23739 = vmatpush3.bf16.msra.mxu1 %v23736_v32 }
0x16bd   :  { %23741 = vmatprep.subr.bf16.mxu1 %v23740_v5  ;;  %v23748_v6 = vpack.c.bf16 %v29070_v62, %v29068_v9 }
0x16bf   :  { %20774 = vmatmul.mubr.f32.gmra.mrb[116].mxu1 %v13617_v54 }
0x16c0   :  { %23743 = vmatpush3.bf16.msra.mxu1 %v23740_v5  ;;  %20808 = vmatprep.mubr.f32.mxu1 %v28419_v56 }
0x16c1   :  { %23745 = vmatprep.subr.bf16.mxu1 %v23744_v50 }
0x16c4   :  { %23747 = vmatpush3.bf16.msra.mxu1 %v23744_v50 }
0x16c5   :  { %23749 = vmatprep.subr.bf16.mxu1 %v23748_v6 }
0x16c8   :  { %23751 = vmatpush3.bf16.msra.mxu1 %v23748_v6 }
0x16c9   :  { %23753 = vmatprep.subr.bf16.mxu1 %v23752_v21 }
0x16cc   :  { %23755 = vmatpush3.bf16.msra.mxu1 %v23752_v21 }
0x16cd   :  { %23757 = vmatprep.subr.bf16.mxu1 %v23756_v11 }
0x16d0   :  { %23759 = vmatpush3.bf16.msra.mxu1 %v23756_v11 }
0x16d1   :  { %23761 = vmatprep.subr.bf16.mxu1 %v28144_v30 }
0x16d3   :  { %20809 = vmatmul.mubr.f32.vlgmr.msra.gmra.mrb[110].mxu1 %v28386_v57 }
0x16d4   :  { %20811 = vmatprep.mubr.f32.mxu1 %v28388_v35  ;;  %23763 = vmatpush3.bf16.msra.mxu1 %v28144_v30  ;;  %v14455_v30 = vld [vmem:[%s28659_s9] ss:$0 sm:$0xff] }
0x16d5   :  { %23765 = vmatprep.subr.bf16.mxu1 %v28148_v37 }
0x16d7   :  { %20812 = vmatmul.mubr.f32.gmra.mrb[112].mxu1 %v28401_v48 }
0x16d8   :  { %20814 = vmatprep.mubr.f32.mxu1 %v28403_v14  ;;  %23767 = vmatpush3.bf16.msra.mxu1 %v28148_v37 }
0x16d9   :  { %23769 = vmatprep.subr.bf16.mxu1 %v28152_v23 }
0x16db   :  { %20815 = vmatmul.mubr.f32.gmra.mrb[114].mxu1 %v28428_v15 }
0x16dc   :  { %20817 = vmatprep.mubr.f32.mxu1 %v28434_v44  ;;  %23771 = vmatpush3.bf16.msra.mxu1 %v28152_v23 }
0x16dd   :  { %23773 = vmatprep.subr.bf16.mxu1 %v28156_v0 }
0x16df   :  { %20818 = vmatmul.mubr.f32.gmra.mrb[116].mxu1 %v28447_v39 }
0x16e0   :  { %23775 = vmatpush3.bf16.msra.mxu1 %v28156_v0  ;;  %20852 = vmatprep.mubr.f32.mxu1 %v28419_v56 }
0x16e1   :  { %23777 = vmatprep.subr.bf16.mxu1 %v28176_v8 }
0x16e4   :  { %23779 = vmatpush3.bf16.msra.mxu1 %v28176_v8 }
0x16e5   :  { %23781 = vmatprep.subr.bf16.mxu1 %v28182_v24 }
0x16e8   :  { %23783 = vmatpush3.bf16.msra.mxu1 %v28182_v24 }
0x16e9   :  { %23785 = vmatprep.subr.bf16.mxu1 %v28197_v26 }
0x16ec   :  { %23787 = vmatpush3.bf16.msra.mxu1 %v28197_v26 }
0x16ed   :  { %23789 = vmatprep.subr.bf16.mxu1 %v28207_v12 }
0x16f0   :  { %23791 = vmatpush3.bf16.msra.mxu1 %v28207_v12 }
0x16f3   :  { %20853 = vmatmul.mubr.f32.vlgmr.msra.gmra.mrb[110].mxu1 %v28386_v57 }
0x16f4   :  { %20855 = vmatprep.mubr.f32.mxu1 %v28388_v35 }
0x16f7   :  { %20856 = vmatmul.mubr.f32.gmra.mrb[112].mxu1 %v28401_v48 }
0x16f8   :  { %20858 = vmatprep.mubr.f32.mxu1 %v28403_v14 }
0x16fb   :  { %20859 = vmatmul.mubr.f32.gmra.mrb[114].mxu1 %v28428_v15 }
0x16fc   :  { %20861 = vmatprep.mubr.f32.mxu1 %v28434_v44 }
0x16ff   :  { %20862 = vmatmul.mubr.f32.gmra.mrb[116].mxu1 %v28447_v39 }
0x17c6   :  { %v20854_v37 = vpop.f32.mrb[110].mxu1 }
0x17c7   :  { %v23824_v23 = vadd.f32 %v20854_v37, %v14455_v30  ;;  %v14360_v0 = vpop.f32.mrb[111].mxu1 }
0x17c8   :  { %v23825_v8 = vadd.f32 %v14455_v30, %v14360_v0 }
0x17c9   :  { %14407 = vst [vmem:[%s28660_s10 + $0x8] sm:$0xff] %v23824_v23 }
0x17ca   :  { %14406 = vst [vmem:[%s28660_s10] sm:$0xff] %v23825_v8  ;;  %v20857_v24 = vpop.f32.mrb[112].mxu1 }
0x17cb   :  { %v23826_v26 = vadd.f32 %v20857_v24, %v14455_v30  ;;  %v14372_v12 = vpop.f32.mrb[113].mxu1 }
0x17cc   :  { %v23827_v58 = vadd.f32 %v14455_v30, %v14372_v12 }
0x17cd   :  { %14409 = vst [vmem:[%s28660_s10 + $0x18] sm:$0xff] %v23826_v26 }
0x17ce   :  { %14408 = vst [vmem:[%s28660_s10 + $0x10] sm:$0xff] %v23827_v58  ;;  %v20860_v57 = vpop.f32.mrb[114].mxu1 }
0x17cf   :  { %v23828_v35 = vadd.f32 %v20860_v57, %v14455_v30  ;;  %v14384_v48 = vpop.f32.mrb[115].mxu1 }
0x17d0   :  { %v23829_v14 = vadd.f32 %v14455_v30, %v14384_v48 }
0x17d1   :  { %14411 = vst [vmem:[%s28660_s10 + $0x28] sm:$0xff] %v23828_v35 }
0x17d2   :  { %14410 = vst [vmem:[%s28660_s10 + $0x20] sm:$0xff] %v23829_v14  ;;  %v20863_v56 = vpop.f32.mrb[116].mxu1 }
0x17d3   :  { %v23830_v15 = vadd.f32 %v20863_v56, %v14455_v30  ;;  %v14396_v1 = vpop.f32.mrb[117].mxu1 }
0x17d4   :  { %v23831_v44 = vadd.f32 %v14455_v30, %v14396_v1 }
0x17d5   :  { %14413 = vst [vmem:[%s28660_s10 + $0x38] sm:$0xff] %v23830_v15 }
0x17d6   :  { %14412 = vst [vmem:[%s28660_s10 + $0x30] sm:$0xff] %v23831_v44 }
0x17d7   :  { %14418 = vsyncpa [#allocation4], 1 }
0x17d8   :  { %14419 = vsyncpa [#allocation6], 1 }
0x17d9   :  { %14420 = vsyncpa [#allocation9], 1 }

</bundles_post_ra>
